<compile_context>
chip_gen: v5e
topology: v5e:2x2
jax: 0.10.0
libtpu: 0.0.40
codegen_flags: <defaults>
</compile_context>

<pallas_src>
import jax
import jax.numpy as jnp
from jax.experimental import pallas as pl
from jax.experimental.pallas import tpu as pltpu

EPS = 1e-5

IN = 3
H1, H2, H3 = 1024, 512, 4096   # padded 1000 / 500 / 4000
OUT, OUT_PAD = 12, 128


def _round_up(n, m):
    return ((n + m - 1) // m) * m


# --------------------------------------------------------------------------- kernel
def _mlp_kernel(x_ref,
                w1_ref, b1_ref,
                w2_ref, b2_ref,
                w3_ref, b3_ref,
                w4_ref, b4_ref,
                o_ref):
    x = x_ref[...]                                           # (TB, 3) f32

    # Layer 1: contraction dim is only 3 -> three VPU broadcast-FMAs, keep MXU free.
    h = (x[:, 0:1] * w1_ref[0:1, :]
         + x[:, 1:2] * w1_ref[1:2, :]
         + x[:, 2:3] * w1_ref[2:3, :]
         + b1_ref[...])
    h = jnp.maximum(h, 0.0)                                  # (TB, H1) f32

    # Layers 2/3: MXU matmul (bf16 weights, f32 accumulation) + folded bias + ReLU.
    h = jnp.dot(h.astype(w2_ref.dtype), w2_ref[...],
                preferred_element_type=jnp.float32) + b2_ref[...]
    h = jnp.maximum(h, 0.0)                                  # (TB, H2)

    h = jnp.dot(h.astype(w3_ref.dtype), w3_ref[...],
                preferred_element_type=jnp.float32) + b3_ref[...]
    h = jnp.maximum(h, 0.0)                                  # (TB, H3)

    # Layer 4: lane-padded (12 -> 128) output -> unmasked lane-dense store.
    o_ref[...] = jnp.dot(h.astype(w4_ref.dtype), w4_ref[...],
                         preferred_element_type=jnp.float32) + b4_ref[...]


# -------------------------------------------------------------------------- wrapper
def semg_to_angles_forward(x, prepared, *, tile_b=512):
    """x: (B, 3) float32.  prepared: output of prepare_params()."""
    w1, b1, w2, b2, w3, b3, w4, b4 = prepared
    batch = x.shape[0]

    tb = min(tile_b, _round_up(batch, 8))
    padded_b = _round_up(batch, tb)
    if padded_b != batch:
        x = jnp.pad(x, ((0, padded_b - batch), (0, 0)))
    grid = (padded_b // tb,)

    param_bytes = sum(int(p.size) * p.dtype.itemsize for p in prepared)
    cost = pl.CostEstimate(
        flops=2 * padded_b * (IN * H1 + H1 * H2 + H2 * H3 + H3 * OUT_PAD),
        transcendentals=0,
        bytes_accessed=param_bytes + padded_b * (IN + OUT_PAD) * 4,
    )

    const = lambda i: (0, 0)   # weights: same block every step -> stay VMEM-resident
    fn = pl.pallas_call(
        _mlp_kernel,
        out_shape=jax.ShapeDtypeStruct((padded_b, OUT_PAD), jnp.float32),
        grid_spec=pltpu.PrefetchScalarGridSpec(
            num_scalar_prefetch=0,
            grid=grid,
            in_specs=[
                pl.BlockSpec((tb, IN), lambda i: (i, 0)),
                pl.BlockSpec((IN, H1), const),
                pl.BlockSpec((1, H1), const),
                pl.BlockSpec((H1, H2), const),
                pl.BlockSpec((1, H2), const),
                pl.BlockSpec((H2, H3), const),
                pl.BlockSpec((1, H3), const),
                pl.BlockSpec((H3, OUT_PAD), const),
                pl.BlockSpec((1, OUT_PAD), const),
            ],
            out_specs=pl.BlockSpec((tb, OUT_PAD), lambda i: (i, 0)),
        ),
        compiler_params=pltpu.CompilerParams(
            dimension_semantics=("parallel",),
            vmem_limit_bytes=40 << 20,   # safe on v7x's 64 MiB physical VMEM
        ),
        cost_estimate=cost,
    )
    out = fn(x, w1, b1, w2, b2, w3, b3, w4, b4)
    return out[:batch, :OUT]


# --------------------------------------------------------------- parameter handling
def _linear_init(key, fan_in, fan_out):
    # Matches torch.nn.Linear default: U(-1/sqrt(fan_in), 1/sqrt(fan_in))
    kw, kb = jax.random.split(key)
    bound = 1.0 / jnp.sqrt(jnp.float32(fan_in))
    w = jax.random.uniform(kw, (fan_in, fan_out), jnp.float32, -bound, bound)
    b = jax.random.uniform(kb, (1, fan_out), jnp.float32, -bound, bound)
    return w, b


def _bn_init(features):
    # Fresh nn.BatchNorm1d: gamma=1, beta=0, running_mean=0, running_var=1
    g = jnp.ones((1, features), jnp.float32)
    be = jnp.zeros((1, features), jnp.float32)
    m = jnp.zeros((1, features), jnp.float32)
    v = jnp.ones((1, features), jnp.float32)
    return g, be, m, v


def init_params(key):
    k1, k2, k3, k4 = jax.random.split(key, 4)
    w1, b1 = _linear_init(k1, 3, 1000)
    w2, b2 = _linear_init(k2, 1000, 500)
    w3, b3 = _linear_init(k3, 500, 4000)
    w4, b4 = _linear_init(k4, 4000, 12)
    g1, be1, m1, v1 = _bn_init(1000)
    g2, be2, m2, v2 = _bn_init(500)
    g3, be3, m3, v3 = _bn_init(4000)
    return (w1, b1, g1, be1, m1, v1,
            w2, b2, g2, be2, m2, v2,
            w3, b3, g3, be3, m3, v3,
            w4, b4)


def prepare_params(params, weight_dtype=jnp.bfloat16):
    """Fold eval-mode BatchNorm into the Linears, pad to lane-friendly dims, cast."""
    (w1, b1, g1, be1, m1, v1,
     w2, b2, g2, be2, m2, v2,
     w3, b3, g3, be3, m3, v3,
     w4, b4) = params

    def fold(w, b, g, be, m, v):
        s = g * jax.lax.rsqrt(v + EPS)            # (1, out)
        return w * s, (b - m) * s + be

    def pad2(a, rows, cols):
        return jnp.pad(a, ((0, rows - a.shape[0]), (0, cols - a.shape[1])))

    w1f, b1f = fold(w1, b1, g1, be1, m1, v1)
    w2f, b2f = fold(w2, b2, g2, be2, m2, v2)
    w3f, b3f = fold(w3, b3, g3, be3, m3, v3)

    w1p = pad2(w1f, IN, H1)                       # stays f32 (VPU FMA path)
    b1p = pad2(b1f, 1, H1)
    w2p = pad2(w2f, H1, H2).astype(weight_dtype)
    b2p = pad2(b2f, 1, H2)
    w3p = pad2(w3f, H2, H3).astype(weight_dtype)
    b3p = pad2(b3f, 1, H3)
    w4p = pad2(w4, H3, OUT_PAD).astype(weight_dtype)
    b4p = pad2(b4, 1, OUT_PAD)
    return (w1p, b1p, w2p, b2p, w3p, b3p, w4p, b4p)


# ----------------------------------------------------------------------- references
def _reference_forward(x, params):
    """Full-precision eval-mode forward of the PyTorch module (raw params)."""
    (w1, b1, g1, be1, m1, v1,
     w2, b2, g2, be2, m2, v2,
     w3, b3, g3, be3, m3, v3,
     w4, b4) = params

    def layer(h, w, b, g, be, m, v):
        z = h @ w + b
        z = (z - m) * (g / jnp.sqrt(v + EPS)) + be
        return jnp.maximum(z, 0.0)

    h = layer(x, w1, b1, g1, be1, m1, v1)
    h = layer(h, w2, b2, g2, be2, m2, v2)
    h = layer(h, w3, b3, g3, be3, m3, v3)
    return h @ w4 + b4


def _reference_prepared(x, prepared):
    """Plain-JAX mirror of the kernel math using the same prepared params."""
    w1, b1, w2, b2, w3, b3, w4, b4 = prepared
    h = jnp.maximum(x[:, 0:1] * w1[0:1, :] + x[:, 1:2] * w1[1:2, :]
                    + x[:, 2:3] * w1[2:3, :] + b1, 0.0)
    h = jnp.maximum(jnp.dot(h.astype(w2.dtype), w2,
                            preferred_element_type=jnp.float32) + b2, 0.0)
    h = jnp.maximum(jnp.dot(h.astype(w3.dtype), w3,
                            preferred_element_type=jnp.float32) + b3, 0.0)
    out = jnp.dot(h.astype(w4.dtype), w4, preferred_element_type=jnp.float32) + b4
    return out[:, :OUT]


if __name__ == "__main__":
    key = jax.random.PRNGKey(0)
    kx, kp = jax.random.split(key)

    batch = 16
    x = jax.random.normal(kx, (batch, 3), jnp.float32)
    params = init_params(kp)
    prepared = prepare_params(params)             # bf16 heavy weights (default)

    out = jax.block_until_ready(semg_to_angles_forward(x, prepared))
    assert out.shape == (batch, OUT), out.shape

    # Kernel-exactness check: same prepared (folded/padded/bf16) params in plain JAX.
    ref_p = _reference_prepared(x, prepared)
    err_p = float(jnp.max(jnp.abs(out - ref_p)))
    assert jnp.allclose(out, ref_p, atol=2e-3, rtol=2e-3), err_p

    # Semantics check vs the full-precision eval-mode module forward
    # (tolerance sized for the bf16 weight quantization).
    ref = _reference_forward(x, params)
    err = float(jnp.max(jnp.abs(out - ref)))
    assert jnp.allclose(out, ref, atol=2e-2, rtol=2e-2), err

    print("KERNEL_OK")
</pallas_src>

<mosaic_0001>
module attributes {stable_mosaic.version = 11 : i64} {
  func.func @_mlp_kernel(%arg0: i32, %arg1: memref<16x3xf32, #tpu.memory_space<vmem>>, %arg2: memref<3x1024xf32, #tpu.memory_space<vmem>>, %arg3: memref<1x1024xf32, #tpu.memory_space<vmem>>, %arg4: memref<1024x512xbf16, #tpu.memory_space<vmem>>, %arg5: memref<1x512xf32, #tpu.memory_space<vmem>>, %arg6: memref<512x4096xbf16, #tpu.memory_space<vmem>>, %arg7: memref<1x4096xf32, #tpu.memory_space<vmem>>, %arg8: memref<4096x128xbf16, #tpu.memory_space<vmem>>, %arg9: memref<1x128xf32, #tpu.memory_space<vmem>>, %arg10: memref<16x128xf32, #tpu.memory_space<vmem>>) attributes {dimension_semantics = [#tpu.dimension_semantics<parallel>], iteration_bounds = array<i64: 1>, scalar_prefetch = 0 : i64, scratch_operands = 0 : i64, tpu.core_type = #tpu.core_type<tc>, window_params = [{transform_indices = @transform_0, window_bounds = array<i64: 16, 3>}, {pipeline_mode = #tpu.pipeline_mode<synchronous>, transform_indices = @transform_1, window_bounds = array<i64: 3, 1024>}, {pipeline_mode = #tpu.pipeline_mode<synchronous>, transform_indices = @transform_2, window_bounds = array<i64: 1, 1024>}, {pipeline_mode = #tpu.pipeline_mode<synchronous>, transform_indices = @transform_3, window_bounds = array<i64: 1024, 512>}, {pipeline_mode = #tpu.pipeline_mode<synchronous>, transform_indices = @transform_4, window_bounds = array<i64: 1, 512>}, {pipeline_mode = #tpu.pipeline_mode<synchronous>, transform_indices = @transform_5, window_bounds = array<i64: 512, 4096>}, {pipeline_mode = #tpu.pipeline_mode<synchronous>, transform_indices = @transform_6, window_bounds = array<i64: 1, 4096>}, {pipeline_mode = #tpu.pipeline_mode<synchronous>, transform_indices = @transform_7, window_bounds = array<i64: 4096, 128>}, {pipeline_mode = #tpu.pipeline_mode<synchronous>, transform_indices = @transform_8, window_bounds = array<i64: 1, 128>}, {transform_indices = @transform_9, window_bounds = array<i64: 16, 128>}]} {
    %c0 = arith.constant 0 : index
    %c0_0 = arith.constant 0 : index
    %0 = vector.load %arg1[%c0, %c0_0] : memref<16x3xf32, #tpu.memory_space<vmem>>, vector<16x3xf32>
    %1 = vector.extract_strided_slice %0 {offsets = [0, 0], sizes = [16, 1], strides = [1, 1]} : vector<16x3xf32> to vector<16x1xf32>
    %c0_1 = arith.constant 0 : index
    %c0_2 = arith.constant 0 : index
    %2 = vector.load %arg2[%c0_1, %c0_2] : memref<3x1024xf32, #tpu.memory_space<vmem>>, vector<1x1024xf32>
    %3 = vector.broadcast %1 : vector<16x1xf32> to vector<16x1024xf32>
    %4 = vector.broadcast %2 : vector<1x1024xf32> to vector<16x1024xf32>
    %5 = arith.mulf %3, %4 : vector<16x1024xf32>
    %6 = vector.extract_strided_slice %0 {offsets = [0, 1], sizes = [16, 1], strides = [1, 1]} : vector<16x3xf32> to vector<16x1xf32>
    %c1 = arith.constant 1 : index
    %c0_3 = arith.constant 0 : index
    %7 = vector.load %arg2[%c1, %c0_3] : memref<3x1024xf32, #tpu.memory_space<vmem>>, vector<1x1024xf32>
    %8 = vector.broadcast %6 : vector<16x1xf32> to vector<16x1024xf32>
    %9 = vector.broadcast %7 : vector<1x1024xf32> to vector<16x1024xf32>
    %10 = arith.mulf %8, %9 : vector<16x1024xf32>
    %11 = arith.addf %5, %10 : vector<16x1024xf32>
    %12 = vector.extract_strided_slice %0 {offsets = [0, 2], sizes = [16, 1], strides = [1, 1]} : vector<16x3xf32> to vector<16x1xf32>
    %c2 = arith.constant 2 : index
    %c0_4 = arith.constant 0 : index
    %13 = vector.load %arg2[%c2, %c0_4] : memref<3x1024xf32, #tpu.memory_space<vmem>>, vector<1x1024xf32>
    %14 = vector.broadcast %12 : vector<16x1xf32> to vector<16x1024xf32>
    %15 = vector.broadcast %13 : vector<1x1024xf32> to vector<16x1024xf32>
    %16 = arith.mulf %14, %15 : vector<16x1024xf32>
    %17 = arith.addf %11, %16 : vector<16x1024xf32>
    %c0_5 = arith.constant 0 : index
    %c0_6 = arith.constant 0 : index
    %18 = vector.load %arg3[%c0_5, %c0_6] : memref<1x1024xf32, #tpu.memory_space<vmem>>, vector<1x1024xf32>
    %19 = vector.broadcast %18 : vector<1x1024xf32> to vector<16x1024xf32>
    %20 = arith.addf %17, %19 : vector<16x1024xf32>
    %cst = arith.constant 0.000000e+00 : f32
    %21 = vector.broadcast %cst : f32 to vector<16x1024xf32>
    %22 = arith.maximumf %20, %21 : vector<16x1024xf32>
    %23 = arith.truncf %22 : vector<16x1024xf32> to vector<16x1024xbf16>
    %c0_7 = arith.constant 0 : index
    %c0_8 = arith.constant 0 : index
    %24 = vector.load %arg4[%c0_7, %c0_8] : memref<1024x512xbf16, #tpu.memory_space<vmem>>, vector<1024x512xbf16>
    %cst_9 = arith.constant dense<0.000000e+00> : vector<16x512xf32>
    %25 = tpu.matmul %23, %24, %cst_9 {dimension_numbers = #tpu.dot_dimension_numbers<[1], [0], [0], [1], [0, 0, 1, 1], [], []>} : vector<16x1024xbf16>, vector<1024x512xbf16>, vector<16x512xf32> -> vector<16x512xf32>
    %c0_10 = arith.constant 0 : index
    %c0_11 = arith.constant 0 : index
    %26 = vector.load %arg5[%c0_10, %c0_11] : memref<1x512xf32, #tpu.memory_space<vmem>>, vector<1x512xf32>
    %27 = vector.broadcast %26 : vector<1x512xf32> to vector<16x512xf32>
    %28 = arith.addf %25, %27 : vector<16x512xf32>
    %cst_12 = arith.constant 0.000000e+00 : f32
    %29 = vector.broadcast %cst_12 : f32 to vector<16x512xf32>
    %30 = arith.maximumf %28, %29 : vector<16x512xf32>
    %31 = arith.truncf %30 : vector<16x512xf32> to vector<16x512xbf16>
    %c0_13 = arith.constant 0 : index
    %c0_14 = arith.constant 0 : index
    %32 = vector.load %arg6[%c0_13, %c0_14] : memref<512x4096xbf16, #tpu.memory_space<vmem>>, vector<512x4096xbf16>
    %cst_15 = arith.constant dense<0.000000e+00> : vector<16x4096xf32>
    %33 = tpu.matmul %31, %32, %cst_15 {dimension_numbers = #tpu.dot_dimension_numbers<[1], [0], [0], [1], [0, 0, 1, 1], [], []>} : vector<16x512xbf16>, vector<512x4096xbf16>, vector<16x4096xf32> -> vector<16x4096xf32>
    %c0_16 = arith.constant 0 : index
    %c0_17 = arith.constant 0 : index
    %34 = vector.load %arg7[%c0_16, %c0_17] : memref<1x4096xf32, #tpu.memory_space<vmem>>, vector<1x4096xf32>
    %35 = vector.broadcast %34 : vector<1x4096xf32> to vector<16x4096xf32>
    %36 = arith.addf %33, %35 : vector<16x4096xf32>
    %cst_18 = arith.constant 0.000000e+00 : f32
    %37 = vector.broadcast %cst_18 : f32 to vector<16x4096xf32>
    %38 = arith.maximumf %36, %37 : vector<16x4096xf32>
    %39 = arith.truncf %38 : vector<16x4096xf32> to vector<16x4096xbf16>
    %c0_19 = arith.constant 0 : index
    %c0_20 = arith.constant 0 : index
    %40 = vector.load %arg8[%c0_19, %c0_20] : memref<4096x128xbf16, #tpu.memory_space<vmem>>, vector<4096x128xbf16>
    %cst_21 = arith.constant dense<0.000000e+00> : vector<16x128xf32>
    %41 = tpu.matmul %39, %40, %cst_21 {dimension_numbers = #tpu.dot_dimension_numbers<[1], [0], [0], [1], [0, 0, 1, 1], [], []>} : vector<16x4096xbf16>, vector<4096x128xbf16>, vector<16x128xf32> -> vector<16x128xf32>
    %c0_22 = arith.constant 0 : index
    %c0_23 = arith.constant 0 : index
    %42 = vector.load %arg9[%c0_22, %c0_23] : memref<1x128xf32, #tpu.memory_space<vmem>>, vector<1x128xf32>
    %43 = vector.broadcast %42 : vector<1x128xf32> to vector<16x128xf32>
    %44 = arith.addf %41, %43 : vector<16x128xf32>
    %c0_24 = arith.constant 0 : index
    %c0_25 = arith.constant 0 : index
    %45 = vector.load %arg10[%c0_24, %c0_25] : memref<16x128xf32, #tpu.memory_space<vmem>>, vector<16x128xf32>
    tpu.vector_store %arg10[%c0_24, %c0_25], %44 {strides = array<i32>} : memref<16x128xf32, #tpu.memory_space<vmem>>, vector<16x128xf32>,
    return
  }
  func.func @transform_0(%arg0: i32) -> (i32, i32) {
    %c0_i32 = arith.constant 0 : i32
    %c0_i32_0 = arith.constant 0 : i32
    return %arg0, %c0_i32 : i32, i32
  }
  func.func @transform_1(%arg0: i32) -> (i32, i32) {
    %c0_i32 = arith.constant 0 : i32
    %c0_i32_0 = arith.constant 0 : i32
    %c0_i32_1 = arith.constant 0 : i32
    return %c0_i32, %c0_i32_0 : i32, i32
  }
  func.func @transform_2(%arg0: i32) -> (i32, i32) {
    %c0_i32 = arith.constant 0 : i32
    %c0_i32_0 = arith.constant 0 : i32
    %c0_i32_1 = arith.constant 0 : i32
    return %c0_i32, %c0_i32_0 : i32, i32
  }
  func.func @transform_3(%arg0: i32) -> (i32, i32) {
    %c0_i32 = arith.constant 0 : i32
    %c0_i32_0 = arith.constant 0 : i32
    %c0_i32_1 = arith.constant 0 : i32
    return %c0_i32, %c0_i32_0 : i32, i32
  }
  func.func @transform_4(%arg0: i32) -> (i32, i32) {
    %c0_i32 = arith.constant 0 : i32
    %c0_i32_0 = arith.constant 0 : i32
    %c0_i32_1 = arith.constant 0 : i32
    return %c0_i32, %c0_i32_0 : i32, i32
  }
  func.func @transform_5(%arg0: i32) -> (i32, i32) {
    %c0_i32 = arith.constant 0 : i32
    %c0_i32_0 = arith.constant 0 : i32
    %c0_i32_1 = arith.constant 0 : i32
    return %c0_i32, %c0_i32_0 : i32, i32
  }
  func.func @transform_6(%arg0: i32) -> (i32, i32) {
    %c0_i32 = arith.constant 0 : i32
    %c0_i32_0 = arith.constant 0 : i32
    %c0_i32_1 = arith.constant 0 : i32
    return %c0_i32, %c0_i32_0 : i32, i32
  }
  func.func @transform_7(%arg0: i32) -> (i32, i32) {
    %c0_i32 = arith.constant 0 : i32
    %c0_i32_0 = arith.constant 0 : i32
    %c0_i32_1 = arith.constant 0 : i32
    return %c0_i32, %c0_i32_0 : i32, i32
  }
  func.func @transform_8(%arg0: i32) -> (i32, i32) {
    %c0_i32 = arith.constant 0 : i32
    %c0_i32_0 = arith.constant 0 : i32
    %c0_i32_1 = arith.constant 0 : i32
    return %c0_i32, %c0_i32_0 : i32, i32
  }
  func.func @transform_9(%arg0: i32) -> (i32, i32) {
    %c0_i32 = arith.constant 0 : i32
    %c0_i32_0 = arith.constant 0 : i32
    return %arg0, %c0_i32 : i32, i32
  }
}

</mosaic_0001>

<bundles_post_ra>
// kernel: tpu_custom_call.1
= control target key start
LH: loop header
LB: loop body
LE: loop exit
PB: predicated region body
PF: predicated region fallthrough
CT: control target
= control target key end

     0   :  { %14 = vsyncpa [#allocation3], 0  ;;  %s22321_s0 = inlined_call_operand.vmem [shape: f32[16,3], index: 0, kind: input, shape index: {}]   ;;  %s22322_s1 = inlined_call_operand.hbm [shape: f32[3,1024], index: 1, kind: input, shape index: {}]   ;;  %s22323_s2 = inlined_call_operand.hbm [shape: f32[1,1024], index: 2, kind: input, shape index: {}]   ;;  %s22324_s3 = inlined_call_operand.hbm [shape: bf16[1024,512], index: 3, kind: input, shape index: {}]   ;;  %s22325_s4 = inlined_call_operand.hbm [shape: f32[1,512], index: 4, kind: input, shape index: {}]   ;;  %s22326_s5 = inlined_call_operand.hbm [shape: bf16[512,4096], index: 5, kind: input, shape index: {}]   ;;  %s22327_s6 = inlined_call_operand.hbm [shape: f32[1,4096], index: 6, kind: input, shape index: {}]   ;;  %s22328_s7 = inlined_call_operand.hbm [shape: bf16[4096,128], index: 7, kind: input, shape index: {}]   ;;  %s22329_s8 = inlined_call_operand.hbm [shape: f32[1,128], index: 8, kind: input, shape index: {}]   ;;  %s22330_s9 = inlined_call_operand.hbm [shape: f32[16,128], index: 9, kind: output, shape index: {}]  }
   0x1   :  { %15 = vsyncpa [#allocation6], 0 }
   0x2   :  { %16 = vsyncpa [#allocation9], 0 }
   0x3   :  { %17 = vsyncpa [#allocation12], 0 }
   0x4   :  { %18 = vsyncpa [#allocation15], 0  ;;  %s38_s11 = sshll.u32 %s22323_s2, 4  ;;  %s39_s11 = int_to_ptr.hbm [resolvable:$true] %s38_s11 }
   0x5   :  { %19 = vsyncpa [#allocation4], 0  ;;  %s20942_s12 = smov [#allocation5]   ;;  %s62_s16 = sshll.u32 %s22325_s4, 4  ;;  %s63_s16 = int_to_ptr.hbm [resolvable:$true] %s62_s16 }
   0x6   :  { %s40_s13 = sshll.u32 %s20942_s12, 4  ;;  %s20943_s17 = smov [#allocation8]   ;;  %s41_s13 = int_to_ptr.vmem [resolvable:$true] %s40_s13 }
   0x7   :  { %43 = dma.hbm_to_vmem [thread:$0]  %s39_s11, 128, %s41_s13, [#allocation6]  }
   0x8   :  { %s64_s18 = sshll.u32 %s20943_s17, 4  ;;  %s86_s21 = sshll.u32 %s22327_s6, 4  ;;  %s65_s18 = int_to_ptr.vmem [resolvable:$true] %s64_s18  ;;  %s87_s21 = int_to_ptr.hbm [resolvable:$true] %s86_s21 }
   0x9   :  { %67 = dma.hbm_to_vmem [thread:$0]  %s63_s16, 64, %s65_s18, [#allocation9]  }
   0xa   :  { %s27_s23 = sshll.u32 %s22322_s1, 4  ;;  %s20944_s24 = smov [#allocation11]   ;;  %s28_s23 = int_to_ptr.hbm [resolvable:$true] %s27_s23 }
   0xb   :  { %s88_s25 = sshll.u32 %s20944_s24, 4  ;;  %s20945_s4 = smov [#allocation2]   ;;  %s89_s25 = int_to_ptr.vmem [resolvable:$true] %s88_s25 }
   0xc   :  { %91 = dma.hbm_to_vmem [thread:$0]  %s87_s21, 512, %s89_s25, [#allocation12]  }
   0xd   :  { %s29_s26 = sshll.u32 %s20945_s4, 4  ;;  %s48_s29 = sshll.u32 %s22324_s3, 4  ;;  %s30_s26 = int_to_ptr.vmem [resolvable:$true] %s29_s26  ;;  %s49_s29 = int_to_ptr.hbm [resolvable:$true] %s48_s29 }
   0xe   :  { %32 = dma.hbm_to_vmem [thread:$0]  %s28_s23, 512, %s30_s26, [#allocation3]  }
   0xf   :  { %s20946_s6 = smov [#allocation7]   ;;  %s72_s1 = sshll.u32 %s22326_s5, 4  ;;  %s73_s1 = int_to_ptr.hbm [resolvable:$true] %s72_s1 }
  0x10   :  { %s50_s30 = sshll.u32 %s20946_s6, 4  ;;  %s20947_s12 = smov 256   ;;  %s51_s30 = int_to_ptr.vmem [resolvable:$true] %s50_s30 }
  0x11   :  { %s20948_s13 = smov 16   ;;  %s20949_s14 = smov [#allocation10]  }
  0x12   :  { %56 = dma.hbm_to_vmem [thread:$0]  %s49_s29, 32768, %s51_s30, [#allocation6], %s20947_s12, %s20947_s12, %s20948_s13  }
  0x13   :  { %s74_s15 = sshll.u32 %s20949_s14, 4  ;;  %s20950_s16 = smov 2048   ;;  %s75_s15 = int_to_ptr.vmem [resolvable:$true] %s74_s15 }
  0x14   :  { %s20951_s17 = smov 128   ;;  %s96_s19 = sshll.u32 %s22328_s7, 4  ;;  %s97_s19 = int_to_ptr.hbm [resolvable:$true] %s96_s19 }
  0x15   :  { %80 = dma.hbm_to_vmem [thread:$0]  %s73_s1, 131072, %s75_s15, [#allocation9], %s20950_s16, %s20950_s16, %s20951_s17  }
  0x16   :  { %s20952_s20 = smov [#allocation13]   ;;  %s110_s22 = sshll.u32 %s22329_s8, 4  ;;  %s111_s22 = int_to_ptr.hbm [resolvable:$true] %s110_s22 }
  0x17   :  { %s98_s21 = sshll.u32 %s20952_s20, 4  ;;  %s20953_s23 = smov 64   ;;  %s99_s21 = int_to_ptr.vmem [resolvable:$true] %s98_s21 }
  0x18   :  { %s20954_s24 = smov 4   ;;  %s20955_s25 = smov [#allocation14]  }
  0x19   :  { %104 = dma.hbm_to_vmem [thread:$0]  %s97_s19, 32768, %s99_s21, [#allocation12], %s20953_s23, %s20953_s23, %s20954_s24  }
  0x1a   :  { %s112_s4 = sshll.u32 %s20955_s25, 4  ;;  %s113_s4 = int_to_ptr.vmem [resolvable:$true] %s112_s4 }
  0x1b   :  { %115 = dma.hbm_to_vmem [thread:$0]  %s111_s22, 16, %s113_s4, [#allocation15]  }
  0x1c   :  { %20930 = dma.done.wait [#allocation3], 512  }
  0x1d   :  { %20931 = vsyncadd [#allocation3], 4294966784 }
  0x1e   :  { %20932 = dma.done.wait [#allocation6], 32896  }
  0x1f   :  { %20933 = vsyncadd [#allocation6], 4294934400 }
  0x20   :  { %20934 = dma.done.wait [#allocation9], 131136  }
  0x21   :  { %20935 = vsyncadd [#allocation9], 4294836160 }
  0x22   :  { %20936 = dma.done.wait [#allocation12], 33280  }
  0x23   :  { %20937 = vsyncadd [#allocation12], 4294934016 }
  0x24   :  { %20938 = dma.done.wait [#allocation15], 16  }
  0x25   :  { %20939 = vsyncadd [#allocation15], 4294967280  ;;  %v20956_v0 = vmov 1   ;;  %v20957_v1 = vmov 0   ;;  %v20958_v2 = vmov 2   ;;  %v148_v3 = vld [vmem:[%s22321_s0] sm:$0xff] }
  0x26   :  { %20705 = vset.pattern.permute.xlu1 %v20956_v0  ;;  %20704 = vset.pattern.permute.xlu0 %v20957_v1  ;;  %v13119_v4 = vld [vmem:[#allocation7 + $0xe0] sm:$0xf]  ;;  %v19179_v5 = vld [vmem:[#allocation7 + $0xec] sm:$0xf0]  ;;  %s12988_s29 = sshll.u32 %s22330_s9, 4  ;;  %s20959_s6 = smov [#allocation16]   ;;  %s12989_s29 = int_to_ptr.hbm [resolvable:$true] %s12988_s29 }
  0x27   :  { %20706 = vset.pattern.permute.xlu2 %v20958_v2  ;;  %197 = vperm.xlu1 %20705, %v148_v3   ;;  %v13247_v6 = vld [vmem:[#allocation7 + $0x1e0] sm:$0xf]  ;;  %v19211_v7 = vld [vmem:[#allocation7 + $0x1ec] sm:$0xf0]  ;;  %v13120_v8 = vor.u32 %v19179_v5, %v13119_v4  ;;  %s12986_s30 = sshll.u32 %s20959_s6, 4  ;;  %s20960_s10 = smov 8   ;;  %s12987_s30 = int_to_ptr.vmem [resolvable:$true] %s12986_s30 }
  0x28   :  { %153 = vperm.xlu0 %20704, %v148_v3   ;;  %256 = vperm.xlu2 %20706, %v148_v3   ;;  %v13248_v9 = vor.u32 %v19211_v7, %v13247_v6  ;;  %v13375_v10 = vld [vmem:[#allocation7 + $0x2e0] sm:$0xf]  ;;  %v19243_v11 = vld [vmem:[#allocation7 + $0x2ec] sm:$0xf0] }
  0x29   :  { %v13503_v12 = vld [vmem:[#allocation7 + $0x3e0] sm:$0xf]  ;;  %v13376_v13 = vor.u32 %v19243_v11, %v13375_v10  ;;  %v19275_v14 = vld [vmem:[#allocation7 + $0x3ec] sm:$0xf0]  ;;  %1916 = vmatpush.bf16.msra.mxu0 %v13120_v8 }
  0x2a   :  { %v13103_v15 = vld [vmem:[#allocation7 + $0xc0] sm:$0xf]  ;;  %v19175_v16 = vld [vmem:[#allocation7 + $0xcc] sm:$0xf0]  ;;  %1930 = vmatpush.bf16.msra.mxu1 %v13248_v9  ;;  %v13504_v18 = vor.u32 %v19275_v14, %v13503_v12 }
  0x2b   :  { %v149_v17 = vld [vmem:[%s22321_s0 + $0x8] sm:$0xff]  ;;  %v13104_v19 = vor.u32 %v19175_v16, %v13103_v15  ;;  %v19207_v21 = vld [vmem:[#allocation7 + $0x1cc] sm:$0xf0]  ;;  %1944 = vmatpush.bf16.msra.mxu2 %v13376_v13 }
  0x2c   :  { %v13231_v20 = vld [vmem:[#allocation7 + $0x1c0] sm:$0xf]  ;;  %v19239_v24 = vld [vmem:[#allocation7 + $0x2cc] sm:$0xf0]  ;;  %1958 = vmatpush.bf16.msra.mxu3 %v13504_v18 }
  0x2d   :  { %v13359_v22 = vld [vmem:[#allocation7 + $0x2c0] sm:$0xf]  ;;  %v13232_v23 = vor.u32 %v19207_v21, %v13231_v20  ;;  %v19271_v26 = vld [vmem:[#allocation7 + $0x3cc] sm:$0xf0]  ;;  %1917 = vmatpush.bf16.msra.mxu0 %v13104_v19 }
  0x2e   :  { %v13487_v25 = vld [vmem:[#allocation7 + $0x3c0] sm:$0xf]  ;;  %v13360_v27 = vor.u32 %v19239_v24, %v13359_v22  ;;  %v19171_v29 = vld [vmem:[#allocation7 + $0xac] sm:$0xf0] }
  0x2f   :  { %v13087_v28 = vld [vmem:[#allocation7 + $0xa0] sm:$0xf]  ;;  %v13488_v31 = vor.u32 %v19271_v26, %v13487_v25  ;;  %v19203_v32 = vld [vmem:[#allocation7 + $0x1ac] sm:$0xf0]  ;;  %1931 = vmatpush.bf16.msra.mxu1 %v13232_v23  ;;  %201 = vperm.xlu1 %20705, %v149_v17  }
  0x30   :  { %v13215_v30 = vld [vmem:[#allocation7 + $0x1a0] sm:$0xf]  ;;  %v19235_v34 = vld [vmem:[#allocation7 + $0x2ac] sm:$0xf0]  ;;  %v13088_v35 = vor.u32 %v19171_v29, %v13087_v28  ;;  %158 = vperm.xlu0 %20704, %v149_v17   ;;  %260 = vperm.xlu2 %20706, %v149_v17  }
  0x31   :  { %v13343_v33 = vld [vmem:[#allocation7 + $0x2a0] sm:$0xf]  ;;  %v13216_v36 = vor.u32 %v19203_v32, %v13215_v30  ;;  %v19267_v38 = vld [vmem:[#allocation7 + $0x3ac] sm:$0xf0]  ;;  %1945 = vmatpush.bf16.msra.mxu2 %v13360_v27  ;;  %1959 = vmatpush.bf16.msra.mxu3 %v13488_v31 }
  0x32   :  { %v13471_v37 = vld [vmem:[#allocation7 + $0x3a0] sm:$0xf]  ;;  %v19167_v40 = vld [vmem:[#allocation7 + $0x8c] sm:$0xf0]  ;;  %v13344_v43 = vor.u32 %v19235_v34, %v13343_v33  ;;  %1918 = vmatpush.bf16.msra.mxu0 %v13088_v35 }
  0x33   :  { %v13071_v39 = vld [vmem:[#allocation7 + $0x80] sm:$0xf]  ;;  %v19199_v42 = vld [vmem:[#allocation7 + $0x18c] sm:$0xf0]  ;;  %v13472_v44 = vor.u32 %v19267_v38, %v13471_v37  ;;  %1932 = vmatpush.bf16.msra.mxu1 %v13216_v36 }
  0x34   :  { %v13199_v41 = vld [vmem:[#allocation7 + $0x180] sm:$0xf]  ;;  %v19231_v46 = vld [vmem:[#allocation7 + $0x28c] sm:$0xf0]  ;;  %v13072_v47 = vor.u32 %v19167_v40, %v13071_v39 }
  0x35   :  { %v13327_v45 = vld [vmem:[#allocation7 + $0x280] sm:$0xf]  ;;  %v13200_v48 = vor.u32 %v19199_v42, %v13199_v41  ;;  %v19263_v50 = vld [vmem:[#allocation7 + $0x38c] sm:$0xf0]  ;;  %1946 = vmatpush.bf16.msra.mxu2 %v13344_v43  ;;  %1960 = vmatpush.bf16.msra.mxu3 %v13472_v44 }
  0x36   :  { %v13455_v49 = vld [vmem:[#allocation7 + $0x380] sm:$0xf]  ;;  %v19163_v52 = vld [vmem:[#allocation7 + $0x6c] sm:$0xf0]  ;;  %v13328_v55 = vor.u32 %v19231_v46, %v13327_v45  ;;  %1919 = vmatpush.bf16.msra.mxu0 %v13072_v47 }
  0x37   :  { %v13055_v51 = vld [vmem:[#allocation7 + $0x60] sm:$0xf]  ;;  %v19195_v54 = vld [vmem:[#allocation7 + $0x16c] sm:$0xf0]  ;;  %v13456_v56 = vor.u32 %v19263_v50, %v13455_v49  ;;  %1933 = vmatpush.bf16.msra.mxu1 %v13200_v48 }
  0x38   :  { %v13183_v53 = vld [vmem:[#allocation7 + $0x160] sm:$0xf]  ;;  %v19227_v58 = vld [vmem:[#allocation7 + $0x26c] sm:$0xf0]  ;;  %v13056_v59 = vor.u32 %v19163_v52, %v13055_v51  ;;  %20707 = vset.pattern.permute.xlu0 %v20958_v2 }
  0x39   :  { %v13311_v57 = vld [vmem:[#allocation7 + $0x260] sm:$0xf]  ;;  %v13184_v60 = vor.u32 %v19195_v54, %v13183_v53  ;;  %v19259_v62 = vld [vmem:[#allocation7 + $0x36c] sm:$0xf0]  ;;  %1947 = vmatpush.bf16.msra.mxu2 %v13328_v55  ;;  %1961 = vmatpush.bf16.msra.mxu3 %v13456_v56 }
  0x3a   :  { %v13439_v61 = vld [vmem:[#allocation7 + $0x360] sm:$0xf]  ;;  %v19159_v0 = vld [vmem:[#allocation7 + $0x4c] sm:$0xf0]  ;;  %v13312_v4 = vor.u32 %v19227_v58, %v13311_v57  ;;  %1920 = vmatpush.bf16.msra.mxu0 %v13056_v59 }
  0x3b   :  { %v13039_v63 = vld [vmem:[#allocation7 + $0x40] sm:$0xf]  ;;  %v19191_v3 = vld [vmem:[#allocation7 + $0x14c] sm:$0xf0]  ;;  %v13440_v5 = vor.u32 %v19259_v62, %v13439_v61  ;;  %1934 = vmatpush.bf16.msra.mxu1 %v13184_v60 }
  0x3c   :  { %v13167_v1 = vld [vmem:[#allocation7 + $0x140] sm:$0xf]  ;;  %v19223_v7 = vld [vmem:[#allocation7 + $0x24c] sm:$0xf0]  ;;  %v13040_v8 = vor.u32 %v19159_v0, %v13039_v63 }
  0x3d   :  { %v13295_v6 = vld [vmem:[#allocation7 + $0x240] sm:$0xf]  ;;  %v13168_v9 = vor.u32 %v19191_v3, %v13167_v1  ;;  %v19255_v11 = vld [vmem:[#allocation7 + $0x34c] sm:$0xf0]  ;;  %1948 = vmatpush.bf16.msra.mxu2 %v13312_v4  ;;  %1962 = vmatpush.bf16.msra.mxu3 %v13440_v5 }
  0x3e   :  { %v13423_v10 = vld [vmem:[#allocation7 + $0x340] sm:$0xf]  ;;  %v19155_v13 = vld [vmem:[#allocation7 + $0x2c] sm:$0xf0]  ;;  %v13296_v16 = vor.u32 %v19223_v7, %v13295_v6  ;;  %1921 = vmatpush.bf16.msra.mxu0 %v13040_v8 }
  0x3f   :  { %v13023_v12 = vld [vmem:[#allocation7 + $0x20] sm:$0xf]  ;;  %v19187_v15 = vld [vmem:[#allocation7 + $0x12c] sm:$0xf0]  ;;  %v13424_v2 = vor.u32 %v19255_v11, %v13423_v10  ;;  %1935 = vmatpush.bf16.msra.mxu1 %v13168_v9 }
  0x40   :  { %v13151_v14 = vld [vmem:[#allocation7 + $0x120] sm:$0xf]  ;;  %v19219_v18 = vld [vmem:[#allocation7 + $0x22c] sm:$0xf0]  ;;  %v13024_v21 = vor.u32 %v19155_v13, %v13023_v12 }
  0x41   :  { %v13279_v17 = vld [vmem:[#allocation7 + $0x220] sm:$0xf]  ;;  %v19251_v20 = vld [vmem:[#allocation7 + $0x32c] sm:$0xf0]  ;;  %v13152_v22 = vor.u32 %v19187_v15, %v13151_v14  ;;  %1949 = vmatpush.bf16.msra.mxu2 %v13296_v16  ;;  %1963 = vmatpush.bf16.msra.mxu3 %v13424_v2 }
  0x42   :  { %v13407_v19 = vld [vmem:[#allocation7 + $0x320] sm:$0xf]  ;;  %v19151_v24 = vld [vmem:[#allocation7 + $0xc] sm:$0xf0]  ;;  %v13280_v28 = vor.u32 %v19219_v18, %v13279_v17  ;;  %1922 = vmatpush.bf16.msra.mxu0 %v13024_v21 }
  0x43   :  { %v13007_v23 = vld [vmem:[#allocation7] sm:$0xf]  ;;  %v19183_v26 = vld [vmem:[#allocation7 + $0x10c] sm:$0xf0]  ;;  %v13408_v32 = vor.u32 %v19251_v20, %v13407_v19  ;;  %1936 = vmatpush.bf16.msra.mxu1 %v13152_v22 }
  0x44   :  { %v13135_v25 = vld [vmem:[#allocation7 + $0x100] sm:$0xf]  ;;  %v19307_v29 = vld [vmem:[#allocation7 + $0x4ec] sm:$0xf0]  ;;  %v13008_v36 = vor.u32 %v19151_v24, %v13007_v23 }
  0x45   :  { %v13631_v27 = vld [vmem:[#allocation7 + $0x4e0] sm:$0xf]  ;;  %v19339_v31 = vld [vmem:[#allocation7 + $0x5ec] sm:$0xf0]  ;;  %v13136_v37 = vor.u32 %v19183_v26, %v13135_v25  ;;  %1950 = vmatpush.bf16.msra.mxu2 %v13280_v28  ;;  %1964 = vmatpush.bf16.msra.mxu3 %v13408_v32 }
  0x46   :  { %v13759_v30 = vld [vmem:[#allocation7 + $0x5e0] sm:$0xf]  ;;  %v19215_v34 = vld [vmem:[#allocation7 + $0x20c] sm:$0xf0]  ;;  %v13632_v41 = vor.u32 %v19307_v29, %v13631_v27  ;;  %1923 = vmatpush.bf16.msra.mxu0 %v13008_v36 }
  0x47   :  { %v13263_v33 = vld [vmem:[#allocation7 + $0x200] sm:$0xf]  ;;  %v19247_v38 = vld [vmem:[#allocation7 + $0x30c] sm:$0xf0]  ;;  %v13760_v42 = vor.u32 %v19339_v31, %v13759_v30  ;;  %1937 = vmatpush.bf16.msra.mxu1 %v13136_v37 }
  0x48   :  { %v13391_v35 = vld [vmem:[#allocation7 + $0x300] sm:$0xf]  ;;  %v19371_v40 = vld [vmem:[#allocation7 + $0x6ec] sm:$0xf0]  ;;  %v13264_v45 = vor.u32 %v19215_v34, %v13263_v33 }
  0x49   :  { %v13887_v39 = vld [vmem:[#allocation7 + $0x6e0] sm:$0xf]  ;;  %v19403_v44 = vld [vmem:[#allocation7 + $0x7ec] sm:$0xf0]  ;;  %v13392_v46 = vor.u32 %v19247_v38, %v13391_v35 }
  0x4a   :  { %v14015_v43 = vld [vmem:[#allocation7 + $0x7e0] sm:$0xf]  ;;  %v13888_v47 = vor.u32 %v19371_v40, %v13887_v39  ;;  %1972 = vmatpush.bf16.msrb.mxu0 %v13632_v41  ;;  %1951 = vmatpush.bf16.msra.mxu2 %v13264_v45  ;;  %v19303_v50 = vld [vmem:[#allocation7 + $0x4cc] sm:$0xf0] }
  0x4b   :  { %v14016_v48 = vor.u32 %v19403_v44, %v14015_v43  ;;  %1986 = vmatpush.bf16.msrb.mxu1 %v13760_v42  ;;  %1965 = vmatpush.bf16.msra.mxu3 %v13392_v46  ;;  %v13615_v49 = vld [vmem:[#allocation7 + $0x4c0] sm:$0xf]  ;;  %v19335_v53 = vld [vmem:[#allocation7 + $0x5cc] sm:$0xf0] }
  0x4c   :  { %v13743_v51 = vld [vmem:[#allocation7 + $0x5c0] sm:$0xf]  ;;  %v13616_v52 = vor.u32 %v19303_v50, %v13615_v49  ;;  %v19367_v55 = vld [vmem:[#allocation7 + $0x6cc] sm:$0xf0] }
  0x4d   :  { %v13871_v54 = vld [vmem:[#allocation7 + $0x6c0] sm:$0xf]  ;;  %v13744_v56 = vor.u32 %v19335_v53, %v13743_v51  ;;  %v19399_v59 = vld [vmem:[#allocation7 + $0x7cc] sm:$0xf0] }
  0x4e   :  { %2000 = vmatpush.bf16.msrb.mxu2 %v13888_v47  ;;  %v13872_v57 = vor.u32 %v19367_v55, %v13871_v54  ;;  %v13999_v58 = vld [vmem:[#allocation7 + $0x7c0] sm:$0xf]  ;;  %1973 = vmatpush.bf16.msrb.mxu0 %v13616_v52  ;;  %v19299_v62 = vld [vmem:[#allocation7 + $0x4ac] sm:$0xf0] }
  0x4f   :  { %2014 = vmatpush.bf16.msrb.mxu3 %v14016_v48  ;;  %v13599_v60 = vld [vmem:[#allocation7 + $0x4a0] sm:$0xf]  ;;  %v14000_v61 = vor.u32 %v19399_v59, %v13999_v58  ;;  %v19331_v0 = vld [vmem:[#allocation7 + $0x5ac] sm:$0xf0]  ;;  %1987 = vmatpush.bf16.msrb.mxu1 %v13744_v56 }
  0x50   :  { %v13727_v63 = vld [vmem:[#allocation7 + $0x5a0] sm:$0xf]  ;;  %v13600_v1 = vor.u32 %v19299_v62, %v13599_v60  ;;  %v19363_v5 = vld [vmem:[#allocation7 + $0x6ac] sm:$0xf0] }
  0x51   :  { %v13728_v3 = vor.u32 %v19331_v0, %v13727_v63  ;;  %v13855_v4 = vld [vmem:[#allocation7 + $0x6a0] sm:$0xf]  ;;  %v19395_v8 = vld [vmem:[#allocation7 + $0x7ac] sm:$0xf0] }
  0x52   :  { %2001 = vmatpush.bf16.msrb.mxu2 %v13872_v57  ;;  %v13983_v6 = vld [vmem:[#allocation7 + $0x7a0] sm:$0xf]  ;;  %v13856_v7 = vor.u32 %v19363_v5, %v13855_v4  ;;  %1974 = vmatpush.bf16.msrb.mxu0 %v13600_v1  ;;  %v19295_v11 = vld [vmem:[#allocation7 + $0x48c] sm:$0xf0] }
  0x53   :  { %2015 = vmatpush.bf16.msrb.mxu3 %v14000_v61  ;;  %v13984_v9 = vor.u32 %v19395_v8, %v13983_v6  ;;  %1988 = vmatpush.bf16.msrb.mxu1 %v13728_v3  ;;  %v13583_v10 = vld [vmem:[#allocation7 + $0x480] sm:$0xf]  ;;  %v19327_v14 = vld [vmem:[#allocation7 + $0x58c] sm:$0xf0] }
  0x54   :  { %v13711_v12 = vld [vmem:[#allocation7 + $0x580] sm:$0xf]  ;;  %v13584_v13 = vor.u32 %v19295_v11, %v13583_v10  ;;  %v19359_v16 = vld [vmem:[#allocation7 + $0x68c] sm:$0xf0] }
  0x55   :  { %v13839_v15 = vld [vmem:[#allocation7 + $0x680] sm:$0xf]  ;;  %v13712_v17 = vor.u32 %v19327_v14, %v13711_v12  ;;  %v19391_v19 = vld [vmem:[#allocation7 + $0x78c] sm:$0xf0] }
  0x56   :  { %2002 = vmatpush.bf16.msrb.mxu2 %v13856_v7  ;;  %v13840_v2 = vor.u32 %v19359_v16, %v13839_v15  ;;  %v13967_v18 = vld [vmem:[#allocation7 + $0x780] sm:$0xf]  ;;  %1975 = vmatpush.bf16.msrb.mxu0 %v13584_v13  ;;  %v19291_v22 = vld [vmem:[#allocation7 + $0x46c] sm:$0xf0] }
  0x57   :  { %2016 = vmatpush.bf16.msrb.mxu3 %v13984_v9  ;;  %v13567_v20 = vld [vmem:[#allocation7 + $0x460] sm:$0xf]  ;;  %v13968_v21 = vor.u32 %v19391_v19, %v13967_v18  ;;  %v19323_v24 = vld [vmem:[#allocation7 + $0x56c] sm:$0xf0]  ;;  %1989 = vmatpush.bf16.msrb.mxu1 %v13712_v17  ;;  %v21062_v19 = vld [vmem:[#allocation5] sm:$0xff] }
  0x58   :  { %v13695_v23 = vld [vmem:[#allocation7 + $0x560] sm:$0xf]  ;;  %v13568_v25 = vor.u32 %v19291_v22, %v13567_v20  ;;  %v19355_v28 = vld [vmem:[#allocation7 + $0x66c] sm:$0xf0] }
  0x59   :  { %v13696_v26 = vor.u32 %v19323_v24, %v13695_v23  ;;  %v13823_v27 = vld [vmem:[#allocation7 + $0x660] sm:$0xf]  ;;  %v19387_v31 = vld [vmem:[#allocation7 + $0x76c] sm:$0xf0] }
  0x5a   :  { %2003 = vmatpush.bf16.msrb.mxu2 %v13840_v2  ;;  %v13951_v29 = vld [vmem:[#allocation7 + $0x760] sm:$0xf]  ;;  %v13824_v30 = vor.u32 %v19355_v28, %v13823_v27  ;;  %1976 = vmatpush.bf16.msrb.mxu0 %v13568_v25  ;;  %v19287_v34 = vld [vmem:[#allocation7 + $0x44c] sm:$0xf0] }
  0x5b   :  { %2017 = vmatpush.bf16.msrb.mxu3 %v13968_v21  ;;  %v13952_v32 = vor.u32 %v19387_v31, %v13951_v29  ;;  %1990 = vmatpush.bf16.msrb.mxu1 %v13696_v26  ;;  %v13551_v33 = vld [vmem:[#allocation7 + $0x440] sm:$0xf]  ;;  %v19319_v37 = vld [vmem:[#allocation7 + $0x54c] sm:$0xf0]  ;;  %v21145_v31 = vld [vmem:[#allocation7 + $0xd0] sm:$0xf0] }
  0x5c   :  { %v13679_v35 = vld [vmem:[#allocation7 + $0x540] sm:$0xf]  ;;  %v13552_v36 = vor.u32 %v19287_v34, %v13551_v33  ;;  %v19351_v39 = vld [vmem:[#allocation7 + $0x64c] sm:$0xf0]  ;;  %v22332_v34 = vperm.slane %v21062_v19, 1 }
  0x5d   :  { %v13807_v38 = vld [vmem:[#allocation7 + $0x640] sm:$0xf]  ;;  %v13680_v40 = vor.u32 %v19319_v37, %v13679_v35  ;;  %v19383_v43 = vld [vmem:[#allocation7 + $0x74c] sm:$0xf0]  ;;  %v22331_v35 = vperm.slane %v21062_v19, 2 }
  0x5e   :  { %2004 = vmatpush.bf16.msrb.mxu2 %v13824_v30  ;;  %v13808_v41 = vor.u32 %v19351_v39, %v13807_v38  ;;  %v13935_v42 = vld [vmem:[#allocation7 + $0x740] sm:$0xf]  ;;  %1977 = vmatpush.bf16.msrb.mxu0 %v13552_v36  ;;  %v19283_v46 = vld [vmem:[#allocation7 + $0x42c] sm:$0xf0]  ;;  %v317_v36 = vperm.slane %v21062_v19, 3 }
  0x5f   :  { %2018 = vmatpush.bf16.msrb.mxu3 %v13952_v32  ;;  %v13535_v44 = vld [vmem:[#allocation7 + $0x420] sm:$0xf]  ;;  %v13936_v45 = vor.u32 %v19383_v43, %v13935_v42  ;;  %v19315_v48 = vld [vmem:[#allocation7 + $0x52c] sm:$0xf0]  ;;  %1991 = vmatpush.bf16.msrb.mxu1 %v13680_v40  ;;  %v314_v32 = vperm.slane %v21062_v19, 0 }
  0x60   :  { %v13663_v47 = vld [vmem:[#allocation7 + $0x520] sm:$0xf]  ;;  %v13536_v49 = vor.u32 %v19283_v46, %v13535_v44  ;;  %v19347_v52 = vld [vmem:[#allocation7 + $0x62c] sm:$0xf0] }
  0x61   :  { %v13664_v50 = vor.u32 %v19315_v48, %v13663_v47  ;;  %v13791_v51 = vld [vmem:[#allocation7 + $0x620] sm:$0xf]  ;;  %v19379_v55 = vld [vmem:[#allocation7 + $0x72c] sm:$0xf0] }
  0x62   :  { %2005 = vmatpush.bf16.msrb.mxu2 %v13808_v41  ;;  %v13919_v53 = vld [vmem:[#allocation7 + $0x720] sm:$0xf]  ;;  %v13792_v54 = vor.u32 %v19347_v52, %v13791_v51  ;;  %v19279_v57 = vld [vmem:[#allocation7 + $0x40c] sm:$0xf0]  ;;  %1978 = vmatpush.bf16.msrb.mxu0 %v13536_v49  ;;  %v21112_v51 = vld [vmem:[#allocation7 + $0xe4] sm:$0xf] }
  0x63   :  { %2019 = vmatpush.bf16.msrb.mxu3 %v13936_v45  ;;  %v13519_v56 = vld [vmem:[#allocation7 + $0x400] sm:$0xf]  ;;  %v13920_v58 = vor.u32 %v19379_v55, %v13919_v53  ;;  %v19311_v60 = vld [vmem:[#allocation7 + $0x50c] sm:$0xf0]  ;;  %1992 = vmatpush.bf16.msrb.mxu1 %v13664_v50  ;;  %v21114_v52 = vld [vmem:[#allocation7 + $0xf0] sm:$0xf0] }
  0x64   :  { %v13647_v59 = vld [vmem:[#allocation7 + $0x500] sm:$0xf]  ;;  %v13520_v63 = vor.u32 %v19279_v57, %v13519_v56  ;;  %v19343_v0 = vld [vmem:[#allocation7 + $0x60c] sm:$0xf0]  ;;  %v21128_v57 = vld [vmem:[#allocation7 + $0x1e4] sm:$0xf] }
  0x65   :  { %v13775_v61 = vld [vmem:[#allocation7 + $0x600] sm:$0xf]  ;;  %v19375_v3 = vld [vmem:[#allocation7 + $0x70c] sm:$0xf0]  ;;  %v13648_v4 = vor.u32 %v19311_v60, %v13647_v59  ;;  %v21132_v59 = vld [vmem:[#allocation7 + $0x2e4] sm:$0xf] }
  0x66   :  { %v13903_v1 = vld [vmem:[#allocation7 + $0x700] sm:$0xf]  ;;  %2006 = vmatpush.bf16.msrb.mxu2 %v13792_v54  ;;  %v13776_v5 = vor.u32 %v19343_v0, %v13775_v61  ;;  %1979 = vmatpush.bf16.msrb.mxu0 %v13520_v63  ;;  %v21136_v0 = vld [vmem:[#allocation7 + $0x2f0] sm:$0xf0] }
  0x67   :  { %v21046_v6 = vld [vmem:[#allocation2 + $0x1] ss:$4 sm:$0xff]  ;;  %2020 = vmatpush.bf16.msrb.mxu3 %v13920_v58  ;;  %v13904_v7 = vor.u32 %v19375_v3, %v13903_v1  ;;  %v21048_v8 = vld [vmem:[#allocation2] ss:$4 sm:$0xff]  ;;  %v21050_v9 = vld [vmem:[#allocation2 + $0x2] ss:$4 sm:$0xff]  ;;  %1993 = vmatpush.bf16.msrb.mxu1 %v13648_v4 }
  0x68   :  { %v205_v10 = vperm.slane %v21046_v6, 0  ;;  %v206_v11 = vperm.slane %v21046_v6, 1  ;;  %v207_v12 = vperm.slane %v21046_v6, 2  ;;  %v208_v13 = vperm.slane %v21046_v6, 3  ;;  %v21130_v58 = vld [vmem:[#allocation7 + $0x1f0] sm:$0xf0] }
  0x69   :  { %v209_v14 = vperm.slane %v21046_v6, 4  ;;  %v210_v15 = vperm.slane %v21046_v6, 5  ;;  %v211_v16 = vperm.slane %v21046_v6, 6  ;;  %v162_v2 = vperm.slane %v21048_v8, 0  ;;  %v21138_v1 = vld [vmem:[#allocation7 + $0x3e4] sm:$0xf] }
  0x6a   :  { %2007 = vmatpush.bf16.msrb.mxu2 %v13776_v5  ;;  %v264_v18 = vperm.slane %v21050_v9, 0  ;;  %v265_v20 = vperm.slane %v21050_v9, 1  ;;  %v266_v21 = vperm.slane %v21050_v9, 2  ;;  %v267_v22 = vperm.slane %v21050_v9, 3 }
  0x6b   :  { %2021 = vmatpush.bf16.msrb.mxu3 %v13904_v7  ;;  %v268_v23 = vperm.slane %v21050_v9, 4  ;;  %v163_v24 = vperm.slane %v21048_v8, 1  ;;  %v164_v25 = vperm.slane %v21048_v8, 2  ;;  %v165_v26 = vperm.slane %v21048_v8, 3 }
  0x6c   :  { %v166_v27 = vperm.slane %v21048_v8, 4  ;;  %v167_v29 = vperm.slane %v21048_v8, 5  ;;  %v269_v45 = vperm.slane %v21050_v9, 5  ;;  %v270_v46 = vperm.slane %v21050_v9, 6 }
  0x6d   :  { %v271_v3 = vperm.slane %v21050_v9, 7 }
  0x82   :  { %v21044_v62 = vpop.permute.xlu2 %256 }
  0x83   :  { %v280_v33 = vmul.f32 %v264_v18, %v21044_v62  ;;  %v281_v37 = vmul.f32 %v265_v20, %v21044_v62  ;;  %v282_v38 = vmul.f32 %v266_v21, %v21044_v62  ;;  %v283_v39 = vmul.f32 %v267_v22, %v21044_v62 }
  0x84   :  { %v21086_v40 = vmul.f32 %v268_v23, %v21044_v62  ;;  %v21158_v9 = vmul.f32 %v270_v46, %v21044_v62 }
  0x8a   :  { %v21072_v28 = vpop.permute.xlu2 %260 }
  0x8b   :  { %v21093_v43 = vmul.f32 %v264_v18, %v21072_v28  ;;  %v21096_v44 = vmul.f32 %v265_v20, %v21072_v28  ;;  %v290_v61 = vmul.f32 %v266_v21, %v21072_v28  ;;  %v291_v63 = vmul.f32 %v267_v22, %v21072_v28  ;;  %v21141_v18 = vld [vmem:[#allocation7 + $0x3f0] sm:$0xf0]  ;;  %v21143_v20 = vld [vmem:[#allocation7 + $0xc4] sm:$0xf] }
  0x8c   :  { %v21152_v22 = vmul.f32 %v269_v45, %v21044_v62 }
  0x99   :  { %v21088_v41 = vpop.permute.xlu1 %197 }
  0x9a   :  { %v21090_v42 = vpop.permute.xlu0 %153  ;;  %v221_v48 = vmul.f32 %v205_v10, %v21088_v41  ;;  %v222_v50 = vmul.f32 %v206_v11, %v21088_v41  ;;  %v223_v54 = vmul.f32 %v207_v12, %v21088_v41  ;;  %v224_v56 = vmul.f32 %v208_v13, %v21088_v41 }
  0x9b   :  { %v178_v47 = vmul.f32 %v162_v2, %v21090_v42  ;;  %v179_v49 = vmul.f32 %v163_v24, %v21090_v42  ;;  %v180_v53 = vmul.f32 %v164_v25, %v21090_v42  ;;  %v181_v55 = vmul.f32 %v165_v26, %v21090_v42 }
  0x9c   :  { %v182_v30 = vmul.f32 %v166_v27, %v21090_v42 }
  0x9d   :  { %v237_v60 = vadd.f32 %v221_v48, %v178_v47  ;;  %v238_v4 = vadd.f32 %v222_v50, %v179_v49  ;;  %v239_v5 = vadd.f32 %v223_v54, %v180_v53  ;;  %v240_v7 = vadd.f32 %v224_v56, %v181_v55  ;;  %v21173_v56 = vld [vmem:[#allocation7 + $0x1c4] sm:$0xf] }
  0x9e   :  { %v21148_v47 = vmul.f32 %v268_v23, %v21072_v28  ;;  %v21155_v48 = vmul.f32 %v269_v45, %v21072_v28  ;;  %v21165_v23 = vmul.f32 %v270_v46, %v21072_v28  ;;  %v21181_v54 = vmul.f32 %v271_v3, %v21072_v28 }
  0x9f   :  { %v296_v49 = vadd.f32 %v280_v33, %v237_v60  ;;  %v21175_v33 = vld [vmem:[#allocation7 + $0x1d0] sm:$0xf0]  ;;  %v21178_v60 = vmul.f32 %v271_v3, %v21044_v62  ;;  %v297_v46 = vadd.f32 %v281_v37, %v238_v4  ;;  %v298_v50 = vadd.f32 %v282_v38, %v239_v5 }
  0xa0   :  { %v299_v17 = vadd.f32 %v283_v39, %v240_v7  ;;  %v225_v62 = vmul.f32 %v209_v14, %v21088_v41  ;;  %v183_v5 = vmul.f32 %v167_v29, %v21090_v42 }
  0xa1   :  { %v202_v21 = vpop.permute.xlu1 %201  ;;  %v332_v4 = vadd.f32 %v22331_v35, %v298_v50 }
  0xa2   :  { %v159_v53 = vpop.permute.xlu0 %158  ;;  %v229_v45 = vmul.f32 %v205_v10, %v202_v21  ;;  %v230_v55 = vmul.f32 %v206_v11, %v202_v21  ;;  %v231_v37 = vmul.f32 %v207_v12, %v202_v21  ;;  %v232_v28 = vmul.f32 %v208_v13, %v202_v21 }
  0xa3   :  { %v330_v10 = vadd.f32 %v314_v32, %v296_v49  ;;  %v186_v38 = vmul.f32 %v162_v2, %v159_v53  ;;  %v187_v39 = vmul.f32 %v163_v24, %v159_v53  ;;  %v188_v3 = vmul.f32 %v164_v25, %v159_v53 }
  0xa4   :  { %v189_v12 = vmul.f32 %v165_v26, %v159_v53  ;;  %v331_v13 = vadd.f32 %v22332_v34, %v297_v46  ;;  %v226_v2 = vmul.f32 %v210_v15, %v21088_v41  ;;  %v333_v25 = vadd.f32 %v317_v36, %v299_v17 }
  0xa5   :  { %v245_v24 = vadd.f32 %v229_v45, %v186_v38  ;;  %v246_v7 = vadd.f32 %v230_v55, %v187_v39  ;;  %v241_v26 = vadd.f32 %v225_v62, %v182_v30  ;;  %v233_v49 = vmul.f32 %v209_v14, %v202_v21 }
  0xa6   :  { %v234_v50 = vmul.f32 %v210_v15, %v202_v21  ;;  %v247_v46 = vadd.f32 %v231_v37, %v188_v3  ;;  %v248_v11 = vadd.f32 %v232_v28, %v189_v12  ;;  %v190_v35 = vmul.f32 %v166_v27, %v159_v53 }
  0xa7   :  { %v191_v34 = vmul.f32 %v167_v29, %v159_v53  ;;  %v304_v45 = vadd.f32 %v21093_v43, %v245_v24  ;;  %v305_v55 = vadd.f32 %v21096_v44, %v246_v7  ;;  %v235_v17 = vmul.f32 %v211_v16, %v202_v21  ;;  %v21250_v7 = vld [vmem:[#allocation7 + $0x2d0] sm:$0xf0] }
  0xa8   :  { %v306_v30 = vadd.f32 %v290_v61, %v247_v46  ;;  %v307_v14 = vadd.f32 %v291_v63, %v248_v11  ;;  %v22365_v15 = vperm.slane %v21048_v8, 6  ;;  %v22366_v37 = vperm.slane %v21046_v6, 7 }
  0xa9   :  { %v338_v29 = vadd.f32 %v314_v32, %v304_v45  ;;  %v22368_v43 = vperm.slane %v21062_v19, 1  ;;  %v346_v39 = vmax.f32 %v330_v10, 0.0  ;;  %v347_v3 = vmax.f32 %v331_v13, 0.0 }
  0xaa   :  { %v184_v62 = vmul.f32 %v22365_v15, %v21090_v42  ;;  %v236_v28 = vmul.f32 %v22366_v37, %v202_v21  ;;  %v22367_v27 = vmov %v22365_v15  ;;  %v22369_v61 = vperm.slane %v21062_v19, 2  ;;  %v21248_v21 = vld [vmem:[#allocation7 + $0x2c4] sm:$0xf] }
  0xab   :  { %v192_v38 = vmul.f32 %v22367_v27, %v159_v53  ;;  %v339_v44 = vadd.f32 %v22368_v43, %v305_v55  ;;  %v341_v11 = vadd.f32 %v317_v36, %v307_v14  ;;  %v354_v12 = vmax.f32 %v338_v29, 0.0 }
  0xac   :  { %v340_v63 = vadd.f32 %v22369_v61, %v306_v30  ;;  %v249_v46 = vadd.f32 %v233_v49, %v190_v35  ;;  %v250_v15 = vadd.f32 %v234_v50, %v191_v34  ;;  %v348_v32 = vmax.f32 %v332_v4, 0.0  ;;  %v19269_v35 = vld [vmem:[#allocation7 + $0x3c4] sm:$0xf]  ;;  %v13489_v4 = vld [vmem:[#allocation7 + $0x3d0] sm:$0xf0] }
  0xad   :  { %v355_v24 = vmax.f32 %v339_v44, 0.0  ;;  %v349_v37 = vmax.f32 %v333_v25, 0.0  ;;  %v357_v55 = vmax.f32 %v341_v11, 0.0  ;;  %v22370_v10 = vperm.slane %v21048_v8, 7  ;;  %v13089_v44 = vld [vmem:[#allocation7 + $0xb0] sm:$0xf0] }
  0xae   :  { %v356_v45 = vmax.f32 %v340_v63, 0.0  ;;  %v21254_v27 = vpack.c.bf16 %v354_v12, %v346_v39  ;;  %v227_v36 = vmul.f32 %v211_v16, %v21088_v41  ;;  %v13364_v34 = vor.u32 %v21248_v21, %v21250_v7  ;;  %v19201_v39 = vld [vmem:[#allocation7 + $0x1a4] sm:$0xf] }
  0xaf   :  { %v193_v13 = vmul.f32 %v22370_v10, %v159_v53  ;;  %v21256_v30 = vpack.c.bf16 %v355_v24, %v347_v3  ;;  %v21263_v29 = vpack.c.bf16 %v357_v55, %v349_v37  ;;  %v242_v25 = vadd.f32 %v226_v2, %v183_v5  ;;  %v19169_v53 = vld [vmem:[#allocation7 + $0xa4] sm:$0xf]  ;;  %v13217_v3 = vld [vmem:[#allocation7 + $0x1b0] sm:$0xf0] }
  0xb0   :  { %v21261_v14 = vpack.c.bf16 %v356_v45, %v348_v32  ;;  %1924 = vmatmul.bf16.vlgmr.msra.gmra.mxu0 %v21254_v27  ;;  %v308_v49 = vadd.f32 %v21148_v47, %v249_v46  ;;  %v309_v50 = vadd.f32 %v21155_v48, %v250_v15  ;;  %v319_v16 = vperm.slane %v21062_v19, 5  ;;  %v19233_v11 = vld [vmem:[#allocation7 + $0x2a4] sm:$0xf]  ;;  %v13201_v37 = vld [vmem:[#allocation7 + $0x190] sm:$0xf0] }
  0xb1   :  { %1938 = vmatmul.bf16.vlgmr.msra.gmra.mxu1 %v21256_v30  ;;  %v251_v43 = vadd.f32 %v235_v17, %v192_v38  ;;  %1966 = vmatmul.bf16.vlgmr.msra.gmra.mxu3 %v21263_v29  ;;  %v243_v5 = vadd.f32 %v227_v36, %v184_v62  ;;  %v22371_v2 = vmov %v22370_v10  ;;  %v22372_v47 = vperm.slane %v21046_v6, 7  ;;  %v19197_v45 = vld [vmem:[#allocation7 + $0x184] sm:$0xf]  ;;  %v13457_v36 = vld [vmem:[#allocation7 + $0x390] sm:$0xf0] }
  0xb2   :  { %1952 = vmatmul.bf16.vlgmr.msra.gmra.mxu2 %v21261_v14  ;;  %v185_v61 = vmul.f32 %v22371_v2, %v21090_v42  ;;  %v22373_v48 = vor.u32 %v21112_v51, %v21114_v52  ;;  %v22374_v17 = vor.u32 %v21128_v57, %v21130_v58  ;;  %v13492_v38 = vor.u32 %v19269_v35, %v13489_v4  ;;  %v19265_v51 = vld [vmem:[#allocation7 + $0x3a4] sm:$0xf]  ;;  %v13473_v52 = vld [vmem:[#allocation7 + $0x3b0] sm:$0xf0] }
  0xb3   :  { %v228_v63 = vmul.f32 %v22372_v47, %v21088_v41  ;;  %v300_v62 = vadd.f32 %v21086_v40, %v241_v26  ;;  %v320_v12 = vperm.slane %v21062_v19, 6  ;;  %v252_v8 = vadd.f32 %v236_v28, %v193_v13  ;;  %v13345_v41 = vld [vmem:[#allocation7 + $0x2b0] sm:$0xf0]  ;;  %v19229_v55 = vld [vmem:[#allocation7 + $0x284] sm:$0xf] }
  0xb4   :  { %2028 = vmatpush.bf16.msra.mxu0 %v22373_v48  ;;  %2042 = vmatpush.bf16.msra.mxu1 %v22374_v17  ;;  %v22375_v42 = vor.u32 %v21132_v59, %v21136_v0  ;;  %v22376_v6 = vor.u32 %v21138_v1, %v21141_v18  ;;  %v301_v57 = vadd.f32 %v21152_v22, %v242_v25  ;;  %v321_v21 = vperm.slane %v21062_v19, 7  ;;  %v19165_v59 = vld [vmem:[#allocation7 + $0x84] sm:$0xf]  ;;  %v13073_v0 = vld [vmem:[#allocation7 + $0x90] sm:$0xf0] }
  0xb5   :  { %v310_v58 = vadd.f32 %v21165_v23, %v251_v43  ;;  %v244_v24 = vadd.f32 %v228_v63, %v185_v61  ;;  %v13092_v40 = vor.u32 %v19169_v53, %v13089_v44  ;;  %v13220_v26 = vor.u32 %v19201_v39, %v13217_v3  ;;  %v13185_v39 = vld [vmem:[#allocation7 + $0x170] sm:$0xf0]  ;;  %v19225_v3 = vld [vmem:[#allocation7 + $0x264] sm:$0xf] }
  0xb6   :  { %2056 = vmatpush.bf16.msra.mxu2 %v22375_v42  ;;  %2070 = vmatpush.bf16.msra.mxu3 %v22376_v6  ;;  %v311_v28 = vadd.f32 %v21181_v54, %v252_v8  ;;  %v22377_v7 = vperm.slane %v21062_v19, 4  ;;  %v343_v18 = vadd.f32 %v319_v16, %v309_v50  ;;  %v302_v46 = vadd.f32 %v21158_v9, %v243_v5  ;;  %v13329_v9 = vld [vmem:[#allocation7 + $0x290] sm:$0xf0]  ;;  %v19257_v63 = vld [vmem:[#allocation7 + $0x364] sm:$0xf] }
  0xb7   :  { %v303_v15 = vadd.f32 %v21178_v60, %v244_v24  ;;  %v22378_v22 = vor.u32 %v21143_v20, %v21145_v31  ;;  %v22379_v23 = vor.u32 %v21173_v56, %v21175_v33  ;;  %v13348_v54 = vor.u32 %v19233_v11, %v13345_v41  ;;  %v19261_v60 = vld [vmem:[#allocation7 + $0x384] sm:$0xf]  ;;  %v13057_v50 = vld [vmem:[#allocation7 + $0x70] sm:$0xf0] }
  0xb8   :  { %v342_v1 = vadd.f32 %v22377_v7, %v308_v49  ;;  %v13476_v32 = vor.u32 %v19265_v51, %v13473_v52  ;;  %v22380_v10 = vmov %v22377_v7  ;;  %v335_v35 = vadd.f32 %v319_v16, %v301_v57  ;;  %v19161_v49 = vld [vmem:[#allocation7 + $0x64] sm:$0xf]  ;;  %v13313_v47 = vld [vmem:[#allocation7 + $0x270] sm:$0xf0] }
  0xb9   :  { %2029 = vmatpush.bf16.msra.mxu0 %v22378_v22  ;;  %2043 = vmatpush.bf16.msra.mxu1 %v22379_v23  ;;  %v334_v13 = vadd.f32 %v22380_v10, %v300_v62  ;;  %v344_v31 = vadd.f32 %v320_v12, %v310_v58  ;;  %v345_v20 = vadd.f32 %v321_v21, %v311_v28  ;;  %v359_v56 = vmax.f32 %v343_v18, 0.0  ;;  %v13441_v48 = vld [vmem:[#allocation7 + $0x370] sm:$0xf0]  ;;  %v19157_v6 = vld [vmem:[#allocation7 + $0x44] sm:$0xf] }
  0xba   :  { %2057 = vmatpush.bf16.msra.mxu2 %v13364_v34  ;;  %2071 = vmatpush.bf16.msra.mxu3 %v13492_v38  ;;  %v13076_v4 = vor.u32 %v19165_v59, %v13073_v0  ;;  %v358_v25 = vmax.f32 %v342_v1, 0.0  ;;  %v336_v33 = vadd.f32 %v320_v12, %v302_v46  ;;  %v337_v53 = vadd.f32 %v321_v21, %v303_v15  ;;  %v19193_v34 = vld [vmem:[#allocation7 + $0x164] sm:$0xf]  ;;  %v13041_v41 = vld [vmem:[#allocation7 + $0x50] sm:$0xf0] }
  0xbb   :  { %v13204_v43 = vor.u32 %v19197_v45, %v13201_v37  ;;  %v13332_v19 = vor.u32 %v19229_v55, %v13329_v9  ;;  %v13460_v44 = vor.u32 %v19261_v60, %v13457_v36  ;;  %v350_v16 = vmax.f32 %v334_v13, 0.0  ;;  %v19189_v58 = vld [vmem:[#allocation7 + $0x144] sm:$0xf]  ;;  %v13169_v24 = vld [vmem:[#allocation7 + $0x150] sm:$0xf0] }
  0xbc   :  { %v351_v5 = vmax.f32 %v335_v35, 0.0  ;;  %v360_v2 = vmax.f32 %v344_v31, 0.0  ;;  %v361_v61 = vmax.f32 %v345_v20, 0.0  ;;  %v352_v11 = vmax.f32 %v336_v33, 0.0  ;;  %v19253_v28 = vld [vmem:[#allocation7 + $0x344] sm:$0xf] }
  0xbd   :  { %2030 = vmatpush.bf16.msra.mxu0 %v13092_v40  ;;  %2044 = vmatpush.bf16.msra.mxu1 %v13220_v26  ;;  %v21310_v17 = vpack.c.bf16 %v358_v25, %v350_v16  ;;  %v353_v62 = vmax.f32 %v337_v53, 0.0  ;;  %v13060_v12 = vor.u32 %v19161_v49, %v13057_v50  ;;  %v13188_v8 = vor.u32 %v19193_v34, %v13185_v39  ;;  %v19221_v40 = vld [vmem:[#allocation7 + $0x244] sm:$0xf]  ;;  %v13297_v26 = vld [vmem:[#allocation7 + $0x250] sm:$0xf0] }
  0xbe   :  { %2058 = vmatpush.bf16.msra.mxu2 %v13348_v54  ;;  %2072 = vmatpush.bf16.msra.mxu3 %v13476_v32  ;;  %v21312_v38 = vpack.c.bf16 %v359_v56, %v351_v5  ;;  %v13316_v42 = vor.u32 %v19225_v3, %v13313_v47  ;;  %v21314_v51 = vpack.c.bf16 %v360_v2, %v352_v11  ;;  %v13425_v21 = vld [vmem:[#allocation7 + $0x350] sm:$0xf0]  ;;  %v19153_v7 = vld [vmem:[#allocation7 + $0x24] sm:$0xf] }
  0xbf   :  { %v21316_v52 = vpack.c.bf16 %v361_v61, %v353_v62  ;;  %v13444_v57 = vor.u32 %v19257_v63, %v13441_v48  ;;  %v13044_v59 = vor.u32 %v19157_v6, %v13041_v41  ;;  %v13172_v0 = vor.u32 %v19189_v58, %v13169_v24  ;;  %v13025_v1 = vld [vmem:[#allocation7 + $0x30] sm:$0xf0]  ;;  %v19185_v15 = vld [vmem:[#allocation7 + $0x124] sm:$0xf] }
  0xc0   :  { %1980 = vmatmul.bf16.vlgmr.msrb.gmra.mxu0 %v21310_v17  ;;  %v13300_v18 = vor.u32 %v19221_v40, %v13297_v26  ;;  %v13428_v46 = vor.u32 %v19253_v28, %v13425_v21  ;;  %v13153_v22 = vld [vmem:[#allocation7 + $0x130] sm:$0xf0]  ;;  %v19217_v23 = vld [vmem:[#allocation7 + $0x224] sm:$0xf]  ;;  %v13028_v55 = vor.u32 %v19153_v7, %v13025_v1 }
  0xc1   :  { %2031 = vmatpush.bf16.msra.mxu0 %v13076_v4  ;;  %2045 = vmatpush.bf16.msra.mxu1 %v13204_v43  ;;  %v13281_v54 = vld [vmem:[#allocation7 + $0x230] sm:$0xf0]  ;;  %v19249_v32 = vld [vmem:[#allocation7 + $0x324] sm:$0xf]  ;;  %v13156_v10 = vor.u32 %v19185_v15, %v13153_v22 }
  0xc2   :  { %2059 = vmatpush.bf16.msra.mxu2 %v13332_v19  ;;  %2073 = vmatpush.bf16.msra.mxu3 %v13460_v44  ;;  %v13409_v45 = vld [vmem:[#allocation7 + $0x330] sm:$0xf0]  ;;  %v19149_v37 = vld [vmem:[#allocation7 + $0x4] sm:$0xf]  ;;  %v13284_v36 = vor.u32 %v19217_v23, %v13281_v54 }
  0xc3   :  { %1994 = vmatmul.bf16.vlgmr.msrb.gmra.mxu1 %v21312_v38  ;;  %2008 = vmatmul.bf16.vlgmr.msrb.gmra.mxu2 %v21314_v51  ;;  %v13009_v13 = vld [vmem:[#allocation7 + $0x10] sm:$0xf0]  ;;  %v19181_v9 = vld [vmem:[#allocation7 + $0x104] sm:$0xf]  ;;  %v13412_v35 = vor.u32 %v19249_v32, %v13409_v45 }
  0xc4   :  { %2022 = vmatmul.bf16.vlgmr.msrb.gmra.mxu3 %v21316_v52  ;;  %v13137_v60 = vld [vmem:[#allocation7 + $0x110] sm:$0xf0]  ;;  %v19213_v31 = vld [vmem:[#allocation7 + $0x204] sm:$0xf]  ;;  %v13012_v43 = vor.u32 %v19149_v37, %v13009_v13 }
  0xc5   :  { %2032 = vmatpush.bf16.msra.mxu0 %v13060_v12  ;;  %2046 = vmatpush.bf16.msra.mxu1 %v13188_v8  ;;  %v13265_v20 = vld [vmem:[#allocation7 + $0x210] sm:$0xf0]  ;;  %v19245_v4 = vld [vmem:[#allocation7 + $0x304] sm:$0xf]  ;;  %v13140_v19 = vor.u32 %v19181_v9, %v13137_v60 }
  0xc6   :  { %2060 = vmatpush.bf16.msra.mxu2 %v13316_v42  ;;  %2074 = vmatpush.bf16.msra.mxu3 %v13444_v57  ;;  %v13393_v25 = vld [vmem:[#allocation7 + $0x310] sm:$0xf0]  ;;  %v19305_v56 = vld [vmem:[#allocation7 + $0x4e4] sm:$0xf]  ;;  %v13268_v3 = vor.u32 %v19213_v31, %v13265_v20 }
  0xc7   :  { %v13633_v33 = vld [vmem:[#allocation7 + $0x4f0] sm:$0xf0]  ;;  %v19337_v53 = vld [vmem:[#allocation7 + $0x5e4] sm:$0xf]  ;;  %v13396_v16 = vor.u32 %v19245_v4, %v13393_v25 }
  0xc8   :  { %v13761_v49 = vld [vmem:[#allocation7 + $0x5f0] sm:$0xf0]  ;;  %v19369_v50 = vld [vmem:[#allocation7 + $0x6e4] sm:$0xf]  ;;  %v13636_v5 = vor.u32 %v19305_v56, %v13633_v33 }
  0xc9   :  { %2033 = vmatpush.bf16.msra.mxu0 %v13044_v59  ;;  %2047 = vmatpush.bf16.msra.mxu1 %v13172_v0  ;;  %v13889_v44 = vld [vmem:[#allocation7 + $0x6f0] sm:$0xf0]  ;;  %v19401_v34 = vld [vmem:[#allocation7 + $0x7e4] sm:$0xf]  ;;  %v13764_v2 = vor.u32 %v19337_v53, %v13761_v49 }
  0xca   :  { %2061 = vmatpush.bf16.msra.mxu2 %v13300_v18  ;;  %2075 = vmatpush.bf16.msra.mxu3 %v13428_v46  ;;  %v14017_v39 = vld [vmem:[#allocation7 + $0x7f0] sm:$0xf0]  ;;  %v19301_v61 = vld [vmem:[#allocation7 + $0x4c4] sm:$0xf]  ;;  %v13892_v63 = vor.u32 %v19369_v50, %v13889_v44 }
  0xcb   :  { %v13617_v47 = vld [vmem:[#allocation7 + $0x4d0] sm:$0xf0]  ;;  %v14020_v48 = vor.u32 %v19401_v34, %v14017_v39  ;;  %v19333_v11 = vld [vmem:[#allocation7 + $0x5c4] sm:$0xf] }
  0xcc   :  { %v13745_v62 = vld [vmem:[#allocation7 + $0x5d0] sm:$0xf0]  ;;  %v19365_v12 = vld [vmem:[#allocation7 + $0x6c4] sm:$0xf]  ;;  %v13620_v41 = vor.u32 %v19301_v61, %v13617_v47 }
  0xcd   :  { %2034 = vmatpush.bf16.msra.mxu0 %v13028_v55  ;;  %2048 = vmatpush.bf16.msra.mxu1 %v13156_v10  ;;  %v13873_v8 = vld [vmem:[#allocation7 + $0x6d0] sm:$0xf0]  ;;  %v19397_v42 = vld [vmem:[#allocation7 + $0x7c4] sm:$0xf]  ;;  %v13748_v57 = vor.u32 %v19333_v11, %v13745_v62 }
  0xce   :  { %2062 = vmatpush.bf16.msra.mxu2 %v13284_v36  ;;  %2076 = vmatpush.bf16.msra.mxu3 %v13412_v35  ;;  %v14001_v6 = vld [vmem:[#allocation7 + $0x7d0] sm:$0xf0]  ;;  %v19297_v58 = vld [vmem:[#allocation7 + $0x4a4] sm:$0xf]  ;;  %v13876_v40 = vor.u32 %v19365_v12, %v13873_v8 }
  0xcf   :  { %v13601_v24 = vld [vmem:[#allocation7 + $0x4b0] sm:$0xf0]  ;;  %v14004_v26 = vor.u32 %v19397_v42, %v14001_v6  ;;  %v19329_v28 = vld [vmem:[#allocation7 + $0x5a4] sm:$0xf] }
  0xd0   :  { %v13729_v21 = vld [vmem:[#allocation7 + $0x5b0] sm:$0xf0]  ;;  %v19361_v59 = vld [vmem:[#allocation7 + $0x6a4] sm:$0xf]  ;;  %v13604_v18 = vor.u32 %v19297_v58, %v13601_v24 }
  0xd1   :  { %2035 = vmatpush.bf16.msra.mxu0 %v13012_v43  ;;  %2049 = vmatpush.bf16.msra.mxu1 %v13140_v19  ;;  %v13857_v0 = vld [vmem:[#allocation7 + $0x6b0] sm:$0xf0]  ;;  %v19393_v7 = vld [vmem:[#allocation7 + $0x7a4] sm:$0xf]  ;;  %v13732_v46 = vor.u32 %v19329_v28, %v13729_v21 }
  0xd2   :  { %2063 = vmatpush.bf16.msra.mxu2 %v13268_v3  ;;  %2077 = vmatpush.bf16.msra.mxu3 %v13396_v16  ;;  %v13985_v1 = vld [vmem:[#allocation7 + $0x7b0] sm:$0xf0]  ;;  %v19293_v15 = vld [vmem:[#allocation7 + $0x484] sm:$0xf]  ;;  %v13860_v23 = vor.u32 %v19361_v59, %v13857_v0 }
  0xd3   :  { %v13585_v22 = vld [vmem:[#allocation7 + $0x490] sm:$0xf0]  ;;  %v13988_v54 = vor.u32 %v19393_v7, %v13985_v1  ;;  %v19325_v32 = vld [vmem:[#allocation7 + $0x584] sm:$0xf] }
  0xd4   :  { %2036 = vmatmul.bf16.vlgmr.msra.gmra.mxu0 %v21254_v27  ;;  %2050 = vmatmul.bf16.vlgmr.msra.gmra.mxu1 %v21256_v30  ;;  %v13713_v45 = vld [vmem:[#allocation7 + $0x590] sm:$0xf0]  ;;  %v19357_v37 = vld [vmem:[#allocation7 + $0x684] sm:$0xf]  ;;  %v13588_v9 = vor.u32 %v19293_v15, %v13585_v22 }
  0xd5   :  { %2084 = vmatpush.bf16.msrb.mxu0 %v13636_v5  ;;  %2098 = vmatpush.bf16.msrb.mxu1 %v13764_v2  ;;  %v13841_v55 = vld [vmem:[#allocation7 + $0x690] sm:$0xf0]  ;;  %v19389_v10 = vld [vmem:[#allocation7 + $0x784] sm:$0xf]  ;;  %v13716_v60 = vor.u32 %v19325_v32, %v13713_v45  ;;  %v13255_v32 = vld [vmem:[#allocation7 + $0x1e8] sm:$0xf] }
  0xd6   :  { %2112 = vmatpush.bf16.msrb.mxu2 %v13892_v63  ;;  %2126 = vmatpush.bf16.msrb.mxu3 %v14020_v48  ;;  %v13969_v13 = vld [vmem:[#allocation7 + $0x790] sm:$0xf0]  ;;  %v19289_v36 = vld [vmem:[#allocation7 + $0x464] sm:$0xf]  ;;  %v13844_v31 = vor.u32 %v19357_v37, %v13841_v55  ;;  %v19212_v45 = vld [vmem:[#allocation7 + $0x1f4] sm:$0xf0] }
  0xd7   :  { %2064 = vmatmul.bf16.vlgmr.msra.gmra.mxu2 %v21261_v14  ;;  %2078 = vmatmul.bf16.vlgmr.msra.gmra.mxu3 %v21263_v29  ;;  %v13569_v35 = vld [vmem:[#allocation7 + $0x470] sm:$0xf0]  ;;  %v13972_v20 = vor.u32 %v19389_v10, %v13969_v13  ;;  %v19321_v4 = vld [vmem:[#allocation7 + $0x564] sm:$0xf]  ;;  %v13383_v37 = vld [vmem:[#allocation7 + $0x2e8] sm:$0xf] }
  0xd8   :  { %v13697_v25 = vld [vmem:[#allocation7 + $0x570] sm:$0xf0]  ;;  %v19353_v56 = vld [vmem:[#allocation7 + $0x664] sm:$0xf]  ;;  %v13572_v50 = vor.u32 %v19289_v36, %v13569_v35  ;;  %v19244_v13 = vld [vmem:[#allocation7 + $0x2f4] sm:$0xf0] }
  0xd9   :  { %2085 = vmatpush.bf16.msrb.mxu0 %v13620_v41  ;;  %2099 = vmatpush.bf16.msrb.mxu1 %v13748_v57  ;;  %v13825_v33 = vld [vmem:[#allocation7 + $0x670] sm:$0xf0]  ;;  %v19385_v53 = vld [vmem:[#allocation7 + $0x764] sm:$0xf]  ;;  %v13700_v43 = vor.u32 %v19321_v4, %v13697_v25  ;;  %v13111_v4 = vld [vmem:[#allocation7 + $0xc8] sm:$0xf] }
  0xda   :  { %2113 = vmatpush.bf16.msrb.mxu2 %v13876_v40  ;;  %2127 = vmatpush.bf16.msrb.mxu3 %v14004_v26  ;;  %v13953_v49 = vld [vmem:[#allocation7 + $0x770] sm:$0xf0]  ;;  %v19285_v19 = vld [vmem:[#allocation7 + $0x444] sm:$0xf]  ;;  %v13828_v34 = vor.u32 %v19353_v56, %v13825_v33  ;;  %v19176_v25 = vld [vmem:[#allocation7 + $0xd4] sm:$0xf0]  ;;  %v13384_v56 = vor.u32 %v19244_v13, %v13383_v37 }
  0xdb   :  { %v13553_v44 = vld [vmem:[#allocation7 + $0x450] sm:$0xf0]  ;;  %v13956_v39 = vor.u32 %v19385_v53, %v13953_v49  ;;  %v19317_v3 = vld [vmem:[#allocation7 + $0x544] sm:$0xf]  ;;  %v13239_v53 = vld [vmem:[#allocation7 + $0x1c8] sm:$0xf] }
  0xdc   :  { %v13681_v16 = vld [vmem:[#allocation7 + $0x550] sm:$0xf0]  ;;  %v19349_v5 = vld [vmem:[#allocation7 + $0x644] sm:$0xf]  ;;  %v13556_v63 = vor.u32 %v19285_v19, %v13553_v44  ;;  %v19208_v49 = vld [vmem:[#allocation7 + $0x1d4] sm:$0xf0] }
  0xdd   :  { %2086 = vmatpush.bf16.msrb.mxu0 %v13604_v18  ;;  %2100 = vmatpush.bf16.msrb.mxu1 %v13732_v46  ;;  %v13809_v2 = vld [vmem:[#allocation7 + $0x650] sm:$0xf0]  ;;  %v19381_v61 = vld [vmem:[#allocation7 + $0x744] sm:$0xf]  ;;  %v13684_v48 = vor.u32 %v19317_v3, %v13681_v16  ;;  %v13495_v19 = vld [vmem:[#allocation7 + $0x3c8] sm:$0xf] }
  0xde   :  { %2114 = vmatpush.bf16.msrb.mxu2 %v13860_v23  ;;  %2128 = vmatpush.bf16.msrb.mxu3 %v13988_v54  ;;  %v13937_v47 = vld [vmem:[#allocation7 + $0x750] sm:$0xf0]  ;;  %v19281_v11 = vld [vmem:[#allocation7 + $0x424] sm:$0xf]  ;;  %v13812_v12 = vor.u32 %v19349_v5, %v13809_v2  ;;  %v13127_v23 = vld [vmem:[#allocation7 + $0xe8] sm:$0xf] }
  0xdf   :  { %v13537_v62 = vld [vmem:[#allocation7 + $0x430] sm:$0xf0]  ;;  %v13940_v8 = vor.u32 %v19381_v61, %v13937_v47  ;;  %v19313_v42 = vld [vmem:[#allocation7 + $0x524] sm:$0xf]  ;;  %v19180_v54 = vld [vmem:[#allocation7 + $0xf4] sm:$0xf0] }
  0xe0   :  { %v13665_v6 = vld [vmem:[#allocation7 + $0x530] sm:$0xf0]  ;;  %v19345_v41 = vld [vmem:[#allocation7 + $0x624] sm:$0xf]  ;;  %v13540_v26 = vor.u32 %v19281_v11, %v13537_v62  ;;  %v19272_v44 = vld [vmem:[#allocation7 + $0x3d4] sm:$0xf0] }
  0xe1   :  { %2087 = vmatpush.bf16.msrb.mxu0 %v13588_v9  ;;  %2101 = vmatpush.bf16.msrb.mxu1 %v13716_v60  ;;  %v13793_v57 = vld [vmem:[#allocation7 + $0x630] sm:$0xf0]  ;;  %v19377_v58 = vld [vmem:[#allocation7 + $0x724] sm:$0xf]  ;;  %v13668_v28 = vor.u32 %v19313_v42, %v13665_v6  ;;  %v13511_v9 = vld [vmem:[#allocation7 + $0x3e8] sm:$0xf]  ;;  %v13496_v2 = vor.u32 %v19272_v44, %v13495_v19 }
  0xe2   :  { %2115 = vmatpush.bf16.msrb.mxu2 %v13844_v31  ;;  %2129 = vmatpush.bf16.msrb.mxu3 %v13972_v20  ;;  %v13921_v24 = vld [vmem:[#allocation7 + $0x730] sm:$0xf0]  ;;  %v19277_v40 = vld [vmem:[#allocation7 + $0x404] sm:$0xf]  ;;  %v13796_v7 = vor.u32 %v19345_v41, %v13793_v57  ;;  %v19276_v60 = vld [vmem:[#allocation7 + $0x3f4] sm:$0xf0]  ;;  %v13128_v31 = vor.u32 %v19180_v54, %v13127_v23  ;;  %v13256_v20 = vor.u32 %v19212_v45, %v13255_v32 }
  0xe3   :  { %v13521_v21 = vld [vmem:[#allocation7 + $0x410] sm:$0xf0]  ;;  %v19309_v59 = vld [vmem:[#allocation7 + $0x504] sm:$0xf]  ;;  %v13924_v1 = vor.u32 %v19377_v58, %v13921_v24  ;;  %v13512_v33 = vor.u32 %v19276_v60, %v13511_v9  ;;  %v13095_v3 = vld [vmem:[#allocation7 + $0xa8] sm:$0xf] }
  0xe4   :  { %v13649_v0 = vld [vmem:[#allocation7 + $0x510] sm:$0xf0]  ;;  %v19341_v18 = vld [vmem:[#allocation7 + $0x604] sm:$0xf]  ;;  %v13524_v55 = vor.u32 %v19277_v40, %v13521_v21  ;;  %v19172_v16 = vld [vmem:[#allocation7 + $0xb4] sm:$0xf0] }
  0xe5   :  { %2088 = vmatpush.bf16.msrb.mxu0 %v13572_v50  ;;  %2102 = vmatpush.bf16.msrb.mxu1 %v13700_v43  ;;  %v13777_v46 = vld [vmem:[#allocation7 + $0x610] sm:$0xf0]  ;;  %v19373_v15 = vld [vmem:[#allocation7 + $0x704] sm:$0xf]  ;;  %v13652_v10 = vor.u32 %v19309_v59, %v13649_v0  ;;  %v13367_v50 = vld [vmem:[#allocation7 + $0x2c8] sm:$0xf] }
  0xe6   :  { %2116 = vmatpush.bf16.msrb.mxu2 %v13828_v34  ;;  %2130 = vmatpush.bf16.msrb.mxu3 %v13956_v39  ;;  %v13905_v22 = vld [vmem:[#allocation7 + $0x710] sm:$0xf0]  ;;  %v13780_v36 = vor.u32 %v19341_v18, %v13777_v46  ;;  %v19240_v43 = vld [vmem:[#allocation7 + $0x2d4] sm:$0xf0]  ;;  %v13112_v34 = vor.u32 %v19176_v25, %v13111_v4  ;;  %v13240_v39 = vor.u32 %v19208_v49, %v13239_v53  ;;  %v13223_v61 = vld [vmem:[#allocation7 + $0x1a8] sm:$0xf] }
  0xe7   :  { %v13908_v35 = vor.u32 %v19373_v15, %v13905_v22  ;;  %v13368_v5 = vor.u32 %v19240_v43, %v13367_v50  ;;  %v19204_v47 = vld [vmem:[#allocation7 + $0x1b4] sm:$0xf0]  ;;  %v13479_v11 = vld [vmem:[#allocation7 + $0x3a8] sm:$0xf] }
  0xe8   :  { %v19268_v62 = vld [vmem:[#allocation7 + $0x3b4] sm:$0xf0]  ;;  %v13079_v42 = vld [vmem:[#allocation7 + $0x88] sm:$0xf] }
  0xe9   :  { %2089 = vmatpush.bf16.msrb.mxu0 %v13556_v63  ;;  %2103 = vmatpush.bf16.msrb.mxu1 %v13684_v48  ;;  %v13351_v63 = vld [vmem:[#allocation7 + $0x2a8] sm:$0xf]  ;;  %v19236_v48 = vld [vmem:[#allocation7 + $0x2b4] sm:$0xf0]  ;;  %v13480_v57 = vor.u32 %v19268_v62, %v13479_v11 }
  0xea   :  { %2117 = vmatpush.bf16.msrb.mxu2 %v13812_v12  ;;  %2131 = vmatpush.bf16.msrb.mxu3 %v13940_v8  ;;  %v13096_v12 = vor.u32 %v19172_v16, %v13095_v3  ;;  %v13224_v8 = vor.u32 %v19204_v47, %v13223_v61  ;;  %v19168_v6 = vld [vmem:[#allocation7 + $0x94] sm:$0xf0]  ;;  %v13352_v41 = vor.u32 %v19236_v48, %v13351_v63  ;;  %v13207_v58 = vld [vmem:[#allocation7 + $0x188] sm:$0xf] }
  0xeb   :  { %v19200_v24 = vld [vmem:[#allocation7 + $0x194] sm:$0xf0]  ;;  %v13335_v40 = vld [vmem:[#allocation7 + $0x288] sm:$0xf]  ;;  %v13080_v59 = vor.u32 %v19168_v6, %v13079_v42 }
  0xec   :  { %v19264_v21 = vld [vmem:[#allocation7 + $0x394] sm:$0xf0]  ;;  %v13208_v0 = vor.u32 %v19200_v24, %v13207_v58  ;;  %v13191_v15 = vld [vmem:[#allocation7 + $0x168] sm:$0xf] }
  0xed   :  { %2090 = vmatpush.bf16.msrb.mxu0 %v13540_v26  ;;  %2104 = vmatpush.bf16.msrb.mxu1 %v13668_v28  ;;  %v19232_v26 = vld [vmem:[#allocation7 + $0x294] sm:$0xf0]  ;;  %v13463_v28 = vld [vmem:[#allocation7 + $0x388] sm:$0xf] }
  0xee   :  { %2118 = vmatpush.bf16.msrb.mxu2 %v13796_v7  ;;  %2132 = vmatpush.bf16.msrb.mxu3 %v13924_v1  ;;  %v13063_v7 = vld [vmem:[#allocation7 + $0x68] sm:$0xf]  ;;  %v19164_v1 = vld [vmem:[#allocation7 + $0x74] sm:$0xf0]  ;;  %v13336_v18 = vor.u32 %v19232_v26, %v13335_v40  ;;  %v13464_v46 = vor.u32 %v19264_v21, %v13463_v28 }
  0xef   :  { %v19196_v22 = vld [vmem:[#allocation7 + $0x174] sm:$0xf0]  ;;  %v13319_v23 = vld [vmem:[#allocation7 + $0x268] sm:$0xf]  ;;  %v13064_v37 = vor.u32 %v19164_v1, %v13063_v7 }
  0xf0   :  { %v19228_v54 = vld [vmem:[#allocation7 + $0x274] sm:$0xf0]  ;;  %v13447_v32 = vld [vmem:[#allocation7 + $0x368] sm:$0xf] }
  0xf1   :  { %2091 = vmatpush.bf16.msrb.mxu0 %v13524_v55  ;;  %2105 = vmatpush.bf16.msrb.mxu1 %v13652_v10  ;;  %v19260_v45 = vld [vmem:[#allocation7 + $0x374] sm:$0xf0]  ;;  %v13192_v55 = vor.u32 %v19196_v22, %v13191_v15  ;;  %v13047_v10 = vld [vmem:[#allocation7 + $0x48] sm:$0xf]  ;;  %v13320_v9 = vor.u32 %v19228_v54, %v13319_v23 }
  0xf2   :  { %2119 = vmatpush.bf16.msrb.mxu2 %v13780_v36  ;;  %2133 = vmatpush.bf16.msrb.mxu3 %v13908_v35  ;;  %v19160_v13 = vld [vmem:[#allocation7 + $0x54] sm:$0xf0]  ;;  %v13448_v60 = vor.u32 %v19260_v45, %v13447_v32  ;;  %v13175_v36 = vld [vmem:[#allocation7 + $0x148] sm:$0xf] }
  0xf3   :  { %v19192_v35 = vld [vmem:[#allocation7 + $0x154] sm:$0xf0]  ;;  %v13431_v4 = vld [vmem:[#allocation7 + $0x348] sm:$0xf] }
  0xf4   :  { %2092 = vmatmul.bf16.vlgmr.msrb.gmra.mxu0 %v21310_v17  ;;  %2106 = vmatmul.bf16.vlgmr.msrb.gmra.mxu1 %v21312_v38  ;;  %v19256_v25 = vld [vmem:[#allocation7 + $0x354] sm:$0xf0]  ;;  %v13031_v53 = vld [vmem:[#allocation7 + $0x28] sm:$0xf] }
  0xf5   :  { %2140 = vmatpush.bf16.msra.mxu0 %v13128_v31  ;;  %2154 = vmatpush.bf16.msra.mxu1 %v13256_v20  ;;  %v13303_v31 = vld [vmem:[#allocation7 + $0x248] sm:$0xf]  ;;  %v19224_v20 = vld [vmem:[#allocation7 + $0x254] sm:$0xf0]  ;;  %v13432_v43 = vor.u32 %v19256_v25, %v13431_v4 }
  0xf6   :  { %2168 = vmatpush.bf16.msra.mxu2 %v13384_v56  ;;  %2182 = vmatpush.bf16.msra.mxu3 %v13512_v33  ;;  %v13048_v56 = vor.u32 %v19160_v13, %v13047_v10  ;;  %v13176_v33 = vor.u32 %v19192_v35, %v13175_v36  ;;  %v19156_v49 = vld [vmem:[#allocation7 + $0x34] sm:$0xf0]  ;;  %v13304_v50 = vor.u32 %v19224_v20, %v13303_v31  ;;  %v13159_v19 = vld [vmem:[#allocation7 + $0x128] sm:$0xf] }
  0xf7   :  { %2120 = vmatmul.bf16.vlgmr.msrb.gmra.mxu2 %v21314_v51  ;;  %2134 = vmatmul.bf16.vlgmr.msrb.gmra.mxu3 %v21316_v52  ;;  %v19188_v44 = vld [vmem:[#allocation7 + $0x134] sm:$0xf0]  ;;  %v13415_v3 = vld [vmem:[#allocation7 + $0x328] sm:$0xf] }
  0xf8   :  { %v19252_v16 = vld [vmem:[#allocation7 + $0x334] sm:$0xf0]  ;;  %v13160_v61 = vor.u32 %v19188_v44, %v13159_v19  ;;  %v13143_v63 = vld [vmem:[#allocation7 + $0x108] sm:$0xf] }
  0xf9   :  { %2141 = vmatpush.bf16.msra.mxu0 %v13112_v34  ;;  %2155 = vmatpush.bf16.msra.mxu1 %v13240_v39  ;;  %v13287_v34 = vld [vmem:[#allocation7 + $0x228] sm:$0xf]  ;;  %v19220_v39 = vld [vmem:[#allocation7 + $0x234] sm:$0xf0]  ;;  %v13416_v62 = vor.u32 %v19252_v16, %v13415_v3 }
  0xfa   :  { %2169 = vmatpush.bf16.msra.mxu2 %v13368_v5  ;;  %2183 = vmatpush.bf16.msra.mxu3 %v13496_v2  ;;  %v13015_v5 = vld [vmem:[#allocation7 + $0x8] sm:$0xf]  ;;  %v13032_v2 = vor.u32 %v19156_v49, %v13031_v53  ;;  %v19152_v47 = vld [vmem:[#allocation7 + $0x14] sm:$0xf0]  ;;  %v13288_v11 = vor.u32 %v19220_v39, %v13287_v34 }
  0xfb   :  { %v19184_v48 = vld [vmem:[#allocation7 + $0x114] sm:$0xf0]  ;;  %v13399_v42 = vld [vmem:[#allocation7 + $0x308] sm:$0xf]  ;;  %v13016_v26 = vor.u32 %v19152_v47, %v13015_v5 }
  0xfc   :  { %v19248_v6 = vld [vmem:[#allocation7 + $0x314] sm:$0xf0]  ;;  %v13767_v58 = vld [vmem:[#allocation7 + $0x5e8] sm:$0xf]  ;;  %v13144_v28 = vor.u32 %v19184_v48, %v13143_v63 }
  0xfd   :  { %2142 = vmatpush.bf16.msra.mxu0 %v13096_v12  ;;  %2156 = vmatpush.bf16.msra.mxu1 %v13224_v8  ;;  %v13271_v12 = vld [vmem:[#allocation7 + $0x208] sm:$0xf]  ;;  %v19216_v8 = vld [vmem:[#allocation7 + $0x214] sm:$0xf0]  ;;  %v13400_v1 = vor.u32 %v19248_v6, %v13399_v42 }
  0xfe   :  { %2170 = vmatpush.bf16.msra.mxu2 %v13352_v41  ;;  %2184 = vmatpush.bf16.msra.mxu3 %v13480_v57  ;;  %v13639_v41 = vld [vmem:[#allocation7 + $0x4e8] sm:$0xf]  ;;  %v19308_v57 = vld [vmem:[#allocation7 + $0x4f4] sm:$0xf0]  ;;  %v13272_v7 = vor.u32 %v19216_v8, %v13271_v12 }
  0xff   :  { %v19340_v24 = vld [vmem:[#allocation7 + $0x5f4] sm:$0xf0]  ;;  %v13895_v40 = vld [vmem:[#allocation7 + $0x6e8] sm:$0xf] }
 0x100   :  { %v19372_v21 = vld [vmem:[#allocation7 + $0x6f4] sm:$0xf0]  ;;  %v13623_v15 = vld [vmem:[#allocation7 + $0x4c8] sm:$0xf] }
 0x101   :  { %2143 = vmatpush.bf16.msra.mxu0 %v13080_v59  ;;  %2157 = vmatpush.bf16.msra.mxu1 %v13208_v0  ;;  %v14023_v59 = vld [vmem:[#allocation7 + $0x7e8] sm:$0xf]  ;;  %v19404_v0 = vld [vmem:[#allocation7 + $0x7f4] sm:$0xf0]  ;;  %v13896_v23 = vor.u32 %v19372_v21, %v13895_v40 }
 0x102   :  { %2171 = vmatpush.bf16.msra.mxu2 %v13336_v18  ;;  %2185 = vmatpush.bf16.msra.mxu3 %v13464_v46  ;;  %v13640_v18 = vor.u32 %v19308_v57, %v13639_v41  ;;  %v13768_v46 = vor.u32 %v19340_v24, %v13767_v58  ;;  %v19304_v22 = vld [vmem:[#allocation7 + $0x4d4] sm:$0xf0]  ;;  %v14024_v54 = vor.u32 %v19404_v0, %v14023_v59  ;;  %v13751_v32 = vld [vmem:[#allocation7 + $0x5c8] sm:$0xf] }
 0x103   :  { %v19336_v45 = vld [vmem:[#allocation7 + $0x5d4] sm:$0xf0]  ;;  %v14007_v10 = vld [vmem:[#allocation7 + $0x7c8] sm:$0xf] }
 0x104   :  { %v19400_v13 = vld [vmem:[#allocation7 + $0x7d4] sm:$0xf0]  ;;  %v13607_v36 = vld [vmem:[#allocation7 + $0x4a8] sm:$0xf] }
 0x105   :  { %2144 = vmatpush.bf16.msra.mxu0 %v13064_v37  ;;  %2158 = vmatpush.bf16.msra.mxu1 %v13192_v55  ;;  %v13879_v37 = vld [vmem:[#allocation7 + $0x6c8] sm:$0xf]  ;;  %v19368_v55 = vld [vmem:[#allocation7 + $0x6d4] sm:$0xf0]  ;;  %v14008_v20 = vor.u32 %v19400_v13, %v14007_v10 }
 0x106   :  { %2172 = vmatpush.bf16.msra.mxu2 %v13320_v9  ;;  %2186 = vmatpush.bf16.msra.mxu3 %v13448_v60  ;;  %v13624_v9 = vor.u32 %v19304_v22, %v13623_v15  ;;  %v13752_v60 = vor.u32 %v19336_v45, %v13751_v32  ;;  %v19300_v35 = vld [vmem:[#allocation7 + $0x4b4] sm:$0xf0]  ;;  %v13880_v31 = vor.u32 %v19368_v55, %v13879_v37  ;;  %v13735_v4 = vld [vmem:[#allocation7 + $0x5a8] sm:$0xf] }
 0x107   :  { %v19332_v25 = vld [vmem:[#allocation7 + $0x5b4] sm:$0xf0]  ;;  %v13991_v53 = vld [vmem:[#allocation7 + $0x7a8] sm:$0xf] }
 0x108   :  { %v19396_v49 = vld [vmem:[#allocation7 + $0x7b4] sm:$0xf0]  ;;  %v13591_v19 = vld [vmem:[#allocation7 + $0x488] sm:$0xf] }
 0x109   :  { %2145 = vmatpush.bf16.msra.mxu0 %v13048_v56  ;;  %2159 = vmatpush.bf16.msra.mxu1 %v13176_v33  ;;  %v13863_v56 = vld [vmem:[#allocation7 + $0x6a8] sm:$0xf]  ;;  %v19364_v33 = vld [vmem:[#allocation7 + $0x6b4] sm:$0xf0]  ;;  %v13992_v39 = vor.u32 %v19396_v49, %v13991_v53 }
 0x10a   :  { %2173 = vmatpush.bf16.msra.mxu2 %v13304_v50  ;;  %2187 = vmatpush.bf16.msra.mxu3 %v13432_v43  ;;  %v13608_v50 = vor.u32 %v19300_v35, %v13607_v36  ;;  %v13736_v43 = vor.u32 %v19332_v25, %v13735_v4  ;;  %v19296_v44 = vld [vmem:[#allocation7 + $0x494] sm:$0xf0]  ;;  %v13864_v34 = vor.u32 %v19364_v33, %v13863_v56  ;;  %v13719_v3 = vld [vmem:[#allocation7 + $0x588] sm:$0xf] }
 0x10b   :  { %v19328_v16 = vld [vmem:[#allocation7 + $0x594] sm:$0xf0]  ;;  %v13847_v5 = vld [vmem:[#allocation7 + $0x688] sm:$0xf]  ;;  %v13592_v63 = vor.u32 %v19296_v44, %v13591_v19 }
 0x10c   :  { %v19392_v47 = vld [vmem:[#allocation7 + $0x794] sm:$0xf0]  ;;  %v13720_v48 = vor.u32 %v19328_v16, %v13719_v3  ;;  %v13703_v42 = vld [vmem:[#allocation7 + $0x568] sm:$0xf]  ;;  %v19210_v3 = vld [vmem:[#allocation7 + $0x1ec] sm:$0xf] }
 0x10d   :  { %2146 = vmatpush.bf16.msra.mxu0 %v13032_v2  ;;  %2160 = vmatpush.bf16.msra.mxu1 %v13160_v61  ;;  %v19360_v2 = vld [vmem:[#allocation7 + $0x694] sm:$0xf0]  ;;  %v13975_v61 = vld [vmem:[#allocation7 + $0x788] sm:$0xf]  ;;  %v13257_v16 = vld [vmem:[#allocation7 + $0x1f8] sm:$0xf0] }
 0x10e   :  { %2174 = vmatpush.bf16.msra.mxu2 %v13288_v11  ;;  %2188 = vmatpush.bf16.msra.mxu3 %v13416_v62  ;;  %v13575_v11 = vld [vmem:[#allocation7 + $0x468] sm:$0xf]  ;;  %v19292_v62 = vld [vmem:[#allocation7 + $0x474] sm:$0xf0]  ;;  %v13848_v12 = vor.u32 %v19360_v2, %v13847_v5  ;;  %v13976_v8 = vor.u32 %v19392_v47, %v13975_v61  ;;  %v19242_v5 = vld [vmem:[#allocation7 + $0x2ec] sm:$0xf] }
 0x10f   :  { %v19324_v6 = vld [vmem:[#allocation7 + $0x574] sm:$0xf0]  ;;  %v13831_v41 = vld [vmem:[#allocation7 + $0x668] sm:$0xf]  ;;  %v13576_v40 = vor.u32 %v19292_v62, %v13575_v11  ;;  %v13385_v47 = vld [vmem:[#allocation7 + $0x2f8] sm:$0xf0] }
 0x110   :  { %v19356_v57 = vld [vmem:[#allocation7 + $0x674] sm:$0xf0]  ;;  %v13959_v58 = vld [vmem:[#allocation7 + $0x768] sm:$0xf] }
 0x111   :  { %2147 = vmatpush.bf16.msra.mxu0 %v13016_v26  ;;  %2161 = vmatpush.bf16.msra.mxu1 %v13144_v28  ;;  %v19388_v24 = vld [vmem:[#allocation7 + $0x774] sm:$0xf0]  ;;  %v13704_v26 = vor.u32 %v19324_v6, %v13703_v42  ;;  %v13559_v28 = vld [vmem:[#allocation7 + $0x448] sm:$0xf]  ;;  %v13832_v59 = vor.u32 %v19356_v57, %v13831_v41  ;;  %v19174_v42 = vld [vmem:[#allocation7 + $0xcc] sm:$0xf]  ;;  %v13388_v41 = vor.u32 %v19242_v5, %v13385_v47 }
 0x112   :  { %2175 = vmatpush.bf16.msra.mxu2 %v13272_v7  ;;  %2189 = vmatpush.bf16.msra.mxu3 %v13400_v1  ;;  %v19288_v21 = vld [vmem:[#allocation7 + $0x454] sm:$0xf0]  ;;  %v13960_v0 = vor.u32 %v19388_v24, %v13959_v58  ;;  %v13687_v7 = vld [vmem:[#allocation7 + $0x548] sm:$0xf]  ;;  %v13113_v6 = vld [vmem:[#allocation7 + $0xd8] sm:$0xf0] }
 0x113   :  { %v19320_v1 = vld [vmem:[#allocation7 + $0x554] sm:$0xf0]  ;;  %v13943_v15 = vld [vmem:[#allocation7 + $0x748] sm:$0xf]  ;;  %v19206_v58 = vld [vmem:[#allocation7 + $0x1cc] sm:$0xf] }
 0x114   :  { %2148 = vmatmul.bf16.vlgmr.msra.gmra.mxu0 %v21254_v27  ;;  %2162 = vmatmul.bf16.vlgmr.msra.gmra.mxu1 %v21256_v30  ;;  %v19384_v22 = vld [vmem:[#allocation7 + $0x754] sm:$0xf0]  ;;  %v13543_v32 = vld [vmem:[#allocation7 + $0x428] sm:$0xf]  ;;  %v13241_v24 = vld [vmem:[#allocation7 + $0x1d8] sm:$0xf0] }
 0x115   :  { %2196 = vmatpush.bf16.msrb.mxu0 %v13640_v18  ;;  %2210 = vmatpush.bf16.msrb.mxu1 %v13768_v46  ;;  %v13815_v18 = vld [vmem:[#allocation7 + $0x648] sm:$0xf]  ;;  %v19352_v46 = vld [vmem:[#allocation7 + $0x654] sm:$0xf0]  ;;  %v13944_v55 = vor.u32 %v19384_v22, %v13943_v15  ;;  %v19202_v15 = vld [vmem:[#allocation7 + $0x1ac] sm:$0xf] }
 0x116   :  { %2224 = vmatpush.bf16.msrb.mxu2 %v13896_v23  ;;  %2238 = vmatpush.bf16.msrb.mxu3 %v14024_v54  ;;  %v13560_v23 = vor.u32 %v19288_v21, %v13559_v28  ;;  %v13688_v54 = vor.u32 %v19320_v1, %v13687_v7  ;;  %v19284_v45 = vld [vmem:[#allocation7 + $0x434] sm:$0xf0]  ;;  %v13816_v37 = vor.u32 %v19352_v46, %v13815_v18  ;;  %v13671_v10 = vld [vmem:[#allocation7 + $0x528] sm:$0xf]  ;;  %v19270_v28 = vld [vmem:[#allocation7 + $0x3cc] sm:$0xf] }
 0x117   :  { %2176 = vmatmul.bf16.vlgmr.msra.gmra.mxu2 %v21261_v14  ;;  %2190 = vmatmul.bf16.vlgmr.msra.gmra.mxu3 %v21263_v29  ;;  %v19316_v13 = vld [vmem:[#allocation7 + $0x534] sm:$0xf0]  ;;  %v13927_v36 = vld [vmem:[#allocation7 + $0x728] sm:$0xf]  ;;  %v13497_v21 = vld [vmem:[#allocation7 + $0x3d8] sm:$0xf0] }
 0x118   :  { %v19380_v35 = vld [vmem:[#allocation7 + $0x734] sm:$0xf0]  ;;  %v13672_v4 = vor.u32 %v19316_v13, %v13671_v10  ;;  %v13655_v56 = vld [vmem:[#allocation7 + $0x508] sm:$0xf]  ;;  %v19170_v7 = vld [vmem:[#allocation7 + $0xac] sm:$0xf]  ;;  %v13500_v46 = vor.u32 %v19270_v28, %v13497_v21 }
 0x119   :  { %2197 = vmatpush.bf16.msrb.mxu0 %v13624_v9  ;;  %2211 = vmatpush.bf16.msrb.mxu1 %v13752_v60  ;;  %v13799_v9 = vld [vmem:[#allocation7 + $0x628] sm:$0xf]  ;;  %v19348_v60 = vld [vmem:[#allocation7 + $0x634] sm:$0xf0]  ;;  %v13928_v49 = vor.u32 %v19380_v35, %v13927_v36  ;;  %v13097_v1 = vld [vmem:[#allocation7 + $0xb8] sm:$0xf0] }
 0x11a   :  { %2225 = vmatpush.bf16.msrb.mxu2 %v13880_v31  ;;  %2239 = vmatpush.bf16.msrb.mxu3 %v14008_v20  ;;  %v13527_v31 = vld [vmem:[#allocation7 + $0x408] sm:$0xf]  ;;  %v13544_v20 = vor.u32 %v19284_v45, %v13543_v32  ;;  %v19280_v25 = vld [vmem:[#allocation7 + $0x414] sm:$0xf0]  ;;  %v13800_v53 = vor.u32 %v19348_v60, %v13799_v9  ;;  %v13225_v22 = vld [vmem:[#allocation7 + $0x1b8] sm:$0xf0] }
 0x11b   :  { %v19312_v33 = vld [vmem:[#allocation7 + $0x514] sm:$0xf0]  ;;  %v13911_v19 = vld [vmem:[#allocation7 + $0x708] sm:$0xf]  ;;  %v13528_v2 = vor.u32 %v19280_v25, %v13527_v31  ;;  %v19266_v32 = vld [vmem:[#allocation7 + $0x3ac] sm:$0xf] }
 0x11c   :  { %v19376_v44 = vld [vmem:[#allocation7 + $0x714] sm:$0xf0]  ;;  %v13656_v61 = vor.u32 %v19312_v33, %v13655_v56  ;;  %v13481_v45 = vld [vmem:[#allocation7 + $0x3b8] sm:$0xf0]  ;;  %v19166_v10 = vld [vmem:[#allocation7 + $0x8c] sm:$0xf] }
 0x11d   :  { %2198 = vmatpush.bf16.msrb.mxu0 %v13608_v50  ;;  %2212 = vmatpush.bf16.msrb.mxu1 %v13736_v43  ;;  %v13783_v50 = vld [vmem:[#allocation7 + $0x608] sm:$0xf]  ;;  %v19344_v43 = vld [vmem:[#allocation7 + $0x614] sm:$0xf0]  ;;  %v13912_v62 = vor.u32 %v19376_v44, %v13911_v19  ;;  %v13081_v13 = vld [vmem:[#allocation7 + $0x98] sm:$0xf0]  ;;  %v13484_v60 = vor.u32 %v19266_v32, %v13481_v45 }
 0x11e   :  { %2226 = vmatpush.bf16.msrb.mxu2 %v13864_v34  ;;  %2240 = vmatpush.bf16.msrb.mxu3 %v13992_v39  ;;  %v19178_v34 = vld [vmem:[#allocation7 + $0xec] sm:$0xf]  ;;  %v13129_v39 = vld [vmem:[#allocation7 + $0xf8] sm:$0xf0]  ;;  %v13784_v11 = vor.u32 %v19344_v43, %v13783_v50  ;;  %v13084_v56 = vor.u32 %v19166_v10, %v13081_v13 }
 0x11f   :  { %v19198_v36 = vld [vmem:[#allocation7 + $0x18c] sm:$0xf]  ;;  %v13209_v35 = vld [vmem:[#allocation7 + $0x198] sm:$0xf0] }
 0x120   :  { %v19230_v31 = vld [vmem:[#allocation7 + $0x28c] sm:$0xf]  ;;  %v13465_v25 = vld [vmem:[#allocation7 + $0x398] sm:$0xf0]  ;;  %v13212_v33 = vor.u32 %v19198_v36, %v13209_v35 }
 0x121   :  { %2199 = vmatpush.bf16.msrb.mxu0 %v13592_v63  ;;  %2213 = vmatpush.bf16.msrb.mxu1 %v13720_v48  ;;  %v19274_v63 = vld [vmem:[#allocation7 + $0x3ec] sm:$0xf]  ;;  %v13513_v48 = vld [vmem:[#allocation7 + $0x3f8] sm:$0xf0] }
 0x122   :  { %2227 = vmatpush.bf16.msrb.mxu2 %v13848_v12  ;;  %2241 = vmatpush.bf16.msrb.mxu3 %v13976_v8  ;;  %v13132_v12 = vor.u32 %v19178_v34, %v13129_v39  ;;  %v13260_v8 = vor.u32 %v19210_v3, %v13257_v16  ;;  %v13516_v57 = vor.u32 %v19274_v63, %v13513_v48  ;;  %v19194_v44 = vld [vmem:[#allocation7 + $0x16c] sm:$0xf]  ;;  %v13193_v34 = vld [vmem:[#allocation7 + $0x178] sm:$0xf0] }
 0x123   :  { %v19226_v39 = vld [vmem:[#allocation7 + $0x26c] sm:$0xf]  ;;  %v13321_v3 = vld [vmem:[#allocation7 + $0x278] sm:$0xf0]  ;;  %v13196_v47 = vor.u32 %v19194_v44, %v13193_v34 }
 0x124   :  { %v19258_v16 = vld [vmem:[#allocation7 + $0x36c] sm:$0xf]  ;;  %v13449_v5 = vld [vmem:[#allocation7 + $0x378] sm:$0xf0] }
 0x125   :  { %2200 = vmatpush.bf16.msrb.mxu0 %v13576_v40  ;;  %2214 = vmatpush.bf16.msrb.mxu1 %v13704_v26  ;;  %v19238_v40 = vld [vmem:[#allocation7 + $0x2cc] sm:$0xf]  ;;  %v13369_v26 = vld [vmem:[#allocation7 + $0x2d8] sm:$0xf0] }
 0x126   :  { %2228 = vmatpush.bf16.msrb.mxu2 %v13832_v59  ;;  %2242 = vmatpush.bf16.msrb.mxu3 %v13960_v0  ;;  %v13116_v59 = vor.u32 %v19174_v42, %v13113_v6  ;;  %v13244_v0 = vor.u32 %v19206_v58, %v13241_v24  ;;  %v13372_v18 = vor.u32 %v19238_v40, %v13369_v26  ;;  %v19158_v63 = vld [vmem:[#allocation7 + $0x4c] sm:$0xf]  ;;  %v13049_v48 = vld [vmem:[#allocation7 + $0x58] sm:$0xf0] }
 0x127   :  { %v19222_v42 = vld [vmem:[#allocation7 + $0x24c] sm:$0xf]  ;;  %v13305_v6 = vld [vmem:[#allocation7 + $0x258] sm:$0xf0]  ;;  %v13052_v40 = vor.u32 %v19158_v63, %v13049_v48 }
 0x128   :  { %v19154_v28 = vld [vmem:[#allocation7 + $0x2c] sm:$0xf]  ;;  %v13033_v21 = vld [vmem:[#allocation7 + $0x38] sm:$0xf0] }
 0x129   :  { %2201 = vmatpush.bf16.msrb.mxu0 %v13560_v23  ;;  %2215 = vmatpush.bf16.msrb.mxu1 %v13688_v54  ;;  %v19234_v23 = vld [vmem:[#allocation7 + $0x2ac] sm:$0xf]  ;;  %v13353_v54 = vld [vmem:[#allocation7 + $0x2b8] sm:$0xf0]  ;;  %v13036_v32 = vor.u32 %v19154_v28, %v13033_v21 }
 0x12a   :  { %2229 = vmatpush.bf16.msrb.mxu2 %v13816_v37  ;;  %2243 = vmatpush.bf16.msrb.mxu3 %v13944_v55  ;;  %v13100_v37 = vor.u32 %v19170_v7, %v13097_v1  ;;  %v13228_v55 = vor.u32 %v19202_v15, %v13225_v22  ;;  %v13356_v9 = vor.u32 %v19234_v23, %v13353_v54  ;;  %v19186_v7 = vld [vmem:[#allocation7 + $0x12c] sm:$0xf]  ;;  %v13161_v1 = vld [vmem:[#allocation7 + $0x138] sm:$0xf0] }
 0x12b   :  { %v19250_v15 = vld [vmem:[#allocation7 + $0x32c] sm:$0xf]  ;;  %v13417_v22 = vld [vmem:[#allocation7 + $0x338] sm:$0xf0]  ;;  %v13164_v45 = vor.u32 %v19186_v7, %v13161_v1 }
 0x12c   :  { %v19150_v54 = vld [vmem:[#allocation7 + $0xc] sm:$0xf]  ;;  %v13145_v10 = vld [vmem:[#allocation7 + $0x118] sm:$0xf0] }
 0x12d   :  { %2202 = vmatpush.bf16.msrb.mxu0 %v13544_v20  ;;  %2216 = vmatpush.bf16.msrb.mxu1 %v13672_v4  ;;  %v13337_v20 = vld [vmem:[#allocation7 + $0x298] sm:$0xf0]  ;;  %v19262_v4 = vld [vmem:[#allocation7 + $0x38c] sm:$0xf]  ;;  %v21338_v50 = vpop.f32.mrf.mxu0 }
 0x12e   :  { %2230 = vmatpush.bf16.msrb.mxu2 %v13800_v53  ;;  %2244 = vmatpush.bf16.msrb.mxu3 %v13928_v49  ;;  %v19162_v53 = vld [vmem:[#allocation7 + $0x6c] sm:$0xf]  ;;  %v13065_v49 = vld [vmem:[#allocation7 + $0x78] sm:$0xf0]  ;;  %v13340_v43 = vor.u32 %v19230_v31, %v13337_v20  ;;  %v13468_v19 = vor.u32 %v19262_v4, %v13465_v25 }
 0x12f   :  { %v13273_v36 = vld [vmem:[#allocation7 + $0x218] sm:$0xf0]  ;;  %v19246_v35 = vld [vmem:[#allocation7 + $0x30c] sm:$0xf] }
 0x130   :  { %v13401_v20 = vld [vmem:[#allocation7 + $0x318] sm:$0xf0]  ;;  %v19306_v4 = vld [vmem:[#allocation7 + $0x4ec] sm:$0xf] }
 0x131   :  { %2203 = vmatpush.bf16.msrb.mxu0 %v13528_v2  ;;  %2217 = vmatpush.bf16.msrb.mxu1 %v13656_v61  ;;  %v21340_v2 = vpop.f32.mrf.mxu1  ;;  %v13068_v61 = vor.u32 %v19162_v53, %v13065_v49  ;;  %v13641_v25 = vld [vmem:[#allocation7 + $0x4f8] sm:$0xf0]  ;;  %v19370_v53 = vld [vmem:[#allocation7 + $0x6ec] sm:$0xf] }
 0x132   :  { %2231 = vmatpush.bf16.msrb.mxu2 %v13784_v11  ;;  %2245 = vmatpush.bf16.msrb.mxu3 %v13912_v62  ;;  %v13324_v11 = vor.u32 %v19226_v39, %v13321_v3  ;;  %v13452_v62 = vor.u32 %v19258_v16, %v13449_v5  ;;  %v19402_v44 = vld [vmem:[#allocation7 + $0x7ec] sm:$0xf]  ;;  %v14025_v34 = vld [vmem:[#allocation7 + $0x7f8] sm:$0xf0]  ;;  %v13404_v3 = vor.u32 %v19246_v35, %v13401_v20 }
 0x133   :  { %v19302_v63 = vld [vmem:[#allocation7 + $0x4cc] sm:$0xf]  ;;  %v13625_v48 = vld [vmem:[#allocation7 + $0x4d8] sm:$0xf0] }
 0x134   :  { %2204 = vmatmul.bf16.vlgmr.msrb.gmra.mxu0 %v21310_v17  ;;  %2218 = vmatmul.bf16.vlgmr.msrb.gmra.mxu1 %v21312_v38  ;;  %v21344_v24 = vpop.f32.mrf.mxu3  ;;  %v19298_v21 = vld [vmem:[#allocation7 + $0x4ac] sm:$0xf] }
 0x135   :  { %2252 = vmatpush.bf16.msra.mxu0 %v13132_v12  ;;  %2266 = vmatpush.bf16.msra.mxu1 %v13260_v8  ;;  %v19190_v12 = vld [vmem:[#allocation7 + $0x14c] sm:$0xf]  ;;  %v13177_v8 = vld [vmem:[#allocation7 + $0x158] sm:$0xf0]  ;;  %v21342_v58 = vpop.f32.mrf.mxu2  ;;  %v21346_v23 = vpop.f32.mrf.mxu0 }
 0x136   :  { %2280 = vmatpush.bf16.msra.mxu2 %v13388_v41  ;;  %2294 = vmatpush.bf16.msra.mxu3 %v13516_v57  ;;  %v19254_v41 = vld [vmem:[#allocation7 + $0x34c] sm:$0xf]  ;;  %v13433_v57 = vld [vmem:[#allocation7 + $0x358] sm:$0xf0]  ;;  %v13180_v26 = vor.u32 %v19190_v12, %v13177_v8 }
 0x137   :  { %2232 = vmatmul.bf16.vlgmr.msrb.gmra.mxu2 %v21314_v51  ;;  %2246 = vmatmul.bf16.vlgmr.msrb.gmra.mxu3 %v21316_v52  ;;  %v19334_v12 = vld [vmem:[#allocation7 + $0x5cc] sm:$0xf]  ;;  %v13753_v8 = vld [vmem:[#allocation7 + $0x5d8] sm:$0xf0] }
 0x138   :  { %v13756_v28 = vor.u32 %v19334_v12, %v13753_v8  ;;  %v19330_v1 = vld [vmem:[#allocation7 + $0x5ac] sm:$0xf] }
 0x139   :  { %2253 = vmatpush.bf16.msra.mxu0 %v13116_v59  ;;  %2267 = vmatpush.bf16.msra.mxu1 %v13244_v0  ;;  %v13308_v59 = vor.u32 %v19222_v42, %v13305_v6  ;;  %v13436_v0 = vor.u32 %v19254_v41, %v13433_v57  ;;  %v21348_v31 = vpop.f32.mrf.mxu1  ;;  %v19366_v42 = vld [vmem:[#allocation7 + $0x6cc] sm:$0xf]  ;;  %v13881_v6 = vld [vmem:[#allocation7 + $0x6d8] sm:$0xf0] }
 0x13a   :  { %2281 = vmatpush.bf16.msra.mxu2 %v13372_v18  ;;  %2295 = vmatpush.bf16.msra.mxu3 %v13500_v46  ;;  %v19218_v18 = vld [vmem:[#allocation7 + $0x22c] sm:$0xf]  ;;  %v13289_v46 = vld [vmem:[#allocation7 + $0x238] sm:$0xf0] }
 0x13b   :  { %v13292_v13 = vor.u32 %v19218_v18, %v13289_v46  ;;  %v19398_v41 = vld [vmem:[#allocation7 + $0x7cc] sm:$0xf]  ;;  %v14009_v57 = vld [vmem:[#allocation7 + $0x7d8] sm:$0xf0] }
 0x13c   :  { %v21352_v5 = vpop.f32.mrf.mxu3  ;;  %v14012_v7 = vor.u32 %v19398_v41, %v14009_v57  ;;  %v13737_v18 = vld [vmem:[#allocation7 + $0x5b8] sm:$0xf0]  ;;  %v19362_v46 = vld [vmem:[#allocation7 + $0x6ac] sm:$0xf] }
 0x13d   :  { %2254 = vmatpush.bf16.msra.mxu0 %v13100_v37  ;;  %2268 = vmatpush.bf16.msra.mxu1 %v13228_v55  ;;  %v13017_v37 = vld [vmem:[#allocation7 + $0x18] sm:$0xf0]  ;;  %v19182_v55 = vld [vmem:[#allocation7 + $0x10c] sm:$0xf]  ;;  %v21350_v16 = vpop.f32.mrf.mxu2 }
 0x13e   :  { %2282 = vmatpush.bf16.msra.mxu2 %v13356_v9  ;;  %2296 = vmatpush.bf16.msra.mxu3 %v13484_v60  ;;  %v13420_v9 = vor.u32 %v19250_v15, %v13417_v22  ;;  %v19214_v60 = vld [vmem:[#allocation7 + $0x20c] sm:$0xf]  ;;  %v13020_v49 = vor.u32 %v19150_v54, %v13017_v37  ;;  %v13865_v22 = vld [vmem:[#allocation7 + $0x6b8] sm:$0xf0]  ;;  %v13740_v37 = vor.u32 %v19330_v1, %v13737_v18 }
 0x13f   :  { %v13276_v39 = vor.u32 %v19214_v60, %v13273_v36  ;;  %v19394_v54 = vld [vmem:[#allocation7 + $0x7ac] sm:$0xf]  ;;  %v13721_v60 = vld [vmem:[#allocation7 + $0x598] sm:$0xf0] }
 0x140   :  { %v19390_v20 = vld [vmem:[#allocation7 + $0x78c] sm:$0xf]  ;;  %v13817_v57 = vld [vmem:[#allocation7 + $0x658] sm:$0xf0] }
 0x141   :  { %2255 = vmatpush.bf16.msra.mxu0 %v13084_v56  ;;  %2269 = vmatpush.bf16.msra.mxu1 %v13212_v33  ;;  %v19338_v56 = vld [vmem:[#allocation7 + $0x5ec] sm:$0xf]  ;;  %v13769_v33 = vld [vmem:[#allocation7 + $0x5f8] sm:$0xf0]  ;;  %v21356_v15 = vpop.f32.mrf.mxu1 }
 0x142   :  { %2283 = vmatpush.bf16.msra.mxu2 %v13340_v43  ;;  %2297 = vmatpush.bf16.msra.mxu3 %v13468_v19  ;;  %v13148_v43 = vor.u32 %v19182_v55, %v13145_v10  ;;  %v13897_v19 = vld [vmem:[#allocation7 + $0x6f8] sm:$0xf0]  ;;  %v19294_v55 = vld [vmem:[#allocation7 + $0x48c] sm:$0xf] }
 0x143   :  { %v13593_v10 = vld [vmem:[#allocation7 + $0x498] sm:$0xf0]  ;;  %v19350_v41 = vld [vmem:[#allocation7 + $0x64c] sm:$0xf] }
 0x144   :  { %v19282_v18 = vld [vmem:[#allocation7 + $0x42c] sm:$0xf] }
 0x145   :  { %2256 = vmatpush.bf16.msra.mxu0 %v13068_v61  ;;  %2270 = vmatpush.bf16.msra.mxu1 %v13196_v47  ;;  %v13644_v61 = vor.u32 %v19306_v4, %v13641_v25  ;;  %v13772_v47 = vor.u32 %v19338_v56, %v13769_v33  ;;  %v13596_v4 = vor.u32 %v19294_v55, %v13593_v10  ;;  %v19290_v56 = vld [vmem:[#allocation7 + $0x46c] sm:$0xf]  ;;  %v13577_v33 = vld [vmem:[#allocation7 + $0x478] sm:$0xf0] }
 0x146   :  { %2284 = vmatpush.bf16.msra.mxu2 %v13324_v11  ;;  %2298 = vmatpush.bf16.msra.mxu3 %v13452_v62  ;;  %v13900_v11 = vor.u32 %v19370_v53, %v13897_v19  ;;  %v14028_v62 = vor.u32 %v19402_v44, %v14025_v34  ;;  %v21362_v36 = vpop.f32.mrf.mxu2  ;;  %v19322_v19 = vld [vmem:[#allocation7 + $0x56c] sm:$0xf]  ;;  %v13705_v44 = vld [vmem:[#allocation7 + $0x578] sm:$0xf0] }
 0x147   :  { %v21364_v35 = vpop.f32.mrf.mxu3  ;;  %v19354_v34 = vld [vmem:[#allocation7 + $0x66c] sm:$0xf]  ;;  %v13801_v55 = vld [vmem:[#allocation7 + $0x638] sm:$0xf0] }
 0x148   :  { %v19378_v10 = vld [vmem:[#allocation7 + $0x72c] sm:$0xf] }
 0x149   :  { %2257 = vmatpush.bf16.msra.mxu0 %v13052_v40  ;;  %2271 = vmatpush.bf16.msra.mxu1 %v13180_v26  ;;  %v21354_v40 = vpop.f32.mrf.mxu0  ;;  %v13628_v26 = vor.u32 %v19302_v63, %v13625_v48  ;;  %v13580_v63 = vor.u32 %v19290_v56, %v13577_v33  ;;  %v13708_v48 = vor.u32 %v19322_v19, %v13705_v44  ;;  %v13657_v56 = vld [vmem:[#allocation7 + $0x518] sm:$0xf0]  ;;  %v19342_v33 = vld [vmem:[#allocation7 + $0x60c] sm:$0xf] }
 0x14a   :  { %2285 = vmatpush.bf16.msra.mxu2 %v13308_v59  ;;  %2299 = vmatpush.bf16.msra.mxu3 %v13436_v0  ;;  %v13609_v59 = vld [vmem:[#allocation7 + $0x4b8] sm:$0xf0]  ;;  %v13884_v0 = vor.u32 %v19366_v42, %v13881_v6  ;;  %v19318_v42 = vld [vmem:[#allocation7 + $0x54c] sm:$0xf] }
 0x14b   :  { %v13689_v6 = vld [vmem:[#allocation7 + $0x558] sm:$0xf0]  ;;  %v19374_v19 = vld [vmem:[#allocation7 + $0x70c] sm:$0xf] }
 0x14c   :  { %v13692_v1 = vor.u32 %v19318_v42, %v13689_v6  ;;  %v13913_v44 = vld [vmem:[#allocation7 + $0x718] sm:$0xf0] }
 0x14d   :  { %2258 = vmatpush.bf16.msra.mxu0 %v13036_v32  ;;  %2272 = vmatpush.bf16.msra.mxu1 %v13164_v45  ;;  %v13993_v32 = vld [vmem:[#allocation7 + $0x7b8] sm:$0xf0]  ;;  %v13612_v45 = vor.u32 %v19298_v21, %v13609_v59  ;;  %v21370_v21 = vld [vmem:[#allocation8] sm:$0xf] }
 0x14e   :  { %2286 = vmatpush.bf16.msra.mxu2 %v13292_v13  ;;  %2300 = vmatpush.bf16.msra.mxu3 %v13420_v9  ;;  %v13868_v13 = vor.u32 %v19362_v46, %v13865_v22  ;;  %v13996_v9 = vor.u32 %v19394_v54, %v13993_v32  ;;  %v21372_v59 = vpop.f32.mrf.mxu2  ;;  %v13545_v46 = vld [vmem:[#allocation7 + $0x438] sm:$0xf0]  ;;  %v13820_v22 = vor.u32 %v19350_v41, %v13817_v57  ;;  %v19314_v32 = vld [vmem:[#allocation7 + $0x52c] sm:$0xf]  ;;  %v14799_v57 = vld [vmem:[#allocation10 + $0x600] sm:$0xf] }
 0x151   :  { %2259 = vmatpush.bf16.msra.mxu0 %v13020_v49  ;;  %2273 = vmatpush.bf16.msra.mxu1 %v13148_v43  ;;  %v21366_v53 = vpop.f32.mrf.mxu0 }
 0x152   :  { %2287 = vmatpush.bf16.msra.mxu2 %v13276_v39  ;;  %2301 = vmatpush.bf16.msra.mxu3 %v13404_v3  ;;  %v13833_v39 = vld [vmem:[#allocation7 + $0x678] sm:$0xf0]  ;;  %v19386_v3 = vld [vmem:[#allocation7 + $0x76c] sm:$0xf] }
 0x153   :  { %v13836_v12 = vor.u32 %v19354_v34, %v13833_v39  ;;  %v14927_v34 = vld [vmem:[#allocation10 + $0x700] sm:$0xf] }
 0x154   :  { %2260 = vmatmul.bf16.vlgmr.msra.gmra.mxu0 %v21254_v27  ;;  %2274 = vmatmul.bf16.vlgmr.msra.gmra.mxu1 %v21256_v30  ;;  %v19326_v27 = vld [vmem:[#allocation7 + $0x58c] sm:$0xf]  ;;  %v19645_v39 = vld [vmem:[#allocation10 + $0x77c] sm:$0xf0] }
 0x155   :  { %2308 = vmatpush.bf16.msrb.mxu0 %v13644_v61  ;;  %2322 = vmatpush.bf16.msrb.mxu1 %v13772_v47  ;;  %v19358_v30 = vld [vmem:[#allocation7 + $0x68c] sm:$0xf]  ;;  %v13724_v25 = vor.u32 %v19326_v27, %v13721_v60  ;;  %v13961_v61 = vld [vmem:[#allocation7 + $0x778] sm:$0xf0]  ;;  %v21368_v47 = vpop.f32.mrf.mxu1  ;;  %v13548_v60 = vor.u32 %v19282_v18, %v13545_v46  ;;  %v14928_v6 = vor.u32 %v19645_v39, %v14927_v34  ;;  %v19869_v18 = vld [vmem:[#allocation10 + $0xe7c] sm:$0xf0] }
 0x156   :  { %2336 = vmatpush.bf16.msrb.mxu2 %v13900_v11  ;;  %2350 = vmatpush.bf16.msrb.mxu3 %v14028_v62  ;;  %v19286_v11 = vld [vmem:[#allocation7 + $0x44c] sm:$0xf]  ;;  %v13561_v62 = vld [vmem:[#allocation7 + $0x458] sm:$0xf0]  ;;  %v13964_v8 = vor.u32 %v19386_v3, %v13961_v61  ;;  %v15951_v3 = vld [vmem:[#allocation10 + $0xf00] sm:$0xf] }
 0x157   :  { %2288 = vmatmul.bf16.vlgmr.msra.gmra.mxu2 %v21261_v14  ;;  %2302 = vmatmul.bf16.vlgmr.msra.gmra.mxu3 %v21263_v29  ;;  %v13849_v14 = vld [vmem:[#allocation7 + $0x698] sm:$0xf0]  ;;  %v19901_v61 = vld [vmem:[#allocation10 + $0xf7c] sm:$0xf0] }
 0x158   :  { %v13977_v29 = vld [vmem:[#allocation7 + $0x798] sm:$0xf0]  ;;  %v13852_v49 = vor.u32 %v19358_v30, %v13849_v14  ;;  %v19278_v14 = vld [vmem:[#allocation7 + $0x40c] sm:$0xf]  ;;  %v15952_v41 = vor.u32 %v19901_v61, %v15951_v3  ;;  %v19517_v3 = vld [vmem:[#allocation10 + $0x37c] sm:$0xf0] }
 0x159   :  { %2309 = vmatpush.bf16.msrb.mxu0 %v13628_v26  ;;  %2323 = vmatpush.bf16.msrb.mxu1 %v13756_v28  ;;  %v13980_v43 = vor.u32 %v19390_v20, %v13977_v29  ;;  %v19382_v26 = vld [vmem:[#allocation7 + $0x74c] sm:$0xf]  ;;  %v13945_v28 = vld [vmem:[#allocation7 + $0x758] sm:$0xf0]  ;;  %v2037_v27 = vpop.f32.mrf.mxu0 }
 0x15a   :  { %2337 = vmatpush.bf16.msrb.mxu2 %v13884_v0  ;;  %2351 = vmatpush.bf16.msrb.mxu3 %v14012_v7  ;;  %v21374_v0 = vpop.f32.mrf.mxu3  ;;  %v13564_v7 = vor.u32 %v19286_v11, %v13561_v62  ;;  %v13948_v54 = vor.u32 %v19382_v26, %v13945_v28  ;;  %v13529_v20 = vld [vmem:[#allocation7 + $0x418] sm:$0xf0]  ;;  %v19310_v29 = vld [vmem:[#allocation7 + $0x50c] sm:$0xf]  ;;  %v13916_v62 = vor.u32 %v19374_v19, %v13913_v44 }
 0x15d   :  { %2310 = vmatpush.bf16.msrb.mxu0 %v13612_v45  ;;  %2324 = vmatpush.bf16.msrb.mxu1 %v13740_v37  ;;  %v13673_v45 = vld [vmem:[#allocation7 + $0x538] sm:$0xf0]  ;;  %v19346_v37 = vld [vmem:[#allocation7 + $0x62c] sm:$0xf] }
 0x15e   :  { %2338 = vmatpush.bf16.msrb.mxu2 %v13868_v13  ;;  %2352 = vmatpush.bf16.msrb.mxu3 %v13996_v9  ;;  %v13929_v13 = vld [vmem:[#allocation7 + $0x738] sm:$0xf0]  ;;  %v628_v9 = vperm.slane %v21370_v21, 0  ;;  %v13676_v30 = vor.u32 %v19314_v32, %v13673_v45  ;;  %v14671_v32 = vld [vmem:[#allocation10 + $0x500] sm:$0xf] }
 0x15f   :  { %v19581_v45 = vld [vmem:[#allocation10 + $0x57c] sm:$0xf0] }
 0x160   :  { %v1926_v26 = vadd.f32 %v21338_v50, %v628_v9  ;;  %v1928_v28 = vadd.f32 %v21346_v23, %v628_v9  ;;  %v15695_v23 = vld [vmem:[#allocation10 + $0xd00] sm:$0xf] }
 0x161   :  { %2311 = vmatpush.bf16.msrb.mxu0 %v13596_v4  ;;  %2325 = vmatpush.bf16.msrb.mxu1 %v13724_v25  ;;  %v13804_v4 = vor.u32 %v19346_v37, %v13801_v55  ;;  %v13932_v25 = vor.u32 %v19378_v10, %v13929_v13  ;;  %v2039_v46 = vpop.f32.mrf.mxu0  ;;  %v19837_v10 = vld [vmem:[#allocation10 + $0xd7c] sm:$0xf0] }
 0x162   :  { %2339 = vmatpush.bf16.msrb.mxu2 %v13852_v49  ;;  %2353 = vmatpush.bf16.msrb.mxu3 %v13980_v43  ;;  %v13785_v49 = vld [vmem:[#allocation7 + $0x618] sm:$0xf0]  ;;  %v2051_v43 = vpop.f32.mrf.mxu1  ;;  %v21378_v42 = vpop.f32.mrf.mxu3  ;;  %v1940_v37 = vadd.f32 %v21340_v2, %v1926_v26  ;;  %v1942_v50 = vadd.f32 %v21348_v31, %v1928_v28  ;;  %v16975_v13 = vld [vmem:[#allocation10 + $0x1700] sm:$0xf]  ;;  %v14672_v31 = vor.u32 %v19581_v45, %v14671_v32 }
 0x163   :  { %v13788_v11 = vor.u32 %v19342_v33, %v13785_v49  ;;  %v20125_v33 = vld [vmem:[#allocation10 + $0x167c] sm:$0xf0] }
 0x164   :  { %v1956_v2 = vadd.f32 %v21350_v16, %v1942_v50  ;;  %v14287_v28 = vld [vmem:[#allocation10 + $0x200] sm:$0xf] }
 0x165   :  { %2312 = vmatpush.bf16.msrb.mxu0 %v13580_v63  ;;  %2326 = vmatpush.bf16.msrb.mxu1 %v13708_v48  ;;  %v13532_v63 = vor.u32 %v19278_v14, %v13529_v20  ;;  %v13660_v48 = vor.u32 %v19310_v29, %v13657_v56  ;;  %v16591_v50 = vld [vmem:[#allocation10 + $0x1400] sm:$0xf] }
 0x166   :  { %2340 = vmatpush.bf16.msrb.mxu2 %v13836_v12  ;;  %2354 = vmatpush.bf16.msrb.mxu3 %v13964_v8  ;;  %v629_v12 = vperm.slane %v21370_v21, 1  ;;  %v2065_v8 = vpop.f32.mrf.mxu2  ;;  %v1970_v16 = vadd.f32 %v21352_v5, %v1956_v2  ;;  %v20093_v5 = vld [vmem:[#allocation10 + $0x157c] sm:$0xf0] }
 0x167   :  { %v19709_v2 = vld [vmem:[#allocation10 + $0x97c] sm:$0xf0] }
 0x168   :  { %v2038_v55 = vadd.f32 %v2037_v27, %v629_v12  ;;  %v14543_v27 = vld [vmem:[#allocation10 + $0x400] sm:$0xf]  ;;  %v2040_v29 = vadd.f32 %v2039_v46, %v629_v12 }
 0x169   :  { %2313 = vmatpush.bf16.msrb.mxu0 %v13564_v7  ;;  %2327 = vmatpush.bf16.msrb.mxu1 %v13692_v1  ;;  %v19613_v7 = vld [vmem:[#allocation10 + $0x67c] sm:$0xf0] }
 0x16a   :  { %2341 = vmatpush.bf16.msrb.mxu2 %v13820_v22  ;;  %2355 = vmatpush.bf16.msrb.mxu3 %v13948_v54  ;;  %v15823_v1 = vld [vmem:[#allocation10 + $0xe00] sm:$0xf]  ;;  %v14800_v22 = vor.u32 %v19613_v7, %v14799_v57  ;;  %v2053_v9 = vpop.f32.mrf.mxu1  ;;  %v2052_v20 = vadd.f32 %v2051_v43, %v2038_v55 }
 0x16b   :  { %v15824_v54 = vor.u32 %v19869_v18, %v15823_v1  ;;  %v14415_v43 = vld [vmem:[#allocation10 + $0x300] sm:$0xf] }
 0x16c   :  { %v2066_v49 = vadd.f32 %v2065_v8, %v2052_v20  ;;  %v14416_v57 = vor.u32 %v19517_v3, %v14415_v43  ;;  %v19485_v1 = vld [vmem:[#allocation10 + $0x27c] sm:$0xf0] }
 0x16d   :  { %2314 = vmatpush.bf16.msrb.mxu0 %v13548_v60  ;;  %2328 = vmatpush.bf16.msrb.mxu1 %v13676_v30  ;;  %v20157_v60 = vld [vmem:[#allocation10 + $0x177c] sm:$0xf0]  ;;  %v1954_v30 = vadd.f32 %v21342_v58, %v1940_v37 }
 0x16e   :  { %2342 = vmatpush.bf16.msrb.mxu2 %v13804_v4  ;;  %2356 = vmatpush.bf16.msrb.mxu3 %v13932_v25  ;;  %v16976_v14 = vor.u32 %v20157_v60, %v16975_v13  ;;  %v15567_v4 = vld [vmem:[#allocation10 + $0xc00] sm:$0xf]  ;;  %v2067_v56 = vpop.f32.mrf.mxu2  ;;  %v2080_v8 = vadd.f32 %v21378_v42, %v2066_v49  ;;  %v19885_v49 = vld [vmem:[#allocation10 + $0xf04] sm:$0xf] }
 0x16f   :  { %v19805_v25 = vld [vmem:[#allocation10 + $0xc7c] sm:$0xf0]  ;;  %v1968_v58 = vadd.f32 %v21344_v24, %v1954_v30 }
 0x170   :  { %v15568_v39 = vor.u32 %v19805_v25, %v15567_v4  ;;  %v16719_v24 = vld [vmem:[#allocation10 + $0x1500] sm:$0xf] }
 0x171   :  { %2315 = vmatpush.bf16.msrb.mxu0 %v13532_v63  ;;  %2329 = vmatpush.bf16.msrb.mxu1 %v13660_v48  ;;  %v2093_v19 = vpop.f32.mrf.mxu0  ;;  %v1982_v61 = vadd.f32 %v21354_v40, %v1968_v58  ;;  %v1984_v63 = vadd.f32 %v21366_v53, %v1970_v16  ;;  %v2054_v48 = vadd.f32 %v2053_v9, %v2040_v29  ;;  %v15311_v18 = vld [vmem:[#allocation10 + $0xa00] sm:$0xf]  ;;  %v14929_v16 = vld [vmem:[#allocation10 + $0x780] sm:$0xf0] }
 0x172   :  { %2343 = vmatpush.bf16.msrb.mxu2 %v13788_v11  ;;  %2357 = vmatpush.bf16.msrb.mxu3 %v13916_v62  ;;  %v15439_v11 = vld [vmem:[#allocation10 + $0xb00] sm:$0xf]  ;;  %v2107_v12 = vpop.f32.mrf.mxu1  ;;  %v2094_v7 = vadd.f32 %v2093_v19, %v2080_v8  ;;  %v15953_v19 = vld [vmem:[#allocation10 + $0xf80] sm:$0xf0] }
 0x173   :  { %v19773_v62 = vld [vmem:[#allocation10 + $0xb7c] sm:$0xf0]  ;;  %v1996_v40 = vadd.f32 %v21356_v15, %v1982_v61  ;;  %v1998_v53 = vadd.f32 %v21368_v47, %v1984_v63  ;;  %v14288_v15 = vor.u32 %v19485_v1, %v14287_v28 }
 0x174   :  { %2316 = vmatmul.bf16.vlgmr.msrb.gmra.mxu0 %v21310_v17  ;;  %2330 = vmatmul.bf16.vlgmr.msrb.gmra.mxu1 %v21312_v38  ;;  %v15696_v17 = vor.u32 %v19837_v10, %v15695_v23  ;;  %v19549_v38 = vld [vmem:[#allocation10 + $0x47c] sm:$0xf0]  ;;  %v15440_v26 = vor.u32 %v19773_v62, %v15439_v11  ;;  %v2108_v9 = vadd.f32 %v2107_v12, %v2094_v7  ;;  %v19597_v12 = vld [vmem:[#allocation10 + $0x604] sm:$0xf] }
 0x175   :  { %8592 = vmatpush.bf16.msra.mxu0 %v14928_v6  ;;  %8606 = vmatpush.bf16.msra.mxu1 %v15952_v41  ;;  %v14544_v34 = vor.u32 %v19549_v38, %v14543_v27  ;;  %v2068_v6 = vadd.f32 %v2067_v56, %v2054_v48  ;;  %v16720_v41 = vor.u32 %v20093_v5, %v16719_v24  ;;  %v19741_v46 = vld [vmem:[#allocation10 + $0xa7c] sm:$0xf0]  ;;  %v14801_v5 = vld [vmem:[#allocation10 + $0x680] sm:$0xf0] }
 0x176   :  { %2344 = vmatmul.bf16.vlgmr.msrb.gmra.mxu2 %v21314_v51  ;;  %2358 = vmatmul.bf16.vlgmr.msrb.gmra.mxu3 %v21316_v52  ;;  %v16847_v51 = vld [vmem:[#allocation10 + $0x1600] sm:$0xf]  ;;  %v2081_v52 = vpop.f32.mrf.mxu3  ;;  %v2010_v42 = vadd.f32 %v21362_v36, %v1996_v40  ;;  %v2012_v32 = vadd.f32 %v21372_v59, %v1998_v53  ;;  %v15312_v23 = vor.u32 %v19741_v46, %v15311_v18 }
 0x177   :  { %8620 = vmatpush.bf16.msra.mxu2 %v16976_v14  ;;  %v16848_v44 = vor.u32 %v20125_v33, %v16847_v51  ;;  %v2082_v45 = vadd.f32 %v2081_v52, %v2068_v6  ;;  %v20061_v55 = vld [vmem:[#allocation10 + $0x147c] sm:$0xf0]  ;;  %v19629_v33 = vld [vmem:[#allocation10 + $0x704] sm:$0xf]  ;;  %v15956_v24 = vor.u32 %v19885_v49, %v15953_v19  ;;  %v14804_v46 = vor.u32 %v19597_v12, %v14801_v5 }
 0x178   :  { %v14159_v47 = vld [vmem:[#allocation10 + $0x100] sm:$0xf]  ;;  %v16592_v13 = vor.u32 %v20061_v55, %v16591_v50  ;;  %v2024_v59 = vadd.f32 %v21364_v35, %v2010_v42  ;;  %v2026_v27 = vadd.f32 %v21374_v0, %v2012_v32  ;;  %v14932_v62 = vor.u32 %v19629_v33, %v14929_v16  ;;  %v19853_v6 = vld [vmem:[#allocation10 + $0xe04] sm:$0xf] }
 0x179   :  { %8593 = vmatpush.bf16.msra.mxu0 %v14800_v22  ;;  %8607 = vmatpush.bf16.msra.mxu1 %v15824_v54  ;;  %v2095_v37 = vpop.f32.mrf.mxu0  ;;  %v19453_v10 = vld [vmem:[#allocation10 + $0x17c] sm:$0xf0]  ;;  %v14673_v42 = vld [vmem:[#allocation10 + $0x580] sm:$0xf0] }
 0x17a   :  { %v2121_v22 = vpop.f32.mrf.mxu2  ;;  %v2096_v60 = vadd.f32 %v2095_v37, %v2082_v45  ;;  %v15183_v30 = vld [vmem:[#allocation10 + $0x900] sm:$0xf]  ;;  %v2109_v38 = vpop.f32.mrf.mxu1  ;;  %v14160_v20 = vor.u32 %v19453_v10, %v14159_v47  ;;  %v2364_v35 = vmax.f32 %v2024_v59, 0.0  ;;  %v2368_v43 = vmax.f32 %v2026_v27, 0.0  ;;  %v19821_v32 = vld [vmem:[#allocation10 + $0xd04] sm:$0xf] }
 0x17b   :  { %8621 = vmatpush.bf16.msra.mxu2 %v16848_v44  ;;  %v16463_v14 = vld [vmem:[#allocation10 + $0x1300] sm:$0xf]  ;;  %v15184_v29 = vor.u32 %v19709_v2, %v15183_v30  ;;  %v15697_v45 = vld [vmem:[#allocation10 + $0xd80] sm:$0xf0] }
 0x17c   :  { %v20029_v36 = vld [vmem:[#allocation10 + $0x137c] sm:$0xf0]  ;;  %v2110_v51 = vadd.f32 %v2109_v38, %v2096_v60  ;;  %v21401_v53 = vpack.c.bf16 %v2368_v43, %v2364_v35  ;;  %v20141_v50 = vld [vmem:[#allocation10 + $0x1704] sm:$0xf]  ;;  %v15700_v47 = vor.u32 %v19821_v32, %v15697_v45  ;;  %v19870_v32 = vld [vmem:[#allocation10 + $0xe84] sm:$0xf0] }
 0x17d   :  { %8594 = vmatpush.bf16.msra.mxu0 %v14672_v31  ;;  %8608 = vmatpush.bf16.msra.mxu1 %v15696_v17  ;;  %v2122_v31 = vadd.f32 %v2121_v22, %v2108_v9  ;;  %v16464_v17 = vor.u32 %v20029_v36, %v16463_v14  ;;  %v14031_v4 = vld [vmem:[#allocation10] sm:$0xf]  ;;  %v16977_v55 = vld [vmem:[#allocation10 + $0x1780] sm:$0xf0] }
 0x17e   :  { %v2135_v54 = vpop.f32.mrf.mxu3  ;;  %v19421_v25 = vld [vmem:[#allocation10 + $0x7c] sm:$0xf0]  ;;  %v19533_v10 = vld [vmem:[#allocation10 + $0x404] sm:$0xf] }
 0x17f   :  { %8622 = vmatpush.bf16.msra.mxu2 %v16720_v41  ;;  %v15055_v56 = vld [vmem:[#allocation10 + $0x800] sm:$0xf]  ;;  %v2136_v44 = vadd.f32 %v2135_v54, %v2122_v31  ;;  %v14032_v61 = vor.u32 %v19421_v25, %v14031_v4  ;;  %v15825_v41 = vld [vmem:[#allocation10 + $0xe80] sm:$0xf0] }
 0x180   :  { %v19677_v52 = vld [vmem:[#allocation10 + $0x87c] sm:$0xf0]  ;;  %v15828_v22 = vor.u32 %v19853_v6, %v15825_v41  ;;  %v19565_v54 = vld [vmem:[#allocation10 + $0x504] sm:$0xf]  ;;  %v19646_v41 = vld [vmem:[#allocation10 + $0x784] sm:$0xf0] }
 0x181   :  { %8595 = vmatpush.bf16.msra.mxu0 %v14544_v34  ;;  %8609 = vmatpush.bf16.msra.mxu1 %v15568_v39  ;;  %v16335_v0 = vld [vmem:[#allocation10 + $0x1200] sm:$0xf]  ;;  %v15056_v63 = vor.u32 %v19677_v52, %v15055_v56  ;;  %v19789_v9 = vld [vmem:[#allocation10 + $0xc04] sm:$0xf] }
 0x182   :  { %v2123_v58 = vpop.f32.mrf.mxu2  ;;  %v19997_v39 = vld [vmem:[#allocation10 + $0x127c] sm:$0xf0]  ;;  %v15569_v60 = vld [vmem:[#allocation10 + $0xc80] sm:$0xf0] }
 0x183   :  { %8623 = vmatpush.bf16.msra.mxu2 %v16592_v13  ;;  %v2124_v34 = vadd.f32 %v2123_v58, %v2110_v51  ;;  %v16336_v48 = vor.u32 %v19997_v39, %v16335_v0  ;;  %v16207_v8 = vld [vmem:[#allocation10 + $0x1100] sm:$0xf]  ;;  %v14545_v13 = vld [vmem:[#allocation10 + $0x480] sm:$0xf0]  ;;  %v15572_v59 = vor.u32 %v19789_v9, %v15569_v60  ;;  %v15703_v9 = vld [vmem:[#allocation10 + $0xd08] sm:$0xf] }
 0x184   :  { %v16079_v7 = vld [vmem:[#allocation10 + $0x1000] sm:$0xf]  ;;  %v20109_v30 = vld [vmem:[#allocation10 + $0x1604] sm:$0xf]  ;;  %v14548_v36 = vor.u32 %v19533_v10, %v14545_v13  ;;  %v14679_v10 = vld [vmem:[#allocation10 + $0x508] sm:$0xf] }
 0x185   :  { %8596 = vmatpush.bf16.msra.mxu0 %v14416_v57  ;;  %8610 = vmatpush.bf16.msra.mxu1 %v15440_v26  ;;  %v19965_v57 = vld [vmem:[#allocation10 + $0x117c] sm:$0xf0]  ;;  %v2365_v26 = vmax.f32 %v2136_v44, 0.0  ;;  %v16849_v2 = vld [vmem:[#allocation10 + $0x1680] sm:$0xf0] }
 0x186   :  { %v2137_v3 = vpop.f32.mrf.mxu3  ;;  %v16208_v40 = vor.u32 %v19965_v57, %v16207_v8  ;;  %v19933_v1 = vld [vmem:[#allocation10 + $0x107c] sm:$0xf0]  ;;  %v16852_v14 = vor.u32 %v20109_v30, %v16849_v2  ;;  %v19501_v31 = vld [vmem:[#allocation10 + $0x304] sm:$0xf]  ;;  %v14935_v8 = vld [vmem:[#allocation10 + $0x708] sm:$0xf] }
 0x187   :  { %8624 = vmatpush.bf16.msra.mxu2 %v16464_v17  ;;  %v2138_v11 = vadd.f32 %v2137_v3, %v2124_v34  ;;  %v16080_v37 = vor.u32 %v19933_v1, %v16079_v7  ;;  %v14417_v17 = vld [vmem:[#allocation10 + $0x380] sm:$0xf0]  ;;  %v15959_v57 = vld [vmem:[#allocation10 + $0xf08] sm:$0xf]  ;;  %v14936_v1 = vor.u32 %v19646_v41, %v14935_v8 }
 0x188   :  { %v19757_v27 = vld [vmem:[#allocation10 + $0xb04] sm:$0xf]  ;;  %v14420_v25 = vor.u32 %v19501_v31, %v14417_v17  ;;  %v19582_v13 = vld [vmem:[#allocation10 + $0x584] sm:$0xf0] }
 0x189   :  { %8597 = vmatpush.bf16.msra.mxu0 %v14288_v15  ;;  %8611 = vmatpush.bf16.msra.mxu1 %v15312_v23  ;;  %v2369_v28 = vmax.f32 %v2138_v11, 0.0  ;;  %v16980_v15 = vor.u32 %v20141_v50, %v16977_v55  ;;  %v14676_v23 = vor.u32 %v19565_v54, %v14673_v42  ;;  %v15441_v38 = vld [vmem:[#allocation10 + $0xb80] sm:$0xf0]  ;;  %v19614_v54 = vld [vmem:[#allocation10 + $0x684] sm:$0xf0]  ;;  %v630_v50 = vperm.slane %v21370_v21, 2 }
 0x18a   :  { %v15444_v51 = vor.u32 %v19757_v27, %v15441_v38  ;;  %v19469_v56 = vld [vmem:[#allocation10 + $0x204] sm:$0xf]  ;;  %v15831_v42 = vld [vmem:[#allocation10 + $0xe08] sm:$0xf]  ;;  %v14680_v38 = vor.u32 %v19582_v13, %v14679_v10  ;;  %v20317_v13 = vld [vmem:[#allocation10 + $0x1c7c] sm:$0xf0] }
 0x18b   :  { %8625 = vmatpush.bf16.msra.mxu2 %v16336_v48  ;;  %v21403_v18 = vpack.c.bf16 %v2369_v28, %v2365_v26  ;;  %v14289_v52 = vld [vmem:[#allocation10 + $0x280] sm:$0xf0]  ;;  %v19902_v26 = vld [vmem:[#allocation10 + $0xf84] sm:$0xf0] }
 0x18c   :  { %v19725_v33 = vld [vmem:[#allocation10 + $0xa04] sm:$0xf]  ;;  %v14292_v16 = vor.u32 %v19469_v56, %v14289_v52  ;;  %v19838_v2 = vld [vmem:[#allocation10 + $0xd84] sm:$0xf0]  ;;  %v17999_v56 = vld [vmem:[#allocation10 + $0x1f00] sm:$0xf] }
 0x18d   :  { %8598 = vmatpush.bf16.msra.mxu0 %v14160_v20  ;;  %8612 = vmatpush.bf16.msra.mxu1 %v15184_v29  ;;  %v20077_v20 = vld [vmem:[#allocation10 + $0x1504] sm:$0xf]  ;;  %v19550_v31 = vld [vmem:[#allocation10 + $0x484] sm:$0xf0]  ;;  %v20413_v52 = vld [vmem:[#allocation10 + $0x1f7c] sm:$0xf0] }
 0x18e   :  { %v16721_v29 = vld [vmem:[#allocation10 + $0x1580] sm:$0xf0]  ;;  %v19710_v10 = vld [vmem:[#allocation10 + $0x984] sm:$0xf0] }
 0x18f   :  { %8626 = vmatpush.bf16.msra.mxu2 %v16208_v40  ;;  %v16724_v4 = vor.u32 %v20077_v20, %v16721_v29  ;;  %v15313_v58 = vld [vmem:[#allocation10 + $0xa80] sm:$0xf0]  ;;  %v15704_v20 = vor.u32 %v19838_v2, %v15703_v9  ;;  %v15575_v29 = vld [vmem:[#allocation10 + $0xc08] sm:$0xf]  ;;  %v17487_v2 = vld [vmem:[#allocation10 + $0x1b00] sm:$0xf] }
 0x190   :  { %v15316_v49 = vor.u32 %v19725_v33, %v15313_v58  ;;  %v19437_v19 = vld [vmem:[#allocation10 + $0x104] sm:$0xf]  ;;  %v18000_v33 = vor.u32 %v20413_v52, %v17999_v56  ;;  %v15961_v56 = vld [vmem:[#allocation10 + $0xf88] sm:$0xf0] }
 0x191   :  { %8599 = vmatpush.bf16.msra.mxu0 %v14032_v61  ;;  %8613 = vmatpush.bf16.msra.mxu1 %v15056_v63  ;;  %v14161_v35 = vld [vmem:[#allocation10 + $0x180] sm:$0xf0]  ;;  %v2149_v61 = vpop.f32.mrf.mxu0  ;;  %v2163_v28 = vpop.f32.mrf.mxu1 }
 0x192   :  { %v19693_v44 = vld [vmem:[#allocation10 + $0x904] sm:$0xf]  ;;  %v14164_v63 = vor.u32 %v19437_v19, %v14161_v35  ;;  %v2150_v21 = vadd.f32 %v2149_v61, %v630_v50  ;;  %v17871_v19 = vld [vmem:[#allocation10 + $0x1e00] sm:$0xf]  ;;  %8634 = vmatpush.bf16.msra.mxu3 %v18000_v33 }
 0x193   :  { %8627 = vmatpush.bf16.msra.mxu2 %v16080_v37  ;;  %v15185_v34 = vld [vmem:[#allocation10 + $0x980] sm:$0xf0] }
 0x194   :  { %8600 = vmatmul.bf16.vlgmr.msra.gmra.mxu0 %v21401_v53  ;;  %8614 = vmatmul.bf16.vlgmr.msra.gmra.mxu1 %v21403_v18  ;;  %v20045_v0 = vld [vmem:[#allocation10 + $0x1404] sm:$0xf]  ;;  %v15188_v48 = vor.u32 %v19693_v44, %v15185_v34  ;;  %v2164_v58 = vadd.f32 %v2163_v28, %v2150_v21  ;;  %v14039_v21 = vld [vmem:[#allocation10 + $0x8] sm:$0xf] }
 0x195   :  { %8648 = vmatpush.bf16.msrb.mxu0 %v14932_v62  ;;  %8662 = vmatpush.bf16.msrb.mxu1 %v15956_v24  ;;  %v16593_v39 = vld [vmem:[#allocation10 + $0x1480] sm:$0xf0] }
 0x196   :  { %v19405_v43 = vld [vmem:[#allocation10 + $0x4] sm:$0xf]  ;;  %v16596_v3 = vor.u32 %v20045_v0, %v16593_v39  ;;  %v14423_v39 = vld [vmem:[#allocation10 + $0x308] sm:$0xf] }
 0x197   :  { %8676 = vmatpush.bf16.msrb.mxu2 %v16980_v15  ;;  %v14033_v11 = vld [vmem:[#allocation10 + $0x80] sm:$0xf0] }
 0x198   :  { %v20013_v62 = vld [vmem:[#allocation10 + $0x1304] sm:$0xf]  ;;  %v14036_v40 = vor.u32 %v19405_v43, %v14033_v11  ;;  %v20381_v43 = vld [vmem:[#allocation10 + $0x1e7c] sm:$0xf0]  ;;  %v19774_v11 = vld [vmem:[#allocation10 + $0xb84] sm:$0xf0] }
 0x199   :  { %8649 = vmatpush.bf16.msrb.mxu0 %v14804_v46  ;;  %8663 = vmatpush.bf16.msrb.mxu1 %v15828_v22  ;;  %v16465_v24 = vld [vmem:[#allocation10 + $0x1380] sm:$0xf0]  ;;  %v15960_v46 = vor.u32 %v19902_v26, %v15959_v57  ;;  %v14807_v22 = vld [vmem:[#allocation10 + $0x608] sm:$0xf]  ;;  %v2151_v30 = vpop.f32.mrf.mxu0  ;;  %v2165_v27 = vpop.f32.mrf.mxu1 }
 0x19a   :  { %v19661_v12 = vld [vmem:[#allocation10 + $0x804] sm:$0xf]  ;;  %v16468_v6 = vor.u32 %v20013_v62, %v16465_v24  ;;  %v2177_v45 = vpop.f32.mrf.mxu2  ;;  %v21407_v37 = vpop.f32.mrf.mxu3  ;;  %v17872_v62 = vor.u32 %v20381_v43, %v17871_v19  ;;  %v14295_v57 = vld [vmem:[#allocation10 + $0x208] sm:$0xf] }
 0x19b   :  { %8677 = vmatpush.bf16.msrb.mxu2 %v16852_v14  ;;  %v15057_v5 = vld [vmem:[#allocation10 + $0x880] sm:$0xf0] }
 0x19c   :  { %v15060_v7 = vor.u32 %v19661_v12, %v15057_v5  ;;  %v19981_v55 = vld [vmem:[#allocation10 + $0x1204] sm:$0xf]  ;;  %v17743_v12 = vld [vmem:[#allocation10 + $0x1d00] sm:$0xf]  ;;  %8635 = vmatpush.bf16.msra.mxu3 %v17872_v62 }
 0x19d   :  { %8650 = vmatpush.bf16.msrb.mxu0 %v14676_v23  ;;  %8664 = vmatpush.bf16.msrb.mxu1 %v15700_v47  ;;  %v16337_v15 = vld [vmem:[#allocation10 + $0x1280] sm:$0xf0]  ;;  %v14808_v23 = vor.u32 %v19614_v54, %v14807_v22  ;;  %v15832_v47 = vor.u32 %v19870_v32, %v15831_v42  ;;  %v20349_v5 = vld [vmem:[#allocation10 + $0x1d7c] sm:$0xf0] }
 0x19e   :  { %v16340_v60 = vor.u32 %v19981_v55, %v16337_v15  ;;  %v19949_v14 = vld [vmem:[#allocation10 + $0x1104] sm:$0xf]  ;;  %v19454_v55 = vld [vmem:[#allocation10 + $0x184] sm:$0xf0]  ;;  %v17231_v62 = vld [vmem:[#allocation10 + $0x1900] sm:$0xf] }
 0x19f   :  { %8678 = vmatpush.bf16.msrb.mxu2 %v16724_v4  ;;  %v19917_v4 = vld [vmem:[#allocation10 + $0x1004] sm:$0xf]  ;;  %v15191_v15 = vld [vmem:[#allocation10 + $0x908] sm:$0xf] }
 0x1a1   :  { %8651 = vmatpush.bf16.msrb.mxu0 %v14548_v36  ;;  %8665 = vmatpush.bf16.msrb.mxu1 %v15572_v59  ;;  %v16209_v36 = vld [vmem:[#allocation10 + $0x1180] sm:$0xf0]  ;;  %v14551_v59 = vld [vmem:[#allocation10 + $0x408] sm:$0xf] }
 0x1a2   :  { %v16212_v17 = vor.u32 %v19949_v14, %v16209_v36  ;;  %v2179_v35 = vpop.f32.mrf.mxu2  ;;  %v2193_v44 = vpop.f32.mrf.mxu3  ;;  %v14552_v34 = vor.u32 %v19550_v31, %v14551_v59  ;;  %v15192_v36 = vor.u32 %v19710_v10, %v15191_v15  ;;  %v19422_v59 = vld [vmem:[#allocation10 + $0x84] sm:$0xf0]  ;;  %v20285_v31 = vld [vmem:[#allocation10 + $0x1b7c] sm:$0xf0]  ;;  %v19534_v15 = vld [vmem:[#allocation10 + $0x40c] sm:$0xf] }
 0x1a3   :  { %8679 = vmatpush.bf16.msrb.mxu2 %v16596_v3  ;;  %v2178_v3 = vadd.f32 %v2177_v45, %v2164_v58  ;;  %v14040_v58 = vor.u32 %v19422_v59, %v14039_v21  ;;  %v14553_v10 = vld [vmem:[#allocation10 + $0x488] sm:$0xf0]  ;;  %v17873_v21 = vld [vmem:[#allocation10 + $0x1e80] sm:$0xf0] }
 0x1a4   :  { %v14556_v59 = vor.u32 %v19534_v15, %v14553_v10  ;;  %v16215_v15 = vld [vmem:[#allocation10 + $0x1108] sm:$0xf] }
 0x1a5   :  { %8652 = vmatpush.bf16.msrb.mxu0 %v14420_v25  ;;  %8666 = vmatpush.bf16.msrb.mxu1 %v15444_v51  ;;  %v16081_v25 = vld [vmem:[#allocation10 + $0x1080] sm:$0xf0]  ;;  %v19806_v51 = vld [vmem:[#allocation10 + $0xc84] sm:$0xf0]  ;;  %v2192_v26 = vadd.f32 %v21407_v37, %v2178_v3  ;;  %v17615_v37 = vld [vmem:[#allocation10 + $0x1c00] sm:$0xf] }
 0x1a6   :  { %v15576_v0 = vor.u32 %v19806_v51, %v15575_v29  ;;  %v17616_v9 = vor.u32 %v20317_v13, %v17615_v37  ;;  %v17488_v29 = vor.u32 %v20285_v31, %v17487_v2  ;;  %v19886_v51 = vld [vmem:[#allocation10 + $0xf0c] sm:$0xf] }
 0x1a7   :  { %8680 = vmatpush.bf16.msrb.mxu2 %v16468_v6  ;;  %v14809_v3 = vld [vmem:[#allocation10 + $0x688] sm:$0xf0] }
 0x1a8   :  { %v19790_v37 = vld [vmem:[#allocation10 + $0xc0c] sm:$0xf] }
 0x1a9   :  { %8653 = vmatpush.bf16.msrb.mxu0 %v14292_v16  ;;  %8667 = vmatpush.bf16.msrb.mxu1 %v15316_v49  ;;  %v2152_v16 = vadd.f32 %v2151_v30, %v630_v50  ;;  %v16084_v49 = vor.u32 %v19917_v4, %v16081_v25  ;;  %v14167_v50 = vld [vmem:[#allocation10 + $0x108] sm:$0xf]  ;;  %v14937_v25 = vld [vmem:[#allocation10 + $0x788] sm:$0xf0] }
 0x1aa   :  { %v14168_v14 = vor.u32 %v19454_v55, %v14167_v50  ;;  %v15577_v13 = vld [vmem:[#allocation10 + $0xc88] sm:$0xf0] }
 0x1ab   :  { %8681 = vmatpush.bf16.msrb.mxu2 %v16340_v60  ;;  %v2166_v24 = vadd.f32 %v2165_v27, %v2152_v16  ;;  %v15063_v27 = vld [vmem:[#allocation10 + $0x808] sm:$0xf]  ;;  %v15580_v31 = vor.u32 %v19790_v37, %v15577_v13 }
 0x1ad   :  { %8654 = vmatpush.bf16.msrb.mxu0 %v14164_v63  ;;  %8668 = vmatpush.bf16.msrb.mxu1 %v15188_v48  ;;  %v19518_v63 = vld [vmem:[#allocation10 + $0x384] sm:$0xf0]  ;;  %v2180_v28 = vadd.f32 %v2179_v35, %v2166_v24 }
 0x1ae   :  { %v15447_v48 = vld [vmem:[#allocation10 + $0xb08] sm:$0xf]  ;;  %v14424_v6 = vor.u32 %v19518_v63, %v14423_v39  ;;  %v20253_v39 = vld [vmem:[#allocation10 + $0x1a7c] sm:$0xf0]  ;;  %v15833_v63 = vld [vmem:[#allocation10 + $0xe88] sm:$0xf0] }
 0x1af   :  { %8682 = vmatpush.bf16.msrb.mxu2 %v16212_v17  ;;  %v15448_v41 = vor.u32 %v19774_v11, %v15447_v48  ;;  %v16983_v24 = vld [vmem:[#allocation10 + $0x1708] sm:$0xf] }
 0x1b1   :  { %8655 = vmatpush.bf16.msrb.mxu0 %v14036_v40  ;;  %8669 = vmatpush.bf16.msrb.mxu1 %v15060_v7  ;;  %v2205_v61 = vpop.f32.mrf.mxu0  ;;  %v2219_v8 = vpop.f32.mrf.mxu1  ;;  %v19486_v40 = vld [vmem:[#allocation10 + $0x284] sm:$0xf0] }
 0x1b2   :  { %v15319_v7 = vld [vmem:[#allocation10 + $0xa08] sm:$0xf]  ;;  %v2206_v22 = vadd.f32 %v2205_v61, %v2192_v26  ;;  %v14296_v32 = vor.u32 %v19486_v40, %v14295_v57  ;;  %v19854_v61 = vld [vmem:[#allocation10 + $0xe0c] sm:$0xf] }
 0x1b3   :  { %8683 = vmatpush.bf16.msrb.mxu2 %v16084_v49  ;;  %v15836_v57 = vor.u32 %v19854_v61, %v15833_v63  ;;  %v19566_v26 = vld [vmem:[#allocation10 + $0x50c] sm:$0xf] }
 0x1b4   :  { %8656 = vmatmul.bf16.vlgmr.msrb.gmra.mxu0 %v21401_v53  ;;  %8670 = vmatmul.bf16.vlgmr.msrb.gmra.mxu1 %v21403_v18  ;;  %v2220_v60 = vadd.f32 %v2219_v8, %v2206_v22  ;;  %v19822_v40 = vld [vmem:[#allocation10 + $0xd0c] sm:$0xf] }
 0x1b5   :  { %8704 = vmatpush.bf16.msra.mxu0 %v14936_v1  ;;  %8718 = vmatpush.bf16.msra.mxu1 %v15960_v46  ;;  %v19742_v1 = vld [vmem:[#allocation10 + $0xa84] sm:$0xf0]  ;;  %v17744_v46 = vor.u32 %v20349_v5, %v17743_v12  ;;  %v20221_v5 = vld [vmem:[#allocation10 + $0x197c] sm:$0xf0]  ;;  %v19438_v61 = vld [vmem:[#allocation10 + $0x10c] sm:$0xf] }
 0x1b6   :  { %v15320_v45 = vor.u32 %v19742_v1, %v15319_v7  ;;  %v20158_v12 = vld [vmem:[#allocation10 + $0x1784] sm:$0xf0]  ;;  %v15705_v7 = vld [vmem:[#allocation10 + $0xd88] sm:$0xf0]  ;;  %v17232_v1 = vor.u32 %v20221_v5, %v17231_v62 }
 0x1b7   :  { %8636 = vmatpush.bf16.msra.mxu3 %v17744_v46  ;;  %v16984_v22 = vor.u32 %v20158_v12, %v16983_v24  ;;  %v15708_v55 = vor.u32 %v19822_v40, %v15705_v7  ;;  %v14169_v63 = vld [vmem:[#allocation10 + $0x188] sm:$0xf0]  ;;  %v16343_v24 = vld [vmem:[#allocation10 + $0x1208] sm:$0xf] }
 0x1b8   :  { %v19998_v12 = vld [vmem:[#allocation10 + $0x1284] sm:$0xf0]  ;;  %v19406_v5 = vld [vmem:[#allocation10 + $0xc] sm:$0xf] }
 0x1b9   :  { %8705 = vmatpush.bf16.msra.mxu0 %v14808_v23  ;;  %8719 = vmatpush.bf16.msra.mxu1 %v15832_v47  ;;  %v2194_v23 = vadd.f32 %v2193_v44, %v2180_v28  ;;  %v2207_v47 = vpop.f32.mrf.mxu0  ;;  %v2221_v4 = vpop.f32.mrf.mxu1  ;;  %v15964_v44 = vor.u32 %v19886_v51, %v15961_v56  ;;  %v14681_v28 = vld [vmem:[#allocation10 + $0x588] sm:$0xf0]  ;;  %v20062_v51 = vld [vmem:[#allocation10 + $0x1484] sm:$0xf0]  ;;  %v20333_v56 = vld [vmem:[#allocation10 + $0x1d04] sm:$0xf] }
 0x1ba   :  { %v2233_v54 = vpop.f32.mrf.mxu2  ;;  %v2247_v42 = vpop.f32.mrf.mxu3  ;;  %v14684_v50 = vor.u32 %v19566_v26, %v14681_v28  ;;  %v14041_v26 = vld [vmem:[#allocation10 + $0x88] sm:$0xf0] }
 0x1bb   :  { %v2208_v30 = vadd.f32 %v2207_v47, %v2194_v23  ;;  %v2234_v17 = vadd.f32 %v2233_v54, %v2220_v60  ;;  %8637 = vmatpush.bf16.msra.mxu3 %v17616_v9  ;;  %v17103_v54 = vld [vmem:[#allocation10 + $0x1800] sm:$0xf]  ;;  %v20397_v23 = vld [vmem:[#allocation10 + $0x1f04] sm:$0xf]  ;;  %v19662_v28 = vld [vmem:[#allocation10 + $0x80c] sm:$0xf]  ;;  %v14044_v37 = vor.u32 %v19406_v5, %v14041_v26 }
 0x1bc   :  { %v18001_v47 = vld [vmem:[#allocation10 + $0x1f80] sm:$0xf0]  ;;  %v15065_v40 = vld [vmem:[#allocation10 + $0x888] sm:$0xf0] }
 0x1bd   :  { %8706 = vmatpush.bf16.msra.mxu0 %v14680_v38  ;;  %8720 = vmatpush.bf16.msra.mxu1 %v15704_v20  ;;  %v19678_v38 = vld [vmem:[#allocation10 + $0x884] sm:$0xf0]  ;;  %v19630_v20 = vld [vmem:[#allocation10 + $0x70c] sm:$0xf]  ;;  %v2222_v52 = vadd.f32 %v2221_v4, %v2208_v30  ;;  %v2248_v49 = vadd.f32 %v2247_v42, %v2234_v17  ;;  %v20189_v42 = vld [vmem:[#allocation10 + $0x187c] sm:$0xf0]  ;;  %v18004_v2 = vor.u32 %v20397_v23, %v18001_v47 }
 0x1be   :  { %v15064_v16 = vor.u32 %v19678_v38, %v15063_v27  ;;  %v14940_v35 = vor.u32 %v19630_v20, %v14937_v25  ;;  %v17104_v9 = vor.u32 %v20189_v42, %v17103_v54  ;;  %v16727_v30 = vld [vmem:[#allocation10 + $0x1508] sm:$0xf]  ;;  %v19502_v17 = vld [vmem:[#allocation10 + $0x30c] sm:$0xf]  ;;  %v19647_v54 = vld [vmem:[#allocation10 + $0x78c] sm:$0xf0]  ;;  %v15068_v13 = vor.u32 %v19662_v28, %v15065_v40 }
 0x1bf   :  { %8638 = vmatpush.bf16.msra.mxu3 %v17488_v29  ;;  %v2366_v8 = vmax.f32 %v2248_v49, 0.0  ;;  %v14425_v27 = vld [vmem:[#allocation10 + $0x388] sm:$0xf0]  ;;  %v16599_v4 = vld [vmem:[#allocation10 + $0x1408] sm:$0xf] }
 0x1c0   :  { %v19758_v38 = vld [vmem:[#allocation10 + $0xb0c] sm:$0xf]  ;;  %v20269_v42 = vld [vmem:[#allocation10 + $0x1b04] sm:$0xf]  ;;  %v19966_v23 = vld [vmem:[#allocation10 + $0x1184] sm:$0xf0] }
 0x1c1   :  { %8707 = vmatpush.bf16.msra.mxu0 %v14552_v34  ;;  %8721 = vmatpush.bf16.msra.mxu1 %v15576_v0  ;;  %v19598_v34 = vld [vmem:[#allocation10 + $0x60c] sm:$0xf]  ;;  %v17359_v0 = vld [vmem:[#allocation10 + $0x1a00] sm:$0xf]  ;;  %v20173_v5 = vld [vmem:[#allocation10 + $0x1804] sm:$0xf] }
 0x1c2   :  { %v2235_v33 = vpop.f32.mrf.mxu2  ;;  %v2249_v43 = vpop.f32.mrf.mxu3  ;;  %v17360_v48 = vor.u32 %v20253_v39, %v17359_v0  ;;  %v15449_v20 = vld [vmem:[#allocation10 + $0xb88] sm:$0xf0]  ;;  %v16471_v0 = vld [vmem:[#allocation10 + $0x1308] sm:$0xf] }
 0x1c3   :  { %v2236_v19 = vadd.f32 %v2235_v33, %v2222_v52  ;;  %v17745_v52 = vld [vmem:[#allocation10 + $0x1d80] sm:$0xf0]  ;;  %v14428_v33 = vor.u32 %v19502_v17, %v14425_v27  ;;  %v14297_v49 = vld [vmem:[#allocation10 + $0x288] sm:$0xf0]  ;;  %v20030_v39 = vld [vmem:[#allocation10 + $0x1384] sm:$0xf0] }
 0x1c4   :  { %8639 = vmatpush.bf16.msra.mxu3 %v17360_v48  ;;  %v19694_v48 = vld [vmem:[#allocation10 + $0x90c] sm:$0xf]  ;;  %v16472_v62 = vor.u32 %v20030_v39, %v16471_v0  ;;  %v20205_v0 = vld [vmem:[#allocation10 + $0x1904] sm:$0xf] }
 0x1c5   :  { %8708 = vmatpush.bf16.msra.mxu0 %v14424_v6  ;;  %8722 = vmatpush.bf16.msra.mxu1 %v15448_v41  ;;  %v2250_v11 = vadd.f32 %v2249_v43, %v2236_v19  ;;  %v14812_v41 = vor.u32 %v19598_v34, %v14809_v3  ;;  %v19726_v19 = vld [vmem:[#allocation10 + $0xa0c] sm:$0xf]  ;;  %v17748_v34 = vor.u32 %v20333_v56, %v17745_v52  ;;  %v20237_v56 = vld [vmem:[#allocation10 + $0x1a04] sm:$0xf] }
 0x1c6   :  { %v17361_v52 = vld [vmem:[#allocation10 + $0x1a80] sm:$0xf0]  ;;  %v20110_v39 = vld [vmem:[#allocation10 + $0x160c] sm:$0xf] }
 0x1c7   :  { %v2370_v6 = vmax.f32 %v2250_v11, 0.0  ;;  %v15193_v11 = vld [vmem:[#allocation10 + $0x988] sm:$0xf0] }
 0x1c8   :  { %8640 = vmatpush.bf16.msra.mxu3 %v17232_v1  ;;  %v20078_v26 = vld [vmem:[#allocation10 + $0x150c] sm:$0xf] }
 0x1c9   :  { %8709 = vmatpush.bf16.msra.mxu0 %v14296_v32  ;;  %8723 = vmatpush.bf16.msra.mxu1 %v15320_v45  ;;  %v21413_v46 = vpack.c.bf16 %v2370_v6, %v2366_v8  ;;  %v16855_v32 = vld [vmem:[#allocation10 + $0x1608] sm:$0xf]  ;;  %v20301_v8 = vld [vmem:[#allocation10 + $0x1c04] sm:$0xf]  ;;  %v16729_v28 = vld [vmem:[#allocation10 + $0x1588] sm:$0xf0] }
 0x1ca   :  { %v20126_v45 = vld [vmem:[#allocation10 + $0x1684] sm:$0xf0]  ;;  %v17617_v6 = vld [vmem:[#allocation10 + $0x1c80] sm:$0xf0] }
 0x1cb   :  { %8628 = vmatmul.bf16.vlgmr.msra.gmra.mxu2 %v21413_v46  ;;  %v16856_v60 = vor.u32 %v20126_v45, %v16855_v32  ;;  %v17620_v7 = vor.u32 %v20301_v8, %v17617_v6  ;;  %v16344_v32 = vor.u32 %v19998_v12, %v16343_v24  ;;  %v15967_v45 = vld [vmem:[#allocation10 + $0xf10] sm:$0xf]  ;;  %v17105_v8 = vld [vmem:[#allocation10 + $0x1880] sm:$0xf0] }
 0x1cc   :  { %8732 = vmatpush.bf16.msra.mxu2 %v16984_v22  ;;  %8641 = vmatpush.bf16.msra.mxu3 %v17104_v9  ;;  %v14943_v22 = vld [vmem:[#allocation10 + $0x710] sm:$0xf]  ;;  %v17108_v40 = vor.u32 %v20173_v5, %v17105_v8  ;;  %v19631_v5 = vld [vmem:[#allocation10 + $0x714] sm:$0xf] }
 0x1cd   :  { %8710 = vmatpush.bf16.msra.mxu0 %v14168_v14  ;;  %8724 = vmatpush.bf16.msra.mxu1 %v15192_v36  ;;  %v20094_v14 = vld [vmem:[#allocation10 + $0x1584] sm:$0xf0]  ;;  %v20365_v36 = vld [vmem:[#allocation10 + $0x1e04] sm:$0xf]  ;;  %v14944_v9 = vor.u32 %v19647_v54, %v14943_v22  ;;  %v19551_v12 = vld [vmem:[#allocation10 + $0x48c] sm:$0xf0] }
 0x1ce   :  { %v16728_v29 = vor.u32 %v20094_v14, %v16727_v30  ;;  %v17876_v25 = vor.u32 %v20365_v36, %v17873_v21  ;;  %v14815_v30 = vld [vmem:[#allocation10 + $0x610] sm:$0xf]  ;;  %v14945_v8 = vld [vmem:[#allocation10 + $0x790] sm:$0xf0] }
 0x1cf   :  { %v19615_v14 = vld [vmem:[#allocation10 + $0x68c] sm:$0xf0] }
 0x1d0   :  { %8733 = vmatpush.bf16.msra.mxu2 %v16856_v60  ;;  %8690 = vmatpush.bf16.msrb.mxu3 %v18004_v2  ;;  %v16216_v2 = vor.u32 %v19966_v23, %v16215_v15  ;;  %v15839_v36 = vld [vmem:[#allocation10 + $0xe10] sm:$0xf]  ;;  %v16732_v23 = vor.u32 %v20078_v26, %v16729_v28  ;;  %v15969_v26 = vld [vmem:[#allocation10 + $0xf90] sm:$0xf0] }
 0x1d1   :  { %8711 = vmatpush.bf16.msra.mxu0 %v14040_v58  ;;  %8725 = vmatpush.bf16.msra.mxu1 %v15064_v16  ;;  %v15452_v58 = vor.u32 %v19758_v38, %v15449_v20  ;;  %v19470_v16 = vld [vmem:[#allocation10 + $0x20c] sm:$0xf]  ;;  %v2261_v1 = vpop.f32.mrf.mxu0  ;;  %v21419_v10 = vpop.f32.mrf.mxu1  ;;  %v19871_v21 = vld [vmem:[#allocation10 + $0xe8c] sm:$0xf0] }
 0x1d2   :  { %v14300_v43 = vor.u32 %v19470_v16, %v14297_v49  ;;  %v20142_v38 = vld [vmem:[#allocation10 + $0x170c] sm:$0xf]  ;;  %v19583_v16 = vld [vmem:[#allocation10 + $0x58c] sm:$0xf0]  ;;  %v17364_v49 = vor.u32 %v20237_v56, %v17361_v52 }
 0x1d3   :  { %v16985_v20 = vld [vmem:[#allocation10 + $0x1788] sm:$0xf0] }
 0x1d4   :  { %8712 = vmatmul.bf16.vlgmr.msra.gmra.mxu0 %v21401_v53  ;;  %8726 = vmatmul.bf16.vlgmr.msra.gmra.mxu1 %v21403_v18 }
 0x1d5   :  { %8760 = vmatpush.bf16.msrb.mxu0 %v14940_v35  ;;  %8774 = vmatpush.bf16.msrb.mxu1 %v15964_v44  ;;  %v15321_v35 = vld [vmem:[#allocation10 + $0xa88] sm:$0xf0]  ;;  %v16600_v44 = vor.u32 %v20062_v51, %v16599_v4  ;;  %v15840_v51 = vor.u32 %v19871_v21, %v15839_v36  ;;  %v19487_v36 = vld [vmem:[#allocation10 + $0x28c] sm:$0xf0] }
 0x1d6   :  { %8734 = vmatpush.bf16.msra.mxu2 %v16728_v29  ;;  %8691 = vmatpush.bf16.msrb.mxu3 %v17876_v25  ;;  %v15324_v3 = vor.u32 %v19726_v19, %v15321_v35  ;;  %v20709_v29 = vld [vmem:[#allocation8] sm:$0xf]  ;;  %v14816_v25 = vor.u32 %v19615_v14, %v14815_v30  ;;  %v16988_v35 = vor.u32 %v20142_v38, %v16985_v20  ;;  %v14303_v14 = vld [vmem:[#allocation10 + $0x210] sm:$0xf]  ;;  %v20014_v20 = vld [vmem:[#allocation10 + $0x130c] sm:$0xf] }
 0x1d7   :  { %v631_v4 = vperm.slane %v20709_v29, 3  ;;  %v19743_v38 = vld [vmem:[#allocation10 + $0xa8c] sm:$0xf0]  ;;  %v16473_v29 = vld [vmem:[#allocation10 + $0x1388] sm:$0xf0] }
 0x1d9   :  { %8761 = vmatpush.bf16.msrb.mxu0 %v14812_v41  ;;  %8775 = vmatpush.bf16.msrb.mxu1 %v15836_v57  ;;  %v14172_v41 = vor.u32 %v19438_v61, %v14169_v63  ;;  %v15196_v57 = vor.u32 %v19694_v48, %v15193_v11  ;;  %v2263_v19 = vpop.f32.mrf.mxu0  ;;  %v2262_v61 = vadd.f32 %v2261_v1, %v631_v4  ;;  %v14559_v48 = vld [vmem:[#allocation10 + $0x410] sm:$0xf] }
 0x1da   :  { %8735 = vmatpush.bf16.msra.mxu2 %v16600_v44  ;;  %8692 = vmatpush.bf16.msrb.mxu3 %v17748_v34  ;;  %v2289_v17 = vpop.f32.mrf.mxu2  ;;  %v21421_v27 = vpop.f32.mrf.mxu3  ;;  %v15711_v44 = vld [vmem:[#allocation10 + $0xd10] sm:$0xf]  ;;  %v2264_v1 = vadd.f32 %v2263_v19, %v631_v4  ;;  %v14560_v22 = vor.u32 %v19551_v12, %v14559_v48  ;;  %v19950_v12 = vld [vmem:[#allocation10 + $0x110c] sm:$0xf] }
 0x1db   :  { %8684 = vmatmul.bf16.vlgmr.msrb.gmra.mxu2 %v21413_v46  ;;  %v19839_v34 = vld [vmem:[#allocation10 + $0xd8c] sm:$0xf0] }
 0x1dc   :  { %v15712_v24 = vor.u32 %v19839_v34, %v15711_v44  ;;  %v15199_v19 = vld [vmem:[#allocation10 + $0x910] sm:$0xf]  ;;  %v19982_v44 = vld [vmem:[#allocation10 + $0x120c] sm:$0xf] }
 0x1dd   :  { %8762 = vmatpush.bf16.msrb.mxu0 %v14684_v50  ;;  %8776 = vmatpush.bf16.msrb.mxu1 %v15708_v55  ;;  %v19903_v50 = vld [vmem:[#allocation10 + $0xf8c] sm:$0xf0]  ;;  %v17489_v55 = vld [vmem:[#allocation10 + $0x1b80] sm:$0xf0]  ;;  %v16345_v34 = vld [vmem:[#allocation10 + $0x1288] sm:$0xf0] }
 0x1de   :  { %8736 = vmatpush.bf16.msra.mxu2 %v16472_v62  ;;  %8693 = vmatpush.bf16.msrb.mxu3 %v17620_v7  ;;  %v17492_v47 = vor.u32 %v20269_v42, %v17489_v55  ;;  %v15968_v60 = vor.u32 %v19903_v50, %v15967_v45  ;;  %v2277_v62 = vpop.f32.mrf.mxu1  ;;  %v2276_v7 = vadd.f32 %v21419_v10, %v2262_v61  ;;  %v14431_v45 = vld [vmem:[#allocation10 + $0x310] sm:$0xf] }
 0x1df   :  { %v19519_v50 = vld [vmem:[#allocation10 + $0x38c] sm:$0xf0]  ;;  %v2278_v10 = vadd.f32 %v2277_v62, %v2264_v1 }
 0x1e0   :  { %v2290_v55 = vadd.f32 %v2289_v17, %v2276_v7  ;;  %v15327_v17 = vld [vmem:[#allocation10 + $0xa10] sm:$0xf] }
 0x1e1   :  { %8763 = vmatpush.bf16.msrb.mxu0 %v14556_v59  ;;  %8777 = vmatpush.bf16.msrb.mxu1 %v15580_v31  ;;  %v16087_v59 = vld [vmem:[#allocation10 + $0x1008] sm:$0xf]  ;;  %v15328_v52 = vor.u32 %v19743_v38, %v15327_v17  ;;  %v15071_v48 = vld [vmem:[#allocation10 + $0x810] sm:$0xf]  ;;  %v19567_v17 = vld [vmem:[#allocation10 + $0x514] sm:$0xf] }
 0x1e2   :  { %8737 = vmatpush.bf16.msra.mxu2 %v16344_v32  ;;  %8694 = vmatpush.bf16.msrb.mxu3 %v17492_v47  ;;  %v19934_v31 = vld [vmem:[#allocation10 + $0x1084] sm:$0xf0]  ;;  %v2291_v54 = vpop.f32.mrf.mxu2  ;;  %v2305_v42 = vpop.f32.mrf.mxu3  ;;  %v15455_v47 = vld [vmem:[#allocation10 + $0xb10] sm:$0xf]  ;;  %v2304_v21 = vadd.f32 %v21421_v27, %v2290_v55  ;;  %v16476_v27 = vor.u32 %v20014_v20, %v16473_v29  ;;  %v19599_v55 = vld [vmem:[#allocation10 + $0x614] sm:$0xf] }
 0x1e3   :  { %v14689_v38 = vld [vmem:[#allocation10 + $0x590] sm:$0xf0] }
 0x1e4   :  { %v19823_v29 = vld [vmem:[#allocation10 + $0xd14] sm:$0xf] }
 0x1e5   :  { %8764 = vmatpush.bf16.msrb.mxu0 %v14428_v33  ;;  %8778 = vmatpush.bf16.msrb.mxu1 %v15452_v58  ;;  %v16088_v33 = vor.u32 %v19934_v31, %v16087_v59  ;;  %v14687_v58 = vld [vmem:[#allocation10 + $0x510] sm:$0xf]  ;;  %v2292_v59 = vadd.f32 %v2291_v54, %v2278_v10 }
 0x1e6   :  { %8738 = vmatpush.bf16.msra.mxu2 %v16216_v2  ;;  %8695 = vmatpush.bf16.msrb.mxu3 %v17364_v49  ;;  %v14688_v63 = vor.u32 %v19583_v16, %v14687_v58  ;;  %v19455_v58 = vld [vmem:[#allocation10 + $0x18c] sm:$0xf0] }
 0x1e7   :  { %v2306_v16 = vadd.f32 %v2305_v42, %v2292_v59  ;;  %v16991_v10 = vld [vmem:[#allocation10 + $0x1710] sm:$0xf] }
 0x1e9   :  { %8765 = vmatpush.bf16.msrb.mxu0 %v14300_v43  ;;  %8779 = vmatpush.bf16.msrb.mxu1 %v15324_v3  ;;  %v16857_v43 = vld [vmem:[#allocation10 + $0x1688] sm:$0xf0]  ;;  %v17233_v3 = vld [vmem:[#allocation10 + $0x1980] sm:$0xf0] }
 0x1ea   :  { %v17236_v11 = vor.u32 %v20205_v0, %v17233_v3  ;;  %8739 = vmatpush.bf16.msra.mxu2 %v16088_v33  ;;  %v16860_v6 = vor.u32 %v20110_v39, %v16857_v43  ;;  %v14175_v33 = vld [vmem:[#allocation10 + $0x110] sm:$0xf] }
 0x1eb   :  { %v14176_v43 = vor.u32 %v19455_v58, %v14175_v33  ;;  %v14047_v3 = vld [vmem:[#allocation10 + $0x10] sm:$0xf]  ;;  %v14692_v33 = vor.u32 %v19567_v17, %v14689_v38  ;;  %v17879_v58 = vld [vmem:[#allocation10 + $0x1e08] sm:$0xf] }
 0x1ec   :  { %8696 = vmatpush.bf16.msrb.mxu3 %v17236_v11  ;;  %v19679_v11 = vld [vmem:[#allocation10 + $0x88c] sm:$0xf0] }
 0x1ed   :  { %8766 = vmatpush.bf16.msrb.mxu0 %v14172_v41  ;;  %8780 = vmatpush.bf16.msrb.mxu1 %v15196_v57  ;;  %v15583_v41 = vld [vmem:[#allocation10 + $0xc10] sm:$0xf]  ;;  %v15072_v1 = vor.u32 %v19679_v11, %v15071_v48  ;;  %v17751_v48 = vld [vmem:[#allocation10 + $0x1d08] sm:$0xf] }
 0x1ee   :  { %8788 = vmatpush.bf16.msrb.mxu2 %v16988_v35  ;;  %v19807_v57 = vld [vmem:[#allocation10 + $0xc8c] sm:$0xf0]  ;;  %v20350_v11 = vld [vmem:[#allocation10 + $0x1d84] sm:$0xf0] }
 0x1ef   :  { %8740 = vmatmul.bf16.vlgmr.msra.gmra.mxu2 %v21413_v46  ;;  %v15584_v32 = vor.u32 %v19807_v57, %v15583_v41  ;;  %v19711_v35 = vld [vmem:[#allocation10 + $0x98c] sm:$0xf0]  ;;  %v16217_v41 = vld [vmem:[#allocation10 + $0x1188] sm:$0xf0]  ;;  %v19887_v57 = vld [vmem:[#allocation10 + $0xf14] sm:$0xf] }
 0x1f0   :  { %8697 = vmatpush.bf16.msrb.mxu3 %v17108_v40  ;;  %v15200_v61 = vor.u32 %v19711_v35, %v15199_v19  ;;  %v19535_v19 = vld [vmem:[#allocation10 + $0x414] sm:$0xf]  ;;  %v16351_v17 = vld [vmem:[#allocation10 + $0x1210] sm:$0xf] }
 0x1f1   :  { %8767 = vmatpush.bf16.msrb.mxu0 %v14044_v37  ;;  %8781 = vmatpush.bf16.msrb.mxu1 %v15068_v13  ;;  %v2317_v15 = vpop.f32.mrf.mxu0  ;;  %v19775_v37 = vld [vmem:[#allocation10 + $0xb8c] sm:$0xf0]  ;;  %v20046_v13 = vld [vmem:[#allocation10 + $0x140c] sm:$0xf]  ;;  %v2331_v30 = vpop.f32.mrf.mxu1  ;;  %v14561_v35 = vld [vmem:[#allocation10 + $0x490] sm:$0xf0] }
 0x1f2   :  { %8789 = vmatpush.bf16.msrb.mxu2 %v16860_v6  ;;  %v15456_v2 = vor.u32 %v19775_v37, %v15455_v47  ;;  %v2318_v4 = vadd.f32 %v2317_v15, %v2304_v21  ;;  %v14817_v15 = vld [vmem:[#allocation10 + $0x690] sm:$0xf0]  ;;  %v16089_v47 = vld [vmem:[#allocation10 + $0x1088] sm:$0xf0]  ;;  %v19999_v38 = vld [vmem:[#allocation10 + $0x128c] sm:$0xf0] }
 0x1f3   :  { %v19855_v37 = vld [vmem:[#allocation10 + $0xe14] sm:$0xf] }
 0x1f4   :  { %8768 = vmatmul.bf16.vlgmr.msrb.gmra.mxu0 %v21401_v53  ;;  %8782 = vmatmul.bf16.vlgmr.msrb.gmra.mxu1 %v21403_v18  ;;  %v2332_v0 = vadd.f32 %v2331_v30, %v2318_v4  ;;  %v14820_v30 = vor.u32 %v19599_v55, %v14817_v15  ;;  %v15713_v4 = vld [vmem:[#allocation10 + $0xd90] sm:$0xf0] }
 0x1f5   :  { %8816 = vmatpush.bf16.msra.mxu0 %v14944_v9  ;;  %8830 = vmatpush.bf16.msra.mxu1 %v15968_v60  ;;  %v16601_v9 = vld [vmem:[#allocation10 + $0x1488] sm:$0xf0]  ;;  %v14432_v60 = vor.u32 %v19519_v50, %v14431_v45  ;;  %v15972_v45 = vor.u32 %v19887_v57, %v15969_v26  ;;  %v17752_v57 = vor.u32 %v20350_v11, %v17751_v48  ;;  %v19727_v15 = vld [vmem:[#allocation10 + $0xa14] sm:$0xf] }
 0x1f6   :  { %8790 = vmatpush.bf16.msrb.mxu2 %v16732_v23  ;;  %v16604_v31 = vor.u32 %v20046_v13, %v16601_v9  ;;  %v19918_v50 = vld [vmem:[#allocation10 + $0x100c] sm:$0xf]  ;;  %v15841_v13 = vld [vmem:[#allocation10 + $0xe90] sm:$0xf0] }
 0x1f7   :  { %v16092_v59 = vor.u32 %v19918_v50, %v16089_v47 }
 0x1f9   :  { %8817 = vmatpush.bf16.msra.mxu0 %v14816_v25  ;;  %8831 = vmatpush.bf16.msra.mxu1 %v15840_v51  ;;  %v14304_v25 = vor.u32 %v19487_v36, %v14303_v14  ;;  %v2345_v51 = vpop.f32.mrf.mxu2  ;;  %v2359_v56 = vpop.f32.mrf.mxu3  ;;  %v20414_v14 = vld [vmem:[#allocation10 + $0x1f84] sm:$0xf0] }
 0x1fa   :  { %8791 = vmatpush.bf16.msrb.mxu2 %v16604_v31  ;;  %v2319_v49 = vpop.f32.mrf.mxu0  ;;  %v2346_v62 = vadd.f32 %v2345_v51, %v2332_v0  ;;  %v2333_v6 = vpop.f32.mrf.mxu1  ;;  %v15844_v31 = vor.u32 %v19855_v37, %v15841_v13  ;;  %v15585_v0 = vld [vmem:[#allocation10 + $0xc90] sm:$0xf0]  ;;  %v16479_v37 = vld [vmem:[#allocation10 + $0x1310] sm:$0xf] }
 0x1fb   :  { %v2320_v39 = vadd.f32 %v2319_v49, %v2306_v16  ;;  %v20382_v16 = vld [vmem:[#allocation10 + $0x1e84] sm:$0xf0]  ;;  %v15716_v49 = vor.u32 %v19823_v29, %v15713_v4  ;;  %v20031_v13 = vld [vmem:[#allocation10 + $0x138c] sm:$0xf0] }
 0x1fc   :  { %v2360_v54 = vadd.f32 %v2359_v56, %v2346_v62  ;;  %v16863_v56 = vld [vmem:[#allocation10 + $0x1610] sm:$0xf]  ;;  %v17367_v29 = vld [vmem:[#allocation10 + $0x1a08] sm:$0xf] }
 0x1fd   :  { %8818 = vmatpush.bf16.msra.mxu0 %v14688_v63  ;;  %8832 = vmatpush.bf16.msra.mxu1 %v15712_v24  ;;  %v19423_v63 = vld [vmem:[#allocation10 + $0x8c] sm:$0xf0]  ;;  %v16348_v24 = vor.u32 %v19982_v44, %v16345_v34  ;;  %v2334_v28 = vadd.f32 %v2333_v6, %v2320_v39  ;;  %v19791_v34 = vld [vmem:[#allocation10 + $0xc14] sm:$0xf]  ;;  %v17880_v39 = vor.u32 %v20382_v16, %v17879_v58  ;;  %v20254_v4 = vld [vmem:[#allocation10 + $0x1a84] sm:$0xf0] }
 0x1fe   :  { %8792 = vmatpush.bf16.msrb.mxu2 %v16476_v27  ;;  %v14048_v40 = vor.u32 %v19423_v63, %v14047_v3  ;;  %v2367_v36 = vmax.f32 %v2360_v54, 0.0  ;;  %v21432_v27 = vld [vmem:[#allocation11] sm:$0xff]  ;;  %v20095_v3 = vld [vmem:[#allocation10 + $0x158c] sm:$0xf0]  ;;  %v14564_v63 = vor.u32 %v19535_v19, %v14561_v35  ;;  %v15588_v62 = vor.u32 %v19791_v34, %v15585_v0  ;;  %v15457_v6 = vld [vmem:[#allocation10 + $0xb90] sm:$0xf0] }
 0x1ff   :  { %v20318_v54 = vld [vmem:[#allocation10 + $0x1c84] sm:$0xf0]  ;;  %v15073_v58 = vld [vmem:[#allocation10 + $0x890] sm:$0xf0]  ;;  %v16352_v16 = vor.u32 %v19999_v38, %v16351_v17  ;;  %v14951_v19 = vld [vmem:[#allocation10 + $0x718] sm:$0xf] }
 0x200   :  { %v19648_v35 = vld [vmem:[#allocation10 + $0x794] sm:$0xf0]  ;;  %v19967_v34 = vld [vmem:[#allocation10 + $0x118c] sm:$0xf0] }
 0x201   :  { %8819 = vmatpush.bf16.msra.mxu0 %v14560_v22  ;;  %8833 = vmatpush.bf16.msra.mxu1 %v15584_v32  ;;  %v2347_v7 = vpop.f32.mrf.mxu2  ;;  %v14948_v22 = vor.u32 %v19631_v5, %v14945_v8  ;;  %v16220_v32 = vor.u32 %v19950_v12, %v16217_v41  ;;  %v2361_v23 = vpop.f32.mrf.mxu3  ;;  %v14433_v12 = vld [vmem:[#allocation10 + $0x390] sm:$0xf0]  ;;  %v15975_v0 = vld [vmem:[#allocation10 + $0xf18] sm:$0xf]  ;;  %v14952_v11 = vor.u32 %v19648_v35, %v14951_v19 }
 0x202   :  { %v2348_v42 = vadd.f32 %v2347_v7, %v2334_v28  ;;  %8793 = vmatpush.bf16.msrb.mxu2 %v16348_v24  ;;  %v19503_v24 = vld [vmem:[#allocation10 + $0x314] sm:$0xf]  ;;  %v16607_v28 = vld [vmem:[#allocation10 + $0x1410] sm:$0xf]  ;;  %v19552_v17 = vld [vmem:[#allocation10 + $0x494] sm:$0xf0] }
 0x203   :  { %v19759_v8 = vld [vmem:[#allocation10 + $0xb14] sm:$0xf]  ;;  %v14439_v19 = vld [vmem:[#allocation10 + $0x318] sm:$0xf] }
 0x204   :  { %v2362_v9 = vadd.f32 %v2361_v23, %v2348_v42  ;;  %v15460_v42 = vor.u32 %v19759_v8, %v15457_v6  ;;  %v15329_v23 = vld [vmem:[#allocation10 + $0xa90] sm:$0xf0]  ;;  %v14823_v8 = vld [vmem:[#allocation10 + $0x618] sm:$0xf] }
 0x205   :  { %8820 = vmatpush.bf16.msra.mxu0 %v14432_v60  ;;  %8834 = vmatpush.bf16.msra.mxu1 %v15456_v2  ;;  %v20159_v60 = vld [vmem:[#allocation10 + $0x178c] sm:$0xf0]  ;;  %v18007_v2 = vld [vmem:[#allocation10 + $0x1f08] sm:$0xf]  ;;  %v19616_v6 = vld [vmem:[#allocation10 + $0x694] sm:$0xf0] }
 0x206   :  { %v2371_v21 = vmax.f32 %v2362_v9, 0.0  ;;  %8794 = vmatpush.bf16.msrb.mxu2 %v16220_v32  ;;  %v16992_v20 = vor.u32 %v20159_v60, %v16991_v10  ;;  %v18008_v51 = vor.u32 %v20414_v14, %v18007_v2  ;;  %v19471_v32 = vld [vmem:[#allocation10 + $0x214] sm:$0xf]  ;;  %v17495_v10 = vld [vmem:[#allocation10 + $0x1b08] sm:$0xf] }
 0x207   :  { %v20286_v60 = vld [vmem:[#allocation10 + $0x1b84] sm:$0xf0]  ;;  %v19439_v2 = vld [vmem:[#allocation10 + $0x114] sm:$0xf]  ;;  %v19520_v35 = vld [vmem:[#allocation10 + $0x394] sm:$0xf0] }
 0x208   :  { %v14177_v14 = vld [vmem:[#allocation10 + $0x190] sm:$0xf0] }
 0x209   :  { %8821 = vmatpush.bf16.msra.mxu0 %v14304_v25  ;;  %8835 = vmatpush.bf16.msra.mxu1 %v15328_v52  ;;  %v21429_v25 = vpack.c.bf16 %v2371_v21, %v2367_v36  ;;  %v20127_v52 = vld [vmem:[#allocation10 + $0x168c] sm:$0xf0]  ;;  %v16480_v36 = vor.u32 %v20031_v13, %v16479_v37  ;;  %v19695_v21 = vld [vmem:[#allocation10 + $0x914] sm:$0xf]  ;;  %v15719_v37 = vld [vmem:[#allocation10 + $0xd18] sm:$0xf] }
 0x20a   :  { %8795 = vmatpush.bf16.msrb.mxu2 %v16092_v59  ;;  %v16864_v44 = vor.u32 %v20127_v52, %v16863_v56  ;;  %v15201_v59 = vld [vmem:[#allocation10 + $0x990] sm:$0xf0]  ;;  %v19840_v13 = vld [vmem:[#allocation10 + $0xd94] sm:$0xf0] }
 0x20b   :  { %8642 = vmatmul.bf16.vlgmr.msra.gmra.mxu3 %v21429_v25  ;;  %v15204_v56 = vor.u32 %v19695_v21, %v15201_v59  ;;  %v14049_v52 = vld [vmem:[#allocation10 + $0x90] sm:$0xf0]  ;;  %v15720_v59 = vor.u32 %v19840_v13, %v15719_v37 }
 0x20c   :  { %8746 = vmatpush.bf16.msra.mxu3 %v18008_v51  ;;  %v19407_v51 = vld [vmem:[#allocation10 + $0x14] sm:$0xf] }
 0x20d   :  { %8822 = vmatpush.bf16.msra.mxu0 %v14176_v43  ;;  %8836 = vmatpush.bf16.msra.mxu1 %v15200_v61  ;;  %v16735_v43 = vld [vmem:[#allocation10 + $0x1510] sm:$0xf]  ;;  %v22340_v61 = vperm.slane %v21432_v27, 0  ;;  %v19983_v13 = vld [vmem:[#allocation10 + $0x1214] sm:$0xf] }
 0x20e   :  { %8844 = vmatpush.bf16.msra.mxu2 %v16992_v20  ;;  %v16736_v5 = vor.u32 %v20095_v3, %v16735_v43  ;;  %v14180_v20 = vor.u32 %v19439_v2, %v14177_v14  ;;  %v14052_v43 = vor.u32 %v19407_v51, %v14049_v52  ;;  %v17239_v3 = vld [vmem:[#allocation10 + $0x1908] sm:$0xf]  ;;  %v20366_v14 = vld [vmem:[#allocation10 + $0x1e0c] sm:$0xf]  ;;  %v20079_v51 = vld [vmem:[#allocation10 + $0x1514] sm:$0xf] }
 0x20f   :  { %8796 = vmatmul.bf16.vlgmr.msrb.gmra.mxu2 %v21413_v46  ;;  %v22338_v52 = vperm.slane %v21432_v27, 1 }
 0x210   :  { %8747 = vmatpush.bf16.msra.mxu3 %v17880_v39  ;;  %v19904_v39 = vld [vmem:[#allocation10 + $0xf94] sm:$0xf0] }
 0x211   :  { %8823 = vmatpush.bf16.msra.mxu0 %v14048_v40  ;;  %8837 = vmatpush.bf16.msra.mxu1 %v15072_v1  ;;  %v8601_v41 = vpop.f32.mrf.mxu0  ;;  %v8615_v26 = vpop.f32.mrf.mxu1  ;;  %v20063_v40 = vld [vmem:[#allocation10 + $0x148c] sm:$0xf0]  ;;  %v14436_v1 = vor.u32 %v19503_v24, %v14433_v12  ;;  %v15976_v24 = vor.u32 %v19904_v39, %v15975_v0  ;;  %v17111_v12 = vld [vmem:[#allocation10 + $0x1808] sm:$0xf]  ;;  %v19776_v0 = vld [vmem:[#allocation10 + $0xb94] sm:$0xf0] }
 0x212   :  { %8845 = vmatpush.bf16.msra.mxu2 %v16864_v44  ;;  %v8602_v7 = vadd.f32 %v8601_v41, %v22340_v61  ;;  %v16608_v55 = vor.u32 %v20063_v40, %v16607_v28  ;;  %v17368_v44 = vor.u32 %v20254_v4, %v17367_v29  ;;  %v19872_v28 = vld [vmem:[#allocation10 + $0xe94] sm:$0xf0]  ;;  %v20190_v40 = vld [vmem:[#allocation10 + $0x1884] sm:$0xf0]  ;;  %v19891_v61 = vld [vmem:[#allocation10 + $0xf34] sm:$0xf] }
 0x213   :  { %v19808_v29 = vld [vmem:[#allocation10 + $0xc94] sm:$0xf0] }
 0x214   :  { %8824 = vmatmul.bf16.vlgmr.msra.gmra.mxu0 %v21401_v53  ;;  %8838 = vmatmul.bf16.vlgmr.msra.gmra.mxu1 %v21403_v18  ;;  %v21439_v50 = vadd.f32 %v8615_v26, %v8602_v7  ;;  %v15847_v26 = vld [vmem:[#allocation10 + $0xe18] sm:$0xf]  ;;  %v20143_v7 = vld [vmem:[#allocation10 + $0x1714] sm:$0xf] }
 0x215   :  { %8872 = vmatpush.bf16.msrb.mxu0 %v14948_v22  ;;  %8886 = vmatpush.bf16.msrb.mxu1 %v15972_v45  ;;  %v17623_v22 = vld [vmem:[#allocation10 + $0x1c08] sm:$0xf]  ;;  %v14305_v45 = vld [vmem:[#allocation10 + $0x290] sm:$0xf0] }
 0x216   :  { %8846 = vmatpush.bf16.msra.mxu2 %v16736_v5  ;;  %8748 = vmatpush.bf16.msra.mxu3 %v17752_v57  ;;  %v17624_v47 = vor.u32 %v20318_v54, %v17623_v22  ;;  %v14308_v9 = vor.u32 %v19471_v32, %v14305_v45  ;;  %v16095_v5 = vld [vmem:[#allocation10 + $0x1010] sm:$0xf]  ;;  %v14824_v22 = vor.u32 %v19616_v6, %v14823_v8  ;;  %v20398_v54 = vld [vmem:[#allocation10 + $0x1f0c] sm:$0xf]  ;;  %v14311_v8 = vld [vmem:[#allocation10 + $0x218] sm:$0xf] }
 0x217   :  { %v19935_v57 = vld [vmem:[#allocation10 + $0x108c] sm:$0xf0]  ;;  %v15848_v45 = vor.u32 %v19872_v28, %v15847_v26  ;;  %v19488_v6 = vld [vmem:[#allocation10 + $0x294] sm:$0xf0] }
 0x218   :  { %v16096_v32 = vor.u32 %v19935_v57, %v16095_v5  ;;  %v15335_v26 = vld [vmem:[#allocation10 + $0xa18] sm:$0xf] }
 0x219   :  { %8873 = vmatpush.bf16.msrb.mxu0 %v14820_v30  ;;  %8887 = vmatpush.bf16.msrb.mxu1 %v15844_v31  ;;  %v15332_v30 = vor.u32 %v19727_v15, %v15329_v23  ;;  %v17496_v31 = vor.u32 %v20286_v60, %v17495_v10  ;;  %v19584_v15 = vld [vmem:[#allocation10 + $0x594] sm:$0xf0]  ;;  %v17112_v23 = vor.u32 %v20190_v40, %v17111_v12  ;;  %v20111_v60 = vld [vmem:[#allocation10 + $0x1614] sm:$0xf]  ;;  %v21446_v21 = vpop.f32.mrf.mxu1 }
 0x21a   :  { %8847 = vmatpush.bf16.msra.mxu2 %v16608_v55  ;;  %8749 = vmatpush.bf16.msra.mxu3 %v17624_v47  ;;  %v14695_v55 = vld [vmem:[#allocation10 + $0x518] sm:$0xf] }
 0x21b   :  { %8698 = vmatmul.bf16.vlgmr.msrb.gmra.mxu3 %v21429_v25  ;;  %v14696_v2 = vor.u32 %v19584_v15, %v14695_v55  ;;  %v19744_v28 = vld [vmem:[#allocation10 + $0xa94] sm:$0xf0] }
 0x21c   :  { %v19456_v55 = vld [vmem:[#allocation10 + $0x194] sm:$0xf0] }
 0x21d   :  { %8874 = vmatpush.bf16.msrb.mxu0 %v14692_v33  ;;  %8888 = vmatpush.bf16.msrb.mxu1 %v15716_v49  ;;  %v19663_v33 = vld [vmem:[#allocation10 + $0x814] sm:$0xf]  ;;  %v16223_v49 = vld [vmem:[#allocation10 + $0x1110] sm:$0xf] }
 0x21e   :  { %8848 = vmatpush.bf16.msra.mxu2 %v16480_v36  ;;  %8750 = vmatpush.bf16.msra.mxu3 %v17496_v31  ;;  %v15076_v48 = vor.u32 %v19663_v33, %v15073_v58  ;;  %v17881_v36 = vld [vmem:[#allocation10 + $0x1e88] sm:$0xf0]  ;;  %v14567_v31 = vld [vmem:[#allocation10 + $0x418] sm:$0xf] }
 0x21f   :  { %v17884_v4 = vor.u32 %v20366_v14, %v17881_v36  ;;  %v14568_v33 = vor.u32 %v19552_v17, %v14567_v31  ;;  %v20334_v58 = vld [vmem:[#allocation10 + $0x1d0c] sm:$0xf]  ;;  %v14055_v14 = vld [vmem:[#allocation10 + $0x18] sm:$0xf] }
 0x220   :  { %v15079_v31 = vld [vmem:[#allocation10 + $0x818] sm:$0xf] }
 0x221   :  { %8875 = vmatpush.bf16.msrb.mxu0 %v14564_v63  ;;  %8889 = vmatpush.bf16.msrb.mxu1 %v15588_v62  ;;  %v20222_v63 = vld [vmem:[#allocation10 + $0x1984] sm:$0xf0]  ;;  %v16224_v62 = vor.u32 %v19967_v34, %v16223_v49  ;;  %v15463_v34 = vld [vmem:[#allocation10 + $0xb18] sm:$0xf] }
 0x222   :  { %8849 = vmatpush.bf16.msra.mxu2 %v16352_v16  ;;  %8751 = vmatpush.bf16.msra.mxu3 %v17368_v44  ;;  %v17240_v41 = vor.u32 %v20222_v63, %v17239_v3  ;;  %v17753_v16 = vld [vmem:[#allocation10 + $0x1d88] sm:$0xf0]  ;;  %v20047_v3 = vld [vmem:[#allocation10 + $0x1414] sm:$0xf]  ;;  %v15464_v5 = vor.u32 %v19776_v0, %v15463_v34  ;;  %v19680_v17 = vld [vmem:[#allocation10 + $0x894] sm:$0xf0] }
 0x223   :  { %v16609_v63 = vld [vmem:[#allocation10 + $0x1490] sm:$0xf0] }
 0x224   :  { %v16612_v57 = vor.u32 %v20047_v3, %v16609_v63  ;;  %v19600_v3 = vld [vmem:[#allocation10 + $0x61c] sm:$0xf] }
 0x225   :  { %8876 = vmatpush.bf16.msrb.mxu0 %v14436_v1  ;;  %8890 = vmatpush.bf16.msrb.mxu1 %v15460_v42  ;;  %v16993_v1 = vld [vmem:[#allocation10 + $0x1790] sm:$0xf0]  ;;  %v18009_v42 = vld [vmem:[#allocation10 + $0x1f88] sm:$0xf0]  ;;  %v14825_v63 = vld [vmem:[#allocation10 + $0x698] sm:$0xf0] }
 0x226   :  { %8850 = vmatpush.bf16.msra.mxu2 %v16224_v62  ;;  %8752 = vmatpush.bf16.msra.mxu3 %v17240_v41  ;;  %v16996_v47 = vor.u32 %v20143_v7, %v16993_v1  ;;  %v18012_v10 = vor.u32 %v20398_v54, %v18009_v42  ;;  %v20302_v62 = vld [vmem:[#allocation10 + $0x1c0c] sm:$0xf]  ;;  %v20015_v7 = vld [vmem:[#allocation10 + $0x1314] sm:$0xf] }
 0x227   :  { %v16481_v1 = vld [vmem:[#allocation10 + $0x1390] sm:$0xf0]  ;;  %v20270_v54 = vld [vmem:[#allocation10 + $0x1b0c] sm:$0xf] }
 0x228   :  { %v17497_v42 = vld [vmem:[#allocation10 + $0x1b88] sm:$0xf0]  ;;  %v16484_v15 = vor.u32 %v20015_v7, %v16481_v1  ;;  %v19568_v7 = vld [vmem:[#allocation10 + $0x51c] sm:$0xf] }
 0x229   :  { %8877 = vmatpush.bf16.msrb.mxu0 %v14308_v9  ;;  %8891 = vmatpush.bf16.msrb.mxu1 %v15332_v30  ;;  %v21443_v9 = vpop.f32.mrf.mxu0  ;;  %v16865_v30 = vld [vmem:[#allocation10 + $0x1690] sm:$0xf0]  ;;  %v17500_v37 = vor.u32 %v20270_v54, %v17497_v42  ;;  %v14697_v1 = vld [vmem:[#allocation10 + $0x598] sm:$0xf0] }
 0x22a   :  { %8851 = vmatpush.bf16.msra.mxu2 %v16096_v32  ;;  %8753 = vmatpush.bf16.msra.mxu3 %v17112_v23  ;;  %v16868_v38 = vor.u32 %v20111_v60, %v16865_v30  ;;  %v15336_v32 = vor.u32 %v19744_v28, %v15335_v26  ;;  %v15207_v23 = vld [vmem:[#allocation10 + $0x918] sm:$0xf]  ;;  %v20238_v30 = vld [vmem:[#allocation10 + $0x1a0c] sm:$0xf]  ;;  %v20415_v26 = vld [vmem:[#allocation10 + $0x1f8c] sm:$0xf0] }
 0x22b   :  { %v19824_v42 = vld [vmem:[#allocation10 + $0xd1c] sm:$0xf] }
 0x22d   :  { %8878 = vmatpush.bf16.msrb.mxu0 %v14180_v20  ;;  %8892 = vmatpush.bf16.msrb.mxu1 %v15204_v56  ;;  %v15591_v20 = vld [vmem:[#allocation10 + $0xc18] sm:$0xf]  ;;  %v16737_v56 = vld [vmem:[#allocation10 + $0x1590] sm:$0xf0] }
 0x22e   :  { %8900 = vmatpush.bf16.msrb.mxu2 %v16996_v47  ;;  %8802 = vmatpush.bf16.msrb.mxu3 %v18012_v10  ;;  %v15592_v49 = vor.u32 %v19808_v29, %v15591_v20  ;;  %v16740_v44 = vor.u32 %v20079_v51, %v16737_v56  ;;  %v19712_v47 = vld [vmem:[#allocation10 + $0x994] sm:$0xf0]  ;;  %v16353_v10 = vld [vmem:[#allocation10 + $0x1290] sm:$0xf0]  ;;  %v19632_v29 = vld [vmem:[#allocation10 + $0x71c] sm:$0xf] }
 0x22f   :  { %8852 = vmatmul.bf16.vlgmr.msra.gmra.mxu2 %v21413_v46  ;;  %8754 = vmatmul.bf16.vlgmr.msra.gmra.mxu3 %v21429_v25  ;;  %v15208_v36 = vor.u32 %v19712_v47, %v15207_v23  ;;  %v19951_v20 = vld [vmem:[#allocation10 + $0x1114] sm:$0xf]  ;;  %v20128_v23 = vld [vmem:[#allocation10 + $0x1694] sm:$0xf0]  ;;  %v14700_v47 = vor.u32 %v19568_v7, %v14697_v1  ;;  %v17503_v7 = vld [vmem:[#allocation10 + $0x1b10] sm:$0xf] }
 0x230   :  { %v16225_v56 = vld [vmem:[#allocation10 + $0x1190] sm:$0xf0]  ;;  %v20287_v1 = vld [vmem:[#allocation10 + $0x1b8c] sm:$0xf0] }
 0x231   :  { %8879 = vmatpush.bf16.msrb.mxu0 %v14052_v43  ;;  %8893 = vmatpush.bf16.msrb.mxu1 %v15076_v48  ;;  %v8657_v39 = vpop.f32.mrf.mxu0  ;;  %v17756_v43 = vor.u32 %v20334_v58, %v17753_v16  ;;  %v8671_v12 = vpop.f32.mrf.mxu1  ;;  %v15977_v58 = vld [vmem:[#allocation10 + $0xf98] sm:$0xf0]  ;;  %v16228_v34 = vor.u32 %v19951_v20, %v16225_v56  ;;  %v22335_v20 = vperm.slane %v21432_v27, 2 }
 0x232   :  { %8901 = vmatpush.bf16.msrb.mxu2 %v16868_v38  ;;  %8803 = vmatpush.bf16.msrb.mxu3 %v17884_v4  ;;  %v8658_v48 = vadd.f32 %v8657_v39, %v22338_v52  ;;  %v16356_v38 = vor.u32 %v19983_v13, %v16353_v10  ;;  %v14953_v4 = vld [vmem:[#allocation10 + $0x798] sm:$0xf0]  ;;  %v20174_v39 = vld [vmem:[#allocation10 + $0x180c] sm:$0xf]  ;;  %v20383_v13 = vld [vmem:[#allocation10 + $0x1e8c] sm:$0xf0] }
 0x233   :  { %v20146_v52 = vld [vmem:[#allocation10 + $0x172c] sm:$0xf] }
 0x234   :  { %8880 = vmatmul.bf16.vlgmr.msrb.gmra.mxu0 %v21401_v53  ;;  %8894 = vmatmul.bf16.vlgmr.msrb.gmra.mxu1 %v21403_v18  ;;  %v21453_v41 = vadd.f32 %v8671_v12, %v8658_v48  ;;  %v17113_v12 = vld [vmem:[#allocation10 + $0x1888] sm:$0xf0] }
 0x235   :  { %8928 = vmatpush.bf16.msra.mxu0 %v14952_v11  ;;  %8942 = vmatpush.bf16.msra.mxu1 %v15976_v24  ;;  %v14440_v11 = vor.u32 %v19520_v35, %v14439_v19  ;;  %v17625_v24 = vld [vmem:[#allocation10 + $0x1c88] sm:$0xf0]  ;;  %v15080_v35 = vor.u32 %v19680_v17, %v15079_v31  ;;  %v16743_v17 = vld [vmem:[#allocation10 + $0x1518] sm:$0xf] }
 0x236   :  { %8902 = vmatpush.bf16.msrb.mxu2 %v16740_v44  ;;  %8804 = vmatpush.bf16.msrb.mxu3 %v17756_v43  ;;  %v17628_v40 = vor.u32 %v20302_v62, %v17625_v24  ;;  %v17241_v19 = vld [vmem:[#allocation10 + $0x1988] sm:$0xf0]  ;;  %v14956_v44 = vor.u32 %v19632_v29, %v14953_v4  ;;  %v19919_v43 = vld [vmem:[#allocation10 + $0x1014] sm:$0xf]  ;;  %v19856_v62 = vld [vmem:[#allocation10 + $0xe1c] sm:$0xf] }
 0x237   :  { %v15849_v24 = vld [vmem:[#allocation10 + $0xe98] sm:$0xf0]  ;;  %v17759_v4 = vld [vmem:[#allocation10 + $0x1d10] sm:$0xf] }
 0x239   :  { %8929 = vmatpush.bf16.msra.mxu0 %v14824_v22  ;;  %8943 = vmatpush.bf16.msra.mxu1 %v15848_v45  ;;  %v14312_v22 = vor.u32 %v19488_v6, %v14311_v8  ;;  %v14183_v45 = vld [vmem:[#allocation10 + $0x118] sm:$0xf]  ;;  %v14828_v6 = vor.u32 %v19600_v3, %v14825_v63  ;;  %v21459_v10 = vpop.f32.mrf.mxu1  ;;  %v17631_v3 = vld [vmem:[#allocation10 + $0x1c10] sm:$0xf] }
 0x23a   :  { %8903 = vmatpush.bf16.msrb.mxu2 %v16612_v57  ;;  %8805 = vmatpush.bf16.msrb.mxu3 %v17628_v40  ;;  %v14184_v60 = vor.u32 %v19456_v55, %v14183_v45  ;;  %v20160_v8 = vld [vmem:[#allocation10 + $0x1794] sm:$0xf0]  ;;  %v18015_v57 = vld [vmem:[#allocation10 + $0x1f10] sm:$0xf]  ;;  %v15852_v40 = vor.u32 %v19856_v62, %v15849_v24  ;;  %v21456_v45 = vpop.f32.mrf.mxu0  ;;  %v19472_v62 = vld [vmem:[#allocation10 + $0x21c] sm:$0xf] }
 0x23b   :  { %v18016_v55 = vor.u32 %v20415_v26, %v18015_v57  ;;  %v20319_v63 = vld [vmem:[#allocation10 + $0x1c8c] sm:$0xf0]  ;;  %v14313_v24 = vld [vmem:[#allocation10 + $0x298] sm:$0xf0]  ;;  %v16487_v26 = vld [vmem:[#allocation10 + $0x1318] sm:$0xf] }
 0x23c   :  { %v17632_v57 = vor.u32 %v20319_v63, %v17631_v3  ;;  %v16103_v3 = vld [vmem:[#allocation10 + $0x1018] sm:$0xf]  ;;  %v14831_v63 = vld [vmem:[#allocation10 + $0x620] sm:$0xf] }
 0x23d   :  { %8930 = vmatpush.bf16.msra.mxu0 %v14696_v2  ;;  %8944 = vmatpush.bf16.msra.mxu1 %v15720_v59  ;;  %v17369_v2 = vld [vmem:[#allocation10 + $0x1a88] sm:$0xf0]  ;;  %v19424_v59 = vld [vmem:[#allocation10 + $0x94] sm:$0xf0] }
 0x23e   :  { %8904 = vmatpush.bf16.msrb.mxu2 %v16484_v15  ;;  %8806 = vmatpush.bf16.msrb.mxu3 %v17500_v37  ;;  %v17372_v51 = vor.u32 %v20238_v30, %v17369_v2  ;;  %v14056_v16 = vor.u32 %v19424_v59, %v14055_v14  ;;  %v16871_v15 = vld [vmem:[#allocation10 + $0x1618] sm:$0xf]  ;;  %v17887_v37 = vld [vmem:[#allocation10 + $0x1e10] sm:$0xf]  ;;  %v19536_v30 = vld [vmem:[#allocation10 + $0x41c] sm:$0xf] }
 0x23f   :  { %v14569_v2 = vld [vmem:[#allocation10 + $0x498] sm:$0xf0]  ;;  %v16872_v14 = vor.u32 %v20128_v23, %v16871_v15  ;;  %v17888_v31 = vor.u32 %v20383_v13, %v17887_v37  ;;  %v17504_v23 = vor.u32 %v20287_v1, %v17503_v7  ;;  %v20000_v37 = vld [vmem:[#allocation10 + $0x1294] sm:$0xf0]  ;;  %v18017_v7 = vld [vmem:[#allocation10 + $0x1f90] sm:$0xf0] }
 0x240   :  { %v15593_v59 = vld [vmem:[#allocation10 + $0xc98] sm:$0xf0]  ;;  %v14572_v29 = vor.u32 %v19536_v30, %v14569_v2  ;;  %v17375_v30 = vld [vmem:[#allocation10 + $0x1a10] sm:$0xf] }
 0x241   :  { %8931 = vmatpush.bf16.msra.mxu0 %v14568_v33  ;;  %8945 = vmatpush.bf16.msra.mxu1 %v15592_v49  ;;  %v19888_v33 = vld [vmem:[#allocation10 + $0xf1c] sm:$0xf]  ;;  %v20206_v49 = vld [vmem:[#allocation10 + $0x190c] sm:$0xf]  ;;  %v20255_v2 = vld [vmem:[#allocation10 + $0x1a8c] sm:$0xf0] }
 0x242   :  { %8905 = vmatpush.bf16.msrb.mxu2 %v16356_v38  ;;  %v15980_v0 = vor.u32 %v19888_v33, %v15977_v58  ;;  %8807 = vmatpush.bf16.msrb.mxu3 %v17372_v51  ;;  %v17244_v48 = vor.u32 %v20206_v49, %v17241_v19  ;;  %v20096_v38 = vld [vmem:[#allocation10 + $0x1594] sm:$0xf0]  ;;  %v20351_v51 = vld [vmem:[#allocation10 + $0x1d8c] sm:$0xf0]  ;;  %v19504_v33 = vld [vmem:[#allocation10 + $0x31c] sm:$0xf] }
 0x243   :  { %v14441_v58 = vld [vmem:[#allocation10 + $0x398] sm:$0xf0] }
 0x244   :  { %v19760_v49 = vld [vmem:[#allocation10 + $0xb1c] sm:$0xf] }
 0x245   :  { %8932 = vmatpush.bf16.msra.mxu0 %v14440_v11  ;;  %8946 = vmatpush.bf16.msra.mxu1 %v15464_v5  ;;  %v16097_v11 = vld [vmem:[#allocation10 + $0x1090] sm:$0xf0]  ;;  %v16999_v5 = vld [vmem:[#allocation10 + $0x1718] sm:$0xf]  ;;  %v15465_v19 = vld [vmem:[#allocation10 + $0xb98] sm:$0xf0] }
 0x246   :  { %8906 = vmatpush.bf16.msrb.mxu2 %v16228_v34  ;;  %v16100_v28 = vor.u32 %v19919_v43, %v16097_v11  ;;  %8808 = vmatpush.bf16.msrb.mxu3 %v17244_v48  ;;  %v17000_v54 = vor.u32 %v20160_v8, %v16999_v5  ;;  %v16615_v34 = vld [vmem:[#allocation10 + $0x1418] sm:$0xf]  ;;  %v14444_v43 = vor.u32 %v19504_v33, %v14441_v58  ;;  %v19728_v8 = vld [vmem:[#allocation10 + $0xa1c] sm:$0xf] }
 0x247   :  { %v15468_v11 = vor.u32 %v19760_v49, %v15465_v19  ;;  %v15209_v15 = vld [vmem:[#allocation10 + $0x998] sm:$0xf0]  ;;  %v17376_v33 = vor.u32 %v20255_v2, %v17375_v30  ;;  %v19968_v58 = vld [vmem:[#allocation10 + $0x1194] sm:$0xf0]  ;;  %v19905_v49 = vld [vmem:[#allocation10 + $0xf9c] sm:$0xf0] }
 0x248   :  { %v20367_v2 = vld [vmem:[#allocation10 + $0x1e14] sm:$0xf] }
 0x249   :  { %8933 = vmatpush.bf16.msra.mxu0 %v14312_v22  ;;  %8947 = vmatpush.bf16.msra.mxu1 %v15336_v32  ;;  %v17116_v22 = vor.u32 %v20174_v39, %v17113_v12  ;;  %v15721_v32 = vld [vmem:[#allocation10 + $0xd98] sm:$0xf0] }
 0x24a   :  { %8907 = vmatpush.bf16.msrb.mxu2 %v16100_v28  ;;  %v20032_v28 = vld [vmem:[#allocation10 + $0x1394] sm:$0xf0] }
 0x24b   :  { %8809 = vmatpush.bf16.msrb.mxu3 %v17116_v22 }
 0x24d   :  { %8934 = vmatpush.bf16.msra.mxu0 %v14184_v60  ;;  %8948 = vmatpush.bf16.msra.mxu1 %v15208_v36  ;;  %v15724_v60 = vor.u32 %v19824_v42, %v15721_v32  ;;  %v19792_v36 = vld [vmem:[#allocation10 + $0xc1c] sm:$0xf]  ;;  %v16488_v32 = vor.u32 %v20032_v28, %v16487_v26 }
 0x24e   :  { %8956 = vmatpush.bf16.msra.mxu2 %v17000_v54  ;;  %8810 = vmatmul.bf16.vlgmr.msrb.gmra.mxu3 %v21429_v25  ;;  %v15596_v56 = vor.u32 %v19792_v36, %v15593_v59  ;;  %v19440_v54 = vld [vmem:[#allocation10 + $0x11c] sm:$0xf]  ;;  %v8629_v13 = vpop.f32.mrf.mxu2 }
 0x24f   :  { %8858 = vmatpush.bf16.msra.mxu3 %v18016_v55  ;;  %8908 = vmatmul.bf16.vlgmr.msrb.gmra.mxu2 %v21413_v46  ;;  %v14185_v42 = vld [vmem:[#allocation10 + $0x198] sm:$0xf0]  ;;  %v21469_v36 = vadd.f32 %v8629_v13, %v21439_v50  ;;  %v20223_v50 = vld [vmem:[#allocation10 + $0x198c] sm:$0xf0] }
 0x250   :  { %v19696_v55 = vld [vmem:[#allocation10 + $0x91c] sm:$0xf] }
 0x251   :  { %8935 = vmatpush.bf16.msra.mxu0 %v14056_v16  ;;  %8949 = vmatpush.bf16.msra.mxu1 %v15080_v35  ;;  %v16744_v16 = vor.u32 %v20096_v38, %v16743_v17  ;;  %v8713_v35 = vpop.f32.mrf.mxu0  ;;  %v8727_v48 = vpop.f32.mrf.mxu1  ;;  %v15212_v59 = vor.u32 %v19696_v55, %v15209_v15  ;;  %v19664_v17 = vld [vmem:[#allocation10 + $0x81c] sm:$0xf]  ;;  %v15727_v15 = vld [vmem:[#allocation10 + $0xd20] sm:$0xf] }
 0x252   :  { %8957 = vmatpush.bf16.msra.mxu2 %v16872_v14  ;;  %v8714_v39 = vadd.f32 %v8713_v35, %v22335_v20  ;;  %v19408_v14 = vld [vmem:[#allocation10 + $0x1c] sm:$0xf]  ;;  %v17247_v35 = vld [vmem:[#allocation10 + $0x1910] sm:$0xf]  ;;  %v16119_v20 = vld [vmem:[#allocation10 + $0x1028] sm:$0xf] }
 0x253   :  { %8859 = vmatpush.bf16.msra.mxu3 %v17888_v31  ;;  %v14057_v31 = vld [vmem:[#allocation10 + $0x98] sm:$0xf0] }
 0x254   :  { %8936 = vmatmul.bf16.vlgmr.msra.gmra.mxu0 %v21401_v53  ;;  %8950 = vmatmul.bf16.vlgmr.msra.gmra.mxu1 %v21403_v18  ;;  %v21466_v12 = vadd.f32 %v8727_v48, %v8714_v39  ;;  %v15081_v38 = vld [vmem:[#allocation10 + $0x898] sm:$0xf0]  ;;  %v14060_v19 = vor.u32 %v19408_v14, %v14057_v31  ;;  %v19617_v48 = vld [vmem:[#allocation10 + $0x69c] sm:$0xf0]  ;;  %v17889_v14 = vld [vmem:[#allocation10 + $0x1e90] sm:$0xf0] }
 0x255   :  { %8984 = vmatpush.bf16.msrb.mxu0 %v14956_v44  ;;  %8998 = vmatpush.bf16.msrb.mxu1 %v15980_v0  ;;  %v17760_v44 = vor.u32 %v20351_v51, %v17759_v4  ;;  %v20064_v0 = vld [vmem:[#allocation10 + $0x1494] sm:$0xf0]  ;;  %v14959_v51 = vld [vmem:[#allocation10 + $0x720] sm:$0xf]  ;;  %v17001_v26 = vld [vmem:[#allocation10 + $0x1798] sm:$0xf0]  ;;  %v14832_v28 = vor.u32 %v19617_v48, %v14831_v63 }
 0x256   :  { %8958 = vmatpush.bf16.msra.mxu2 %v16744_v16  ;;  %v16616_v5 = vor.u32 %v20064_v0, %v16615_v34  ;;  %v16231_v4 = vld [vmem:[#allocation10 + $0x1118] sm:$0xf]  ;;  %v15983_v16 = vld [vmem:[#allocation10 + $0xf20] sm:$0xf]  ;;  %v20112_v13 = vld [vmem:[#allocation10 + $0x161c] sm:$0xf] }
 0x257   :  { %8860 = vmatpush.bf16.msra.mxu3 %v17760_v44  ;;  %v15084_v44 = vor.u32 %v19664_v17, %v15081_v38  ;;  %v16232_v0 = vor.u32 %v19968_v58, %v16231_v4  ;;  %v15984_v39 = vor.u32 %v19905_v49, %v15983_v16  ;;  %v14575_v17 = vld [vmem:[#allocation10 + $0x420] sm:$0xf]  ;;  %v20080_v58 = vld [vmem:[#allocation10 + $0x151c] sm:$0xf] }
 0x258   :  { %v19553_v38 = vld [vmem:[#allocation10 + $0x49c] sm:$0xf0]  ;;  %v16745_v16 = vld [vmem:[#allocation10 + $0x1598] sm:$0xf0] }
 0x259   :  { %8985 = vmatpush.bf16.msrb.mxu0 %v14828_v6  ;;  %8999 = vmatpush.bf16.msrb.mxu1 %v15852_v40  ;;  %v15337_v6 = vld [vmem:[#allocation10 + $0xa98] sm:$0xf0]  ;;  %v14316_v40 = vor.u32 %v19472_v62, %v14313_v24  ;;  %v19936_v62 = vld [vmem:[#allocation10 + $0x1094] sm:$0xf0]  ;;  %v15855_v24 = vld [vmem:[#allocation10 + $0xe20] sm:$0xf] }
 0x25a   :  { %v15340_v22 = vor.u32 %v19728_v8, %v15337_v6  ;;  %8959 = vmatpush.bf16.msra.mxu2 %v16616_v5  ;;  %v19873_v5 = vld [vmem:[#allocation10 + $0xe9c] sm:$0xf0]  ;;  %v21471_v8 = vpop.f32.mrf.mxu2  ;;  %v20191_v6 = vld [vmem:[#allocation10 + $0x188c] sm:$0xf0]  ;;  %v16104_v1 = vor.u32 %v19936_v62, %v16103_v3  ;;  %v16617_v62 = vld [vmem:[#allocation10 + $0x1498] sm:$0xf0] }
 0x25b   :  { %8861 = vmatpush.bf16.msra.mxu3 %v17632_v57  ;;  %v20144_v57 = vld [vmem:[#allocation10 + $0x171c] sm:$0xf]  ;;  %v15599_v4 = vld [vmem:[#allocation10 + $0xc20] sm:$0xf] }
 0x25c   :  { %v17004_v55 = vor.u32 %v20144_v57, %v17001_v26  ;;  %v15471_v3 = vld [vmem:[#allocation10 + $0xb20] sm:$0xf]  ;;  %v17633_v57 = vld [vmem:[#allocation10 + $0x1c90] sm:$0xf0] }
 0x25d   :  { %8986 = vmatpush.bf16.msrb.mxu0 %v14700_v47  ;;  %9000 = vmatpush.bf16.msrb.mxu1 %v15724_v60  ;;  %v16359_v47 = vld [vmem:[#allocation10 + $0x1218] sm:$0xf]  ;;  %v14188_v60 = vor.u32 %v19440_v54, %v14185_v42  ;;  %v14703_v54 = vld [vmem:[#allocation10 + $0x520] sm:$0xf] }
 0x25e   :  { %8960 = vmatpush.bf16.msra.mxu2 %v16488_v32  ;;  %v19585_v42 = vld [vmem:[#allocation10 + $0x59c] sm:$0xf0] }
 0x25f   :  { %8862 = vmatpush.bf16.msra.mxu3 %v17504_v23  ;;  %v19841_v23 = vld [vmem:[#allocation10 + $0xd9c] sm:$0xf0]  ;;  %v14704_v30 = vor.u32 %v19585_v42, %v14703_v54 }
 0x260   :  { %v15728_v31 = vor.u32 %v19841_v23, %v15727_v15  ;;  %v19777_v63 = vld [vmem:[#allocation10 + $0xb9c] sm:$0xf0]  ;;  %v20016_v15 = vld [vmem:[#allocation10 + $0x131c] sm:$0xf] }
 0x261   :  { %8987 = vmatpush.bf16.msrb.mxu0 %v14572_v29  ;;  %9001 = vmatpush.bf16.msrb.mxu1 %v15596_v56  ;;  %v16360_v29 = vor.u32 %v20000_v37, %v16359_v47  ;;  %v19649_v56 = vld [vmem:[#allocation10 + $0x79c] sm:$0xf0]  ;;  %v21474_v47 = vpop.f32.mrf.mxu0  ;;  %v16489_v23 = vld [vmem:[#allocation10 + $0x1398] sm:$0xf0] }
 0x262   :  { %v14960_v34 = vor.u32 %v19649_v56, %v14959_v51  ;;  %v19809_v51 = vld [vmem:[#allocation10 + $0xc9c] sm:$0xf0]  ;;  %v8685_v56 = vpop.f32.mrf.mxu2 }
 0x263   :  { %8961 = vmatpush.bf16.msra.mxu2 %v16360_v29  ;;  %8863 = vmatpush.bf16.msra.mxu3 %v17376_v33  ;;  %v17892_v33 = vor.u32 %v20367_v2, %v17889_v14  ;;  %v21480_v49 = vadd.f32 %v8685_v56, %v21453_v41  ;;  %v15343_v54 = vld [vmem:[#allocation10 + $0xa20] sm:$0xf] }
 0x264   :  { %v19745_v42 = vld [vmem:[#allocation10 + $0xa9c] sm:$0xf0] }
 0x265   :  { %8988 = vmatpush.bf16.msrb.mxu0 %v14444_v43  ;;  %9002 = vmatpush.bf16.msrb.mxu1 %v15468_v11  ;;  %v17119_v43 = vld [vmem:[#allocation10 + $0x1810] sm:$0xf]  ;;  %v17248_v11 = vor.u32 %v20223_v50, %v17247_v35  ;;  %v14576_v35 = vor.u32 %v19553_v38, %v14575_v17  ;;  %v20335_v50 = vld [vmem:[#allocation10 + $0x1d14] sm:$0xf]  ;;  %v14191_v2 = vld [vmem:[#allocation10 + $0x120] sm:$0xf] }
 0x266   :  { %v17120_v32 = vor.u32 %v20191_v6, %v17119_v43  ;;  %v16748_v43 = vor.u32 %v20080_v58, %v16745_v16  ;;  %v20303_v6 = vld [vmem:[#allocation10 + $0x1c14] sm:$0xf]  ;;  %v19457_v14 = vld [vmem:[#allocation10 + $0x19c] sm:$0xf0] }
 0x267   :  { %8962 = vmatpush.bf16.msra.mxu2 %v16232_v0  ;;  %8864 = vmatpush.bf16.msra.mxu3 %v17248_v11  ;;  %v14447_v0 = vld [vmem:[#allocation10 + $0x320] sm:$0xf]  ;;  %v20048_v11 = vld [vmem:[#allocation10 + $0x141c] sm:$0xf]  ;;  %v14192_v56 = vor.u32 %v19457_v14, %v14191_v2  ;;  %v17377_v58 = vld [vmem:[#allocation10 + $0x1a90] sm:$0xf0] }
 0x268   :  { %v15215_v17 = vld [vmem:[#allocation10 + $0x920] sm:$0xf]  ;;  %v18023_v14 = vld [vmem:[#allocation10 + $0x1f18] sm:$0xf] }
 0x269   :  { %8989 = vmatpush.bf16.msrb.mxu0 %v14316_v40  ;;  %9003 = vmatpush.bf16.msrb.mxu1 %v15340_v22  ;;  %v20399_v40 = vld [vmem:[#allocation10 + $0x1f14] sm:$0xf]  ;;  %v15856_v22 = vor.u32 %v19873_v5, %v15855_v24  ;;  %v19713_v38 = vld [vmem:[#allocation10 + $0x99c] sm:$0xf0] }
 0x26a   :  { %v18020_v37 = vor.u32 %v20399_v40, %v18017_v7  ;;  %v14319_v40 = vld [vmem:[#allocation10 + $0x220] sm:$0xf] }
 0x26b   :  { %8963 = vmatpush.bf16.msra.mxu2 %v16104_v1  ;;  %8865 = vmatpush.bf16.msra.mxu3 %v17120_v32  ;;  %v19489_v7 = vld [vmem:[#allocation10 + $0x29c] sm:$0xf0]  ;;  %v21489_v32 = vpop.f32.mrf.mxu2 }
 0x26c   :  { %v14063_v16 = vld [vmem:[#allocation10 + $0x20] sm:$0xf] }
 0x26d   :  { %8990 = vmatpush.bf16.msrb.mxu0 %v14188_v60  ;;  %9004 = vmatpush.bf16.msrb.mxu1 %v15212_v59  ;;  %v16873_v60 = vld [vmem:[#allocation10 + $0x1698] sm:$0xf0]  ;;  %v21477_v59 = vpop.f32.mrf.mxu1 }
 0x26e   :  { %v16876_v29 = vor.u32 %v20112_v13, %v16873_v60  ;;  %8964 = vmatmul.bf16.vlgmr.msra.gmra.mxu2 %v21413_v46  ;;  %8866 = vmatmul.bf16.vlgmr.msra.gmra.mxu3 %v21429_v25  ;;  %v20271_v13 = vld [vmem:[#allocation10 + $0x1b14] sm:$0xf] }
 0x26f   :  { %9012 = vmatpush.bf16.msrb.mxu2 %v17004_v55  ;;  %8914 = vmatpush.bf16.msrb.mxu3 %v18020_v37  ;;  %v17636_v55 = vor.u32 %v20303_v6, %v17633_v57  ;;  %v14320_v37 = vor.u32 %v19489_v7, %v14319_v40  ;;  %v17505_v60 = vld [vmem:[#allocation10 + $0x1b90] sm:$0xf0] }
 0x270   :  { %v20207_v6 = vld [vmem:[#allocation10 + $0x1914] sm:$0xf] }
 0x271   :  { %8991 = vmatpush.bf16.msrb.mxu0 %v14060_v19  ;;  %9005 = vmatpush.bf16.msrb.mxu1 %v15084_v44  ;;  %v22333_v19 = vperm.slane %v21432_v27, 3  ;;  %v17761_v44 = vld [vmem:[#allocation10 + $0x1d90] sm:$0xf0]  ;;  %v8769_v41 = vpop.f32.mrf.mxu0 }
 0x272   :  { %v17764_v48 = vor.u32 %v20335_v50, %v17761_v44  ;;  %v19425_v50 = vld [vmem:[#allocation10 + $0x9c] sm:$0xf0]  ;;  %v17249_v57 = vld [vmem:[#allocation10 + $0x1990] sm:$0xf0] }
 0x273   :  { %9013 = vmatpush.bf16.msrb.mxu2 %v16876_v29  ;;  %8915 = vmatpush.bf16.msrb.mxu3 %v17892_v33  ;;  %v8770_v24 = vadd.f32 %v8769_v41, %v22333_v19  ;;  %v17508_v29 = vor.u32 %v20271_v13, %v17505_v60  ;;  %v20239_v33 = vld [vmem:[#allocation10 + $0x1a14] sm:$0xf]  ;;  %v15087_v44 = vld [vmem:[#allocation10 + $0x820] sm:$0xf] }
 0x274   :  { %8992 = vmatmul.bf16.vlgmr.msrb.gmra.mxu0 %v21401_v53  ;;  %9006 = vmatmul.bf16.vlgmr.msrb.gmra.mxu1 %v21403_v18  ;;  %v17380_v41 = vor.u32 %v20239_v33, %v17377_v58  ;;  %v17121_v13 = vld [vmem:[#allocation10 + $0x1890] sm:$0xf0]  ;;  %v17007_v60 = vld [vmem:[#allocation10 + $0x1720] sm:$0xf]  ;;  %v19825_v33 = vld [vmem:[#allocation10 + $0xd24] sm:$0xf] }
 0x275   :  { %9040 = vmatpush.bf16.msra.mxu0 %v14960_v34  ;;  %9054 = vmatpush.bf16.msra.mxu1 %v15984_v39  ;;  %v15600_v34 = vor.u32 %v19809_v51, %v15599_v4  ;;  %v19521_v39 = vld [vmem:[#allocation10 + $0x39c] sm:$0xf0]  ;;  %v8783_v26 = vpop.f32.mrf.mxu1  ;;  %v19984_v4 = vld [vmem:[#allocation10 + $0x121c] sm:$0xf]  ;;  %v15729_v58 = vld [vmem:[#allocation10 + $0xda0] sm:$0xf0] }
 0x276   :  { %v14448_v5 = vor.u32 %v19521_v39, %v14447_v0  ;;  %v21487_v1 = vadd.f32 %v8783_v26, %v8770_v24  ;;  %v16361_v51 = vld [vmem:[#allocation10 + $0x1298] sm:$0xf0]  ;;  %v20257_v19 = vld [vmem:[#allocation10 + $0x1a9c] sm:$0xf0] }
 0x277   :  { %9014 = vmatpush.bf16.msrb.mxu2 %v16748_v43  ;;  %8916 = vmatpush.bf16.msrb.mxu3 %v17764_v48  ;;  %v16364_v0 = vor.u32 %v19984_v4, %v16361_v51  ;;  %v19952_v39 = vld [vmem:[#allocation10 + $0x111c] sm:$0xf]  ;;  %v19633_v43 = vld [vmem:[#allocation10 + $0x724] sm:$0xf] }
 0x278   :  { %v16233_v48 = vld [vmem:[#allocation10 + $0x1198] sm:$0xf0]  ;;  %v14705_v4 = vld [vmem:[#allocation10 + $0x5a0] sm:$0xf0] }
 0x279   :  { %9041 = vmatpush.bf16.msra.mxu0 %v14832_v28  ;;  %9055 = vmatpush.bf16.msra.mxu1 %v15856_v22  ;;  %v15472_v28 = vor.u32 %v19777_v63, %v15471_v3  ;;  %v16620_v22 = vor.u32 %v20048_v11, %v16617_v62  ;;  %v14961_v3 = vld [vmem:[#allocation10 + $0x7a0] sm:$0xf0]  ;;  %v8741_v63 = vpop.f32.mrf.mxu2  ;;  %v16236_v40 = vor.u32 %v19952_v39, %v16233_v48  ;;  %v20384_v39 = vld [vmem:[#allocation10 + $0x1e94] sm:$0xf0] }
 0x27a   :  { %v19889_v11 = vld [vmem:[#allocation10 + $0xf24] sm:$0xf]  ;;  %v21492_v24 = vadd.f32 %v8741_v63, %v21466_v12 }
 0x27b   :  { %9015 = vmatpush.bf16.msrb.mxu2 %v16620_v22  ;;  %8917 = vmatpush.bf16.msrb.mxu3 %v17636_v55  ;;  %v15985_v62 = vld [vmem:[#allocation10 + $0xfa0] sm:$0xf0]  ;;  %v20175_v22 = vld [vmem:[#allocation10 + $0x1814] sm:$0xf] }
 0x27c   :  { %v15988_v7 = vor.u32 %v19889_v11, %v15985_v62  ;;  %v14833_v55 = vld [vmem:[#allocation10 + $0x6a0] sm:$0xf0]  ;;  %v17124_v51 = vor.u32 %v20175_v22, %v17121_v13  ;;  %v20352_v22 = vld [vmem:[#allocation10 + $0x1d94] sm:$0xf0] }
 0x27d   :  { %9042 = vmatpush.bf16.msra.mxu0 %v14704_v30  ;;  %9056 = vmatpush.bf16.msra.mxu1 %v15728_v31  ;;  %v15344_v30 = vor.u32 %v19745_v42, %v15343_v54  ;;  %v16492_v31 = vor.u32 %v20016_v15, %v16489_v23  ;;  %v19920_v54 = vld [vmem:[#allocation10 + $0x101c] sm:$0xf]  ;;  %v19601_v42 = vld [vmem:[#allocation10 + $0x624] sm:$0xf]  ;;  %v17252_v15 = vor.u32 %v20207_v6, %v17249_v57  ;;  %v16751_v6 = vld [vmem:[#allocation10 + $0x1520] sm:$0xf] }
 0x27e   :  { %v16105_v23 = vld [vmem:[#allocation10 + $0x1098] sm:$0xf0]  ;;  %v15857_v12 = vld [vmem:[#allocation10 + $0xea0] sm:$0xf0]  ;;  %v14836_v2 = vor.u32 %v19601_v42, %v14833_v55  ;;  %v20097_v57 = vld [vmem:[#allocation10 + $0x159c] sm:$0xf0] }
 0x27f   :  { %9016 = vmatpush.bf16.msrb.mxu2 %v16492_v31  ;;  %8918 = vmatpush.bf16.msrb.mxu3 %v17508_v29  ;;  %v20416_v31 = vld [vmem:[#allocation10 + $0x1f94] sm:$0xf0]  ;;  %v19569_v29 = vld [vmem:[#allocation10 + $0x524] sm:$0xf] }
 0x280   :  { %v19537_v63 = vld [vmem:[#allocation10 + $0x424] sm:$0xf] }
 0x281   :  { %9043 = vmatpush.bf16.msra.mxu0 %v14576_v35  ;;  %9057 = vmatpush.bf16.msra.mxu1 %v15600_v34  ;;  %v15216_v35 = vor.u32 %v19713_v38, %v15215_v17  ;;  %v19681_v34 = vld [vmem:[#allocation10 + $0x89c] sm:$0xf0]  ;;  %v16108_v17 = vor.u32 %v19920_v54, %v16105_v23  ;;  %v19793_v11 = vld [vmem:[#allocation10 + $0xc24] sm:$0xf] }
 0x282   :  { %v15088_v26 = vor.u32 %v19681_v34, %v15087_v44  ;;  %v20129_v44 = vld [vmem:[#allocation10 + $0x169c] sm:$0xf0]  ;;  %v14708_v34 = vor.u32 %v19569_v29, %v14705_v4  ;;  %v15601_v62 = vld [vmem:[#allocation10 + $0xca0] sm:$0xf0] }
 0x283   :  { %9017 = vmatpush.bf16.msrb.mxu2 %v16364_v0  ;;  %8919 = vmatpush.bf16.msrb.mxu3 %v17380_v41  ;;  %v17895_v0 = vld [vmem:[#allocation10 + $0x1e18] sm:$0xf]  ;;  %v14577_v41 = vld [vmem:[#allocation10 + $0x4a0] sm:$0xf0]  ;;  %v15604_v54 = vor.u32 %v19793_v11, %v15601_v62 }
 0x284   :  { %v19505_v42 = vld [vmem:[#allocation10 + $0x324] sm:$0xf] }
 0x285   :  { %9044 = vmatpush.bf16.msra.mxu0 %v14448_v5  ;;  %9058 = vmatpush.bf16.msra.mxu1 %v15472_v28  ;;  %v14064_v5 = vor.u32 %v19425_v50, %v14063_v16  ;;  %v14964_v28 = vor.u32 %v19633_v43, %v14961_v3  ;;  %v21495_v16 = vpop.f32.mrf.mxu0  ;;  %v16879_v50 = vld [vmem:[#allocation10 + $0x1620] sm:$0xf]  ;;  %v21498_v43 = vpop.f32.mrf.mxu1  ;;  %v15732_v3 = vor.u32 %v19825_v33, %v15729_v58  ;;  %v14449_v55 = vld [vmem:[#allocation10 + $0x3a0] sm:$0xf0] }
 0x286   :  { %22381 = vst [vmem:[#allocation23_spill] sm:$0xff] %v21495_v16  ;;  %v16880_v48 = vor.u32 %v20129_v44, %v16879_v50  ;;  %v19761_v23 = vld [vmem:[#allocation10 + $0xb24] sm:$0xf]  ;;  %v21509_v50 = vpop.f32.mrf.mxu2  ;;  %v16127_v16 = vld [vmem:[#allocation10 + $0x1030] sm:$0xf] }
 0x287   :  { %9018 = vmatpush.bf16.msrb.mxu2 %v16236_v40  ;;  %8920 = vmatpush.bf16.msrb.mxu3 %v17252_v15  ;;  %22382 = vst [vmem:[#allocation24_spill] sm:$0xff] %v21498_v43  ;;  %v14580_v40 = vor.u32 %v19537_v63, %v14577_v41  ;;  %v16752_v15 = vor.u32 %v20097_v57, %v16751_v6  ;;  %v19473_v4 = vld [vmem:[#allocation10 + $0x224] sm:$0xf]  ;;  %v20288_v63 = vld [vmem:[#allocation10 + $0x1b94] sm:$0xf0] }
 0x288   :  { %v19729_v58 = vld [vmem:[#allocation10 + $0xa24] sm:$0xf]  ;;  %22383 = vst [vmem:[#allocation25_spill] sm:$0xff] %v21509_v50  ;;  %v17023_v43 = vld [vmem:[#allocation10 + $0x1730] sm:$0xf] }
 0x289   :  { %9045 = vmatpush.bf16.msra.mxu0 %v14320_v37  ;;  %9059 = vmatpush.bf16.msra.mxu1 %v15344_v30  ;;  %v19857_v37 = vld [vmem:[#allocation10 + $0xe24] sm:$0xf]  ;;  %v20161_v30 = vld [vmem:[#allocation10 + $0x179c] sm:$0xf0]  ;;  %v17087_v50 = vld [vmem:[#allocation10 + $0x1770] sm:$0xf] }
 0x28a   :  { %v15860_v38 = vor.u32 %v19857_v37, %v15857_v12  ;;  %v15473_v37 = vld [vmem:[#allocation10 + $0xba0] sm:$0xf0] }
 0x28b   :  { %9019 = vmatpush.bf16.msrb.mxu2 %v16108_v17  ;;  %8921 = vmatpush.bf16.msrb.mxu3 %v17124_v51  ;;  %v20320_v17 = vld [vmem:[#allocation10 + $0x1c94] sm:$0xf0]  ;;  %v15476_v29 = vor.u32 %v19761_v23, %v15473_v37  ;;  %v14321_v51 = vld [vmem:[#allocation10 + $0x2a0] sm:$0xf0] }
 0x28c   :  { %v14193_v11 = vld [vmem:[#allocation10 + $0x1a0] sm:$0xf0] }
 0x28d   :  { %9046 = vmatpush.bf16.msra.mxu0 %v14192_v56  ;;  %9060 = vmatpush.bf16.msra.mxu1 %v15216_v35  ;;  %v17008_v56 = vor.u32 %v20161_v30, %v17007_v60  ;;  %v18024_v35 = vor.u32 %v20416_v31, %v18023_v14  ;;  %v16623_v60 = vld [vmem:[#allocation10 + $0x1420] sm:$0xf]  ;;  %v14452_v14 = vor.u32 %v19505_v42, %v14449_v55  ;;  %v17639_v31 = vld [vmem:[#allocation10 + $0x1c18] sm:$0xf]  ;;  %v15217_v6 = vld [vmem:[#allocation10 + $0x9a0] sm:$0xf0] }
 0x28e   :  { %9020 = vmatmul.bf16.vlgmr.msrb.gmra.mxu2 %v21413_v46  ;;  %8922 = vmatmul.bf16.vlgmr.msrb.gmra.mxu3 %v21429_v25  ;;  %v20065_v30 = vld [vmem:[#allocation10 + $0x149c] sm:$0xf0]  ;;  %v17640_v44 = vor.u32 %v20320_v17, %v17639_v31  ;;  %v20256_v42 = vld [vmem:[#allocation10 + $0x1a94] sm:$0xf0]  ;;  %v19409_v55 = vld [vmem:[#allocation10 + $0x24] sm:$0xf] }
 0x28f   :  { %9068 = vmatpush.bf16.msra.mxu2 %v17008_v56  ;;  %8970 = vmatpush.bf16.msra.mxu3 %v18024_v35  ;;  %v16624_v33 = vor.u32 %v20065_v30, %v16623_v60  ;;  %v15345_v35 = vld [vmem:[#allocation10 + $0xaa0] sm:$0xf0]  ;;  %v19650_v31 = vld [vmem:[#allocation10 + $0x7a4] sm:$0xf0] }
 0x290   :  { %v15348_v41 = vor.u32 %v19729_v58, %v15345_v35  ;;  %v14065_v37 = vld [vmem:[#allocation10 + $0xa0] sm:$0xf0]  ;;  %v17255_v35 = vld [vmem:[#allocation10 + $0x1918] sm:$0xf] }
 0x291   :  { %9047 = vmatpush.bf16.msra.mxu0 %v14064_v5  ;;  %9061 = vmatpush.bf16.msra.mxu1 %v15088_v26  ;;  %v17896_v5 = vor.u32 %v20384_v39, %v17895_v0  ;;  %v21501_v26 = vld [vmem:[#allocation11] sm:$0xff]  ;;  %v8825_v12 = vpop.f32.mrf.mxu0  ;;  %v14324_v39 = vor.u32 %v19473_v4, %v14321_v51  ;;  %v15991_v4 = vld [vmem:[#allocation10 + $0xf28] sm:$0xf]  ;;  %v14068_v58 = vor.u32 %v19409_v55, %v14065_v37 }
 0x292   :  { %v20033_v0 = vld [vmem:[#allocation10 + $0x139c] sm:$0xf0]  ;;  %v8797_v17 = vpop.f32.mrf.mxu2  ;;  %v19906_v51 = vld [vmem:[#allocation10 + $0xfa4] sm:$0xf0] }
 0x293   :  { %9069 = vmatpush.bf16.msra.mxu2 %v16880_v48  ;;  %8971 = vmatpush.bf16.msra.mxu3 %v17896_v5  ;;  %v19441_v48 = vld [vmem:[#allocation10 + $0x124] sm:$0xf]  ;;  %v19586_v37 = vld [vmem:[#allocation10 + $0x5a4] sm:$0xf0] }
 0x294   :  { %9048 = vmatmul.bf16.vlgmr.msra.gmra.mxu0 %v21401_v53  ;;  %9062 = vmatmul.bf16.vlgmr.msra.gmra.mxu1 %v21403_v18  ;;  %v19697_v5 = vld [vmem:[#allocation10 + $0x924] sm:$0xf] }
 0x295   :  { %9096 = vmatpush.bf16.msrb.mxu0 %v14964_v28  ;;  %9110 = vmatpush.bf16.msrb.mxu1 %v15988_v7  ;;  %v22337_v28 = vperm.slane %v21501_v26, 4  ;;  %v17767_v7 = vld [vmem:[#allocation10 + $0x1d18] sm:$0xf]  ;;  %v15220_v23 = vor.u32 %v19697_v5, %v15217_v6  ;;  %v15863_v5 = vld [vmem:[#allocation10 + $0xe28] sm:$0xf] }
 0x296   :  { %v17768_v13 = vor.u32 %v20352_v22, %v17767_v7  ;;  %v20001_v7 = vld [vmem:[#allocation10 + $0x129c] sm:$0xf0]  ;;  %v14196_v22 = vor.u32 %v19441_v48, %v14193_v11  ;;  %v19618_v48 = vld [vmem:[#allocation10 + $0x6a4] sm:$0xf0]  ;;  %v20192_v6 = vld [vmem:[#allocation10 + $0x1894] sm:$0xf0] }
 0x297   :  { %9070 = vmatpush.bf16.msra.mxu2 %v16752_v15  ;;  %v8643_v15 = vpop.f32.mrf.mxu3 }
 0x298   :  { %8972 = vmatpush.bf16.msra.mxu3 %v17768_v13  ;;  %v15089_v13 = vld [vmem:[#allocation10 + $0x8a0] sm:$0xf0]  ;;  %v21512_v60 = vadd.f32 %v8643_v15, %v21469_v36 }
 0x299   :  { %9097 = vmatpush.bf16.msrb.mxu0 %v14836_v2  ;;  %9111 = vmatpush.bf16.msrb.mxu1 %v15860_v38  ;;  %v8826_v2 = vadd.f32 %v8825_v12, %v22337_v28  ;;  %v8839_v38 = vpop.f32.mrf.mxu1  ;;  %v19665_v12 = vld [vmem:[#allocation10 + $0x824] sm:$0xf]  ;;  %v19619_v28 = vld [vmem:[#allocation10 + $0x6ac] sm:$0xf0] }
 0x29a   :  { %v15092_v36 = vor.u32 %v19665_v12, %v15089_v13 }
 0x29b   :  { %v21507_v56 = vadd.f32 %v8839_v38, %v8826_v2  ;;  %9071 = vmatpush.bf16.msra.mxu2 %v16624_v33  ;;  %v16239_v2 = vld [vmem:[#allocation10 + $0x1120] sm:$0xf]  ;;  %v21515_v33 = vadd.f32 %v8797_v17, %v21487_v1  ;;  %v19874_v1 = vld [vmem:[#allocation10 + $0xea4] sm:$0xf0]  ;;  %v20113_v17 = vld [vmem:[#allocation10 + $0x1624] sm:$0xf] }
 0x29c   :  { %8973 = vmatpush.bf16.msra.mxu3 %v17640_v44  ;;  %v20224_v44 = vld [vmem:[#allocation10 + $0x1994] sm:$0xf0]  ;;  %v15864_v15 = vor.u32 %v19874_v1, %v15863_v5  ;;  %v20336_v5 = vld [vmem:[#allocation10 + $0x1d1c] sm:$0xf] }
 0x29d   :  { %9098 = vmatpush.bf16.msrb.mxu0 %v14708_v34  ;;  %9112 = vmatpush.bf16.msrb.mxu1 %v15732_v3  ;;  %v16495_v34 = vld [vmem:[#allocation10 + $0x1320] sm:$0xf]  ;;  %v17511_v3 = vld [vmem:[#allocation10 + $0x1b18] sm:$0xf]  ;;  %v17256_v11 = vor.u32 %v20224_v44, %v17255_v35  ;;  %v14583_v44 = vld [vmem:[#allocation10 + $0x428] sm:$0xf] }
 0x29e   :  { %v16496_v62 = vor.u32 %v20033_v0, %v16495_v34  ;;  %v17512_v57 = vor.u32 %v20288_v63, %v17511_v3  ;;  %v17127_v3 = vld [vmem:[#allocation10 + $0x1818] sm:$0xf]  ;;  %v16111_v63 = vld [vmem:[#allocation10 + $0x1020] sm:$0xf]  ;;  %v17769_v1 = vld [vmem:[#allocation10 + $0x1d98] sm:$0xf0] }
 0x29f   :  { %v17128_v12 = vor.u32 %v20192_v6, %v17127_v3 }
 0x2a0   :  { %9072 = vmatpush.bf16.msra.mxu2 %v16496_v62  ;;  %8974 = vmatpush.bf16.msra.mxu3 %v17512_v57  ;;  %v19937_v62 = vld [vmem:[#allocation10 + $0x109c] sm:$0xf0]  ;;  %v20145_v57 = vld [vmem:[#allocation10 + $0x1724] sm:$0xf] }
 0x2a1   :  { %9099 = vmatpush.bf16.msrb.mxu0 %v14580_v40  ;;  %9113 = vmatpush.bf16.msrb.mxu1 %v15604_v54  ;;  %v16367_v40 = vld [vmem:[#allocation10 + $0x1220] sm:$0xf]  ;;  %v17383_v54 = vld [vmem:[#allocation10 + $0x1a18] sm:$0xf]  ;;  %v16112_v55 = vor.u32 %v19937_v62, %v16111_v63  ;;  %v20081_v63 = vld [vmem:[#allocation10 + $0x1524] sm:$0xf] }
 0x2a2   :  { %v16368_v30 = vor.u32 %v20001_v7, %v16367_v40  ;;  %v17384_v38 = vor.u32 %v20256_v42, %v17383_v54  ;;  %v17009_v40 = vld [vmem:[#allocation10 + $0x17a0] sm:$0xf0]  ;;  %v21517_v7 = vpop.f32.mrf.mxu3  ;;  %v20400_v54 = vld [vmem:[#allocation10 + $0x1f1c] sm:$0xf] }
 0x2a3   :  { %v18025_v42 = vld [vmem:[#allocation10 + $0x1f98] sm:$0xf0]  ;;  %v17012_v13 = vor.u32 %v20145_v57, %v17009_v40  ;;  %v14455_v40 = vld [vmem:[#allocation10 + $0x328] sm:$0xf] }
 0x2a4   :  { %9073 = vmatpush.bf16.msra.mxu2 %v16368_v30  ;;  %8975 = vmatpush.bf16.msra.mxu3 %v17384_v38  ;;  %v15735_v30 = vld [vmem:[#allocation10 + $0xd28] sm:$0xf]  ;;  %v16881_v38 = vld [vmem:[#allocation10 + $0x16a0] sm:$0xf0] }
 0x2a5   :  { %9100 = vmatpush.bf16.msrb.mxu0 %v14452_v14  ;;  %9114 = vmatpush.bf16.msrb.mxu1 %v15476_v29  ;;  %v14967_v14 = vld [vmem:[#allocation10 + $0x728] sm:$0xf]  ;;  %v19969_v29 = vld [vmem:[#allocation10 + $0x119c] sm:$0xf0] }
 0x2a6   :  { %v14968_v34 = vor.u32 %v19650_v31, %v14967_v14  ;;  %v16240_v0 = vor.u32 %v19969_v29, %v16239_v2  ;;  %v19842_v2 = vld [vmem:[#allocation10 + $0xda4] sm:$0xf0]  ;;  %v21520_v14 = vpop.f32.mrf.mxu0  ;;  %v18028_v31 = vor.u32 %v20400_v54, %v18025_v42 }
 0x2a7   :  { %v15736_v35 = vor.u32 %v19842_v2, %v15735_v30  ;;  %v15479_v42 = vld [vmem:[#allocation10 + $0xb28] sm:$0xf]  ;;  %v20304_v30 = vld [vmem:[#allocation10 + $0x1c1c] sm:$0xf] }
 0x2a8   :  { %9074 = vmatpush.bf16.msra.mxu2 %v16240_v0  ;;  %8976 = vmatpush.bf16.msra.mxu3 %v17256_v11  ;;  %v15607_v0 = vld [vmem:[#allocation10 + $0xc28] sm:$0xf]  ;;  %v22336_v11 = vperm.slane %v21501_v26, 5  ;;  %v17641_v2 = vld [vmem:[#allocation10 + $0x1c98] sm:$0xf0] }
 0x2a9   :  { %9101 = vmatpush.bf16.msrb.mxu0 %v14324_v39  ;;  %9115 = vmatpush.bf16.msrb.mxu1 %v15348_v41  ;;  %v15992_v39 = vor.u32 %v19906_v51, %v15991_v4  ;;  %v14839_v41 = vld [vmem:[#allocation10 + $0x628] sm:$0xf]  ;;  %v20368_v4 = vld [vmem:[#allocation10 + $0x1e1c] sm:$0xf] }
 0x2aa   :  { %v17897_v51 = vld [vmem:[#allocation10 + $0x1e98] sm:$0xf0] }
 0x2ab   :  { %v17900_v3 = vor.u32 %v20368_v4, %v17897_v51 }
 0x2ac   :  { %9075 = vmatpush.bf16.msra.mxu2 %v16112_v55  ;;  %8977 = vmatpush.bf16.msra.mxu3 %v17128_v12  ;;  %v19778_v55 = vld [vmem:[#allocation10 + $0xba4] sm:$0xf0]  ;;  %v16625_v12 = vld [vmem:[#allocation10 + $0x14a0] sm:$0xf0] }
 0x2ad   :  { %9102 = vmatpush.bf16.msrb.mxu0 %v14196_v22  ;;  %9116 = vmatpush.bf16.msrb.mxu1 %v15220_v23  ;;  %v14840_v22 = vor.u32 %v19618_v48, %v14839_v41  ;;  %v14711_v23 = vld [vmem:[#allocation10 + $0x528] sm:$0xf]  ;;  %v16753_v41 = vld [vmem:[#allocation10 + $0x15a0] sm:$0xf0]  ;;  %v8699_v48 = vpop.f32.mrf.mxu3 }
 0x2ae   :  { %v14712_v29 = vor.u32 %v19586_v37, %v14711_v23  ;;  %v21528_v6 = vadd.f32 %v8699_v48, %v21480_v49  ;;  %v16756_v54 = vor.u32 %v20081_v63, %v16753_v41  ;;  %v17772_v23 = vor.u32 %v20336_v5, %v17769_v1  ;;  %v20049_v37 = vld [vmem:[#allocation10 + $0x1424] sm:$0xf]  ;;  %v20272_v41 = vld [vmem:[#allocation10 + $0x1b1c] sm:$0xf]  ;;  %v14199_v5 = vld [vmem:[#allocation10 + $0x128] sm:$0xf] }
 0x2af   :  { %9076 = vmatmul.bf16.vlgmr.msra.gmra.mxu2 %v21413_v46  ;;  %8978 = vmatmul.bf16.vlgmr.msra.gmra.mxu3 %v21429_v25  ;;  %v16628_v51 = vor.u32 %v20049_v37, %v16625_v12  ;;  %v17513_v48 = vld [vmem:[#allocation10 + $0x1b98] sm:$0xf0]  ;;  %v19458_v1 = vld [vmem:[#allocation10 + $0x1a4] sm:$0xf0] }
 0x2b0   :  { %9124 = vmatpush.bf16.msrb.mxu2 %v17012_v13  ;;  %9026 = vmatpush.bf16.msrb.mxu3 %v18028_v31  ;;  %v17385_v37 = vld [vmem:[#allocation10 + $0x1a98] sm:$0xf0]  ;;  %v14071_v12 = vld [vmem:[#allocation10 + $0x28] sm:$0xf] }
 0x2b1   :  { %9103 = vmatpush.bf16.msrb.mxu0 %v14068_v58  ;;  %9117 = vmatpush.bf16.msrb.mxu1 %v15092_v36  ;;  %v21523_v58 = vpop.f32.mrf.mxu1  ;;  %v19554_v36 = vld [vmem:[#allocation10 + $0x4a4] sm:$0xf0] }
 0x2b2   :  { %v14584_v62 = vor.u32 %v19554_v36, %v14583_v44  ;;  %v19746_v44 = vld [vmem:[#allocation10 + $0xaa4] sm:$0xf0]  ;;  %v21535_v36 = vpop.f32.mrf.mxu2 }
 0x2b3   :  { %22384 = vst [vmem:[#allocation26_spill] sm:$0xff] %v21535_v36  ;;  %v14849_v36 = vld [vmem:[#allocation10 + $0x6b0] sm:$0xf0] }
 0x2b4   :  { %9104 = vmatmul.bf16.vlgmr.msrb.gmra.mxu0 %v21401_v53  ;;  %9118 = vmatmul.bf16.vlgmr.msrb.gmra.mxu1 %v21403_v18 }
 0x2b5   :  { %9152 = vmatpush.bf16.msra.mxu0 %v14968_v34  ;;  %9166 = vmatpush.bf16.msra.mxu1 %v15992_v39  ;;  %v16884_v34 = vor.u32 %v20113_v17, %v16881_v38  ;;  %v19810_v39 = vld [vmem:[#allocation10 + $0xca4] sm:$0xf0]  ;;  %v15480_v17 = vor.u32 %v19778_v55, %v15479_v42  ;;  %v19985_v42 = vld [vmem:[#allocation10 + $0x1224] sm:$0xf] }
 0x2b6   :  { %v15608_v57 = vor.u32 %v19810_v39, %v15607_v0  ;;  %9027 = vmatpush.bf16.msrb.mxu3 %v17900_v3  ;;  %v14327_v38 = vld [vmem:[#allocation10 + $0x228] sm:$0xf]  ;;  %v20017_v0 = vld [vmem:[#allocation10 + $0x1324] sm:$0xf]  ;;  %v21537_v3 = vpop.f32.mrf.mxu3 }
 0x2b7   :  { %9125 = vmatpush.bf16.msrb.mxu2 %v16884_v34  ;;  %v17644_v34 = vor.u32 %v20304_v30, %v17641_v2  ;;  %v16497_v39 = vld [vmem:[#allocation10 + $0x13a0] sm:$0xf0]  ;;  %v15095_v30 = vld [vmem:[#allocation10 + $0x828] sm:$0xf] }
 0x2b8   :  { %v16369_v55 = vld [vmem:[#allocation10 + $0x12a0] sm:$0xf0]  ;;  %v19682_v2 = vld [vmem:[#allocation10 + $0x8a4] sm:$0xf0] }
 0x2b9   :  { %9153 = vmatpush.bf16.msra.mxu0 %v14840_v22  ;;  %9167 = vmatpush.bf16.msra.mxu1 %v15864_v15  ;;  %v19522_v22 = vld [vmem:[#allocation10 + $0x3a4] sm:$0xf0]  ;;  %v8881_v15 = vpop.f32.mrf.mxu0  ;;  %v8895_v31 = vpop.f32.mrf.mxu1 }
 0x2ba   :  { %v8882_v13 = vadd.f32 %v8881_v15, %v22336_v11  ;;  %v14456_v49 = vor.u32 %v19522_v22, %v14455_v40  ;;  %9028 = vmatpush.bf16.msrb.mxu3 %v17772_v23  ;;  %v15223_v40 = vld [vmem:[#allocation10 + $0x928] sm:$0xf]  ;;  %v14200_v15 = vor.u32 %v19458_v1, %v14199_v5  ;;  %v20240_v23 = vld [vmem:[#allocation10 + $0x1a1c] sm:$0xf]  ;;  %v15096_v1 = vor.u32 %v19682_v2, %v15095_v30  ;;  %v18031_v30 = vld [vmem:[#allocation10 + $0x1f20] sm:$0xf] }
 0x2bb   :  { %9126 = vmatpush.bf16.msrb.mxu2 %v16756_v54  ;;  %v19714_v22 = vld [vmem:[#allocation10 + $0x9a4] sm:$0xf0]  ;;  %v17516_v54 = vor.u32 %v20272_v41, %v17513_v48  ;;  %v20208_v48 = vld [vmem:[#allocation10 + $0x191c] sm:$0xf]  ;;  %v20417_v2 = vld [vmem:[#allocation10 + $0x1f9c] sm:$0xf0] }
 0x2bc   :  { %v21533_v4 = vadd.f32 %v8895_v31, %v8882_v13  ;;  %v15224_v13 = vor.u32 %v19714_v22, %v15223_v40  ;;  %v16372_v31 = vor.u32 %v19985_v42, %v16369_v55  ;;  %v19921_v42 = vld [vmem:[#allocation10 + $0x1024] sm:$0xf]  ;;  %v19602_v55 = vld [vmem:[#allocation10 + $0x62c] sm:$0xf]  ;;  %v14847_v11 = vld [vmem:[#allocation10 + $0x630] sm:$0xf] }
 0x2bd   :  { %9154 = vmatpush.bf16.msra.mxu0 %v14712_v29  ;;  %9168 = vmatpush.bf16.msra.mxu1 %v15736_v35  ;;  %v19490_v29 = vld [vmem:[#allocation10 + $0x2a4] sm:$0xf0] }
 0x2be   :  { %v15351_v35 = vld [vmem:[#allocation10 + $0xa28] sm:$0xf]  ;;  %v14328_v63 = vor.u32 %v19490_v29, %v14327_v38  ;;  %9029 = vmatpush.bf16.msrb.mxu3 %v17644_v34  ;;  %v19634_v38 = vld [vmem:[#allocation10 + $0x72c] sm:$0xf] }
 0x2bf   :  { %9127 = vmatpush.bf16.msrb.mxu2 %v16628_v51  ;;  %v14969_v29 = vld [vmem:[#allocation10 + $0x7a8] sm:$0xf0]  ;;  %v8853_v51 = vpop.f32.mrf.mxu2 }
 0x2c0   :  { %v19890_v34 = vld [vmem:[#allocation10 + $0xf2c] sm:$0xf] }
 0x2c1   :  { %9155 = vmatpush.bf16.msra.mxu0 %v14584_v62  ;;  %9169 = vmatpush.bf16.msra.mxu1 %v15608_v57  ;;  %v15352_v62 = vor.u32 %v19746_v44, %v15351_v35  ;;  %v16500_v57 = vor.u32 %v20017_v0, %v16497_v39  ;;  %v17388_v35 = vor.u32 %v20240_v23, %v17385_v37  ;;  %v16241_v44 = vld [vmem:[#allocation10 + $0x11a0] sm:$0xf0]  ;;  %v15993_v0 = vld [vmem:[#allocation10 + $0xfa8] sm:$0xf0] }
 0x2c2   :  { %9030 = vmatpush.bf16.msrb.mxu3 %v17516_v54  ;;  %v21540_v39 = vadd.f32 %v8853_v51, %v21507_v56  ;;  %v15996_v22 = vor.u32 %v19890_v34, %v15993_v0  ;;  %v20176_v54 = vld [vmem:[#allocation10 + $0x181c] sm:$0xf]  ;;  %v14841_v23 = vld [vmem:[#allocation10 + $0x6a8] sm:$0xf0]  ;;  %v16113_v37 = vld [vmem:[#allocation10 + $0x10a0] sm:$0xf0] }
 0x2c3   :  { %9128 = vmatpush.bf16.msrb.mxu2 %v16500_v57  ;;  %v14972_v57 = vor.u32 %v19634_v38, %v14969_v29  ;;  %v17015_v51 = vld [vmem:[#allocation10 + $0x1728] sm:$0xf]  ;;  %v19570_v38 = vld [vmem:[#allocation10 + $0x52c] sm:$0xf] }
 0x2c4   :  { %v14713_v29 = vld [vmem:[#allocation10 + $0x5a8] sm:$0xf0] }
 0x2c5   :  { %9156 = vmatpush.bf16.msra.mxu0 %v14456_v49  ;;  %9170 = vmatpush.bf16.msra.mxu1 %v15480_v17  ;;  %v19426_v49 = vld [vmem:[#allocation10 + $0xa4] sm:$0xf0]  ;;  %v19953_v17 = vld [vmem:[#allocation10 + $0x1124] sm:$0xf]  ;;  %v19826_v34 = vld [vmem:[#allocation10 + $0xd2c] sm:$0xf] }
 0x2c6   :  { %v14072_v41 = vor.u32 %v19426_v49, %v14071_v12  ;;  %v16244_v40 = vor.u32 %v19953_v17, %v16241_v44  ;;  %9031 = vmatpush.bf16.msrb.mxu3 %v17388_v35  ;;  %v15865_v12 = vld [vmem:[#allocation10 + $0xea8] sm:$0xf0]  ;;  %v17129_v49 = vld [vmem:[#allocation10 + $0x1898] sm:$0xf0] }
 0x2c7   :  { %9129 = vmatpush.bf16.msrb.mxu2 %v16372_v31  ;;  %v16116_v31 = vor.u32 %v19921_v42, %v16113_v37  ;;  %v17132_v35 = vor.u32 %v20176_v54, %v17129_v49  ;;  %v15737_v0 = vld [vmem:[#allocation10 + $0xda8] sm:$0xf0]  ;;  %v20098_v49 = vld [vmem:[#allocation10 + $0x15a4] sm:$0xf0] }
 0x2c8   :  { %v15740_v42 = vor.u32 %v19826_v34, %v15737_v0  ;;  %v19538_v54 = vld [vmem:[#allocation10 + $0x42c] sm:$0xf]  ;;  %v16631_v0 = vld [vmem:[#allocation10 + $0x1428] sm:$0xf] }
 0x2c9   :  { %9157 = vmatpush.bf16.msra.mxu0 %v14328_v63  ;;  %9171 = vmatpush.bf16.msra.mxu1 %v15352_v62  ;;  %v8755_v63 = vpop.f32.mrf.mxu3  ;;  %v17257_v62 = vld [vmem:[#allocation10 + $0x1998] sm:$0xf0]  ;;  %v15609_v37 = vld [vmem:[#allocation10 + $0xca8] sm:$0xf0] }
 0x2ca   :  { %v21543_v5 = vadd.f32 %v8755_v63, %v21492_v24  ;;  %v17260_v56 = vor.u32 %v20208_v48, %v17257_v62  ;;  %v20162_v24 = vld [vmem:[#allocation10 + $0x17a4] sm:$0xf0]  ;;  %v21546_v63 = vpop.f32.mrf.mxu0 }
 0x2cb   :  { %9130 = vmatpush.bf16.msrb.mxu2 %v16244_v40  ;;  %v17016_v44 = vor.u32 %v20162_v24, %v17015_v51  ;;  %v16887_v48 = vld [vmem:[#allocation10 + $0x1628] sm:$0xf]  ;;  %v20385_v40 = vld [vmem:[#allocation10 + $0x1e9c] sm:$0xf0]  ;;  %v22334_v51 = vperm.slane %v21501_v26, 6 }
 0x2cc   :  { %22385 = vst [vmem:[#allocation27_spill] sm:$0xff] %v21543_v5  ;;  %9032 = vmatpush.bf16.msrb.mxu3 %v17260_v56  ;;  %v20130_v62 = vld [vmem:[#allocation10 + $0x16a4] sm:$0xf0]  ;;  %v19794_v56 = vld [vmem:[#allocation10 + $0xc2c] sm:$0xf] }
 0x2cd   :  { %9158 = vmatpush.bf16.msra.mxu0 %v14200_v15  ;;  %9172 = vmatpush.bf16.msra.mxu1 %v15224_v13  ;;  %v19858_v15 = vld [vmem:[#allocation10 + $0xe2c] sm:$0xf]  ;;  %v14844_v13 = vor.u32 %v19602_v55, %v14841_v23  ;;  %v16888_v23 = vor.u32 %v20130_v62, %v16887_v48  ;;  %v14857_v5 = vld [vmem:[#allocation10 + $0x6b8] sm:$0xf0] }
 0x2ce   :  { %v15868_v17 = vor.u32 %v19858_v15, %v15865_v12  ;;  %v14585_v55 = vld [vmem:[#allocation10 + $0x4a8] sm:$0xf0]  ;;  %v16759_v12 = vld [vmem:[#allocation10 + $0x1528] sm:$0xf] }
 0x2cf   :  { %9131 = vmatpush.bf16.msrb.mxu2 %v16116_v31  ;;  %v14588_v24 = vor.u32 %v19538_v54, %v14585_v55  ;;  %v19506_v31 = vld [vmem:[#allocation10 + $0x32c] sm:$0xf] }
 0x2d0   :  { %9033 = vmatpush.bf16.msrb.mxu3 %v17132_v35  ;;  %v15481_v35 = vld [vmem:[#allocation10 + $0xba8] sm:$0xf0] }
 0x2d1   :  { %9159 = vmatpush.bf16.msra.mxu0 %v14072_v41  ;;  %9173 = vmatpush.bf16.msra.mxu1 %v15096_v1  ;;  %v18032_v41 = vor.u32 %v20417_v2, %v18031_v30  ;;  %v14716_v1 = vor.u32 %v19570_v38, %v14713_v29  ;;  %v20353_v30 = vld [vmem:[#allocation10 + $0x1d9c] sm:$0xf0]  ;;  %v15612_v2 = vor.u32 %v19794_v56, %v15609_v37  ;;  %v19762_v29 = vld [vmem:[#allocation10 + $0xb2c] sm:$0xf] }
 0x2d2   :  { %9132 = vmatmul.bf16.vlgmr.msrb.gmra.mxu2 %v21413_v46  ;;  %v16760_v38 = vor.u32 %v20098_v49, %v16759_v12  ;;  %v19474_v54 = vld [vmem:[#allocation10 + $0x22c] sm:$0xf]  ;;  %v21558_v12 = vpop.f32.mrf.mxu2 }
 0x2d3   :  { %9180 = vmatpush.bf16.msra.mxu2 %v17016_v44  ;;  %9034 = vmatmul.bf16.vlgmr.msrb.gmra.mxu3 %v21429_v25  ;;  %v8937_v44 = vpop.f32.mrf.mxu0  ;;  %v14329_v55 = vld [vmem:[#allocation10 + $0x2a8] sm:$0xf0] }
 0x2d4   :  { %9160 = vmatmul.bf16.vlgmr.msra.gmra.mxu0 %v21401_v53  ;;  %9174 = vmatmul.bf16.vlgmr.msra.gmra.mxu1 %v21403_v18  ;;  %v8938_v48 = vadd.f32 %v8937_v44, %v22334_v51  ;;  %v19730_v37 = vld [vmem:[#allocation10 + $0xa2c] sm:$0xf]  ;;  %v15999_v51 = vld [vmem:[#allocation10 + $0xf30] sm:$0xf] }
 0x2d5   :  { %9208 = vmatpush.bf16.msrb.mxu0 %v14972_v57  ;;  %9222 = vmatpush.bf16.msrb.mxu1 %v15996_v22  ;;  %v17903_v57 = vld [vmem:[#allocation10 + $0x1e20] sm:$0xf]  ;;  %v21549_v22 = vpop.f32.mrf.mxu1  ;;  %v14201_v44 = vld [vmem:[#allocation10 + $0x1a8] sm:$0xf0] }
 0x2d6   :  { %9082 = vmatpush.bf16.msra.mxu3 %v18032_v41  ;;  %v17904_v15 = vor.u32 %v20385_v40, %v17903_v57  ;;  %v20066_v41 = vld [vmem:[#allocation10 + $0x14a4] sm:$0xf0]  ;;  %v20321_v57 = vld [vmem:[#allocation10 + $0x1c9c] sm:$0xf0] }
 0x2d7   :  { %9181 = vmatpush.bf16.msra.mxu2 %v16888_v23  ;;  %v16632_v56 = vor.u32 %v20066_v41, %v16631_v0  ;;  %v19698_v0 = vld [vmem:[#allocation10 + $0x92c] sm:$0xf] }
 0x2d8   :  { %v15225_v41 = vld [vmem:[#allocation10 + $0x9a8] sm:$0xf0] }
 0x2d9   :  { %9209 = vmatpush.bf16.msrb.mxu0 %v14844_v13  ;;  %9223 = vmatpush.bf16.msrb.mxu1 %v15868_v17  ;;  %v17775_v13 = vld [vmem:[#allocation10 + $0x1d20] sm:$0xf]  ;;  %v14457_v17 = vld [vmem:[#allocation10 + $0x3a8] sm:$0xf0] }
 0x2da   :  { %9083 = vmatpush.bf16.msra.mxu3 %v17904_v15  ;;  %v17776_v34 = vor.u32 %v20353_v30, %v17775_v13  ;;  %v14460_v62 = vor.u32 %v19506_v31, %v14457_v17  ;;  %v15353_v15 = vld [vmem:[#allocation10 + $0xaa8] sm:$0xf0]  ;;  %v16503_v13 = vld [vmem:[#allocation10 + $0x1328] sm:$0xf]  ;;  %v21560_v30 = vpop.f32.mrf.mxu3  ;;  %v14332_v31 = vor.u32 %v19474_v54, %v14329_v55  ;;  %v20289_v17 = vld [vmem:[#allocation10 + $0x1b9c] sm:$0xf0]  ;;  %v15228_v54 = vor.u32 %v19698_v0, %v15225_v41 }
 0x2db   :  { %9182 = vmatpush.bf16.msra.mxu2 %v16760_v38  ;;  %22386 = vst [vmem:[#allocation28_spill] sm:$0xff] %v21560_v30  ;;  %v14073_v55 = vld [vmem:[#allocation10 + $0xa8] sm:$0xf0]  ;;  %v17263_v0 = vld [vmem:[#allocation10 + $0x1920] sm:$0xf] }
 0x2dc   :  { %v20225_v41 = vld [vmem:[#allocation10 + $0x199c] sm:$0xf0]  ;;  %v20154_v30 = vld [vmem:[#allocation10 + $0x176c] sm:$0xf] }
 0x2dd   :  { %9210 = vmatpush.bf16.msrb.mxu0 %v14716_v1  ;;  %9224 = vmatpush.bf16.msrb.mxu1 %v15740_v42  ;;  %v17647_v1 = vld [vmem:[#allocation10 + $0x1c20] sm:$0xf]  ;;  %v8951_v40 = vpop.f32.mrf.mxu1  ;;  %v15484_v42 = vor.u32 %v19762_v29, %v15481_v35  ;;  %v15356_v29 = vor.u32 %v19730_v37, %v15353_v15  ;;  %v19442_v35 = vld [vmem:[#allocation10 + $0x12c] sm:$0xf] }
 0x2de   :  { %v21556_v23 = vadd.f32 %v8951_v40, %v8938_v48  ;;  %9084 = vmatpush.bf16.msra.mxu3 %v17776_v34  ;;  %v17648_v49 = vor.u32 %v20321_v57, %v17647_v1  ;;  %v16375_v34 = vld [vmem:[#allocation10 + $0x1228] sm:$0xf]  ;;  %v14204_v57 = vor.u32 %v19442_v35, %v14201_v44  ;;  %v17391_v40 = vld [vmem:[#allocation10 + $0x1a20] sm:$0xf]  ;;  %v15097_v37 = vld [vmem:[#allocation10 + $0x8a8] sm:$0xf0] }
 0x2df   :  { %9183 = vmatpush.bf16.msra.mxu2 %v16632_v56  ;;  %v20002_v1 = vld [vmem:[#allocation10 + $0x12a4] sm:$0xf0] }
 0x2e0   :  { %v16376_v15 = vor.u32 %v20002_v1, %v16375_v34  ;;  %v16247_v56 = vld [vmem:[#allocation10 + $0x1128] sm:$0xf] }
 0x2e1   :  { %9211 = vmatpush.bf16.msrb.mxu0 %v14588_v24  ;;  %9225 = vmatpush.bf16.msrb.mxu1 %v15612_v2  ;;  %v20034_v24 = vld [vmem:[#allocation10 + $0x13a4] sm:$0xf0]  ;;  %v17519_v2 = vld [vmem:[#allocation10 + $0x1b20] sm:$0xf] }
 0x2e2   :  { %v16504_v38 = vor.u32 %v20034_v24, %v16503_v13  ;;  %9085 = vmatpush.bf16.msra.mxu3 %v17648_v49  ;;  %v17520_v48 = vor.u32 %v20289_v17, %v17519_v2  ;;  %v14975_v13 = vld [vmem:[#allocation10 + $0x730] sm:$0xf]  ;;  %v8909_v49 = vpop.f32.mrf.mxu2  ;;  %v17392_v2 = vor.u32 %v20257_v19, %v17391_v40  ;;  %v19970_v17 = vld [vmem:[#allocation10 + $0x11a4] sm:$0xf0]  ;;  %v8811_v35 = vpop.f32.mrf.mxu3  ;;  %v17135_v40 = vld [vmem:[#allocation10 + $0x1820] sm:$0xf] }
 0x2e3   :  { %v19651_v24 = vld [vmem:[#allocation10 + $0x7ac] sm:$0xf0]  ;;  %v21563_v44 = vadd.f32 %v8909_v49, %v21533_v4  ;;  %v17264_v4 = vor.u32 %v20225_v41, %v17263_v0  ;;  %v19938_v49 = vld [vmem:[#allocation10 + $0x10a4] sm:$0xf0]  ;;  %v17905_v41 = vld [vmem:[#allocation10 + $0x1ea0] sm:$0xf0] }
 0x2e4   :  { %9184 = vmatpush.bf16.msra.mxu2 %v16504_v38  ;;  %v21566_v38 = vadd.f32 %v8811_v35, %v21515_v33  ;;  %v14976_v1 = vor.u32 %v19651_v24, %v14975_v13  ;;  %v17017_v33 = vld [vmem:[#allocation10 + $0x17a8] sm:$0xf0]  ;;  %v19587_v13 = vld [vmem:[#allocation10 + $0x5ac] sm:$0xf0]  ;;  %v21569_v35 = vpop.f32.mrf.mxu0 }
 0x2e5   :  { %9212 = vmatpush.bf16.msrb.mxu0 %v14460_v62  ;;  %9226 = vmatpush.bf16.msrb.mxu1 %v15484_v42  ;;  %v19410_v62 = vld [vmem:[#allocation10 + $0x2c] sm:$0xf]  ;;  %22388 = vst [vmem:[#allocation30_spill] sm:$0xff] %v21569_v35  ;;  %v20147_v35 = vld [vmem:[#allocation10 + $0x1734] sm:$0xf] }
 0x2e6   :  { %v19666_v42 = vld [vmem:[#allocation10 + $0x82c] sm:$0xf]  ;;  %9086 = vmatpush.bf16.msra.mxu3 %v17520_v48  ;;  %22387 = vst [vmem:[#allocation29_spill] sm:$0xff] %v21566_v38  ;;  %v16248_v48 = vor.u32 %v19970_v17, %v16247_v56  ;;  %v14719_v56 = vld [vmem:[#allocation10 + $0x530] sm:$0xf] }
 0x2e7   :  { %v15100_v34 = vor.u32 %v19666_v42, %v15097_v37  ;;  %v20401_v42 = vld [vmem:[#allocation10 + $0x1f24] sm:$0xf]  ;;  %v15743_v17 = vld [vmem:[#allocation10 + $0xd30] sm:$0xf]  ;;  %v14720_v0 = vor.u32 %v19587_v13, %v14719_v56  ;;  %v19922_v38 = vld [vmem:[#allocation10 + $0x102c] sm:$0xf] }
 0x2e8   :  { %9185 = vmatpush.bf16.msra.mxu2 %v16376_v15  ;;  %v18033_v37 = vld [vmem:[#allocation10 + $0x1fa0] sm:$0xf0]  ;;  %v15487_v13 = vld [vmem:[#allocation10 + $0xb30] sm:$0xf] }
 0x2e9   :  { %9213 = vmatpush.bf16.msrb.mxu0 %v14332_v31  ;;  %9227 = vmatpush.bf16.msrb.mxu1 %v15356_v29  ;;  %v19907_v31 = vld [vmem:[#allocation10 + $0xfac] sm:$0xf0]  ;;  %v14076_v29 = vor.u32 %v19410_v62, %v14073_v55  ;;  %v20193_v55 = vld [vmem:[#allocation10 + $0x189c] sm:$0xf0] }
 0x2ea   :  { %v16000_v19 = vor.u32 %v19907_v31, %v15999_v51  ;;  %9087 = vmatpush.bf16.msra.mxu3 %v17392_v2  ;;  %v19875_v62 = vld [vmem:[#allocation10 + $0xeac] sm:$0xf0]  ;;  %v16120_v51 = vor.u32 %v19938_v49, %v16119_v20  ;;  %v17136_v24 = vor.u32 %v20193_v55, %v17135_v40  ;;  %v17020_v2 = vor.u32 %v20146_v52, %v17017_v33  ;;  %v20369_v20 = vld [vmem:[#allocation10 + $0x1e24] sm:$0xf] }
 0x2eb   :  { %v19843_v31 = vld [vmem:[#allocation10 + $0xdac] sm:$0xf0]  ;;  %v17908_v49 = vor.u32 %v20369_v20, %v17905_v41  ;;  %v22339_v55 = vperm.slane %v21501_v26, 7  ;;  %v17649_v20 = vld [vmem:[#allocation10 + $0x1ca0] sm:$0xf0] }
 0x2ec   :  { %9186 = vmatpush.bf16.msra.mxu2 %v16248_v48  ;;  %v14591_v48 = vld [vmem:[#allocation10 + $0x430] sm:$0xf] }
 0x2ed   :  { %9214 = vmatpush.bf16.msrb.mxu0 %v14204_v57  ;;  %9228 = vmatpush.bf16.msrb.mxu1 %v15228_v54  ;;  %v15871_v57 = vld [vmem:[#allocation10 + $0xe30] sm:$0xf]  ;;  %v14848_v54 = vor.u32 %v19619_v28, %v14847_v11  ;;  %v18036_v28 = vor.u32 %v20401_v42, %v18033_v37  ;;  %v20114_v11 = vld [vmem:[#allocation10 + $0x162c] sm:$0xf]  ;;  %v17777_v42 = vld [vmem:[#allocation10 + $0x1da0] sm:$0xf0] }
 0x2ee   :  { %v15872_v15 = vor.u32 %v19875_v62, %v15871_v57  ;;  %9088 = vmatpush.bf16.msra.mxu3 %v17264_v4  ;;  %v19555_v52 = vld [vmem:[#allocation10 + $0x4ac] sm:$0xf0]  ;;  %v20082_v57 = vld [vmem:[#allocation10 + $0x152c] sm:$0xf] }
 0x2ef   :  { %v15615_v40 = vld [vmem:[#allocation10 + $0xc30] sm:$0xf]  ;;  %v16761_v62 = vld [vmem:[#allocation10 + $0x15a8] sm:$0xf0]  ;;  %v14592_v33 = vor.u32 %v19555_v52, %v14591_v48 }
 0x2f0   :  { %9187 = vmatpush.bf16.msra.mxu2 %v16120_v51  ;;  %v19811_v4 = vld [vmem:[#allocation10 + $0xcac] sm:$0xf0]  ;;  %v16764_v56 = vor.u32 %v20082_v57, %v16761_v62  ;;  %v21581_v57 = vpop.f32.mrf.mxu2 }
 0x2f1   :  { %9215 = vmatpush.bf16.msrb.mxu0 %v14076_v29  ;;  %9229 = vmatpush.bf16.msrb.mxu1 %v15100_v34  ;;  %v16889_v29 = vld [vmem:[#allocation10 + $0x16a8] sm:$0xf0]  ;;  %v21572_v34 = vpop.f32.mrf.mxu1  ;;  %v15616_v37 = vor.u32 %v19811_v4, %v15615_v40  ;;  %v14463_v51 = vld [vmem:[#allocation10 + $0x330] sm:$0xf] }
 0x2f2   :  { %22389 = vst [vmem:[#allocation31_spill] sm:$0xff] %v21572_v34  ;;  %9089 = vmatpush.bf16.msra.mxu3 %v17136_v24  ;;  %v19779_v24 = vld [vmem:[#allocation10 + $0xbac] sm:$0xf0]  ;;  %v19620_v34 = vld [vmem:[#allocation10 + $0x6b4] sm:$0xf0] }
 0x2f3   :  { %9188 = vmatmul.bf16.vlgmr.msra.gmra.mxu2 %v21413_v46  ;;  %v14335_v48 = vld [vmem:[#allocation10 + $0x230] sm:$0xf] }
 0x2f4   :  { %9216 = vmatmul.bf16.vlgmr.msrb.gmra.mxu0 %v21401_v53  ;;  %9230 = vmatmul.bf16.vlgmr.msrb.gmra.mxu1 %v21403_v18  ;;  %v19491_v52 = vld [vmem:[#allocation10 + $0x2ac] sm:$0xf0] }
 0x2f5   :  { %9264 = vmatpush.bf16.msra.mxu0 %v14976_v1  ;;  %9278 = vmatpush.bf16.msra.mxu1 %v16000_v19  ;;  %v15744_v1 = vor.u32 %v19843_v31, %v15743_v17  ;;  %v16892_v19 = vor.u32 %v20114_v11, %v16889_v29  ;;  %v20050_v31 = vld [vmem:[#allocation10 + $0x142c] sm:$0xf]  ;;  %v15359_v4 = vld [vmem:[#allocation10 + $0xa30] sm:$0xf] }
 0x2f6   :  { %9236 = vmatpush.bf16.msrb.mxu2 %v17020_v2  ;;  %9138 = vmatpush.bf16.msrb.mxu3 %v18036_v28  ;;  %v8993_v2 = vpop.f32.mrf.mxu0  ;;  %v16633_v28 = vld [vmem:[#allocation10 + $0x14a8] sm:$0xf0] }
 0x2f7   :  { %9090 = vmatmul.bf16.vlgmr.msra.gmra.mxu3 %v21429_v25  ;;  %v8994_v11 = vadd.f32 %v8993_v2, %v22339_v55  ;;  %v16636_v40 = vor.u32 %v20050_v31, %v16633_v28  ;;  %v19459_v2 = vld [vmem:[#allocation10 + $0x1ac] sm:$0xf0]  ;;  %v17393_v55 = vld [vmem:[#allocation10 + $0x1aa0] sm:$0xf0] }
 0x2f8   :  { %v15231_v31 = vld [vmem:[#allocation10 + $0x930] sm:$0xf] }
 0x2f9   :  { %9265 = vmatpush.bf16.msra.mxu0 %v14848_v54  ;;  %9279 = vmatpush.bf16.msra.mxu1 %v15872_v15  ;;  %v20337_v54 = vld [vmem:[#allocation10 + $0x1d24] sm:$0xf]  ;;  %v19523_v15 = vld [vmem:[#allocation10 + $0x3ac] sm:$0xf0]  ;;  %v9007_v41 = vpop.f32.mrf.mxu1 }
 0x2fa   :  { %9237 = vmatpush.bf16.msrb.mxu2 %v16892_v19  ;;  %9139 = vmatpush.bf16.msrb.mxu3 %v17908_v49  ;;  %v17780_v17 = vor.u32 %v20337_v54, %v17777_v42  ;;  %v14464_v29 = vor.u32 %v19523_v15, %v14463_v51  ;;  %v21579_v19 = vadd.f32 %v9007_v41, %v8994_v11  ;;  %v19747_v49 = vld [vmem:[#allocation10 + $0xaac] sm:$0xf0]  ;;  %v20018_v54 = vld [vmem:[#allocation10 + $0x132c] sm:$0xf]  ;;  %v21583_v42 = vpop.f32.mrf.mxu3  ;;  %v17521_v15 = vld [vmem:[#allocation10 + $0x1ba0] sm:$0xf0] }
 0x2fb   :  { %22390 = vst [vmem:[#allocation32_spill] sm:$0xff] %v21583_v42  ;;  %v14336_v51 = vor.u32 %v19491_v52, %v14335_v48  ;;  %v19715_v28 = vld [vmem:[#allocation10 + $0x9ac] sm:$0xf0]  ;;  %v20241_v41 = vld [vmem:[#allocation10 + $0x1a24] sm:$0xf] }
 0x2fc   :  { %v15232_v48 = vor.u32 %v19715_v28, %v15231_v31  ;;  %v19427_v52 = vld [vmem:[#allocation10 + $0xac] sm:$0xf0]  ;;  %v20209_v31 = vld [vmem:[#allocation10 + $0x1924] sm:$0xf]  ;;  %v19603_v42 = vld [vmem:[#allocation10 + $0x634] sm:$0xf] }
 0x2fd   :  { %9266 = vmatpush.bf16.msra.mxu0 %v14720_v0  ;;  %9280 = vmatpush.bf16.msra.mxu1 %v15744_v1  ;;  %v20305_v0 = vld [vmem:[#allocation10 + $0x1c24] sm:$0xf]  ;;  %v15488_v1 = vor.u32 %v19779_v24, %v15487_v13  ;;  %v15360_v13 = vor.u32 %v19747_v49, %v15359_v4  ;;  %v14207_v24 = vld [vmem:[#allocation10 + $0x130] sm:$0xf] }
 0x2fe   :  { %9238 = vmatpush.bf16.msrb.mxu2 %v16764_v56  ;;  %9140 = vmatpush.bf16.msrb.mxu3 %v17780_v17  ;;  %v17652_v62 = vor.u32 %v20305_v0, %v17649_v20  ;;  %v19986_v17 = vld [vmem:[#allocation10 + $0x122c] sm:$0xf]  ;;  %v14208_v20 = vor.u32 %v19459_v2, %v14207_v24  ;;  %v19683_v4 = vld [vmem:[#allocation10 + $0x8ac] sm:$0xf0]  ;;  %v17265_v28 = vld [vmem:[#allocation10 + $0x19a0] sm:$0xf0] }
 0x2ff   :  { %v16377_v0 = vld [vmem:[#allocation10 + $0x12a8] sm:$0xf0] }
 0x300   :  { %v16380_v49 = vor.u32 %v19986_v17, %v16377_v0 }
 0x301   :  { %9267 = vmatpush.bf16.msra.mxu0 %v14592_v33  ;;  %9281 = vmatpush.bf16.msra.mxu1 %v15616_v37  ;;  %v16505_v33 = vld [vmem:[#allocation10 + $0x13a8] sm:$0xf0]  ;;  %v20273_v37 = vld [vmem:[#allocation10 + $0x1b24] sm:$0xf] }
 0x302   :  { %9239 = vmatpush.bf16.msrb.mxu2 %v16636_v40  ;;  %v16508_v56 = vor.u32 %v20018_v54, %v16505_v33  ;;  %9141 = vmatpush.bf16.msrb.mxu3 %v17652_v62  ;;  %v17524_v11 = vor.u32 %v20273_v37, %v17521_v15  ;;  %v19954_v40 = vld [vmem:[#allocation10 + $0x112c] sm:$0xf]  ;;  %v19635_v54 = vld [vmem:[#allocation10 + $0x734] sm:$0xf]  ;;  %v8965_v62 = vpop.f32.mrf.mxu2  ;;  %v17396_v37 = vor.u32 %v20241_v41, %v17393_v55  ;;  %v8867_v24 = vpop.f32.mrf.mxu3  ;;  %v20177_v41 = vld [vmem:[#allocation10 + $0x1824] sm:$0xf] }
 0x303   :  { %v14977_v33 = vld [vmem:[#allocation10 + $0x7b0] sm:$0xf0]  ;;  %v16249_v15 = vld [vmem:[#allocation10 + $0x11a8] sm:$0xf0]  ;;  %v21586_v2 = vadd.f32 %v8965_v62, %v21556_v23  ;;  %v17268_v23 = vor.u32 %v20209_v31, %v17265_v28  ;;  %v20386_v28 = vld [vmem:[#allocation10 + $0x1ea4] sm:$0xf0] }
 0x304   :  { %v14980_v0 = vor.u32 %v19635_v54, %v14977_v33  ;;  %v16121_v62 = vld [vmem:[#allocation10 + $0x10a8] sm:$0xf0]  ;;  %v14721_v54 = vld [vmem:[#allocation10 + $0x5b0] sm:$0xf0] }
 0x305   :  { %9268 = vmatpush.bf16.msra.mxu0 %v14464_v29  ;;  %9282 = vmatpush.bf16.msra.mxu1 %v15488_v1  ;;  %v14079_v29 = vld [vmem:[#allocation10 + $0x30] sm:$0xf] }
 0x306   :  { %v15103_v1 = vld [vmem:[#allocation10 + $0x830] sm:$0xf]  ;;  %9240 = vmatpush.bf16.msrb.mxu2 %v16508_v56  ;;  %9142 = vmatpush.bf16.msrb.mxu3 %v17524_v11  ;;  %v21589_v56 = vadd.f32 %v8867_v24, %v21540_v39  ;;  %v16252_v11 = vor.u32 %v19954_v40, %v16249_v15  ;;  %v19571_v40 = vld [vmem:[#allocation10 + $0x534] sm:$0xf]  ;;  %v21592_v24 = vpop.f32.mrf.mxu0 }
 0x307   :  { %v15104_v17 = vor.u32 %v19683_v4, %v15103_v1  ;;  %v20163_v39 = vld [vmem:[#allocation10 + $0x17ac] sm:$0xf0]  ;;  %v18039_v1 = vld [vmem:[#allocation10 + $0x1f28] sm:$0xf]  ;;  %v19827_v15 = vld [vmem:[#allocation10 + $0xd34] sm:$0xf]  ;;  %v14724_v31 = vor.u32 %v19571_v40, %v14721_v54 }
 0x308   :  { %22391 = vst [vmem:[#allocation33_spill] sm:$0xff] %v21589_v56  ;;  %v20418_v4 = vld [vmem:[#allocation10 + $0x1fa4] sm:$0xf0]  ;;  %v14465_v40 = vld [vmem:[#allocation10 + $0x3b0] sm:$0xf0] }
 0x309   :  { %9269 = vmatpush.bf16.msra.mxu0 %v14336_v51  ;;  %9283 = vmatpush.bf16.msra.mxu1 %v15360_v13  ;;  %v16001_v51 = vld [vmem:[#allocation10 + $0xfb0] sm:$0xf0]  ;;  %v14080_v13 = vor.u32 %v19427_v52, %v14079_v29  ;;  %v17137_v52 = vld [vmem:[#allocation10 + $0x18a0] sm:$0xf0]  ;;  %22392 = vst [vmem:[#allocation34_spill] sm:$0xff] %v21592_v24 }
 0x30a   :  { %9241 = vmatpush.bf16.msrb.mxu2 %v16380_v49  ;;  %v16004_v55 = vor.u32 %v19891_v61, %v16001_v51  ;;  %9143 = vmatpush.bf16.msrb.mxu3 %v17396_v37  ;;  %v15873_v29 = vld [vmem:[#allocation10 + $0xeb0] sm:$0xf0]  ;;  %v16124_v61 = vor.u32 %v19922_v38, %v16121_v62  ;;  %v17140_v33 = vor.u32 %v20177_v41, %v17137_v52  ;;  %v17911_v38 = vld [vmem:[#allocation10 + $0x1e28] sm:$0xf]  ;;  %v20099_v52 = vld [vmem:[#allocation10 + $0x15ac] sm:$0xf0] }
 0x30b   :  { %v17024_v37 = vor.u32 %v20163_v39, %v17023_v43  ;;  %v15745_v51 = vld [vmem:[#allocation10 + $0xdb0] sm:$0xf0]  ;;  %v16007_v24 = vld [vmem:[#allocation10 + $0xf38] sm:$0xf]  ;;  %v19627_v56 = vld [vmem:[#allocation10 + $0x6ec] sm:$0xf0] }
 0x30c   :  { %v19539_v43 = vld [vmem:[#allocation10 + $0x434] sm:$0xf] }
 0x30d   :  { %9270 = vmatpush.bf16.msra.mxu0 %v14208_v20  ;;  %9284 = vmatpush.bf16.msra.mxu1 %v15232_v48  ;;  %v19859_v20 = vld [vmem:[#allocation10 + $0xe34] sm:$0xf]  ;;  %v14852_v48 = vor.u32 %v19603_v42, %v14849_v36  ;;  %v18040_v36 = vor.u32 %v20418_v4, %v18039_v1  ;;  %v16895_v42 = vld [vmem:[#allocation10 + $0x1630] sm:$0xf]  ;;  %v17783_v1 = vld [vmem:[#allocation10 + $0x1d28] sm:$0xf] }
 0x30e   :  { %9242 = vmatpush.bf16.msrb.mxu2 %v16252_v11  ;;  %v15876_v49 = vor.u32 %v19859_v20, %v15873_v29  ;;  %9144 = vmatpush.bf16.msrb.mxu3 %v17268_v23  ;;  %v21597_v11 = vld [vmem:[#allocation11 + $0x8] sm:$0xff]  ;;  %v19795_v23 = vld [vmem:[#allocation10 + $0xc34] sm:$0xf]  ;;  %v17912_v20 = vor.u32 %v20386_v28, %v17911_v38  ;;  %v16767_v29 = vld [vmem:[#allocation10 + $0x1530] sm:$0xf] }
 0x30f   :  { %22394 = vst [vmem:[#allocation36_spill] sm:$0xff] %v21597_v11  ;;  %v15617_v62 = vld [vmem:[#allocation10 + $0xcb0] sm:$0xf0]  ;;  %v22341_v39 = vperm.slane %v21597_v11, 0  ;;  %v20354_v4 = vld [vmem:[#allocation10 + $0x1da4] sm:$0xf0]  ;;  %v16768_v54 = vor.u32 %v20099_v52, %v16767_v29  ;;  %v21606_v52 = vpop.f32.mrf.mxu2 }
 0x310   :  { %v17655_v38 = vld [vmem:[#allocation10 + $0x1c28] sm:$0xf]  ;;  %v15361_v29 = vld [vmem:[#allocation10 + $0xab0] sm:$0xf0]  ;;  %22395 = vst [vmem:[#allocation37_spill] sm:$0xff] %v21606_v52 }
 0x311   :  { %9271 = vmatpush.bf16.msra.mxu0 %v14080_v13  ;;  %9285 = vmatpush.bf16.msra.mxu1 %v15104_v17  ;;  %v20131_v13 = vld [vmem:[#allocation10 + $0x16ac] sm:$0xf0]  ;;  %v21595_v17 = vpop.f32.mrf.mxu1  ;;  %v20322_v28 = vld [vmem:[#allocation10 + $0x1ca4] sm:$0xf0]  ;;  %v14855_v52 = vld [vmem:[#allocation10 + $0x638] sm:$0xf] }
 0x312   :  { %22393 = vst [vmem:[#allocation35_spill] sm:$0xff] %v21595_v17  ;;  %9243 = vmatpush.bf16.msrb.mxu2 %v16124_v61  ;;  %9145 = vmatpush.bf16.msrb.mxu3 %v17140_v33  ;;  %v16896_v41 = vor.u32 %v20131_v13, %v16895_v42  ;;  %v15620_v61 = vor.u32 %v19795_v23, %v15617_v62  ;;  %v19763_v33 = vld [vmem:[#allocation10 + $0xb34] sm:$0xf]  ;;  %v20067_v42 = vld [vmem:[#allocation10 + $0x14ac] sm:$0xf0] }
 0x313   :  { %v20258_v17 = vld [vmem:[#allocation10 + $0x1aa4] sm:$0xf0] }
 0x314   :  { %9272 = vmatmul.bf16.vlgmr.msra.gmra.mxu0 %v21401_v53  ;;  %9286 = vmatmul.bf16.vlgmr.msra.gmra.mxu1 %v21403_v18 }
 0x315   :  { %9320 = vmatpush.bf16.msrb.mxu0 %v14980_v0  ;;  %9334 = vmatpush.bf16.msrb.mxu1 %v16004_v55  ;;  %v15748_v0 = vor.u32 %v19827_v15, %v15745_v51  ;;  %v14593_v55 = vld [vmem:[#allocation10 + $0x4b0] sm:$0xf0]  ;;  %v9049_v15 = vpop.f32.mrf.mxu0  ;;  %v17784_v51 = vor.u32 %v20354_v4, %v17783_v1  ;;  %v17656_v1 = vor.u32 %v20322_v28, %v17655_v38  ;;  %v16511_v4 = vld [vmem:[#allocation10 + $0x1330] sm:$0xf] }
 0x316   :  { %9292 = vmatpush.bf16.msra.mxu2 %v17024_v37  ;;  %9194 = vmatpush.bf16.msra.mxu3 %v18040_v36  ;;  %v15489_v37 = vld [vmem:[#allocation10 + $0xbb0] sm:$0xf0]  ;;  %v16639_v36 = vld [vmem:[#allocation10 + $0x1430] sm:$0xf]  ;;  %v9050_v13 = vadd.f32 %v9049_v15, %v22341_v39  ;;  %v17399_v39 = vld [vmem:[#allocation10 + $0x1a28] sm:$0xf] }
 0x317   :  { %9244 = vmatmul.bf16.vlgmr.msrb.gmra.mxu2 %v21413_v46  ;;  %9146 = vmatmul.bf16.vlgmr.msrb.gmra.mxu3 %v21429_v25  ;;  %v16640_v62 = vor.u32 %v20067_v42, %v16639_v36  ;;  %v19443_v15 = vld [vmem:[#allocation10 + $0x134] sm:$0xf]  ;;  %v20003_v38 = vld [vmem:[#allocation10 + $0x12ac] sm:$0xf0] }
 0x318   :  { %v19699_v36 = vld [vmem:[#allocation10 + $0x934] sm:$0xf] }
 0x319   :  { %9321 = vmatpush.bf16.msrb.mxu0 %v14852_v48  ;;  %9335 = vmatpush.bf16.msrb.mxu1 %v15876_v49  ;;  %v14596_v48 = vor.u32 %v19539_v43, %v14593_v55  ;;  %v19507_v49 = vld [vmem:[#allocation10 + $0x334] sm:$0xf]  ;;  %v15492_v43 = vor.u32 %v19763_v33, %v15489_v37  ;;  %v20290_v33 = vld [vmem:[#allocation10 + $0x1ba4] sm:$0xf0] }
 0x31a   :  { %9293 = vmatpush.bf16.msra.mxu2 %v16896_v41  ;;  %9195 = vmatpush.bf16.msra.mxu3 %v17912_v20  ;;  %v19475_v55 = vld [vmem:[#allocation10 + $0x234] sm:$0xf] }
 0x31b   :  { %v14337_v41 = vld [vmem:[#allocation10 + $0x2b0] sm:$0xf0] }
 0x31c   :  { %v19731_v20 = vld [vmem:[#allocation10 + $0xa34] sm:$0xf] }
 0x31d   :  { %9322 = vmatpush.bf16.msrb.mxu0 %v14724_v31  ;;  %9336 = vmatpush.bf16.msrb.mxu1 %v15748_v0  ;;  %v14468_v31 = vor.u32 %v19507_v49, %v14465_v40  ;;  %v9063_v0 = vpop.f32.mrf.mxu1  ;;  %v21608_v49 = vpop.f32.mrf.mxu3  ;;  %v14340_v40 = vor.u32 %v19475_v55, %v14337_v41  ;;  %v15364_v37 = vor.u32 %v19731_v20, %v15361_v29  ;;  %v15233_v42 = vld [vmem:[#allocation10 + $0x9b0] sm:$0xf0] }
 0x31e   :  { %v21604_v23 = vadd.f32 %v9063_v0, %v9050_v13  ;;  %9294 = vmatpush.bf16.msra.mxu2 %v16768_v54  ;;  %9196 = vmatpush.bf16.msra.mxu3 %v17784_v51  ;;  %v14209_v13 = vld [vmem:[#allocation10 + $0x1b0] sm:$0xf0]  ;;  %v16383_v51 = vld [vmem:[#allocation10 + $0x1230] sm:$0xf]  ;;  %v15236_v55 = vor.u32 %v19699_v36, %v15233_v42  ;;  %v17271_v36 = vld [vmem:[#allocation10 + $0x1928] sm:$0xf] }
 0x31f   :  { %v14212_v28 = vor.u32 %v19443_v15, %v14209_v13  ;;  %v14081_v41 = vld [vmem:[#allocation10 + $0xb0] sm:$0xf0]  ;;  %v16384_v29 = vor.u32 %v20003_v38, %v16383_v51  ;;  %v20226_v42 = vld [vmem:[#allocation10 + $0x19a4] sm:$0xf0] }
 0x320   :  { %v15105_v20 = vld [vmem:[#allocation10 + $0x8b0] sm:$0xf0] }
 0x321   :  { %9323 = vmatpush.bf16.msrb.mxu0 %v14596_v48  ;;  %9337 = vmatpush.bf16.msrb.mxu1 %v15620_v61  ;;  %v20035_v48 = vld [vmem:[#allocation10 + $0x13ac] sm:$0xf0]  ;;  %v17527_v61 = vld [vmem:[#allocation10 + $0x1b28] sm:$0xf] }
 0x322   :  { %9295 = vmatpush.bf16.msra.mxu2 %v16640_v62  ;;  %v16512_v54 = vor.u32 %v20035_v48, %v16511_v4  ;;  %9197 = vmatpush.bf16.msra.mxu3 %v17656_v1  ;;  %v17528_v0 = vor.u32 %v20290_v33, %v17527_v61  ;;  %v16255_v62 = vld [vmem:[#allocation10 + $0x1130] sm:$0xf]  ;;  %v14983_v4 = vld [vmem:[#allocation10 + $0x738] sm:$0xf]  ;;  %v9021_v1 = vpop.f32.mrf.mxu2  ;;  %v17400_v61 = vor.u32 %v20258_v17, %v17399_v39  ;;  %v17143_v39 = vld [vmem:[#allocation10 + $0x1828] sm:$0xf] }
 0x323   :  { %v19652_v48 = vld [vmem:[#allocation10 + $0x7b4] sm:$0xf0]  ;;  %v19971_v33 = vld [vmem:[#allocation10 + $0x11ac] sm:$0xf0]  ;;  %v21611_v13 = vadd.f32 %v9021_v1, %v21579_v19  ;;  %v17272_v19 = vor.u32 %v20226_v42, %v17271_v36  ;;  %v17913_v42 = vld [vmem:[#allocation10 + $0x1ea8] sm:$0xf0] }
 0x324   :  { %v14984_v38 = vor.u32 %v19652_v48, %v14983_v4  ;;  %v19939_v1 = vld [vmem:[#allocation10 + $0x10ac] sm:$0xf0]  ;;  %v19588_v4 = vld [vmem:[#allocation10 + $0x5b4] sm:$0xf0] }
 0x325   :  { %9324 = vmatpush.bf16.msrb.mxu0 %v14468_v31  ;;  %9338 = vmatpush.bf16.msrb.mxu1 %v15492_v43  ;;  %v19411_v31 = vld [vmem:[#allocation10 + $0x34] sm:$0xf]  ;;  %v8923_v15 = vpop.f32.mrf.mxu3 }
 0x326   :  { %v19667_v43 = vld [vmem:[#allocation10 + $0x834] sm:$0xf]  ;;  %9296 = vmatpush.bf16.msra.mxu2 %v16512_v54  ;;  %9198 = vmatpush.bf16.msra.mxu3 %v17528_v0  ;;  %v21614_v54 = vadd.f32 %v8923_v15, %v21563_v44  ;;  %v16256_v0 = vor.u32 %v19971_v33, %v16255_v62  ;;  %v14727_v62 = vld [vmem:[#allocation10 + $0x538] sm:$0xf]  ;;  %v21617_v15 = vpop.f32.mrf.mxu0 }
 0x327   :  { %v15108_v51 = vor.u32 %v19667_v43, %v15105_v20  ;;  %v17025_v44 = vld [vmem:[#allocation10 + $0x17b0] sm:$0xf0]  ;;  %v20402_v43 = vld [vmem:[#allocation10 + $0x1f2c] sm:$0xf]  ;;  %v15751_v33 = vld [vmem:[#allocation10 + $0xd38] sm:$0xf]  ;;  %v14728_v36 = vor.u32 %v19588_v4, %v14727_v62 }
 0x328   :  { %22396 = vst [vmem:[#allocation38_spill] sm:$0xff] %v21614_v54  ;;  %v18041_v20 = vld [vmem:[#allocation10 + $0x1fa8] sm:$0xf0]  ;;  %v15495_v4 = vld [vmem:[#allocation10 + $0xb38] sm:$0xf] }
 0x329   :  { %9325 = vmatpush.bf16.msrb.mxu0 %v14340_v40  ;;  %9339 = vmatpush.bf16.msrb.mxu1 %v15364_v37  ;;  %v19908_v40 = vld [vmem:[#allocation10 + $0xfb4] sm:$0xf0]  ;;  %v14084_v37 = vor.u32 %v19411_v31, %v14081_v41  ;;  %v20194_v41 = vld [vmem:[#allocation10 + $0x18a4] sm:$0xf0]  ;;  %22397 = vst [vmem:[#allocation39_spill] sm:$0xff] %v21617_v15 }
 0x32a   :  { %9297 = vmatpush.bf16.msra.mxu2 %v16384_v29  ;;  %v16008_v17 = vor.u32 %v19908_v40, %v16007_v24  ;;  %9199 = vmatpush.bf16.msra.mxu3 %v17400_v61  ;;  %v19876_v31 = vld [vmem:[#allocation10 + $0xeb4] sm:$0xf0]  ;;  %v16128_v24 = vor.u32 %v19939_v1, %v16127_v16  ;;  %v17144_v48 = vor.u32 %v20194_v41, %v17143_v39  ;;  %v20370_v16 = vld [vmem:[#allocation10 + $0x1e2c] sm:$0xf]  ;;  %v22342_v41 = vperm.slane %v21597_v11, 1 }
 0x32b   :  { %v17028_v61 = vor.u32 %v20147_v35, %v17025_v44  ;;  %v19844_v40 = vld [vmem:[#allocation10 + $0xdb4] sm:$0xf0]  ;;  %v17916_v1 = vor.u32 %v20370_v16, %v17913_v42  ;;  %v17657_v16 = vld [vmem:[#allocation10 + $0x1ca8] sm:$0xf0]  ;;  %v19604_v15 = vld [vmem:[#allocation10 + $0x63c] sm:$0xf] }
 0x32c   :  { %v19556_v35 = vld [vmem:[#allocation10 + $0x4b4] sm:$0xf0] }
 0x32d   :  { %9326 = vmatpush.bf16.msrb.mxu0 %v14212_v28  ;;  %9340 = vmatpush.bf16.msrb.mxu1 %v15236_v55  ;;  %v15879_v28 = vld [vmem:[#allocation10 + $0xe38] sm:$0xf]  ;;  %v14856_v55 = vor.u32 %v19620_v34, %v14855_v52  ;;  %v18044_v34 = vor.u32 %v20402_v43, %v18041_v20  ;;  %v20115_v52 = vld [vmem:[#allocation10 + $0x1634] sm:$0xf]  ;;  %v17785_v43 = vld [vmem:[#allocation10 + $0x1da8] sm:$0xf0] }
 0x32e   :  { %9298 = vmatpush.bf16.msra.mxu2 %v16256_v0  ;;  %v15880_v29 = vor.u32 %v19876_v31, %v15879_v28  ;;  %9200 = vmatpush.bf16.msra.mxu3 %v17272_v19  ;;  %v14599_v0 = vld [vmem:[#allocation10 + $0x438] sm:$0xf]  ;;  %v20083_v28 = vld [vmem:[#allocation10 + $0x1534] sm:$0xf] }
 0x32f   :  { %v15623_v39 = vld [vmem:[#allocation10 + $0xc38] sm:$0xf]  ;;  %v16769_v31 = vld [vmem:[#allocation10 + $0x15b0] sm:$0xf0]  ;;  %v14600_v44 = vor.u32 %v19556_v35, %v14599_v0 }
 0x330   :  { %v19812_v19 = vld [vmem:[#allocation10 + $0xcb4] sm:$0xf0]  ;;  %v16772_v62 = vor.u32 %v20083_v28, %v16769_v31  ;;  %v21629_v28 = vpop.f32.mrf.mxu2 }
 0x331   :  { %9327 = vmatpush.bf16.msrb.mxu0 %v14084_v37  ;;  %9341 = vmatpush.bf16.msrb.mxu1 %v15108_v51  ;;  %v16897_v37 = vld [vmem:[#allocation10 + $0x16b0] sm:$0xf0]  ;;  %v21620_v51 = vpop.f32.mrf.mxu1  ;;  %v15624_v20 = vor.u32 %v19812_v19, %v15623_v39  ;;  %v14343_v0 = vld [vmem:[#allocation10 + $0x238] sm:$0xf]  ;;  %22399 = vst [vmem:[#allocation41_spill] sm:$0xff] %v21629_v28 }
 0x332   :  { %22398 = vst [vmem:[#allocation40_spill] sm:$0xff] %v21620_v51  ;;  %9299 = vmatpush.bf16.msra.mxu2 %v16128_v24  ;;  %9201 = vmatpush.bf16.msra.mxu3 %v17144_v48  ;;  %v14471_v24 = vld [vmem:[#allocation10 + $0x338] sm:$0xf]  ;;  %v19892_v28 = vld [vmem:[#allocation10 + $0xf3c] sm:$0xf] }
 0x333   :  { %v19780_v48 = vld [vmem:[#allocation10 + $0xbb4] sm:$0xf0]  ;;  %v19923_v51 = vld [vmem:[#allocation10 + $0x1034] sm:$0xf] }
 0x334   :  { %9328 = vmatmul.bf16.vlgmr.msrb.gmra.mxu0 %v21401_v53  ;;  %9342 = vmatmul.bf16.vlgmr.msrb.gmra.mxu1 %v21403_v18  ;;  %v19492_v35 = vld [vmem:[#allocation10 + $0x2b4] sm:$0xf0] }
 0x335   :  { %9376 = vmatpush.bf16.msra.mxu0 %v14984_v38  ;;  %9390 = vmatpush.bf16.msra.mxu1 %v16008_v17  ;;  %v15752_v38 = vor.u32 %v19844_v40, %v15751_v33  ;;  %v16900_v17 = vor.u32 %v20115_v52, %v16897_v37  ;;  %v20051_v40 = vld [vmem:[#allocation10 + $0x1434] sm:$0xf]  ;;  %v15367_v19 = vld [vmem:[#allocation10 + $0xa38] sm:$0xf] }
 0x336   :  { %9348 = vmatpush.bf16.msrb.mxu2 %v17028_v61  ;;  %9250 = vmatpush.bf16.msrb.mxu3 %v18044_v34  ;;  %v9105_v61 = vpop.f32.mrf.mxu0  ;;  %v16641_v34 = vld [vmem:[#allocation10 + $0x14b0] sm:$0xf0]  ;;  %v17031_v54 = vld [vmem:[#allocation10 + $0x1738] sm:$0xf] }
 0x337   :  { %9300 = vmatmul.bf16.vlgmr.msra.gmra.mxu2 %v21413_v46  ;;  %9202 = vmatmul.bf16.vlgmr.msra.gmra.mxu3 %v21429_v25  ;;  %v9106_v52 = vadd.f32 %v9105_v61, %v22342_v41  ;;  %v16644_v39 = vor.u32 %v20051_v40, %v16641_v34  ;;  %v19460_v61 = vld [vmem:[#allocation10 + $0x1b4] sm:$0xf0]  ;;  %v17401_v41 = vld [vmem:[#allocation10 + $0x1aa8] sm:$0xf0] }
 0x338   :  { %v15239_v40 = vld [vmem:[#allocation10 + $0x938] sm:$0xf] }
 0x339   :  { %9377 = vmatpush.bf16.msra.mxu0 %v14856_v55  ;;  %9391 = vmatpush.bf16.msra.mxu1 %v15880_v29  ;;  %v20338_v55 = vld [vmem:[#allocation10 + $0x1d2c] sm:$0xf]  ;;  %v19524_v29 = vld [vmem:[#allocation10 + $0x3b4] sm:$0xf0]  ;;  %v9119_v42 = vpop.f32.mrf.mxu1 }
 0x33a   :  { %9349 = vmatpush.bf16.msrb.mxu2 %v16900_v17  ;;  %9251 = vmatpush.bf16.msrb.mxu3 %v17916_v1  ;;  %v17788_v33 = vor.u32 %v20338_v55, %v17785_v43  ;;  %v14472_v37 = vor.u32 %v19524_v29, %v14471_v24  ;;  %v21627_v17 = vadd.f32 %v9119_v42, %v9106_v52  ;;  %v19748_v1 = vld [vmem:[#allocation10 + $0xab4] sm:$0xf0]  ;;  %v20019_v55 = vld [vmem:[#allocation10 + $0x1334] sm:$0xf]  ;;  %v21631_v43 = vpop.f32.mrf.mxu3  ;;  %v17529_v29 = vld [vmem:[#allocation10 + $0x1ba8] sm:$0xf0] }
 0x33b   :  { %v14344_v24 = vor.u32 %v19492_v35, %v14343_v0  ;;  %v19716_v34 = vld [vmem:[#allocation10 + $0x9b4] sm:$0xf0]  ;;  %v20242_v42 = vld [vmem:[#allocation10 + $0x1a2c] sm:$0xf] }
 0x33c   :  { %v15240_v0 = vor.u32 %v19716_v34, %v15239_v40  ;;  %v19428_v35 = vld [vmem:[#allocation10 + $0xb4] sm:$0xf0]  ;;  %v20210_v40 = vld [vmem:[#allocation10 + $0x192c] sm:$0xf] }
 0x33d   :  { %9378 = vmatpush.bf16.msra.mxu0 %v14728_v36  ;;  %9392 = vmatpush.bf16.msra.mxu1 %v15752_v38  ;;  %v20306_v36 = vld [vmem:[#allocation10 + $0x1c2c] sm:$0xf]  ;;  %v15496_v38 = vor.u32 %v19780_v48, %v15495_v4  ;;  %v15368_v4 = vor.u32 %v19748_v1, %v15367_v19  ;;  %v14215_v48 = vld [vmem:[#allocation10 + $0x138] sm:$0xf] }
 0x33e   :  { %9350 = vmatpush.bf16.msrb.mxu2 %v16772_v62  ;;  %9252 = vmatpush.bf16.msrb.mxu3 %v17788_v33  ;;  %v17660_v31 = vor.u32 %v20306_v36, %v17657_v16  ;;  %v19987_v33 = vld [vmem:[#allocation10 + $0x1234] sm:$0xf]  ;;  %v14216_v16 = vor.u32 %v19460_v61, %v14215_v48  ;;  %v19684_v19 = vld [vmem:[#allocation10 + $0x8b4] sm:$0xf0]  ;;  %v17273_v34 = vld [vmem:[#allocation10 + $0x19a8] sm:$0xf0] }
 0x33f   :  { %v16385_v36 = vld [vmem:[#allocation10 + $0x12b0] sm:$0xf0] }
 0x340   :  { %v16388_v1 = vor.u32 %v19987_v33, %v16385_v36 }
 0x341   :  { %9379 = vmatpush.bf16.msra.mxu0 %v14600_v44  ;;  %9393 = vmatpush.bf16.msra.mxu1 %v15624_v20  ;;  %v16513_v44 = vld [vmem:[#allocation10 + $0x13b0] sm:$0xf0]  ;;  %v20274_v20 = vld [vmem:[#allocation10 + $0x1b2c] sm:$0xf] }
 0x342   :  { %9351 = vmatpush.bf16.msrb.mxu2 %v16644_v39  ;;  %v16516_v62 = vor.u32 %v20019_v55, %v16513_v44  ;;  %9253 = vmatpush.bf16.msrb.mxu3 %v17660_v31  ;;  %v17532_v52 = vor.u32 %v20274_v20, %v17529_v29  ;;  %v19955_v39 = vld [vmem:[#allocation10 + $0x1134] sm:$0xf]  ;;  %v19636_v55 = vld [vmem:[#allocation10 + $0x73c] sm:$0xf]  ;;  %v9077_v31 = vpop.f32.mrf.mxu2  ;;  %v17404_v20 = vor.u32 %v20242_v42, %v17401_v41  ;;  %v8979_v48 = vpop.f32.mrf.mxu3  ;;  %v20178_v42 = vld [vmem:[#allocation10 + $0x182c] sm:$0xf] }
 0x343   :  { %v14985_v44 = vld [vmem:[#allocation10 + $0x7b8] sm:$0xf0]  ;;  %v16257_v29 = vld [vmem:[#allocation10 + $0x11b0] sm:$0xf0]  ;;  %v21634_v61 = vadd.f32 %v9077_v31, %v21604_v23  ;;  %v17276_v23 = vor.u32 %v20210_v40, %v17273_v34  ;;  %v20387_v34 = vld [vmem:[#allocation10 + $0x1eac] sm:$0xf0] }
 0x344   :  { %v14988_v36 = vor.u32 %v19636_v55, %v14985_v44  ;;  %v16129_v31 = vld [vmem:[#allocation10 + $0x10b0] sm:$0xf0]  ;;  %v14729_v55 = vld [vmem:[#allocation10 + $0x5b8] sm:$0xf0] }
 0x345   :  { %9380 = vmatpush.bf16.msra.mxu0 %v14472_v37  ;;  %9394 = vmatpush.bf16.msra.mxu1 %v15496_v38  ;;  %v14087_v37 = vld [vmem:[#allocation10 + $0x38] sm:$0xf] }
 0x346   :  { %v15111_v38 = vld [vmem:[#allocation10 + $0x838] sm:$0xf]  ;;  %9352 = vmatpush.bf16.msrb.mxu2 %v16516_v62  ;;  %9254 = vmatpush.bf16.msrb.mxu3 %v17532_v52  ;;  %v21637_v62 = vadd.f32 %v8979_v48, %v21586_v2  ;;  %v16260_v52 = vor.u32 %v19955_v39, %v16257_v29  ;;  %v19572_v39 = vld [vmem:[#allocation10 + $0x53c] sm:$0xf]  ;;  %v21640_v48 = vpop.f32.mrf.mxu0 }
 0x347   :  { %v15112_v33 = vor.u32 %v19684_v19, %v15111_v38  ;;  %v20164_v2 = vld [vmem:[#allocation10 + $0x17b4] sm:$0xf0]  ;;  %v18047_v38 = vld [vmem:[#allocation10 + $0x1f30] sm:$0xf]  ;;  %v19828_v29 = vld [vmem:[#allocation10 + $0xd3c] sm:$0xf]  ;;  %v14732_v40 = vor.u32 %v19572_v39, %v14729_v55 }
 0x348   :  { %22400 = vst [vmem:[#allocation42_spill] sm:$0xff] %v21637_v62  ;;  %v20419_v19 = vld [vmem:[#allocation10 + $0x1fac] sm:$0xf0]  ;;  %v19764_v55 = vld [vmem:[#allocation10 + $0xb3c] sm:$0xf] }
 0x349   :  { %9381 = vmatpush.bf16.msra.mxu0 %v14344_v24  ;;  %9395 = vmatpush.bf16.msra.mxu1 %v15368_v4  ;;  %v16009_v24 = vld [vmem:[#allocation10 + $0xfb8] sm:$0xf0]  ;;  %v14088_v4 = vor.u32 %v19428_v35, %v14087_v37  ;;  %v17145_v35 = vld [vmem:[#allocation10 + $0x18a8] sm:$0xf0]  ;;  %22401 = vst [vmem:[#allocation43_spill] sm:$0xff] %v21640_v48 }
 0x34a   :  { %9353 = vmatpush.bf16.msrb.mxu2 %v16388_v1  ;;  %v16012_v41 = vor.u32 %v19892_v28, %v16009_v24  ;;  %9255 = vmatpush.bf16.msrb.mxu3 %v17404_v20  ;;  %v15881_v37 = vld [vmem:[#allocation10 + $0xeb8] sm:$0xf0]  ;;  %v16132_v28 = vor.u32 %v19923_v51, %v16129_v31  ;;  %v17148_v44 = vor.u32 %v20178_v42, %v17145_v35  ;;  %v17919_v51 = vld [vmem:[#allocation10 + $0x1e30] sm:$0xf]  ;;  %v22343_v35 = vperm.slane %v21597_v11, 2 }
 0x34b   :  { %v17032_v20 = vor.u32 %v20164_v2, %v17031_v54  ;;  %v15753_v24 = vld [vmem:[#allocation10 + $0xdb8] sm:$0xf0]  ;;  %v17920_v31 = vor.u32 %v20387_v34, %v17919_v51  ;;  %v20323_v51 = vld [vmem:[#allocation10 + $0x1cac] sm:$0xf0]  ;;  %v16015_v62 = vld [vmem:[#allocation10 + $0xf40] sm:$0xf] }
 0x34c   :  { %v14601_v54 = vld [vmem:[#allocation10 + $0x4b8] sm:$0xf0] }
 0x34d   :  { %9382 = vmatpush.bf16.msra.mxu0 %v14216_v16  ;;  %9396 = vmatpush.bf16.msra.mxu1 %v15240_v0  ;;  %v19860_v16 = vld [vmem:[#allocation10 + $0xe3c] sm:$0xf]  ;;  %v14860_v0 = vor.u32 %v19604_v15, %v14857_v5  ;;  %v18048_v5 = vor.u32 %v20419_v19, %v18047_v38  ;;  %v16903_v15 = vld [vmem:[#allocation10 + $0x1638] sm:$0xf]  ;;  %v20355_v38 = vld [vmem:[#allocation10 + $0x1dac] sm:$0xf0] }
 0x34e   :  { %9354 = vmatpush.bf16.msrb.mxu2 %v16260_v52  ;;  %v15884_v1 = vor.u32 %v19860_v16, %v15881_v37  ;;  %9256 = vmatpush.bf16.msrb.mxu3 %v17276_v23  ;;  %v19540_v52 = vld [vmem:[#allocation10 + $0x43c] sm:$0xf]  ;;  %v16775_v16 = vld [vmem:[#allocation10 + $0x1538] sm:$0xf] }
 0x34f   :  { %v19796_v42 = vld [vmem:[#allocation10 + $0xc3c] sm:$0xf]  ;;  %v20100_v37 = vld [vmem:[#allocation10 + $0x15b4] sm:$0xf0]  ;;  %v14604_v2 = vor.u32 %v19540_v52, %v14601_v54 }
 0x350   :  { %v15625_v23 = vld [vmem:[#allocation10 + $0xcb8] sm:$0xf0]  ;;  %v16776_v39 = vor.u32 %v20100_v37, %v16775_v16  ;;  %v21652_v16 = vpop.f32.mrf.mxu2 }
 0x351   :  { %9383 = vmatpush.bf16.msra.mxu0 %v14088_v4  ;;  %9397 = vmatpush.bf16.msra.mxu1 %v15112_v33  ;;  %v20132_v4 = vld [vmem:[#allocation10 + $0x16b4] sm:$0xf0]  ;;  %v21643_v33 = vpop.f32.mrf.mxu1  ;;  %v15628_v19 = vor.u32 %v19796_v42, %v15625_v23  ;;  %v19476_v52 = vld [vmem:[#allocation10 + $0x23c] sm:$0xf]  ;;  %22403 = vst [vmem:[#allocation45_spill] sm:$0xff] %v21652_v16 }
 0x352   :  { %22402 = vst [vmem:[#allocation44_spill] sm:$0xff] %v21643_v33  ;;  %9355 = vmatpush.bf16.msrb.mxu2 %v16132_v28  ;;  %9257 = vmatpush.bf16.msrb.mxu3 %v17148_v44  ;;  %v19508_v28 = vld [vmem:[#allocation10 + $0x33c] sm:$0xf]  ;;  %v14863_v16 = vld [vmem:[#allocation10 + $0x640] sm:$0xf] }
 0x353   :  { %v15497_v44 = vld [vmem:[#allocation10 + $0xbb8] sm:$0xf0]  ;;  %v19621_v33 = vld [vmem:[#allocation10 + $0x6bc] sm:$0xf0] }
 0x354   :  { %9384 = vmatmul.bf16.vlgmr.msra.gmra.mxu0 %v21401_v53  ;;  %9398 = vmatmul.bf16.vlgmr.msra.gmra.mxu1 %v21403_v18  ;;  %v14345_v54 = vld [vmem:[#allocation10 + $0x2b8] sm:$0xf0] }
 0x355   :  { %9432 = vmatpush.bf16.msrb.mxu0 %v14988_v36  ;;  %9446 = vmatpush.bf16.msrb.mxu1 %v16012_v41  ;;  %v15756_v36 = vor.u32 %v19828_v29, %v15753_v24  ;;  %v16904_v41 = vor.u32 %v20132_v4, %v16903_v15  ;;  %v16647_v24 = vld [vmem:[#allocation10 + $0x1438] sm:$0xf]  ;;  %v19732_v23 = vld [vmem:[#allocation10 + $0xa3c] sm:$0xf] }
 0x356   :  { %9404 = vmatpush.bf16.msra.mxu2 %v17032_v20  ;;  %9306 = vmatpush.bf16.msra.mxu3 %v18048_v5  ;;  %v9161_v20 = vpop.f32.mrf.mxu0  ;;  %v20068_v5 = vld [vmem:[#allocation10 + $0x14b4] sm:$0xf0]  ;;  %v20148_v48 = vld [vmem:[#allocation10 + $0x173c] sm:$0xf] }
 0x357   :  { %9356 = vmatmul.bf16.vlgmr.msrb.gmra.mxu2 %v21413_v46  ;;  %9258 = vmatmul.bf16.vlgmr.msrb.gmra.mxu3 %v21429_v25  ;;  %v9162_v15 = vadd.f32 %v9161_v20, %v22343_v35  ;;  %v16648_v42 = vor.u32 %v20068_v5, %v16647_v24  ;;  %v14217_v20 = vld [vmem:[#allocation10 + $0x1b8] sm:$0xf0]  ;;  %v20259_v35 = vld [vmem:[#allocation10 + $0x1aac] sm:$0xf0] }
 0x358   :  { %v19700_v24 = vld [vmem:[#allocation10 + $0x93c] sm:$0xf] }
 0x359   :  { %9433 = vmatpush.bf16.msrb.mxu0 %v14860_v0  ;;  %9447 = vmatpush.bf16.msrb.mxu1 %v15884_v1  ;;  %v17791_v0 = vld [vmem:[#allocation10 + $0x1d30] sm:$0xf]  ;;  %v14473_v1 = vld [vmem:[#allocation10 + $0x3b8] sm:$0xf0]  ;;  %v9175_v34 = vpop.f32.mrf.mxu1 }
 0x35a   :  { %9405 = vmatpush.bf16.msra.mxu2 %v16904_v41  ;;  %9307 = vmatpush.bf16.msra.mxu3 %v17920_v31  ;;  %v17792_v29 = vor.u32 %v20355_v38, %v17791_v0  ;;  %v14476_v4 = vor.u32 %v19508_v28, %v14473_v1  ;;  %v21650_v41 = vadd.f32 %v9175_v34, %v9162_v15  ;;  %v15369_v31 = vld [vmem:[#allocation10 + $0xab8] sm:$0xf0]  ;;  %v16519_v0 = vld [vmem:[#allocation10 + $0x1338] sm:$0xf]  ;;  %v21654_v38 = vpop.f32.mrf.mxu3  ;;  %v20291_v1 = vld [vmem:[#allocation10 + $0x1bac] sm:$0xf0] }
 0x35b   :  { %22404 = vst [vmem:[#allocation46_spill] sm:$0xff] %v21654_v38  ;;  %v14348_v28 = vor.u32 %v19476_v52, %v14345_v54  ;;  %v15241_v5 = vld [vmem:[#allocation10 + $0x9b8] sm:$0xf0]  ;;  %v17407_v34 = vld [vmem:[#allocation10 + $0x1a30] sm:$0xf] }
 0x35c   :  { %v15244_v52 = vor.u32 %v19700_v24, %v15241_v5  ;;  %v14089_v54 = vld [vmem:[#allocation10 + $0xb8] sm:$0xf0]  ;;  %v17279_v24 = vld [vmem:[#allocation10 + $0x1930] sm:$0xf]  ;;  %v16135_v38 = vld [vmem:[#allocation10 + $0x1038] sm:$0xf] }
 0x35d   :  { %9434 = vmatpush.bf16.msrb.mxu0 %v14732_v40  ;;  %9448 = vmatpush.bf16.msrb.mxu1 %v15756_v36  ;;  %v17663_v40 = vld [vmem:[#allocation10 + $0x1c30] sm:$0xf]  ;;  %v15500_v36 = vor.u32 %v19764_v55, %v15497_v44  ;;  %v15372_v55 = vor.u32 %v19732_v23, %v15369_v31  ;;  %v19444_v44 = vld [vmem:[#allocation10 + $0x13c] sm:$0xf] }
 0x35e   :  { %9406 = vmatpush.bf16.msra.mxu2 %v16776_v39  ;;  %9308 = vmatpush.bf16.msra.mxu3 %v17792_v29  ;;  %v17664_v37 = vor.u32 %v20323_v51, %v17663_v40  ;;  %v16391_v29 = vld [vmem:[#allocation10 + $0x1238] sm:$0xf]  ;;  %v14220_v51 = vor.u32 %v19444_v44, %v14217_v20  ;;  %v15113_v23 = vld [vmem:[#allocation10 + $0x8b8] sm:$0xf0]  ;;  %v20227_v5 = vld [vmem:[#allocation10 + $0x19ac] sm:$0xf0] }
 0x35f   :  { %v20004_v40 = vld [vmem:[#allocation10 + $0x12b4] sm:$0xf0] }
 0x360   :  { %v16392_v31 = vor.u32 %v20004_v40, %v16391_v29 }
 0x361   :  { %9435 = vmatpush.bf16.msrb.mxu0 %v14604_v2  ;;  %9449 = vmatpush.bf16.msrb.mxu1 %v15628_v19  ;;  %v20036_v2 = vld [vmem:[#allocation10 + $0x13b4] sm:$0xf0]  ;;  %v17535_v19 = vld [vmem:[#allocation10 + $0x1b30] sm:$0xf] }
 0x362   :  { %9407 = vmatpush.bf16.msra.mxu2 %v16648_v42  ;;  %v16520_v39 = vor.u32 %v20036_v2, %v16519_v0  ;;  %9309 = vmatpush.bf16.msra.mxu3 %v17664_v37  ;;  %v17536_v15 = vor.u32 %v20291_v1, %v17535_v19  ;;  %v16263_v42 = vld [vmem:[#allocation10 + $0x1138] sm:$0xf]  ;;  %v14991_v0 = vld [vmem:[#allocation10 + $0x740] sm:$0xf]  ;;  %v9133_v37 = vpop.f32.mrf.mxu2  ;;  %v17408_v19 = vor.u32 %v20259_v35, %v17407_v34  ;;  %v9035_v44 = vpop.f32.mrf.mxu3  ;;  %v17151_v34 = vld [vmem:[#allocation10 + $0x1830] sm:$0xf] }
 0x363   :  { %v19653_v2 = vld [vmem:[#allocation10 + $0x7bc] sm:$0xf0]  ;;  %v19972_v1 = vld [vmem:[#allocation10 + $0x11b4] sm:$0xf0]  ;;  %v21657_v20 = vadd.f32 %v9133_v37, %v21627_v17  ;;  %v17280_v17 = vor.u32 %v20227_v5, %v17279_v24  ;;  %v17921_v5 = vld [vmem:[#allocation10 + $0x1eb0] sm:$0xf0] }
 0x364   :  { %v14992_v40 = vor.u32 %v19653_v2, %v14991_v0  ;;  %v19940_v37 = vld [vmem:[#allocation10 + $0x10b4] sm:$0xf0]  ;;  %v19589_v0 = vld [vmem:[#allocation10 + $0x5bc] sm:$0xf0] }
 0x365   :  { %9436 = vmatpush.bf16.msrb.mxu0 %v14476_v4  ;;  %9450 = vmatpush.bf16.msrb.mxu1 %v15500_v36  ;;  %v19412_v4 = vld [vmem:[#allocation10 + $0x3c] sm:$0xf] }
 0x366   :  { %v19668_v36 = vld [vmem:[#allocation10 + $0x83c] sm:$0xf]  ;;  %9408 = vmatpush.bf16.msra.mxu2 %v16520_v39  ;;  %9310 = vmatpush.bf16.msra.mxu3 %v17536_v15  ;;  %v21660_v39 = vadd.f32 %v9035_v44, %v21611_v13  ;;  %v16264_v15 = vor.u32 %v19972_v1, %v16263_v42  ;;  %v14735_v42 = vld [vmem:[#allocation10 + $0x540] sm:$0xf]  ;;  %v21663_v44 = vpop.f32.mrf.mxu0 }
 0x367   :  { %v15116_v29 = vor.u32 %v19668_v36, %v15113_v23  ;;  %v17033_v13 = vld [vmem:[#allocation10 + $0x17b8] sm:$0xf0]  ;;  %v20403_v36 = vld [vmem:[#allocation10 + $0x1f34] sm:$0xf]  ;;  %v15759_v1 = vld [vmem:[#allocation10 + $0xd40] sm:$0xf]  ;;  %v14736_v24 = vor.u32 %v19589_v0, %v14735_v42 }
 0x368   :  { %22405 = vst [vmem:[#allocation47_spill] sm:$0xff] %v21660_v39  ;;  %v18049_v23 = vld [vmem:[#allocation10 + $0x1fb0] sm:$0xf0]  ;;  %v15503_v0 = vld [vmem:[#allocation10 + $0xb40] sm:$0xf] }
 0x369   :  { %9437 = vmatpush.bf16.msrb.mxu0 %v14348_v28  ;;  %9451 = vmatpush.bf16.msrb.mxu1 %v15372_v55  ;;  %v19909_v28 = vld [vmem:[#allocation10 + $0xfbc] sm:$0xf0]  ;;  %v14092_v55 = vor.u32 %v19412_v4, %v14089_v54  ;;  %v20195_v54 = vld [vmem:[#allocation10 + $0x18ac] sm:$0xf0]  ;;  %22406 = vst [vmem:[#allocation48_spill] sm:$0xff] %v21663_v44 }
 0x36a   :  { %9409 = vmatpush.bf16.msra.mxu2 %v16392_v31  ;;  %v16016_v35 = vor.u32 %v19909_v28, %v16015_v62  ;;  %9311 = vmatpush.bf16.msra.mxu3 %v17408_v19  ;;  %v19877_v4 = vld [vmem:[#allocation10 + $0xebc] sm:$0xf0]  ;;  %v16136_v62 = vor.u32 %v19940_v37, %v16135_v38  ;;  %v17152_v2 = vor.u32 %v20195_v54, %v17151_v34  ;;  %v20371_v38 = vld [vmem:[#allocation10 + $0x1e34] sm:$0xf]  ;;  %v22344_v54 = vperm.slane %v21597_v11, 3 }
 0x36b   :  { %v17036_v19 = vor.u32 %v20148_v48, %v17033_v13  ;;  %v19845_v28 = vld [vmem:[#allocation10 + $0xdbc] sm:$0xf0]  ;;  %v17924_v37 = vor.u32 %v20371_v38, %v17921_v5  ;;  %v17665_v38 = vld [vmem:[#allocation10 + $0x1cb0] sm:$0xf0]  ;;  %v19893_v39 = vld [vmem:[#allocation10 + $0xf44] sm:$0xf] }
 0x36c   :  { %v19557_v48 = vld [vmem:[#allocation10 + $0x4bc] sm:$0xf0]  ;;  %v14865_v44 = vld [vmem:[#allocation10 + $0x6c0] sm:$0xf0] }
 0x36d   :  { %9438 = vmatpush.bf16.msrb.mxu0 %v14220_v51  ;;  %9452 = vmatpush.bf16.msrb.mxu1 %v15244_v52  ;;  %v15887_v51 = vld [vmem:[#allocation10 + $0xe40] sm:$0xf]  ;;  %v14864_v52 = vor.u32 %v19621_v33, %v14863_v16  ;;  %v18052_v33 = vor.u32 %v20403_v36, %v18049_v23  ;;  %v20116_v16 = vld [vmem:[#allocation10 + $0x163c] sm:$0xf]  ;;  %v17793_v36 = vld [vmem:[#allocation10 + $0x1db0] sm:$0xf0] }
 0x36e   :  { %9410 = vmatpush.bf16.msra.mxu2 %v16264_v15  ;;  %v15888_v31 = vor.u32 %v19877_v4, %v15887_v51  ;;  %9312 = vmatpush.bf16.msra.mxu3 %v17280_v17  ;;  %v14607_v15 = vld [vmem:[#allocation10 + $0x440] sm:$0xf]  ;;  %v20084_v51 = vld [vmem:[#allocation10 + $0x153c] sm:$0xf]  ;;  %v20149_v11 = vld [vmem:[#allocation10 + $0x1744] sm:$0xf] }
 0x36f   :  { %v15631_v34 = vld [vmem:[#allocation10 + $0xc40] sm:$0xf]  ;;  %v16777_v4 = vld [vmem:[#allocation10 + $0x15b8] sm:$0xf0]  ;;  %v14608_v13 = vor.u32 %v19557_v48, %v14607_v15 }
 0x370   :  { %v19813_v17 = vld [vmem:[#allocation10 + $0xcbc] sm:$0xf0]  ;;  %v16780_v42 = vor.u32 %v20084_v51, %v16777_v4  ;;  %v21675_v51 = vpop.f32.mrf.mxu2 }
 0x371   :  { %9439 = vmatpush.bf16.msrb.mxu0 %v14092_v55  ;;  %9453 = vmatpush.bf16.msrb.mxu1 %v15116_v29  ;;  %v16905_v55 = vld [vmem:[#allocation10 + $0x16b8] sm:$0xf0]  ;;  %v21666_v29 = vpop.f32.mrf.mxu1  ;;  %v15632_v23 = vor.u32 %v19813_v17, %v15631_v34  ;;  %v14351_v15 = vld [vmem:[#allocation10 + $0x240] sm:$0xf]  ;;  %22408 = vst [vmem:[#allocation50_spill] sm:$0xff] %v21675_v51 }
 0x372   :  { %22407 = vst [vmem:[#allocation49_spill] sm:$0xff] %v21666_v29  ;;  %9411 = vmatpush.bf16.msra.mxu2 %v16136_v62  ;;  %9313 = vmatpush.bf16.msra.mxu3 %v17152_v2  ;;  %v14479_v62 = vld [vmem:[#allocation10 + $0x340] sm:$0xf]  ;;  %v19605_v29 = vld [vmem:[#allocation10 + $0x644] sm:$0xf] }
 0x373   :  { %v19781_v2 = vld [vmem:[#allocation10 + $0xbbc] sm:$0xf0] }
 0x374   :  { %9440 = vmatmul.bf16.vlgmr.msrb.gmra.mxu0 %v21401_v53  ;;  %9454 = vmatmul.bf16.vlgmr.msrb.gmra.mxu1 %v21403_v18  ;;  %v19493_v48 = vld [vmem:[#allocation10 + $0x2bc] sm:$0xf0] }
 0x375   :  { %9488 = vmatpush.bf16.msra.mxu0 %v14992_v40  ;;  %9502 = vmatpush.bf16.msra.mxu1 %v16016_v35  ;;  %v15760_v40 = vor.u32 %v19845_v28, %v15759_v1  ;;  %v16908_v35 = vor.u32 %v20116_v16, %v16905_v55  ;;  %v20052_v28 = vld [vmem:[#allocation10 + $0x143c] sm:$0xf]  ;;  %v15375_v17 = vld [vmem:[#allocation10 + $0xa40] sm:$0xf] }
 0x376   :  { %9460 = vmatpush.bf16.msrb.mxu2 %v17036_v19  ;;  %9362 = vmatpush.bf16.msrb.mxu3 %v18052_v33  ;;  %v9217_v19 = vpop.f32.mrf.mxu0  ;;  %v16649_v33 = vld [vmem:[#allocation10 + $0x14b8] sm:$0xf0]  ;;  %v17039_v51 = vld [vmem:[#allocation10 + $0x1740] sm:$0xf] }
 0x377   :  { %9412 = vmatmul.bf16.vlgmr.msra.gmra.mxu2 %v21413_v46  ;;  %9314 = vmatmul.bf16.vlgmr.msra.gmra.mxu3 %v21429_v25  ;;  %v9218_v16 = vadd.f32 %v9217_v19, %v22344_v54  ;;  %v16652_v34 = vor.u32 %v20052_v28, %v16649_v33  ;;  %v19461_v19 = vld [vmem:[#allocation10 + $0x1bc] sm:$0xf0]  ;;  %v17409_v54 = vld [vmem:[#allocation10 + $0x1ab0] sm:$0xf0] }
 0x378   :  { %v15247_v28 = vld [vmem:[#allocation10 + $0x940] sm:$0xf] }
 0x379   :  { %9489 = vmatpush.bf16.msra.mxu0 %v14864_v52  ;;  %9503 = vmatpush.bf16.msra.mxu1 %v15888_v31  ;;  %v20339_v52 = vld [vmem:[#allocation10 + $0x1d34] sm:$0xf]  ;;  %v19525_v31 = vld [vmem:[#allocation10 + $0x3bc] sm:$0xf0]  ;;  %v9231_v5 = vpop.f32.mrf.mxu1 }
 0x37a   :  { %9461 = vmatpush.bf16.msrb.mxu2 %v16908_v35  ;;  %9363 = vmatpush.bf16.msrb.mxu3 %v17924_v37  ;;  %v17796_v1 = vor.u32 %v20339_v52, %v17793_v36  ;;  %v14480_v55 = vor.u32 %v19525_v31, %v14479_v62  ;;  %v21673_v35 = vadd.f32 %v9231_v5, %v9218_v16  ;;  %v19749_v37 = vld [vmem:[#allocation10 + $0xabc] sm:$0xf0]  ;;  %v20020_v52 = vld [vmem:[#allocation10 + $0x133c] sm:$0xf]  ;;  %v21677_v36 = vpop.f32.mrf.mxu3  ;;  %v17537_v31 = vld [vmem:[#allocation10 + $0x1bb0] sm:$0xf0] }
 0x37b   :  { %22409 = vst [vmem:[#allocation51_spill] sm:$0xff] %v21677_v36  ;;  %v14352_v62 = vor.u32 %v19493_v48, %v14351_v15  ;;  %v19717_v33 = vld [vmem:[#allocation10 + $0x9bc] sm:$0xf0]  ;;  %v20243_v5 = vld [vmem:[#allocation10 + $0x1a34] sm:$0xf] }
 0x37c   :  { %v15248_v15 = vor.u32 %v19717_v33, %v15247_v28  ;;  %v19429_v48 = vld [vmem:[#allocation10 + $0xbc] sm:$0xf0]  ;;  %v20211_v28 = vld [vmem:[#allocation10 + $0x1934] sm:$0xf]  ;;  %v19924_v36 = vld [vmem:[#allocation10 + $0x103c] sm:$0xf] }
 0x37d   :  { %9490 = vmatpush.bf16.msra.mxu0 %v14736_v24  ;;  %9504 = vmatpush.bf16.msra.mxu1 %v15760_v40  ;;  %v20307_v24 = vld [vmem:[#allocation10 + $0x1c34] sm:$0xf]  ;;  %v15504_v40 = vor.u32 %v19781_v2, %v15503_v0  ;;  %v15376_v0 = vor.u32 %v19749_v37, %v15375_v17  ;;  %v14223_v2 = vld [vmem:[#allocation10 + $0x140] sm:$0xf] }
 0x37e   :  { %9462 = vmatpush.bf16.msrb.mxu2 %v16780_v42  ;;  %9364 = vmatpush.bf16.msrb.mxu3 %v17796_v1  ;;  %v17668_v4 = vor.u32 %v20307_v24, %v17665_v38  ;;  %v19988_v1 = vld [vmem:[#allocation10 + $0x123c] sm:$0xf]  ;;  %v14224_v38 = vor.u32 %v19461_v19, %v14223_v2  ;;  %v19685_v17 = vld [vmem:[#allocation10 + $0x8bc] sm:$0xf0]  ;;  %v17281_v33 = vld [vmem:[#allocation10 + $0x19b0] sm:$0xf0] }
 0x37f   :  { %v16393_v24 = vld [vmem:[#allocation10 + $0x12b8] sm:$0xf0] }
 0x380   :  { %v16396_v37 = vor.u32 %v19988_v1, %v16393_v24 }
 0x381   :  { %9491 = vmatpush.bf16.msra.mxu0 %v14608_v13  ;;  %9505 = vmatpush.bf16.msra.mxu1 %v15632_v23  ;;  %v16521_v13 = vld [vmem:[#allocation10 + $0x13b8] sm:$0xf0]  ;;  %v20275_v23 = vld [vmem:[#allocation10 + $0x1b34] sm:$0xf] }
 0x382   :  { %9463 = vmatpush.bf16.msrb.mxu2 %v16652_v34  ;;  %v16524_v42 = vor.u32 %v20020_v52, %v16521_v13  ;;  %9365 = vmatpush.bf16.msrb.mxu3 %v17668_v4  ;;  %v17540_v16 = vor.u32 %v20275_v23, %v17537_v31  ;;  %v19956_v34 = vld [vmem:[#allocation10 + $0x113c] sm:$0xf]  ;;  %v19637_v52 = vld [vmem:[#allocation10 + $0x744] sm:$0xf]  ;;  %v9189_v4 = vpop.f32.mrf.mxu2  ;;  %v17412_v23 = vor.u32 %v20243_v5, %v17409_v54  ;;  %v9091_v2 = vpop.f32.mrf.mxu3  ;;  %v20179_v5 = vld [vmem:[#allocation10 + $0x1834] sm:$0xf] }
 0x383   :  { %v14993_v13 = vld [vmem:[#allocation10 + $0x7c0] sm:$0xf0]  ;;  %v16265_v31 = vld [vmem:[#allocation10 + $0x11b8] sm:$0xf0]  ;;  %v21680_v19 = vadd.f32 %v9189_v4, %v21650_v41  ;;  %v17284_v41 = vor.u32 %v20211_v28, %v17281_v33  ;;  %v20388_v33 = vld [vmem:[#allocation10 + $0x1eb4] sm:$0xf0] }
 0x384   :  { %v14996_v24 = vor.u32 %v19637_v52, %v14993_v13  ;;  %v16137_v4 = vld [vmem:[#allocation10 + $0x10b8] sm:$0xf0]  ;;  %v14737_v52 = vld [vmem:[#allocation10 + $0x5c0] sm:$0xf0] }
 0x385   :  { %9492 = vmatpush.bf16.msra.mxu0 %v14480_v55  ;;  %9506 = vmatpush.bf16.msra.mxu1 %v15504_v40  ;;  %v14095_v55 = vld [vmem:[#allocation10 + $0x40] sm:$0xf] }
 0x386   :  { %v15119_v40 = vld [vmem:[#allocation10 + $0x840] sm:$0xf]  ;;  %9464 = vmatpush.bf16.msrb.mxu2 %v16524_v42  ;;  %9366 = vmatpush.bf16.msrb.mxu3 %v17540_v16  ;;  %v21683_v42 = vadd.f32 %v9091_v2, %v21634_v61  ;;  %v16268_v16 = vor.u32 %v19956_v34, %v16265_v31  ;;  %v19573_v34 = vld [vmem:[#allocation10 + $0x544] sm:$0xf]  ;;  %v21686_v2 = vpop.f32.mrf.mxu0 }
 0x387   :  { %v15120_v1 = vor.u32 %v19685_v17, %v15119_v40  ;;  %v20165_v61 = vld [vmem:[#allocation10 + $0x17bc] sm:$0xf0]  ;;  %v18055_v40 = vld [vmem:[#allocation10 + $0x1f38] sm:$0xf]  ;;  %v19829_v31 = vld [vmem:[#allocation10 + $0xd44] sm:$0xf]  ;;  %v14740_v28 = vor.u32 %v19573_v34, %v14737_v52 }
 0x388   :  { %22410 = vst [vmem:[#allocation52_spill] sm:$0xff] %v21683_v42  ;;  %v20420_v17 = vld [vmem:[#allocation10 + $0x1fb4] sm:$0xf0]  ;;  %v14481_v34 = vld [vmem:[#allocation10 + $0x3c0] sm:$0xf0] }
 0x389   :  { %9493 = vmatpush.bf16.msra.mxu0 %v14352_v62  ;;  %9507 = vmatpush.bf16.msra.mxu1 %v15376_v0  ;;  %v16017_v62 = vld [vmem:[#allocation10 + $0xfc0] sm:$0xf0]  ;;  %v14096_v0 = vor.u32 %v19429_v48, %v14095_v55  ;;  %v17153_v48 = vld [vmem:[#allocation10 + $0x18b0] sm:$0xf0]  ;;  %22411 = vst [vmem:[#allocation53_spill] sm:$0xff] %v21686_v2 }
 0x38a   :  { %9465 = vmatpush.bf16.msrb.mxu2 %v16396_v37  ;;  %v16020_v54 = vor.u32 %v19893_v39, %v16017_v62  ;;  %9367 = vmatpush.bf16.msrb.mxu3 %v17412_v23  ;;  %v15889_v55 = vld [vmem:[#allocation10 + $0xec0] sm:$0xf0]  ;;  %v16140_v39 = vor.u32 %v19924_v36, %v16137_v4  ;;  %v17156_v13 = vor.u32 %v20179_v5, %v17153_v48  ;;  %v17927_v36 = vld [vmem:[#allocation10 + $0x1e38] sm:$0xf]  ;;  %v21692_v48 = vld [vmem:[#allocation11 + $0x8] sm:$0xff] }
 0x38b   :  { %v17040_v23 = vor.u32 %v20165_v61, %v17039_v51  ;;  %v15761_v62 = vld [vmem:[#allocation10 + $0xdc0] sm:$0xf0]  ;;  %v17928_v4 = vor.u32 %v20388_v33, %v17927_v36  ;;  %22413 = vst [vmem:[#allocation55_spill] sm:$0xff] %v21692_v48  ;;  %v22345_v61 = vperm.slane %v21692_v48, 4  ;;  %v17671_v36 = vld [vmem:[#allocation10 + $0x1c38] sm:$0xf] }
 0x38c   :  { %v14609_v51 = vld [vmem:[#allocation10 + $0x4c0] sm:$0xf0]  ;;  %v20324_v33 = vld [vmem:[#allocation10 + $0x1cb4] sm:$0xf0]  ;;  %v16023_v2 = vld [vmem:[#allocation10 + $0xf48] sm:$0xf] }
 0x38d   :  { %9494 = vmatpush.bf16.msra.mxu0 %v14224_v38  ;;  %9508 = vmatpush.bf16.msra.mxu1 %v15248_v15  ;;  %v19861_v38 = vld [vmem:[#allocation10 + $0xe44] sm:$0xf]  ;;  %v14868_v15 = vor.u32 %v19605_v29, %v14865_v44  ;;  %v18056_v44 = vor.u32 %v20420_v17, %v18055_v40  ;;  %v16911_v29 = vld [vmem:[#allocation10 + $0x1640] sm:$0xf]  ;;  %v17799_v40 = vld [vmem:[#allocation10 + $0x1d38] sm:$0xf] }
 0x38e   :  { %9466 = vmatpush.bf16.msrb.mxu2 %v16268_v16  ;;  %v15892_v37 = vor.u32 %v19861_v38, %v15889_v55  ;;  %9368 = vmatpush.bf16.msrb.mxu3 %v17284_v41  ;;  %v19541_v16 = vld [vmem:[#allocation10 + $0x444] sm:$0xf]  ;;  %v16783_v38 = vld [vmem:[#allocation10 + $0x1540] sm:$0xf]  ;;  %v20356_v17 = vld [vmem:[#allocation10 + $0x1db4] sm:$0xf0] }
 0x38f   :  { %v19797_v5 = vld [vmem:[#allocation10 + $0xc44] sm:$0xf]  ;;  %v20101_v55 = vld [vmem:[#allocation10 + $0x15bc] sm:$0xf0]  ;;  %v14871_v42 = vld [vmem:[#allocation10 + $0x648] sm:$0xf] }
 0x390   :  { %v15633_v41 = vld [vmem:[#allocation10 + $0xcc0] sm:$0xf0]  ;;  %v16784_v52 = vor.u32 %v20101_v55, %v16783_v38  ;;  %v21700_v55 = vpop.f32.mrf.mxu2 }
 0x391   :  { %9495 = vmatpush.bf16.msra.mxu0 %v14096_v0  ;;  %9509 = vmatpush.bf16.msra.mxu1 %v15120_v1  ;;  %v20133_v0 = vld [vmem:[#allocation10 + $0x16bc] sm:$0xf0]  ;;  %v21689_v1 = vpop.f32.mrf.mxu1  ;;  %v15377_v38 = vld [vmem:[#allocation10 + $0xac0] sm:$0xf0]  ;;  %22414 = vst [vmem:[#allocation56_spill] sm:$0xff] %v21700_v55 }
 0x392   :  { %22412 = vst [vmem:[#allocation54_spill] sm:$0xff] %v21689_v1  ;;  %9467 = vmatpush.bf16.msrb.mxu2 %v16140_v39  ;;  %9369 = vmatpush.bf16.msrb.mxu3 %v17156_v13  ;;  %v15636_v39 = vor.u32 %v19797_v5, %v15633_v41  ;;  %v19765_v13 = vld [vmem:[#allocation10 + $0xb44] sm:$0xf]  ;;  %v20260_v1 = vld [vmem:[#allocation10 + $0x1ab4] sm:$0xf0] }
 0x393   :  { %v16143_v55 = vld [vmem:[#allocation10 + $0x1040] sm:$0xf] }
 0x394   :  { %9496 = vmatmul.bf16.vlgmr.msra.gmra.mxu0 %v21401_v53  ;;  %9510 = vmatmul.bf16.vlgmr.msra.gmra.mxu1 %v21403_v18 }
 0x395   :  { %9544 = vmatpush.bf16.msrb.mxu0 %v14996_v24  ;;  %9558 = vmatpush.bf16.msrb.mxu1 %v16020_v54  ;;  %v15764_v24 = vor.u32 %v19829_v31, %v15761_v62  ;;  %v16912_v54 = vor.u32 %v20133_v0, %v16911_v29  ;;  %v9273_v31 = vpop.f32.mrf.mxu0  ;;  %v17800_v62 = vor.u32 %v20356_v17, %v17799_v40  ;;  %v20069_v29 = vld [vmem:[#allocation10 + $0x14bc] sm:$0xf0] }
 0x396   :  { %9516 = vmatpush.bf16.msra.mxu2 %v17040_v23  ;;  %9418 = vmatpush.bf16.msra.mxu3 %v18056_v44  ;;  %v15505_v23 = vld [vmem:[#allocation10 + $0xbc0] sm:$0xf0]  ;;  %v16655_v44 = vld [vmem:[#allocation10 + $0x1440] sm:$0xf]  ;;  %v9274_v0 = vadd.f32 %v9273_v31, %v22345_v61  ;;  %v17672_v40 = vor.u32 %v20324_v33, %v17671_v36  ;;  %v17415_v61 = vld [vmem:[#allocation10 + $0x1a38] sm:$0xf] }
 0x397   :  { %9468 = vmatmul.bf16.vlgmr.msrb.gmra.mxu2 %v21413_v46  ;;  %9370 = vmatmul.bf16.vlgmr.msrb.gmra.mxu3 %v21429_v25  ;;  %v16656_v41 = vor.u32 %v20069_v29, %v16655_v44  ;;  %v16527_v17 = vld [vmem:[#allocation10 + $0x1340] sm:$0xf]  ;;  %v19445_v31 = vld [vmem:[#allocation10 + $0x144] sm:$0xf] }
 0x398   :  { %v19701_v44 = vld [vmem:[#allocation10 + $0x944] sm:$0xf]  ;;  %v20005_v36 = vld [vmem:[#allocation10 + $0x12bc] sm:$0xf0] }
 0x399   :  { %9545 = vmatpush.bf16.msrb.mxu0 %v14868_v15  ;;  %9559 = vmatpush.bf16.msrb.mxu1 %v15892_v37  ;;  %v14612_v15 = vor.u32 %v19541_v16, %v14609_v51  ;;  %v19509_v37 = vld [vmem:[#allocation10 + $0x344] sm:$0xf]  ;;  %v15508_v16 = vor.u32 %v19765_v13, %v15505_v23  ;;  %v20292_v13 = vld [vmem:[#allocation10 + $0x1bb4] sm:$0xf0] }
 0x39a   :  { %9517 = vmatpush.bf16.msra.mxu2 %v16912_v54  ;;  %9419 = vmatpush.bf16.msra.mxu3 %v17928_v4  ;;  %v19477_v51 = vld [vmem:[#allocation10 + $0x244] sm:$0xf] }
 0x39b   :  { %v14353_v54 = vld [vmem:[#allocation10 + $0x2c0] sm:$0xf0] }
 0x39c   :  { %v19733_v4 = vld [vmem:[#allocation10 + $0xa44] sm:$0xf] }
 0x39d   :  { %9546 = vmatpush.bf16.msrb.mxu0 %v14740_v28  ;;  %9560 = vmatpush.bf16.msrb.mxu1 %v15764_v24  ;;  %v14484_v28 = vor.u32 %v19509_v37, %v14481_v34  ;;  %v9287_v24 = vpop.f32.mrf.mxu1  ;;  %v21702_v37 = vpop.f32.mrf.mxu3  ;;  %v14356_v34 = vor.u32 %v19477_v51, %v14353_v54  ;;  %v15380_v23 = vor.u32 %v19733_v4, %v15377_v38  ;;  %v15249_v29 = vld [vmem:[#allocation10 + $0x9c0] sm:$0xf0] }
 0x39e   :  { %v21698_v5 = vadd.f32 %v9287_v24, %v9274_v0  ;;  %9518 = vmatpush.bf16.msra.mxu2 %v16784_v52  ;;  %9420 = vmatpush.bf16.msra.mxu3 %v17800_v62  ;;  %22415 = vst [vmem:[#allocation57_spill] sm:$0xff] %v21702_v37  ;;  %v14225_v0 = vld [vmem:[#allocation10 + $0x1c0] sm:$0xf0]  ;;  %v16399_v62 = vld [vmem:[#allocation10 + $0x1240] sm:$0xf]  ;;  %v15252_v51 = vor.u32 %v19701_v44, %v15249_v29 }
 0x39f   :  { %v14228_v33 = vor.u32 %v19445_v31, %v14225_v0  ;;  %v14097_v54 = vld [vmem:[#allocation10 + $0xc0] sm:$0xf0]  ;;  %v16400_v38 = vor.u32 %v20005_v36, %v16399_v62  ;;  %v17287_v44 = vld [vmem:[#allocation10 + $0x1938] sm:$0xf]  ;;  %v19622_v37 = vld [vmem:[#allocation10 + $0x6c4] sm:$0xf0] }
 0x3a0   :  { %v15121_v4 = vld [vmem:[#allocation10 + $0x8c0] sm:$0xf0]  ;;  %v20228_v29 = vld [vmem:[#allocation10 + $0x19b4] sm:$0xf0] }
 0x3a1   :  { %9547 = vmatpush.bf16.msrb.mxu0 %v14612_v15  ;;  %9561 = vmatpush.bf16.msrb.mxu1 %v15636_v39  ;;  %v20037_v15 = vld [vmem:[#allocation10 + $0x13bc] sm:$0xf0]  ;;  %v17543_v39 = vld [vmem:[#allocation10 + $0x1b38] sm:$0xf] }
 0x3a2   :  { %9519 = vmatpush.bf16.msra.mxu2 %v16656_v41  ;;  %v16528_v52 = vor.u32 %v20037_v15, %v16527_v17  ;;  %9421 = vmatpush.bf16.msra.mxu3 %v17672_v40  ;;  %v17544_v24 = vor.u32 %v20292_v13, %v17543_v39  ;;  %v16271_v41 = vld [vmem:[#allocation10 + $0x1140] sm:$0xf]  ;;  %v14999_v17 = vld [vmem:[#allocation10 + $0x748] sm:$0xf]  ;;  %v9245_v40 = vpop.f32.mrf.mxu2  ;;  %v17416_v39 = vor.u32 %v20260_v1, %v17415_v61  ;;  %v17159_v61 = vld [vmem:[#allocation10 + $0x1838] sm:$0xf] }
 0x3a3   :  { %v19654_v15 = vld [vmem:[#allocation10 + $0x7c4] sm:$0xf0]  ;;  %v19973_v13 = vld [vmem:[#allocation10 + $0x11bc] sm:$0xf0]  ;;  %v21705_v0 = vadd.f32 %v9245_v40, %v21673_v35  ;;  %v17288_v35 = vor.u32 %v20228_v29, %v17287_v44  ;;  %v17929_v29 = vld [vmem:[#allocation10 + $0x1eb8] sm:$0xf0] }
 0x3a4   :  { %v15000_v36 = vor.u32 %v19654_v15, %v14999_v17  ;;  %v19941_v40 = vld [vmem:[#allocation10 + $0x10bc] sm:$0xf0]  ;;  %v19590_v17 = vld [vmem:[#allocation10 + $0x5c4] sm:$0xf0] }
 0x3a5   :  { %9548 = vmatpush.bf16.msrb.mxu0 %v14484_v28  ;;  %9562 = vmatpush.bf16.msrb.mxu1 %v15508_v16  ;;  %v19413_v28 = vld [vmem:[#allocation10 + $0x44] sm:$0xf]  ;;  %v9147_v31 = vpop.f32.mrf.mxu3 }
 0x3a6   :  { %v19669_v16 = vld [vmem:[#allocation10 + $0x844] sm:$0xf]  ;;  %9520 = vmatpush.bf16.msra.mxu2 %v16528_v52  ;;  %9422 = vmatpush.bf16.msra.mxu3 %v17544_v24  ;;  %v21708_v52 = vadd.f32 %v9147_v31, %v21657_v20  ;;  %v16272_v24 = vor.u32 %v19973_v13, %v16271_v41  ;;  %v14743_v41 = vld [vmem:[#allocation10 + $0x548] sm:$0xf]  ;;  %v21711_v31 = vpop.f32.mrf.mxu0 }
 0x3a7   :  { %v15124_v62 = vor.u32 %v19669_v16, %v15121_v4  ;;  %v17041_v20 = vld [vmem:[#allocation10 + $0x17c0] sm:$0xf0]  ;;  %v20404_v16 = vld [vmem:[#allocation10 + $0x1f3c] sm:$0xf]  ;;  %v15767_v13 = vld [vmem:[#allocation10 + $0xd48] sm:$0xf]  ;;  %v14744_v44 = vor.u32 %v19590_v17, %v14743_v41 }
 0x3a8   :  { %22416 = vst [vmem:[#allocation58_spill] sm:$0xff] %v21708_v52  ;;  %v18057_v4 = vld [vmem:[#allocation10 + $0x1fb8] sm:$0xf0]  ;;  %v15511_v17 = vld [vmem:[#allocation10 + $0xb48] sm:$0xf] }
 0x3a9   :  { %9549 = vmatpush.bf16.msrb.mxu0 %v14356_v34  ;;  %9563 = vmatpush.bf16.msrb.mxu1 %v15380_v23  ;;  %v19910_v34 = vld [vmem:[#allocation10 + $0xfc4] sm:$0xf0]  ;;  %v14100_v23 = vor.u32 %v19413_v28, %v14097_v54  ;;  %v20196_v54 = vld [vmem:[#allocation10 + $0x18b4] sm:$0xf0]  ;;  %22417 = vst [vmem:[#allocation59_spill] sm:$0xff] %v21711_v31 }
 0x3aa   :  { %9521 = vmatpush.bf16.msra.mxu2 %v16400_v38  ;;  %v16024_v1 = vor.u32 %v19910_v34, %v16023_v2  ;;  %9423 = vmatpush.bf16.msra.mxu3 %v17416_v39  ;;  %v19878_v28 = vld [vmem:[#allocation10 + $0xec4] sm:$0xf0]  ;;  %v16144_v2 = vor.u32 %v19941_v40, %v16143_v55  ;;  %v17160_v15 = vor.u32 %v20196_v54, %v17159_v61  ;;  %v20372_v55 = vld [vmem:[#allocation10 + $0x1e3c] sm:$0xf]  ;;  %v22348_v54 = vperm.slane %v21692_v48, 5 }
 0x3ab   :  { %v17044_v39 = vor.u32 %v20149_v11, %v17041_v20  ;;  %v19846_v34 = vld [vmem:[#allocation10 + $0xdc4] sm:$0xf0]  ;;  %v17932_v40 = vor.u32 %v20372_v55, %v17929_v29  ;;  %v17673_v55 = vld [vmem:[#allocation10 + $0x1cb8] sm:$0xf0]  ;;  %v19606_v31 = vld [vmem:[#allocation10 + $0x64c] sm:$0xf] }
 0x3ac   :  { %v19558_v11 = vld [vmem:[#allocation10 + $0x4c4] sm:$0xf0]  ;;  %v14873_v52 = vld [vmem:[#allocation10 + $0x6c8] sm:$0xf0] }
 0x3ad   :  { %9550 = vmatpush.bf16.msrb.mxu0 %v14228_v33  ;;  %9564 = vmatpush.bf16.msrb.mxu1 %v15252_v51  ;;  %v15895_v33 = vld [vmem:[#allocation10 + $0xe48] sm:$0xf]  ;;  %v14872_v51 = vor.u32 %v19622_v37, %v14871_v42  ;;  %v18060_v42 = vor.u32 %v20404_v16, %v18057_v4  ;;  %v20117_v37 = vld [vmem:[#allocation10 + $0x1644] sm:$0xf]  ;;  %v17801_v16 = vld [vmem:[#allocation10 + $0x1db8] sm:$0xf0] }
 0x3ae   :  { %9522 = vmatpush.bf16.msra.mxu2 %v16272_v24  ;;  %v15896_v38 = vor.u32 %v19878_v28, %v15895_v33  ;;  %9424 = vmatpush.bf16.msra.mxu3 %v17288_v35  ;;  %v14615_v24 = vld [vmem:[#allocation10 + $0x448] sm:$0xf]  ;;  %v20085_v33 = vld [vmem:[#allocation10 + $0x1544] sm:$0xf] }
 0x3af   :  { %v15639_v61 = vld [vmem:[#allocation10 + $0xc48] sm:$0xf]  ;;  %v16785_v28 = vld [vmem:[#allocation10 + $0x15c0] sm:$0xf0]  ;;  %v14616_v20 = vor.u32 %v19558_v11, %v14615_v24 }
 0x3b0   :  { %v19814_v35 = vld [vmem:[#allocation10 + $0xcc4] sm:$0xf0]  ;;  %v16788_v41 = vor.u32 %v20085_v33, %v16785_v28  ;;  %v21723_v33 = vpop.f32.mrf.mxu2 }
 0x3b1   :  { %9551 = vmatpush.bf16.msrb.mxu0 %v14100_v23  ;;  %9565 = vmatpush.bf16.msrb.mxu1 %v15124_v62  ;;  %v16913_v23 = vld [vmem:[#allocation10 + $0x16c0] sm:$0xf0]  ;;  %v21714_v62 = vpop.f32.mrf.mxu1  ;;  %v15640_v4 = vor.u32 %v19814_v35, %v15639_v61  ;;  %v14359_v24 = vld [vmem:[#allocation10 + $0x248] sm:$0xf]  ;;  %22419 = vst [vmem:[#allocation61_spill] sm:$0xff] %v21723_v33 }
 0x3b2   :  { %22418 = vst [vmem:[#allocation60_spill] sm:$0xff] %v21714_v62  ;;  %9523 = vmatpush.bf16.msra.mxu2 %v16144_v2  ;;  %9425 = vmatpush.bf16.msra.mxu3 %v17160_v15  ;;  %v14487_v2 = vld [vmem:[#allocation10 + $0x348] sm:$0xf]  ;;  %v19894_v33 = vld [vmem:[#allocation10 + $0xf4c] sm:$0xf] }
 0x3b3   :  { %v19782_v15 = vld [vmem:[#allocation10 + $0xbc4] sm:$0xf0]  ;;  %v19925_v62 = vld [vmem:[#allocation10 + $0x1044] sm:$0xf] }
 0x3b4   :  { %9552 = vmatmul.bf16.vlgmr.msrb.gmra.mxu0 %v21401_v53  ;;  %9566 = vmatmul.bf16.vlgmr.msrb.gmra.mxu1 %v21403_v18  ;;  %v19494_v11 = vld [vmem:[#allocation10 + $0x2c4] sm:$0xf0] }
 0x3b5   :  { %9600 = vmatpush.bf16.msra.mxu0 %v15000_v36  ;;  %9614 = vmatpush.bf16.msra.mxu1 %v16024_v1  ;;  %v15768_v36 = vor.u32 %v19846_v34, %v15767_v13  ;;  %v16916_v1 = vor.u32 %v20117_v37, %v16913_v23  ;;  %v20053_v34 = vld [vmem:[#allocation10 + $0x1444] sm:$0xf]  ;;  %v15383_v35 = vld [vmem:[#allocation10 + $0xa48] sm:$0xf] }
 0x3b6   :  { %9572 = vmatpush.bf16.msrb.mxu2 %v17044_v39  ;;  %9474 = vmatpush.bf16.msrb.mxu3 %v18060_v42  ;;  %v9329_v39 = vpop.f32.mrf.mxu0  ;;  %v16657_v42 = vld [vmem:[#allocation10 + $0x14c0] sm:$0xf0] }
 0x3b7   :  { %9524 = vmatmul.bf16.vlgmr.msra.gmra.mxu2 %v21413_v46  ;;  %9426 = vmatmul.bf16.vlgmr.msra.gmra.mxu3 %v21429_v25  ;;  %v9330_v37 = vadd.f32 %v9329_v39, %v22348_v54  ;;  %v16660_v61 = vor.u32 %v20053_v34, %v16657_v42  ;;  %v19462_v39 = vld [vmem:[#allocation10 + $0x1c4] sm:$0xf0]  ;;  %v17417_v54 = vld [vmem:[#allocation10 + $0x1ab8] sm:$0xf0] }
 0x3b8   :  { %v15255_v34 = vld [vmem:[#allocation10 + $0x948] sm:$0xf] }
 0x3b9   :  { %9601 = vmatpush.bf16.msra.mxu0 %v14872_v51  ;;  %9615 = vmatpush.bf16.msra.mxu1 %v15896_v38  ;;  %v20340_v51 = vld [vmem:[#allocation10 + $0x1d3c] sm:$0xf]  ;;  %v19526_v38 = vld [vmem:[#allocation10 + $0x3c4] sm:$0xf0]  ;;  %v9343_v29 = vpop.f32.mrf.mxu1 }
 0x3ba   :  { %9573 = vmatpush.bf16.msrb.mxu2 %v16916_v1  ;;  %9475 = vmatpush.bf16.msrb.mxu3 %v17932_v40  ;;  %v17804_v13 = vor.u32 %v20340_v51, %v17801_v16  ;;  %v14488_v23 = vor.u32 %v19526_v38, %v14487_v2  ;;  %v21721_v1 = vadd.f32 %v9343_v29, %v9330_v37  ;;  %v19750_v40 = vld [vmem:[#allocation10 + $0xac4] sm:$0xf0]  ;;  %v20021_v51 = vld [vmem:[#allocation10 + $0x1344] sm:$0xf]  ;;  %v21725_v16 = vpop.f32.mrf.mxu3  ;;  %v17545_v38 = vld [vmem:[#allocation10 + $0x1bb8] sm:$0xf0] }
 0x3bb   :  { %22420 = vst [vmem:[#allocation62_spill] sm:$0xff] %v21725_v16  ;;  %v14360_v2 = vor.u32 %v19494_v11, %v14359_v24  ;;  %v19718_v42 = vld [vmem:[#allocation10 + $0x9c4] sm:$0xf0]  ;;  %v20244_v29 = vld [vmem:[#allocation10 + $0x1a3c] sm:$0xf] }
 0x3bc   :  { %v15256_v24 = vor.u32 %v19718_v42, %v15255_v34  ;;  %v19430_v11 = vld [vmem:[#allocation10 + $0xc4] sm:$0xf0]  ;;  %v20212_v34 = vld [vmem:[#allocation10 + $0x193c] sm:$0xf] }
 0x3bd   :  { %9602 = vmatpush.bf16.msra.mxu0 %v14744_v44  ;;  %9616 = vmatpush.bf16.msra.mxu1 %v15768_v36  ;;  %v20308_v44 = vld [vmem:[#allocation10 + $0x1c3c] sm:$0xf]  ;;  %v15512_v36 = vor.u32 %v19782_v15, %v15511_v17  ;;  %v15384_v17 = vor.u32 %v19750_v40, %v15383_v35  ;;  %v14231_v15 = vld [vmem:[#allocation10 + $0x148] sm:$0xf] }
 0x3be   :  { %9574 = vmatpush.bf16.msrb.mxu2 %v16788_v41  ;;  %9476 = vmatpush.bf16.msrb.mxu3 %v17804_v13  ;;  %v17676_v28 = vor.u32 %v20308_v44, %v17673_v55  ;;  %v19989_v13 = vld [vmem:[#allocation10 + $0x1244] sm:$0xf]  ;;  %v14232_v55 = vor.u32 %v19462_v39, %v14231_v15  ;;  %v19686_v35 = vld [vmem:[#allocation10 + $0x8c4] sm:$0xf0]  ;;  %v17289_v42 = vld [vmem:[#allocation10 + $0x19b8] sm:$0xf0] }
 0x3bf   :  { %v16401_v44 = vld [vmem:[#allocation10 + $0x12c0] sm:$0xf0]  ;;  %v17047_v16 = vld [vmem:[#allocation10 + $0x1748] sm:$0xf] }
 0x3c0   :  { %v16404_v40 = vor.u32 %v19989_v13, %v16401_v44 }
 0x3c1   :  { %9603 = vmatpush.bf16.msra.mxu0 %v14616_v20  ;;  %9617 = vmatpush.bf16.msra.mxu1 %v15640_v4  ;;  %v16529_v20 = vld [vmem:[#allocation10 + $0x13c0] sm:$0xf0]  ;;  %v20276_v4 = vld [vmem:[#allocation10 + $0x1b3c] sm:$0xf] }
 0x3c2   :  { %9575 = vmatpush.bf16.msrb.mxu2 %v16660_v61  ;;  %v16532_v41 = vor.u32 %v20021_v51, %v16529_v20  ;;  %9477 = vmatpush.bf16.msrb.mxu3 %v17676_v28  ;;  %v17548_v37 = vor.u32 %v20276_v4, %v17545_v38  ;;  %v19957_v61 = vld [vmem:[#allocation10 + $0x1144] sm:$0xf]  ;;  %v19638_v51 = vld [vmem:[#allocation10 + $0x74c] sm:$0xf]  ;;  %v9301_v28 = vpop.f32.mrf.mxu2  ;;  %v17420_v4 = vor.u32 %v20244_v29, %v17417_v54  ;;  %v9203_v15 = vpop.f32.mrf.mxu3  ;;  %v20180_v29 = vld [vmem:[#allocation10 + $0x183c] sm:$0xf] }
 0x3c3   :  { %v15001_v20 = vld [vmem:[#allocation10 + $0x7c8] sm:$0xf0]  ;;  %v16273_v38 = vld [vmem:[#allocation10 + $0x11c0] sm:$0xf0]  ;;  %v21728_v39 = vadd.f32 %v9301_v28, %v21698_v5  ;;  %v17292_v5 = vor.u32 %v20212_v34, %v17289_v42  ;;  %v20389_v42 = vld [vmem:[#allocation10 + $0x1ebc] sm:$0xf0] }
 0x3c4   :  { %v15004_v44 = vor.u32 %v19638_v51, %v15001_v20  ;;  %v16145_v28 = vld [vmem:[#allocation10 + $0x10c0] sm:$0xf0]  ;;  %v14745_v51 = vld [vmem:[#allocation10 + $0x5c8] sm:$0xf0] }
 0x3c5   :  { %9604 = vmatpush.bf16.msra.mxu0 %v14488_v23  ;;  %9618 = vmatpush.bf16.msra.mxu1 %v15512_v36  ;;  %v14103_v23 = vld [vmem:[#allocation10 + $0x48] sm:$0xf] }
 0x3c6   :  { %v15127_v36 = vld [vmem:[#allocation10 + $0x848] sm:$0xf]  ;;  %9576 = vmatpush.bf16.msrb.mxu2 %v16532_v41  ;;  %9478 = vmatpush.bf16.msrb.mxu3 %v17548_v37  ;;  %v21731_v41 = vadd.f32 %v9203_v15, %v21680_v19  ;;  %v16276_v37 = vor.u32 %v19957_v61, %v16273_v38  ;;  %v19574_v61 = vld [vmem:[#allocation10 + $0x54c] sm:$0xf]  ;;  %v21734_v15 = vpop.f32.mrf.mxu0 }
 0x3c7   :  { %v15128_v13 = vor.u32 %v19686_v35, %v15127_v36  ;;  %v20166_v19 = vld [vmem:[#allocation10 + $0x17c4] sm:$0xf0]  ;;  %v18063_v36 = vld [vmem:[#allocation10 + $0x1f40] sm:$0xf]  ;;  %v19830_v38 = vld [vmem:[#allocation10 + $0xd4c] sm:$0xf]  ;;  %v14748_v34 = vor.u32 %v19574_v61, %v14745_v51 }
 0x3c8   :  { %22421 = vst [vmem:[#allocation63_spill] sm:$0xff] %v21731_v41  ;;  %v20421_v35 = vld [vmem:[#allocation10 + $0x1fbc] sm:$0xf0]  ;;  %v19766_v51 = vld [vmem:[#allocation10 + $0xb4c] sm:$0xf] }
 0x3c9   :  { %9605 = vmatpush.bf16.msra.mxu0 %v14360_v2  ;;  %9619 = vmatpush.bf16.msra.mxu1 %v15384_v17  ;;  %v16025_v2 = vld [vmem:[#allocation10 + $0xfc8] sm:$0xf0]  ;;  %v14104_v17 = vor.u32 %v19430_v11, %v14103_v23  ;;  %v17161_v11 = vld [vmem:[#allocation10 + $0x18b8] sm:$0xf0]  ;;  %22422 = vst [vmem:[#allocation64_spill] sm:$0xff] %v21734_v15 }
 0x3ca   :  { %9577 = vmatpush.bf16.msrb.mxu2 %v16404_v40  ;;  %v16028_v54 = vor.u32 %v19894_v33, %v16025_v2  ;;  %9479 = vmatpush.bf16.msrb.mxu3 %v17420_v4  ;;  %v15897_v23 = vld [vmem:[#allocation10 + $0xec8] sm:$0xf0]  ;;  %v16148_v33 = vor.u32 %v19925_v62, %v16145_v28  ;;  %v17164_v20 = vor.u32 %v20180_v29, %v17161_v11  ;;  %v17935_v62 = vld [vmem:[#allocation10 + $0x1e40] sm:$0xf]  ;;  %v22349_v11 = vperm.slane %v21692_v48, 6 }
 0x3cb   :  { %v17048_v4 = vor.u32 %v20166_v19, %v17047_v16  ;;  %v15769_v2 = vld [vmem:[#allocation10 + $0xdc8] sm:$0xf0]  ;;  %v17936_v28 = vor.u32 %v20389_v42, %v17935_v62  ;;  %v20325_v62 = vld [vmem:[#allocation10 + $0x1cbc] sm:$0xf0]  ;;  %v16031_v41 = vld [vmem:[#allocation10 + $0xf50] sm:$0xf] }
 0x3cc   :  { %v14617_v16 = vld [vmem:[#allocation10 + $0x4c8] sm:$0xf0] }
 0x3cd   :  { %9606 = vmatpush.bf16.msra.mxu0 %v14232_v55  ;;  %9620 = vmatpush.bf16.msra.mxu1 %v15256_v24  ;;  %v19862_v55 = vld [vmem:[#allocation10 + $0xe4c] sm:$0xf]  ;;  %v14876_v24 = vor.u32 %v19606_v31, %v14873_v52  ;;  %v18064_v52 = vor.u32 %v20421_v35, %v18063_v36  ;;  %v16919_v31 = vld [vmem:[#allocation10 + $0x1648] sm:$0xf]  ;;  %v20357_v36 = vld [vmem:[#allocation10 + $0x1dbc] sm:$0xf0] }
 0x3ce   :  { %9578 = vmatpush.bf16.msrb.mxu2 %v16276_v37  ;;  %v15900_v40 = vor.u32 %v19862_v55, %v15897_v23  ;;  %9480 = vmatpush.bf16.msrb.mxu3 %v17292_v5  ;;  %v19542_v37 = vld [vmem:[#allocation10 + $0x44c] sm:$0xf]  ;;  %v16791_v55 = vld [vmem:[#allocation10 + $0x1548] sm:$0xf] }
 0x3cf   :  { %v19798_v29 = vld [vmem:[#allocation10 + $0xc4c] sm:$0xf]  ;;  %v20102_v23 = vld [vmem:[#allocation10 + $0x15c4] sm:$0xf0]  ;;  %v14620_v19 = vor.u32 %v19542_v37, %v14617_v16 }
 0x3d0   :  { %v15641_v5 = vld [vmem:[#allocation10 + $0xcc8] sm:$0xf0]  ;;  %v16792_v61 = vor.u32 %v20102_v23, %v16791_v55  ;;  %v21746_v55 = vpop.f32.mrf.mxu2 }
 0x3d1   :  { %9607 = vmatpush.bf16.msra.mxu0 %v14104_v17  ;;  %9621 = vmatpush.bf16.msra.mxu1 %v15128_v13  ;;  %v20134_v17 = vld [vmem:[#allocation10 + $0x16c4] sm:$0xf0]  ;;  %v21737_v13 = vpop.f32.mrf.mxu1  ;;  %v15644_v35 = vor.u32 %v19798_v29, %v15641_v5  ;;  %v19478_v37 = vld [vmem:[#allocation10 + $0x24c] sm:$0xf]  ;;  %22424 = vst [vmem:[#allocation66_spill] sm:$0xff] %v21746_v55 }
 0x3d2   :  { %22423 = vst [vmem:[#allocation65_spill] sm:$0xff] %v21737_v13  ;;  %9579 = vmatpush.bf16.msrb.mxu2 %v16148_v33  ;;  %9481 = vmatpush.bf16.msrb.mxu3 %v17164_v20  ;;  %v19510_v33 = vld [vmem:[#allocation10 + $0x34c] sm:$0xf]  ;;  %v14879_v55 = vld [vmem:[#allocation10 + $0x650] sm:$0xf] }
 0x3d3   :  { %v15513_v20 = vld [vmem:[#allocation10 + $0xbc8] sm:$0xf0]  ;;  %v19623_v13 = vld [vmem:[#allocation10 + $0x6cc] sm:$0xf0] }
 0x3d4   :  { %9608 = vmatmul.bf16.vlgmr.msra.gmra.mxu0 %v21401_v53  ;;  %9622 = vmatmul.bf16.vlgmr.msra.gmra.mxu1 %v21403_v18  ;;  %v14361_v16 = vld [vmem:[#allocation10 + $0x2c8] sm:$0xf0] }
 0x3d5   :  { %9656 = vmatpush.bf16.msrb.mxu0 %v15004_v44  ;;  %9670 = vmatpush.bf16.msrb.mxu1 %v16028_v54  ;;  %v15772_v44 = vor.u32 %v19830_v38, %v15769_v2  ;;  %v16920_v54 = vor.u32 %v20134_v17, %v16919_v31  ;;  %v16663_v2 = vld [vmem:[#allocation10 + $0x1448] sm:$0xf]  ;;  %v19734_v5 = vld [vmem:[#allocation10 + $0xa4c] sm:$0xf] }
 0x3d6   :  { %9628 = vmatpush.bf16.msra.mxu2 %v17048_v4  ;;  %9530 = vmatpush.bf16.msra.mxu3 %v18064_v52  ;;  %v9385_v4 = vpop.f32.mrf.mxu0  ;;  %v20070_v52 = vld [vmem:[#allocation10 + $0x14c4] sm:$0xf0]  ;;  %v20150_v15 = vld [vmem:[#allocation10 + $0x174c] sm:$0xf] }
 0x3d7   :  { %9580 = vmatmul.bf16.vlgmr.msrb.gmra.mxu2 %v21413_v46  ;;  %9482 = vmatmul.bf16.vlgmr.msrb.gmra.mxu3 %v21429_v25  ;;  %v9386_v31 = vadd.f32 %v9385_v4, %v22349_v11  ;;  %v16664_v29 = vor.u32 %v20070_v52, %v16663_v2  ;;  %v14233_v4 = vld [vmem:[#allocation10 + $0x1c8] sm:$0xf0]  ;;  %v20261_v11 = vld [vmem:[#allocation10 + $0x1abc] sm:$0xf0] }
 0x3d8   :  { %v19702_v2 = vld [vmem:[#allocation10 + $0x94c] sm:$0xf] }
 0x3d9   :  { %9657 = vmatpush.bf16.msrb.mxu0 %v14876_v24  ;;  %9671 = vmatpush.bf16.msrb.mxu1 %v15900_v40  ;;  %v17807_v24 = vld [vmem:[#allocation10 + $0x1d40] sm:$0xf]  ;;  %v14489_v40 = vld [vmem:[#allocation10 + $0x3c8] sm:$0xf0]  ;;  %v9399_v42 = vpop.f32.mrf.mxu1 }
 0x3da   :  { %9629 = vmatpush.bf16.msra.mxu2 %v16920_v54  ;;  %9531 = vmatpush.bf16.msra.mxu3 %v17936_v28  ;;  %v17808_v38 = vor.u32 %v20357_v36, %v17807_v24  ;;  %v14492_v17 = vor.u32 %v19510_v33, %v14489_v40  ;;  %v21744_v54 = vadd.f32 %v9399_v42, %v9386_v31  ;;  %v15385_v28 = vld [vmem:[#allocation10 + $0xac8] sm:$0xf0]  ;;  %v16535_v24 = vld [vmem:[#allocation10 + $0x1348] sm:$0xf]  ;;  %v21748_v36 = vpop.f32.mrf.mxu3  ;;  %v20293_v40 = vld [vmem:[#allocation10 + $0x1bbc] sm:$0xf0] }
 0x3db   :  { %22425 = vst [vmem:[#allocation67_spill] sm:$0xff] %v21748_v36  ;;  %v14364_v33 = vor.u32 %v19478_v37, %v14361_v16  ;;  %v15257_v52 = vld [vmem:[#allocation10 + $0x9c8] sm:$0xf0]  ;;  %v17423_v42 = vld [vmem:[#allocation10 + $0x1a40] sm:$0xf] }
 0x3dc   :  { %v15260_v37 = vor.u32 %v19702_v2, %v15257_v52  ;;  %v14105_v16 = vld [vmem:[#allocation10 + $0xc8] sm:$0xf0]  ;;  %v17295_v2 = vld [vmem:[#allocation10 + $0x1940] sm:$0xf]  ;;  %v16151_v36 = vld [vmem:[#allocation10 + $0x1048] sm:$0xf] }
 0x3dd   :  { %9658 = vmatpush.bf16.msrb.mxu0 %v14748_v34  ;;  %9672 = vmatpush.bf16.msrb.mxu1 %v15772_v44  ;;  %v17679_v34 = vld [vmem:[#allocation10 + $0x1c40] sm:$0xf]  ;;  %v15516_v44 = vor.u32 %v19766_v51, %v15513_v20  ;;  %v15388_v51 = vor.u32 %v19734_v5, %v15385_v28  ;;  %v19446_v20 = vld [vmem:[#allocation10 + $0x14c] sm:$0xf] }
 0x3de   :  { %9630 = vmatpush.bf16.msra.mxu2 %v16792_v61  ;;  %9532 = vmatpush.bf16.msra.mxu3 %v17808_v38  ;;  %v17680_v23 = vor.u32 %v20325_v62, %v17679_v34  ;;  %v16407_v38 = vld [vmem:[#allocation10 + $0x1248] sm:$0xf]  ;;  %v14236_v62 = vor.u32 %v19446_v20, %v14233_v4  ;;  %v15129_v5 = vld [vmem:[#allocation10 + $0x8c8] sm:$0xf0]  ;;  %v20229_v52 = vld [vmem:[#allocation10 + $0x19bc] sm:$0xf0] }
 0x3df   :  { %v20006_v34 = vld [vmem:[#allocation10 + $0x12c4] sm:$0xf0] }
 0x3e0   :  { %v16408_v28 = vor.u32 %v20006_v34, %v16407_v38 }
 0x3e1   :  { %9659 = vmatpush.bf16.msrb.mxu0 %v14620_v19  ;;  %9673 = vmatpush.bf16.msrb.mxu1 %v15644_v35  ;;  %v20038_v19 = vld [vmem:[#allocation10 + $0x13c4] sm:$0xf0]  ;;  %v17551_v35 = vld [vmem:[#allocation10 + $0x1b40] sm:$0xf] }
 0x3e2   :  { %9631 = vmatpush.bf16.msra.mxu2 %v16664_v29  ;;  %v16536_v61 = vor.u32 %v20038_v19, %v16535_v24  ;;  %9533 = vmatpush.bf16.msra.mxu3 %v17680_v23  ;;  %v17552_v31 = vor.u32 %v20293_v40, %v17551_v35  ;;  %v16279_v29 = vld [vmem:[#allocation10 + $0x1148] sm:$0xf]  ;;  %v15007_v24 = vld [vmem:[#allocation10 + $0x750] sm:$0xf]  ;;  %v9357_v23 = vpop.f32.mrf.mxu2  ;;  %v17424_v35 = vor.u32 %v20261_v11, %v17423_v42  ;;  %v9259_v20 = vpop.f32.mrf.mxu3  ;;  %v17167_v42 = vld [vmem:[#allocation10 + $0x1840] sm:$0xf] }
 0x3e3   :  { %v19655_v19 = vld [vmem:[#allocation10 + $0x7cc] sm:$0xf0]  ;;  %v19974_v40 = vld [vmem:[#allocation10 + $0x11c4] sm:$0xf0]  ;;  %v21751_v4 = vadd.f32 %v9357_v23, %v21721_v1  ;;  %v17296_v1 = vor.u32 %v20229_v52, %v17295_v2  ;;  %v17937_v52 = vld [vmem:[#allocation10 + $0x1ec0] sm:$0xf0] }
 0x3e4   :  { %v15008_v34 = vor.u32 %v19655_v19, %v15007_v24  ;;  %v19942_v23 = vld [vmem:[#allocation10 + $0x10c4] sm:$0xf0]  ;;  %v19591_v24 = vld [vmem:[#allocation10 + $0x5cc] sm:$0xf0] }
 0x3e5   :  { %9660 = vmatpush.bf16.msrb.mxu0 %v14492_v17  ;;  %9674 = vmatpush.bf16.msrb.mxu1 %v15516_v44  ;;  %v19414_v17 = vld [vmem:[#allocation10 + $0x4c] sm:$0xf] }
 0x3e6   :  { %v19670_v44 = vld [vmem:[#allocation10 + $0x84c] sm:$0xf]  ;;  %9632 = vmatpush.bf16.msra.mxu2 %v16536_v61  ;;  %9534 = vmatpush.bf16.msra.mxu3 %v17552_v31  ;;  %v21754_v61 = vadd.f32 %v9259_v20, %v21705_v0  ;;  %v16280_v31 = vor.u32 %v19974_v40, %v16279_v29  ;;  %v14751_v29 = vld [vmem:[#allocation10 + $0x550] sm:$0xf]  ;;  %v21757_v20 = vpop.f32.mrf.mxu0 }
 0x3e7   :  { %v15132_v38 = vor.u32 %v19670_v44, %v15129_v5  ;;  %v17049_v0 = vld [vmem:[#allocation10 + $0x17c8] sm:$0xf0]  ;;  %v20405_v44 = vld [vmem:[#allocation10 + $0x1f44] sm:$0xf]  ;;  %v15775_v40 = vld [vmem:[#allocation10 + $0xd50] sm:$0xf]  ;;  %v14752_v2 = vor.u32 %v19591_v24, %v14751_v29 }
 0x3e8   :  { %22426 = vst [vmem:[#allocation68_spill] sm:$0xff] %v21754_v61  ;;  %v18065_v5 = vld [vmem:[#allocation10 + $0x1fc0] sm:$0xf0]  ;;  %v15519_v24 = vld [vmem:[#allocation10 + $0xb50] sm:$0xf] }
 0x3e9   :  { %9661 = vmatpush.bf16.msrb.mxu0 %v14364_v33  ;;  %9675 = vmatpush.bf16.msrb.mxu1 %v15388_v51  ;;  %v19911_v33 = vld [vmem:[#allocation10 + $0xfcc] sm:$0xf0]  ;;  %v14108_v51 = vor.u32 %v19414_v17, %v14105_v16  ;;  %v20197_v16 = vld [vmem:[#allocation10 + $0x18bc] sm:$0xf0]  ;;  %22427 = vst [vmem:[#allocation69_spill] sm:$0xff] %v21757_v20 }
 0x3ea   :  { %9633 = vmatpush.bf16.msra.mxu2 %v16408_v28  ;;  %v16032_v11 = vor.u32 %v19911_v33, %v16031_v41  ;;  %9535 = vmatpush.bf16.msra.mxu3 %v17424_v35  ;;  %v19879_v17 = vld [vmem:[#allocation10 + $0xecc] sm:$0xf0]  ;;  %v16152_v41 = vor.u32 %v19942_v23, %v16151_v36  ;;  %v17168_v19 = vor.u32 %v20197_v16, %v17167_v42  ;;  %v20373_v36 = vld [vmem:[#allocation10 + $0x1e44] sm:$0xf]  ;;  %v22350_v16 = vperm.slane %v21692_v48, 7 }
 0x3eb   :  { %v17052_v35 = vor.u32 %v20150_v15, %v17049_v0  ;;  %v19847_v33 = vld [vmem:[#allocation10 + $0xdcc] sm:$0xf0]  ;;  %v17940_v23 = vor.u32 %v20373_v36, %v17937_v52  ;;  %v17681_v36 = vld [vmem:[#allocation10 + $0x1cc0] sm:$0xf0]  ;;  %v19895_v61 = vld [vmem:[#allocation10 + $0xf54] sm:$0xf] }
 0x3ec   :  { %v19559_v15 = vld [vmem:[#allocation10 + $0x4cc] sm:$0xf0]  ;;  %v14881_v20 = vld [vmem:[#allocation10 + $0x6d0] sm:$0xf0] }
 0x3ed   :  { %9662 = vmatpush.bf16.msrb.mxu0 %v14236_v62  ;;  %9676 = vmatpush.bf16.msrb.mxu1 %v15260_v37  ;;  %v15903_v62 = vld [vmem:[#allocation10 + $0xe50] sm:$0xf]  ;;  %v14880_v37 = vor.u32 %v19623_v13, %v14879_v55  ;;  %v18068_v13 = vor.u32 %v20405_v44, %v18065_v5  ;;  %v20118_v55 = vld [vmem:[#allocation10 + $0x164c] sm:$0xf]  ;;  %v17809_v44 = vld [vmem:[#allocation10 + $0x1dc0] sm:$0xf0] }
 0x3ee   :  { %9634 = vmatpush.bf16.msra.mxu2 %v16280_v31  ;;  %v15904_v28 = vor.u32 %v19879_v17, %v15903_v62  ;;  %9536 = vmatpush.bf16.msra.mxu3 %v17296_v1  ;;  %v14623_v31 = vld [vmem:[#allocation10 + $0x450] sm:$0xf]  ;;  %v20086_v62 = vld [vmem:[#allocation10 + $0x154c] sm:$0xf]  ;;  %v20151_v48 = vld [vmem:[#allocation10 + $0x1754] sm:$0xf] }
 0x3ef   :  { %v15647_v42 = vld [vmem:[#allocation10 + $0xc50] sm:$0xf]  ;;  %v16793_v17 = vld [vmem:[#allocation10 + $0x15c8] sm:$0xf0]  ;;  %v14624_v0 = vor.u32 %v19559_v15, %v14623_v31 }
 0x3f0   :  { %v19815_v1 = vld [vmem:[#allocation10 + $0xccc] sm:$0xf0]  ;;  %v16796_v29 = vor.u32 %v20086_v62, %v16793_v17  ;;  %v21769_v62 = vpop.f32.mrf.mxu2 }
 0x3f1   :  { %9663 = vmatpush.bf16.msrb.mxu0 %v14108_v51  ;;  %9677 = vmatpush.bf16.msrb.mxu1 %v15132_v38  ;;  %v16921_v51 = vld [vmem:[#allocation10 + $0x16c8] sm:$0xf0]  ;;  %v21760_v38 = vpop.f32.mrf.mxu1  ;;  %v15648_v5 = vor.u32 %v19815_v1, %v15647_v42  ;;  %v14367_v31 = vld [vmem:[#allocation10 + $0x250] sm:$0xf]  ;;  %22429 = vst [vmem:[#allocation71_spill] sm:$0xff] %v21769_v62 }
 0x3f2   :  { %22428 = vst [vmem:[#allocation70_spill] sm:$0xff] %v21760_v38  ;;  %9635 = vmatpush.bf16.msra.mxu2 %v16152_v41  ;;  %9537 = vmatpush.bf16.msra.mxu3 %v17168_v19  ;;  %v14495_v41 = vld [vmem:[#allocation10 + $0x350] sm:$0xf]  ;;  %v19607_v38 = vld [vmem:[#allocation10 + $0x654] sm:$0xf] }
 0x3f3   :  { %v19783_v19 = vld [vmem:[#allocation10 + $0xbcc] sm:$0xf0] }
 0x3f4   :  { %9664 = vmatmul.bf16.vlgmr.msrb.gmra.mxu0 %v21401_v53  ;;  %9678 = vmatmul.bf16.vlgmr.msrb.gmra.mxu1 %v21403_v18  ;;  %v19495_v15 = vld [vmem:[#allocation10 + $0x2cc] sm:$0xf0] }
 0x3f5   :  { %9712 = vmatpush.bf16.msra.mxu0 %v15008_v34  ;;  %9726 = vmatpush.bf16.msra.mxu1 %v16032_v11  ;;  %v15776_v34 = vor.u32 %v19847_v33, %v15775_v40  ;;  %v16924_v11 = vor.u32 %v20118_v55, %v16921_v51  ;;  %v20054_v33 = vld [vmem:[#allocation10 + $0x144c] sm:$0xf]  ;;  %v15391_v1 = vld [vmem:[#allocation10 + $0xa50] sm:$0xf] }
 0x3f6   :  { %9684 = vmatpush.bf16.msrb.mxu2 %v17052_v35  ;;  %9586 = vmatpush.bf16.msrb.mxu3 %v18068_v13  ;;  %v9441_v35 = vpop.f32.mrf.mxu0  ;;  %v16665_v13 = vld [vmem:[#allocation10 + $0x14c8] sm:$0xf0]  ;;  %v17055_v62 = vld [vmem:[#allocation10 + $0x1750] sm:$0xf] }
 0x3f7   :  { %9636 = vmatmul.bf16.vlgmr.msra.gmra.mxu2 %v21413_v46  ;;  %9538 = vmatmul.bf16.vlgmr.msra.gmra.mxu3 %v21429_v25  ;;  %v9442_v55 = vadd.f32 %v9441_v35, %v22350_v16  ;;  %v16668_v42 = vor.u32 %v20054_v33, %v16665_v13  ;;  %v19463_v35 = vld [vmem:[#allocation10 + $0x1cc] sm:$0xf0]  ;;  %v17425_v16 = vld [vmem:[#allocation10 + $0x1ac0] sm:$0xf0] }
 0x3f8   :  { %v15263_v33 = vld [vmem:[#allocation10 + $0x950] sm:$0xf] }
 0x3f9   :  { %9713 = vmatpush.bf16.msra.mxu0 %v14880_v37  ;;  %9727 = vmatpush.bf16.msra.mxu1 %v15904_v28  ;;  %v20341_v37 = vld [vmem:[#allocation10 + $0x1d44] sm:$0xf]  ;;  %v19527_v28 = vld [vmem:[#allocation10 + $0x3cc] sm:$0xf0]  ;;  %v9455_v52 = vpop.f32.mrf.mxu1 }
 0x3fa   :  { %9685 = vmatpush.bf16.msrb.mxu2 %v16924_v11  ;;  %9587 = vmatpush.bf16.msrb.mxu3 %v17940_v23  ;;  %v17812_v40 = vor.u32 %v20341_v37, %v17809_v44  ;;  %v14496_v51 = vor.u32 %v19527_v28, %v14495_v41  ;;  %v21767_v11 = vadd.f32 %v9455_v52, %v9442_v55  ;;  %v19751_v23 = vld [vmem:[#allocation10 + $0xacc] sm:$0xf0]  ;;  %v20022_v37 = vld [vmem:[#allocation10 + $0x134c] sm:$0xf]  ;;  %v21771_v44 = vpop.f32.mrf.mxu3  ;;  %v17553_v28 = vld [vmem:[#allocation10 + $0x1bc0] sm:$0xf0] }
 0x3fb   :  { %22430 = vst [vmem:[#allocation72_spill] sm:$0xff] %v21771_v44  ;;  %v14368_v41 = vor.u32 %v19495_v15, %v14367_v31  ;;  %v19719_v13 = vld [vmem:[#allocation10 + $0x9cc] sm:$0xf0]  ;;  %v20245_v52 = vld [vmem:[#allocation10 + $0x1a44] sm:$0xf] }
 0x3fc   :  { %v15264_v31 = vor.u32 %v19719_v13, %v15263_v33  ;;  %v19431_v15 = vld [vmem:[#allocation10 + $0xcc] sm:$0xf0]  ;;  %v20213_v33 = vld [vmem:[#allocation10 + $0x1944] sm:$0xf]  ;;  %v19926_v44 = vld [vmem:[#allocation10 + $0x104c] sm:$0xf] }
 0x3fd   :  { %9714 = vmatpush.bf16.msra.mxu0 %v14752_v2  ;;  %9728 = vmatpush.bf16.msra.mxu1 %v15776_v34  ;;  %v20309_v2 = vld [vmem:[#allocation10 + $0x1c44] sm:$0xf]  ;;  %v15520_v34 = vor.u32 %v19783_v19, %v15519_v24  ;;  %v15392_v24 = vor.u32 %v19751_v23, %v15391_v1  ;;  %v14239_v19 = vld [vmem:[#allocation10 + $0x150] sm:$0xf] }
 0x3fe   :  { %9686 = vmatpush.bf16.msrb.mxu2 %v16796_v29  ;;  %9588 = vmatpush.bf16.msrb.mxu3 %v17812_v40  ;;  %v17684_v17 = vor.u32 %v20309_v2, %v17681_v36  ;;  %v19990_v40 = vld [vmem:[#allocation10 + $0x124c] sm:$0xf]  ;;  %v14240_v36 = vor.u32 %v19463_v35, %v14239_v19  ;;  %v19687_v1 = vld [vmem:[#allocation10 + $0x8cc] sm:$0xf0]  ;;  %v17297_v13 = vld [vmem:[#allocation10 + $0x19c0] sm:$0xf0] }
 0x3ff   :  { %v16409_v2 = vld [vmem:[#allocation10 + $0x12c8] sm:$0xf0] }
 0x400   :  { %v16412_v23 = vor.u32 %v19990_v40, %v16409_v2 }
 0x401   :  { %9715 = vmatpush.bf16.msra.mxu0 %v14624_v0  ;;  %9729 = vmatpush.bf16.msra.mxu1 %v15648_v5  ;;  %v16537_v0 = vld [vmem:[#allocation10 + $0x13c8] sm:$0xf0]  ;;  %v20277_v5 = vld [vmem:[#allocation10 + $0x1b44] sm:$0xf] }
 0x402   :  { %9687 = vmatpush.bf16.msrb.mxu2 %v16668_v42  ;;  %v16540_v29 = vor.u32 %v20022_v37, %v16537_v0  ;;  %9589 = vmatpush.bf16.msrb.mxu3 %v17684_v17  ;;  %v17556_v55 = vor.u32 %v20277_v5, %v17553_v28  ;;  %v19958_v42 = vld [vmem:[#allocation10 + $0x114c] sm:$0xf]  ;;  %v19639_v37 = vld [vmem:[#allocation10 + $0x754] sm:$0xf]  ;;  %v9413_v17 = vpop.f32.mrf.mxu2  ;;  %v17428_v5 = vor.u32 %v20245_v52, %v17425_v16  ;;  %v9315_v19 = vpop.f32.mrf.mxu3  ;;  %v20181_v52 = vld [vmem:[#allocation10 + $0x1844] sm:$0xf] }
 0x403   :  { %v15009_v0 = vld [vmem:[#allocation10 + $0x7d0] sm:$0xf0]  ;;  %v16281_v28 = vld [vmem:[#allocation10 + $0x11c8] sm:$0xf0]  ;;  %v21774_v35 = vadd.f32 %v9413_v17, %v21744_v54  ;;  %v17300_v54 = vor.u32 %v20213_v33, %v17297_v13  ;;  %v20390_v13 = vld [vmem:[#allocation10 + $0x1ec4] sm:$0xf0] }
 0x404   :  { %v15012_v2 = vor.u32 %v19639_v37, %v15009_v0  ;;  %v16153_v17 = vld [vmem:[#allocation10 + $0x10c8] sm:$0xf0]  ;;  %v14753_v37 = vld [vmem:[#allocation10 + $0x5d0] sm:$0xf0] }
 0x405   :  { %9716 = vmatpush.bf16.msra.mxu0 %v14496_v51  ;;  %9730 = vmatpush.bf16.msra.mxu1 %v15520_v34  ;;  %v14111_v51 = vld [vmem:[#allocation10 + $0x50] sm:$0xf] }
 0x406   :  { %v15135_v34 = vld [vmem:[#allocation10 + $0x850] sm:$0xf]  ;;  %9688 = vmatpush.bf16.msrb.mxu2 %v16540_v29  ;;  %9590 = vmatpush.bf16.msrb.mxu3 %v17556_v55  ;;  %v21777_v29 = vadd.f32 %v9315_v19, %v21728_v39  ;;  %v16284_v55 = vor.u32 %v19958_v42, %v16281_v28  ;;  %v19575_v42 = vld [vmem:[#allocation10 + $0x554] sm:$0xf]  ;;  %v21780_v19 = vpop.f32.mrf.mxu0 }
 0x407   :  { %v15136_v40 = vor.u32 %v19687_v1, %v15135_v34  ;;  %v20167_v39 = vld [vmem:[#allocation10 + $0x17cc] sm:$0xf0]  ;;  %v18071_v34 = vld [vmem:[#allocation10 + $0x1f48] sm:$0xf]  ;;  %v19831_v28 = vld [vmem:[#allocation10 + $0xd54] sm:$0xf]  ;;  %v14756_v33 = vor.u32 %v19575_v42, %v14753_v37 }
 0x408   :  { %22431 = vst [vmem:[#allocation73_spill] sm:$0xff] %v21777_v29  ;;  %v20422_v1 = vld [vmem:[#allocation10 + $0x1fc4] sm:$0xf0]  ;;  %v14497_v42 = vld [vmem:[#allocation10 + $0x3d0] sm:$0xf0] }
 0x409   :  { %9717 = vmatpush.bf16.msra.mxu0 %v14368_v41  ;;  %9731 = vmatpush.bf16.msra.mxu1 %v15392_v24  ;;  %v16033_v41 = vld [vmem:[#allocation10 + $0xfd0] sm:$0xf0]  ;;  %v14112_v24 = vor.u32 %v19431_v15, %v14111_v51  ;;  %v17169_v15 = vld [vmem:[#allocation10 + $0x18c0] sm:$0xf0]  ;;  %22432 = vst [vmem:[#allocation74_spill] sm:$0xff] %v21780_v19 }
 0x40a   :  { %9689 = vmatpush.bf16.msrb.mxu2 %v16412_v23  ;;  %v16036_v16 = vor.u32 %v19895_v61, %v16033_v41  ;;  %9591 = vmatpush.bf16.msrb.mxu3 %v17428_v5  ;;  %v15905_v51 = vld [vmem:[#allocation10 + $0xed0] sm:$0xf0]  ;;  %v16156_v61 = vor.u32 %v19926_v44, %v16153_v17  ;;  %v17172_v0 = vor.u32 %v20181_v52, %v17169_v15  ;;  %v17943_v44 = vld [vmem:[#allocation10 + $0x1e48] sm:$0xf]  ;;  %v20103_v15 = vld [vmem:[#allocation10 + $0x15cc] sm:$0xf0] }
 0x40b   :  { %v17056_v5 = vor.u32 %v20167_v39, %v17055_v62  ;;  %v15777_v41 = vld [vmem:[#allocation10 + $0xdd0] sm:$0xf0]  ;;  %v16039_v19 = vld [vmem:[#allocation10 + $0xf58] sm:$0xf] }
 0x40c   :  { %v19543_v62 = vld [vmem:[#allocation10 + $0x454] sm:$0xf]  ;;  %v14887_v29 = vld [vmem:[#allocation10 + $0x658] sm:$0xf] }
 0x40d   :  { %9718 = vmatpush.bf16.msra.mxu0 %v14240_v36  ;;  %9732 = vmatpush.bf16.msra.mxu1 %v15264_v31  ;;  %v19863_v36 = vld [vmem:[#allocation10 + $0xe54] sm:$0xf]  ;;  %v14884_v31 = vor.u32 %v19607_v38, %v14881_v20  ;;  %v18072_v20 = vor.u32 %v20422_v1, %v18071_v34  ;;  %v16927_v38 = vld [vmem:[#allocation10 + $0x1650] sm:$0xf]  ;;  %v17815_v34 = vld [vmem:[#allocation10 + $0x1d48] sm:$0xf] }
 0x40e   :  { %9690 = vmatpush.bf16.msrb.mxu2 %v16284_v55  ;;  %v15908_v23 = vor.u32 %v19863_v36, %v15905_v51  ;;  %9592 = vmatpush.bf16.msrb.mxu3 %v17300_v54  ;;  %v21785_v55 = vld [vmem:[#allocation11 + $0x10] sm:$0xff]  ;;  %v17944_v36 = vor.u32 %v20390_v13, %v17943_v44  ;;  %v20358_v1 = vld [vmem:[#allocation10 + $0x1dc4] sm:$0xf0] }
 0x40f   :  { %22434 = vst [vmem:[#allocation76_spill] sm:$0xff] %v21785_v55  ;;  %v19799_v54 = vld [vmem:[#allocation10 + $0xc54] sm:$0xf]  ;;  %v16799_v51 = vld [vmem:[#allocation10 + $0x1550] sm:$0xf]  ;;  %v22351_v39 = vperm.slane %v21785_v55, 0 }
 0x410   :  { %v15649_v17 = vld [vmem:[#allocation10 + $0xcd0] sm:$0xf0]  ;;  %v16800_v37 = vor.u32 %v20103_v15, %v16799_v51  ;;  %v17687_v44 = vld [vmem:[#allocation10 + $0x1c48] sm:$0xf]  ;;  %v21794_v15 = vpop.f32.mrf.mxu2 }
 0x411   :  { %9719 = vmatpush.bf16.msra.mxu0 %v14112_v24  ;;  %9733 = vmatpush.bf16.msra.mxu1 %v15136_v40  ;;  %v20135_v24 = vld [vmem:[#allocation10 + $0x16cc] sm:$0xf0]  ;;  %v21783_v40 = vpop.f32.mrf.mxu1  ;;  %v20326_v13 = vld [vmem:[#allocation10 + $0x1cc4] sm:$0xf0]  ;;  %v15393_v51 = vld [vmem:[#allocation10 + $0xad0] sm:$0xf0] }
 0x412   :  { %22433 = vst [vmem:[#allocation75_spill] sm:$0xff] %v21783_v40  ;;  %9691 = vmatpush.bf16.msrb.mxu2 %v16156_v61  ;;  %9593 = vmatpush.bf16.msrb.mxu3 %v17172_v0  ;;  %v16928_v52 = vor.u32 %v20135_v24, %v16927_v38  ;;  %v15652_v61 = vor.u32 %v19799_v54, %v15649_v17  ;;  %v19767_v0 = vld [vmem:[#allocation10 + $0xb54] sm:$0xf]  ;;  %v20071_v38 = vld [vmem:[#allocation10 + $0x14cc] sm:$0xf0] }
 0x413   :  { %22435 = vst [vmem:[#allocation77_spill] sm:$0xff] %v21794_v15  ;;  %v20262_v40 = vld [vmem:[#allocation10 + $0x1ac4] sm:$0xf0]  ;;  %v16159_v15 = vld [vmem:[#allocation10 + $0x1050] sm:$0xf] }
 0x414   :  { %9720 = vmatmul.bf16.vlgmr.msra.gmra.mxu0 %v21401_v53  ;;  %9734 = vmatmul.bf16.vlgmr.msra.gmra.mxu1 %v21403_v18 }
 0x415   :  { %9768 = vmatpush.bf16.msrb.mxu0 %v15012_v2  ;;  %9782 = vmatpush.bf16.msrb.mxu1 %v16036_v16  ;;  %v15780_v2 = vor.u32 %v19831_v28, %v15777_v41  ;;  %v14625_v16 = vld [vmem:[#allocation10 + $0x4d0] sm:$0xf0]  ;;  %v9497_v28 = vpop.f32.mrf.mxu0  ;;  %v17816_v41 = vor.u32 %v20358_v1, %v17815_v34  ;;  %v17688_v34 = vor.u32 %v20326_v13, %v17687_v44  ;;  %v16543_v1 = vld [vmem:[#allocation10 + $0x1350] sm:$0xf] }
 0x416   :  { %9740 = vmatpush.bf16.msra.mxu2 %v17056_v5  ;;  %9642 = vmatpush.bf16.msra.mxu3 %v18072_v20  ;;  %v15521_v5 = vld [vmem:[#allocation10 + $0xbd0] sm:$0xf0]  ;;  %v16671_v20 = vld [vmem:[#allocation10 + $0x1450] sm:$0xf]  ;;  %v9498_v24 = vadd.f32 %v9497_v28, %v22351_v39  ;;  %v17431_v39 = vld [vmem:[#allocation10 + $0x1a48] sm:$0xf] }
 0x417   :  { %9692 = vmatmul.bf16.vlgmr.msrb.gmra.mxu2 %v21413_v46  ;;  %9594 = vmatmul.bf16.vlgmr.msrb.gmra.mxu3 %v21429_v25  ;;  %v16672_v17 = vor.u32 %v20071_v38, %v16671_v20  ;;  %v19447_v28 = vld [vmem:[#allocation10 + $0x154] sm:$0xf]  ;;  %v20007_v44 = vld [vmem:[#allocation10 + $0x12cc] sm:$0xf0] }
 0x418   :  { %v19703_v20 = vld [vmem:[#allocation10 + $0x954] sm:$0xf] }
 0x419   :  { %9769 = vmatpush.bf16.msrb.mxu0 %v14884_v31  ;;  %9783 = vmatpush.bf16.msrb.mxu1 %v15908_v23  ;;  %v14628_v31 = vor.u32 %v19543_v62, %v14625_v16  ;;  %v19511_v23 = vld [vmem:[#allocation10 + $0x354] sm:$0xf]  ;;  %v15524_v62 = vor.u32 %v19767_v0, %v15521_v5  ;;  %v20294_v0 = vld [vmem:[#allocation10 + $0x1bc4] sm:$0xf0] }
 0x41a   :  { %9741 = vmatpush.bf16.msra.mxu2 %v16928_v52  ;;  %9643 = vmatpush.bf16.msra.mxu3 %v17944_v36  ;;  %v19479_v16 = vld [vmem:[#allocation10 + $0x254] sm:$0xf] }
 0x41b   :  { %v14369_v52 = vld [vmem:[#allocation10 + $0x2d0] sm:$0xf0] }
 0x41c   :  { %v19735_v36 = vld [vmem:[#allocation10 + $0xa54] sm:$0xf] }
 0x41d   :  { %9770 = vmatpush.bf16.msrb.mxu0 %v14756_v33  ;;  %9784 = vmatpush.bf16.msrb.mxu1 %v15780_v2  ;;  %v14500_v33 = vor.u32 %v19511_v23, %v14497_v42  ;;  %v9511_v2 = vpop.f32.mrf.mxu1  ;;  %v21796_v23 = vpop.f32.mrf.mxu3  ;;  %v14372_v42 = vor.u32 %v19479_v16, %v14369_v52  ;;  %v15396_v5 = vor.u32 %v19735_v36, %v15393_v51  ;;  %v15265_v38 = vld [vmem:[#allocation10 + $0x9d0] sm:$0xf0] }
 0x41e   :  { %v21792_v54 = vadd.f32 %v9511_v2, %v9498_v24  ;;  %9742 = vmatpush.bf16.msra.mxu2 %v16800_v37  ;;  %9644 = vmatpush.bf16.msra.mxu3 %v17816_v41  ;;  %22436 = vst [vmem:[#allocation78_spill] sm:$0xff] %v21796_v23  ;;  %v14241_v24 = vld [vmem:[#allocation10 + $0x1d0] sm:$0xf0]  ;;  %v16415_v41 = vld [vmem:[#allocation10 + $0x1250] sm:$0xf]  ;;  %v15268_v16 = vor.u32 %v19703_v20, %v15265_v38 }
 0x41f   :  { %v14244_v13 = vor.u32 %v19447_v28, %v14241_v24  ;;  %v14113_v52 = vld [vmem:[#allocation10 + $0xd0] sm:$0xf0]  ;;  %v16416_v51 = vor.u32 %v20007_v44, %v16415_v41  ;;  %v17303_v20 = vld [vmem:[#allocation10 + $0x1948] sm:$0xf]  ;;  %v19624_v23 = vld [vmem:[#allocation10 + $0x6d4] sm:$0xf0] }
 0x420   :  { %v15137_v36 = vld [vmem:[#allocation10 + $0x8d0] sm:$0xf0]  ;;  %v20230_v38 = vld [vmem:[#allocation10 + $0x19c4] sm:$0xf0] }
 0x421   :  { %9771 = vmatpush.bf16.msrb.mxu0 %v14628_v31  ;;  %9785 = vmatpush.bf16.msrb.mxu1 %v15652_v61  ;;  %v20039_v31 = vld [vmem:[#allocation10 + $0x13cc] sm:$0xf0]  ;;  %v17559_v61 = vld [vmem:[#allocation10 + $0x1b48] sm:$0xf] }
 0x422   :  { %9743 = vmatpush.bf16.msra.mxu2 %v16672_v17  ;;  %v16544_v37 = vor.u32 %v20039_v31, %v16543_v1  ;;  %9645 = vmatpush.bf16.msra.mxu3 %v17688_v34  ;;  %v17560_v2 = vor.u32 %v20294_v0, %v17559_v61  ;;  %v16287_v17 = vld [vmem:[#allocation10 + $0x1150] sm:$0xf]  ;;  %v15015_v1 = vld [vmem:[#allocation10 + $0x758] sm:$0xf]  ;;  %v9469_v34 = vpop.f32.mrf.mxu2  ;;  %v17432_v61 = vor.u32 %v20262_v40, %v17431_v39  ;;  %v17175_v39 = vld [vmem:[#allocation10 + $0x1848] sm:$0xf] }
 0x423   :  { %v19656_v31 = vld [vmem:[#allocation10 + $0x7d4] sm:$0xf0]  ;;  %v19975_v0 = vld [vmem:[#allocation10 + $0x11cc] sm:$0xf0]  ;;  %v21799_v24 = vadd.f32 %v9469_v34, %v21767_v11  ;;  %v17304_v11 = vor.u32 %v20230_v38, %v17303_v20  ;;  %v17945_v38 = vld [vmem:[#allocation10 + $0x1ec8] sm:$0xf0] }
 0x424   :  { %v15016_v44 = vor.u32 %v19656_v31, %v15015_v1  ;;  %v19943_v34 = vld [vmem:[#allocation10 + $0x10cc] sm:$0xf0]  ;;  %v19592_v1 = vld [vmem:[#allocation10 + $0x5d4] sm:$0xf0] }
 0x425   :  { %9772 = vmatpush.bf16.msrb.mxu0 %v14500_v33  ;;  %9786 = vmatpush.bf16.msrb.mxu1 %v15524_v62  ;;  %v19415_v33 = vld [vmem:[#allocation10 + $0x54] sm:$0xf]  ;;  %v9371_v28 = vpop.f32.mrf.mxu3 }
 0x426   :  { %v19671_v62 = vld [vmem:[#allocation10 + $0x854] sm:$0xf]  ;;  %9744 = vmatpush.bf16.msra.mxu2 %v16544_v37  ;;  %9646 = vmatpush.bf16.msra.mxu3 %v17560_v2  ;;  %v21802_v37 = vadd.f32 %v9371_v28, %v21751_v4  ;;  %v16288_v2 = vor.u32 %v19975_v0, %v16287_v17  ;;  %v14759_v17 = vld [vmem:[#allocation10 + $0x558] sm:$0xf]  ;;  %v21805_v28 = vpop.f32.mrf.mxu0 }
 0x427   :  { %v15140_v41 = vor.u32 %v19671_v62, %v15137_v36  ;;  %v17057_v4 = vld [vmem:[#allocation10 + $0x17d0] sm:$0xf0]  ;;  %v20406_v62 = vld [vmem:[#allocation10 + $0x1f4c] sm:$0xf]  ;;  %v15783_v0 = vld [vmem:[#allocation10 + $0xd58] sm:$0xf]  ;;  %v14760_v20 = vor.u32 %v19592_v1, %v14759_v17 }
 0x428   :  { %22437 = vst [vmem:[#allocation79_spill] sm:$0xff] %v21802_v37  ;;  %v18073_v36 = vld [vmem:[#allocation10 + $0x1fc8] sm:$0xf0]  ;;  %v15527_v1 = vld [vmem:[#allocation10 + $0xb58] sm:$0xf] }
 0x429   :  { %9773 = vmatpush.bf16.msrb.mxu0 %v14372_v42  ;;  %9787 = vmatpush.bf16.msrb.mxu1 %v15396_v5  ;;  %v19912_v42 = vld [vmem:[#allocation10 + $0xfd4] sm:$0xf0]  ;;  %v14116_v5 = vor.u32 %v19415_v33, %v14113_v52  ;;  %v20198_v52 = vld [vmem:[#allocation10 + $0x18c4] sm:$0xf0]  ;;  %22438 = vst [vmem:[#allocation80_spill] sm:$0xff] %v21805_v28 }
 0x42a   :  { %9745 = vmatpush.bf16.msra.mxu2 %v16416_v51  ;;  %v16040_v40 = vor.u32 %v19912_v42, %v16039_v19  ;;  %9647 = vmatpush.bf16.msra.mxu3 %v17432_v61  ;;  %v19880_v33 = vld [vmem:[#allocation10 + $0xed4] sm:$0xf0]  ;;  %v16160_v19 = vor.u32 %v19943_v34, %v16159_v15  ;;  %v17176_v31 = vor.u32 %v20198_v52, %v17175_v39  ;;  %v20374_v15 = vld [vmem:[#allocation10 + $0x1e4c] sm:$0xf]  ;;  %v22354_v52 = vperm.slane %v21785_v55, 1 }
 0x42b   :  { %v17060_v61 = vor.u32 %v20151_v48, %v17057_v4  ;;  %v19848_v42 = vld [vmem:[#allocation10 + $0xdd4] sm:$0xf0]  ;;  %v17948_v34 = vor.u32 %v20374_v15, %v17945_v38  ;;  %v17689_v15 = vld [vmem:[#allocation10 + $0x1cc8] sm:$0xf0]  ;;  %v19608_v28 = vld [vmem:[#allocation10 + $0x65c] sm:$0xf] }
 0x42c   :  { %v19560_v48 = vld [vmem:[#allocation10 + $0x4d4] sm:$0xf0]  ;;  %v14889_v37 = vld [vmem:[#allocation10 + $0x6d8] sm:$0xf0] }
 0x42d   :  { %9774 = vmatpush.bf16.msrb.mxu0 %v14244_v13  ;;  %9788 = vmatpush.bf16.msrb.mxu1 %v15268_v16  ;;  %v15911_v13 = vld [vmem:[#allocation10 + $0xe58] sm:$0xf]  ;;  %v14888_v16 = vor.u32 %v19624_v23, %v14887_v29  ;;  %v18076_v29 = vor.u32 %v20406_v62, %v18073_v36  ;;  %v20119_v23 = vld [vmem:[#allocation10 + $0x1654] sm:$0xf]  ;;  %v17817_v62 = vld [vmem:[#allocation10 + $0x1dc8] sm:$0xf0] }
 0x42e   :  { %9746 = vmatpush.bf16.msra.mxu2 %v16288_v2  ;;  %v15912_v51 = vor.u32 %v19880_v33, %v15911_v13  ;;  %9648 = vmatpush.bf16.msra.mxu3 %v17304_v11  ;;  %v14631_v2 = vld [vmem:[#allocation10 + $0x458] sm:$0xf]  ;;  %v20087_v13 = vld [vmem:[#allocation10 + $0x1554] sm:$0xf] }
 0x42f   :  { %v15655_v39 = vld [vmem:[#allocation10 + $0xc58] sm:$0xf]  ;;  %v16801_v33 = vld [vmem:[#allocation10 + $0x15d0] sm:$0xf0]  ;;  %v14632_v4 = vor.u32 %v19560_v48, %v14631_v2 }
 0x430   :  { %v19816_v11 = vld [vmem:[#allocation10 + $0xcd4] sm:$0xf0]  ;;  %v16804_v17 = vor.u32 %v20087_v13, %v16801_v33  ;;  %v21817_v13 = vpop.f32.mrf.mxu2 }
 0x431   :  { %9775 = vmatpush.bf16.msrb.mxu0 %v14116_v5  ;;  %9789 = vmatpush.bf16.msrb.mxu1 %v15140_v41  ;;  %v16929_v5 = vld [vmem:[#allocation10 + $0x16d0] sm:$0xf0]  ;;  %v21808_v41 = vpop.f32.mrf.mxu1  ;;  %v15656_v36 = vor.u32 %v19816_v11, %v15655_v39  ;;  %v14375_v2 = vld [vmem:[#allocation10 + $0x258] sm:$0xf]  ;;  %22440 = vst [vmem:[#allocation82_spill] sm:$0xff] %v21817_v13 }
 0x432   :  { %22439 = vst [vmem:[#allocation81_spill] sm:$0xff] %v21808_v41  ;;  %9747 = vmatpush.bf16.msra.mxu2 %v16160_v19  ;;  %9649 = vmatpush.bf16.msra.mxu3 %v17176_v31  ;;  %v14503_v19 = vld [vmem:[#allocation10 + $0x358] sm:$0xf]  ;;  %v19896_v13 = vld [vmem:[#allocation10 + $0xf5c] sm:$0xf] }
 0x433   :  { %v19784_v31 = vld [vmem:[#allocation10 + $0xbd4] sm:$0xf0]  ;;  %v19927_v41 = vld [vmem:[#allocation10 + $0x1054] sm:$0xf] }
 0x434   :  { %9776 = vmatmul.bf16.vlgmr.msrb.gmra.mxu0 %v21401_v53  ;;  %9790 = vmatmul.bf16.vlgmr.msrb.gmra.mxu1 %v21403_v18  ;;  %v19496_v48 = vld [vmem:[#allocation10 + $0x2d4] sm:$0xf0] }
 0x435   :  { %9824 = vmatpush.bf16.msra.mxu0 %v15016_v44  ;;  %9838 = vmatpush.bf16.msra.mxu1 %v16040_v40  ;;  %v15784_v44 = vor.u32 %v19848_v42, %v15783_v0  ;;  %v16932_v40 = vor.u32 %v20119_v23, %v16929_v5  ;;  %v20055_v42 = vld [vmem:[#allocation10 + $0x1454] sm:$0xf]  ;;  %v15399_v11 = vld [vmem:[#allocation10 + $0xa58] sm:$0xf] }
 0x436   :  { %9796 = vmatpush.bf16.msrb.mxu2 %v17060_v61  ;;  %9698 = vmatpush.bf16.msrb.mxu3 %v18076_v29  ;;  %v9553_v61 = vpop.f32.mrf.mxu0  ;;  %v16673_v29 = vld [vmem:[#allocation10 + $0x14d0] sm:$0xf0] }
 0x437   :  { %9748 = vmatmul.bf16.vlgmr.msra.gmra.mxu2 %v21413_v46  ;;  %9650 = vmatmul.bf16.vlgmr.msra.gmra.mxu3 %v21429_v25  ;;  %v9554_v23 = vadd.f32 %v9553_v61, %v22354_v52  ;;  %v16676_v39 = vor.u32 %v20055_v42, %v16673_v29  ;;  %v19464_v61 = vld [vmem:[#allocation10 + $0x1d4] sm:$0xf0]  ;;  %v17433_v52 = vld [vmem:[#allocation10 + $0x1ac8] sm:$0xf0] }
 0x438   :  { %v15271_v42 = vld [vmem:[#allocation10 + $0x958] sm:$0xf] }
 0x439   :  { %9825 = vmatpush.bf16.msra.mxu0 %v14888_v16  ;;  %9839 = vmatpush.bf16.msra.mxu1 %v15912_v51  ;;  %v20342_v16 = vld [vmem:[#allocation10 + $0x1d4c] sm:$0xf]  ;;  %v19528_v51 = vld [vmem:[#allocation10 + $0x3d4] sm:$0xf0]  ;;  %v9567_v38 = vpop.f32.mrf.mxu1 }
 0x43a   :  { %9797 = vmatpush.bf16.msrb.mxu2 %v16932_v40  ;;  %9699 = vmatpush.bf16.msrb.mxu3 %v17948_v34  ;;  %v17820_v0 = vor.u32 %v20342_v16, %v17817_v62  ;;  %v14504_v5 = vor.u32 %v19528_v51, %v14503_v19  ;;  %v21815_v40 = vadd.f32 %v9567_v38, %v9554_v23  ;;  %v19752_v34 = vld [vmem:[#allocation10 + $0xad4] sm:$0xf0]  ;;  %v20023_v16 = vld [vmem:[#allocation10 + $0x1354] sm:$0xf]  ;;  %v21819_v62 = vpop.f32.mrf.mxu3  ;;  %v17561_v51 = vld [vmem:[#allocation10 + $0x1bc8] sm:$0xf0] }
 0x43b   :  { %22441 = vst [vmem:[#allocation83_spill] sm:$0xff] %v21819_v62  ;;  %v14376_v19 = vor.u32 %v19496_v48, %v14375_v2  ;;  %v19720_v29 = vld [vmem:[#allocation10 + $0x9d4] sm:$0xf0]  ;;  %v20246_v38 = vld [vmem:[#allocation10 + $0x1a4c] sm:$0xf] }
 0x43c   :  { %v15272_v2 = vor.u32 %v19720_v29, %v15271_v42  ;;  %v19432_v48 = vld [vmem:[#allocation10 + $0xd4] sm:$0xf0]  ;;  %v20214_v42 = vld [vmem:[#allocation10 + $0x194c] sm:$0xf] }
 0x43d   :  { %9826 = vmatpush.bf16.msra.mxu0 %v14760_v20  ;;  %9840 = vmatpush.bf16.msra.mxu1 %v15784_v44  ;;  %v20310_v20 = vld [vmem:[#allocation10 + $0x1c4c] sm:$0xf]  ;;  %v15528_v44 = vor.u32 %v19784_v31, %v15527_v1  ;;  %v15400_v1 = vor.u32 %v19752_v34, %v15399_v11  ;;  %v14247_v31 = vld [vmem:[#allocation10 + $0x158] sm:$0xf] }
 0x43e   :  { %9798 = vmatpush.bf16.msrb.mxu2 %v16804_v17  ;;  %9700 = vmatpush.bf16.msrb.mxu3 %v17820_v0  ;;  %v17692_v33 = vor.u32 %v20310_v20, %v17689_v15  ;;  %v19991_v0 = vld [vmem:[#allocation10 + $0x1254] sm:$0xf]  ;;  %v14248_v15 = vor.u32 %v19464_v61, %v14247_v31  ;;  %v19688_v11 = vld [vmem:[#allocation10 + $0x8d4] sm:$0xf0]  ;;  %v17305_v29 = vld [vmem:[#allocation10 + $0x19c8] sm:$0xf0] }
 0x43f   :  { %v16417_v20 = vld [vmem:[#allocation10 + $0x12d0] sm:$0xf0]  ;;  %v17063_v62 = vld [vmem:[#allocation10 + $0x1758] sm:$0xf] }
 0x440   :  { %v16420_v34 = vor.u32 %v19991_v0, %v16417_v20 }
 0x441   :  { %9827 = vmatpush.bf16.msra.mxu0 %v14632_v4  ;;  %9841 = vmatpush.bf16.msra.mxu1 %v15656_v36  ;;  %v16545_v4 = vld [vmem:[#allocation10 + $0x13d0] sm:$0xf0]  ;;  %v20278_v36 = vld [vmem:[#allocation10 + $0x1b4c] sm:$0xf] }
 0x442   :  { %9799 = vmatpush.bf16.msrb.mxu2 %v16676_v39  ;;  %v16548_v17 = vor.u32 %v20023_v16, %v16545_v4  ;;  %9701 = vmatpush.bf16.msrb.mxu3 %v17692_v33  ;;  %v17564_v23 = vor.u32 %v20278_v36, %v17561_v51  ;;  %v19959_v39 = vld [vmem:[#allocation10 + $0x1154] sm:$0xf]  ;;  %v19640_v16 = vld [vmem:[#allocation10 + $0x75c] sm:$0xf]  ;;  %v9525_v33 = vpop.f32.mrf.mxu2  ;;  %v17436_v36 = vor.u32 %v20246_v38, %v17433_v52  ;;  %v9427_v31 = vpop.f32.mrf.mxu3  ;;  %v20182_v38 = vld [vmem:[#allocation10 + $0x184c] sm:$0xf] }
 0x443   :  { %v15017_v4 = vld [vmem:[#allocation10 + $0x7d8] sm:$0xf0]  ;;  %v16289_v51 = vld [vmem:[#allocation10 + $0x11d0] sm:$0xf0]  ;;  %v21822_v61 = vadd.f32 %v9525_v33, %v21792_v54  ;;  %v17308_v54 = vor.u32 %v20214_v42, %v17305_v29  ;;  %v20391_v29 = vld [vmem:[#allocation10 + $0x1ecc] sm:$0xf0] }
 0x444   :  { %v15020_v20 = vor.u32 %v19640_v16, %v15017_v4  ;;  %v16161_v33 = vld [vmem:[#allocation10 + $0x10d0] sm:$0xf0]  ;;  %v14761_v16 = vld [vmem:[#allocation10 + $0x5d8] sm:$0xf0] }
 0x445   :  { %9828 = vmatpush.bf16.msra.mxu0 %v14504_v5  ;;  %9842 = vmatpush.bf16.msra.mxu1 %v15528_v44  ;;  %v14119_v5 = vld [vmem:[#allocation10 + $0x58] sm:$0xf] }
 0x446   :  { %v15143_v44 = vld [vmem:[#allocation10 + $0x858] sm:$0xf]  ;;  %9800 = vmatpush.bf16.msrb.mxu2 %v16548_v17  ;;  %9702 = vmatpush.bf16.msrb.mxu3 %v17564_v23  ;;  %v21825_v17 = vadd.f32 %v9427_v31, %v21774_v35  ;;  %v16292_v23 = vor.u32 %v19959_v39, %v16289_v51  ;;  %v19576_v39 = vld [vmem:[#allocation10 + $0x55c] sm:$0xf]  ;;  %v21828_v31 = vpop.f32.mrf.mxu0 }
 0x447   :  { %v15144_v0 = vor.u32 %v19688_v11, %v15143_v44  ;;  %v20168_v35 = vld [vmem:[#allocation10 + $0x17d4] sm:$0xf0]  ;;  %v18079_v44 = vld [vmem:[#allocation10 + $0x1f50] sm:$0xf]  ;;  %v19832_v51 = vld [vmem:[#allocation10 + $0xd5c] sm:$0xf]  ;;  %v14764_v42 = vor.u32 %v19576_v39, %v14761_v16 }
 0x448   :  { %22442 = vst [vmem:[#allocation84_spill] sm:$0xff] %v21825_v17  ;;  %v20423_v11 = vld [vmem:[#allocation10 + $0x1fcc] sm:$0xf0]  ;;  %v19768_v16 = vld [vmem:[#allocation10 + $0xb5c] sm:$0xf] }
 0x449   :  { %9829 = vmatpush.bf16.msra.mxu0 %v14376_v19  ;;  %9843 = vmatpush.bf16.msra.mxu1 %v15400_v1  ;;  %v16041_v19 = vld [vmem:[#allocation10 + $0xfd8] sm:$0xf0]  ;;  %v14120_v1 = vor.u32 %v19432_v48, %v14119_v5  ;;  %v17177_v48 = vld [vmem:[#allocation10 + $0x18c8] sm:$0xf0]  ;;  %22443 = vst [vmem:[#allocation85_spill] sm:$0xff] %v21828_v31 }
 0x44a   :  { %9801 = vmatpush.bf16.msrb.mxu2 %v16420_v34  ;;  %v16044_v52 = vor.u32 %v19896_v13, %v16041_v19  ;;  %9703 = vmatpush.bf16.msrb.mxu3 %v17436_v36  ;;  %v15913_v5 = vld [vmem:[#allocation10 + $0xed8] sm:$0xf0]  ;;  %v16164_v13 = vor.u32 %v19927_v41, %v16161_v33  ;;  %v17180_v4 = vor.u32 %v20182_v38, %v17177_v48  ;;  %v17951_v41 = vld [vmem:[#allocation10 + $0x1e50] sm:$0xf]  ;;  %v22355_v48 = vperm.slane %v21785_v55, 2 }
 0x44b   :  { %v17064_v36 = vor.u32 %v20168_v35, %v17063_v62  ;;  %v15785_v19 = vld [vmem:[#allocation10 + $0xdd8] sm:$0xf0]  ;;  %v17952_v33 = vor.u32 %v20391_v29, %v17951_v41  ;;  %v20327_v41 = vld [vmem:[#allocation10 + $0x1ccc] sm:$0xf0]  ;;  %v16047_v17 = vld [vmem:[#allocation10 + $0xf60] sm:$0xf] }
 0x44c   :  { %v14633_v62 = vld [vmem:[#allocation10 + $0x4d8] sm:$0xf0] }
 0x44d   :  { %9830 = vmatpush.bf16.msra.mxu0 %v14248_v15  ;;  %9844 = vmatpush.bf16.msra.mxu1 %v15272_v2  ;;  %v19864_v15 = vld [vmem:[#allocation10 + $0xe5c] sm:$0xf]  ;;  %v14892_v2 = vor.u32 %v19608_v28, %v14889_v37  ;;  %v18080_v37 = vor.u32 %v20423_v11, %v18079_v44  ;;  %v16935_v28 = vld [vmem:[#allocation10 + $0x1658] sm:$0xf]  ;;  %v20359_v44 = vld [vmem:[#allocation10 + $0x1dcc] sm:$0xf0] }
 0x44e   :  { %9802 = vmatpush.bf16.msrb.mxu2 %v16292_v23  ;;  %v15916_v34 = vor.u32 %v19864_v15, %v15913_v5  ;;  %9704 = vmatpush.bf16.msrb.mxu3 %v17308_v54  ;;  %v19544_v23 = vld [vmem:[#allocation10 + $0x45c] sm:$0xf]  ;;  %v16807_v15 = vld [vmem:[#allocation10 + $0x1558] sm:$0xf] }
 0x44f   :  { %v19800_v38 = vld [vmem:[#allocation10 + $0xc5c] sm:$0xf]  ;;  %v20104_v5 = vld [vmem:[#allocation10 + $0x15d4] sm:$0xf0]  ;;  %v14636_v35 = vor.u32 %v19544_v23, %v14633_v62 }
 0x450   :  { %v15657_v54 = vld [vmem:[#allocation10 + $0xcd8] sm:$0xf0]  ;;  %v16808_v39 = vor.u32 %v20104_v5, %v16807_v15  ;;  %v21840_v15 = vpop.f32.mrf.mxu2 }
 0x451   :  { %9831 = vmatpush.bf16.msra.mxu0 %v14120_v1  ;;  %9845 = vmatpush.bf16.msra.mxu1 %v15144_v0  ;;  %v20136_v1 = vld [vmem:[#allocation10 + $0x16d4] sm:$0xf0]  ;;  %v21831_v0 = vpop.f32.mrf.mxu1  ;;  %v15660_v11 = vor.u32 %v19800_v38, %v15657_v54  ;;  %v19480_v23 = vld [vmem:[#allocation10 + $0x25c] sm:$0xf]  ;;  %22445 = vst [vmem:[#allocation87_spill] sm:$0xff] %v21840_v15 }
 0x452   :  { %22444 = vst [vmem:[#allocation86_spill] sm:$0xff] %v21831_v0  ;;  %9803 = vmatpush.bf16.msrb.mxu2 %v16164_v13  ;;  %9705 = vmatpush.bf16.msrb.mxu3 %v17180_v4  ;;  %v19512_v13 = vld [vmem:[#allocation10 + $0x35c] sm:$0xf]  ;;  %v14895_v15 = vld [vmem:[#allocation10 + $0x660] sm:$0xf] }
 0x453   :  { %v15529_v4 = vld [vmem:[#allocation10 + $0xbd8] sm:$0xf0]  ;;  %v19625_v0 = vld [vmem:[#allocation10 + $0x6dc] sm:$0xf0] }
 0x454   :  { %9832 = vmatmul.bf16.vlgmr.msra.gmra.mxu0 %v21401_v53  ;;  %9846 = vmatmul.bf16.vlgmr.msra.gmra.mxu1 %v21403_v18  ;;  %v14377_v62 = vld [vmem:[#allocation10 + $0x2d8] sm:$0xf0] }
 0x455   :  { %9880 = vmatpush.bf16.msrb.mxu0 %v15020_v20  ;;  %9894 = vmatpush.bf16.msrb.mxu1 %v16044_v52  ;;  %v15788_v20 = vor.u32 %v19832_v51, %v15785_v19  ;;  %v16936_v52 = vor.u32 %v20136_v1, %v16935_v28  ;;  %v16679_v19 = vld [vmem:[#allocation10 + $0x1458] sm:$0xf]  ;;  %v19736_v54 = vld [vmem:[#allocation10 + $0xa5c] sm:$0xf] }
 0x456   :  { %9852 = vmatpush.bf16.msra.mxu2 %v17064_v36  ;;  %9754 = vmatpush.bf16.msra.mxu3 %v18080_v37  ;;  %v9609_v36 = vpop.f32.mrf.mxu0  ;;  %v20072_v37 = vld [vmem:[#allocation10 + $0x14d4] sm:$0xf0]  ;;  %v20152_v31 = vld [vmem:[#allocation10 + $0x175c] sm:$0xf] }
 0x457   :  { %9804 = vmatmul.bf16.vlgmr.msrb.gmra.mxu2 %v21413_v46  ;;  %9706 = vmatmul.bf16.vlgmr.msrb.gmra.mxu3 %v21429_v25  ;;  %v9610_v28 = vadd.f32 %v9609_v36, %v22355_v48  ;;  %v16680_v38 = vor.u32 %v20072_v37, %v16679_v19  ;;  %v14249_v36 = vld [vmem:[#allocation10 + $0x1d8] sm:$0xf0]  ;;  %v20263_v48 = vld [vmem:[#allocation10 + $0x1acc] sm:$0xf0] }
 0x458   :  { %v19704_v19 = vld [vmem:[#allocation10 + $0x95c] sm:$0xf] }
 0x459   :  { %9881 = vmatpush.bf16.msrb.mxu0 %v14892_v2  ;;  %9895 = vmatpush.bf16.msrb.mxu1 %v15916_v34  ;;  %v17823_v2 = vld [vmem:[#allocation10 + $0x1d50] sm:$0xf]  ;;  %v14505_v34 = vld [vmem:[#allocation10 + $0x3d8] sm:$0xf0]  ;;  %v9623_v29 = vpop.f32.mrf.mxu1 }
 0x45a   :  { %9853 = vmatpush.bf16.msra.mxu2 %v16936_v52  ;;  %9755 = vmatpush.bf16.msra.mxu3 %v17952_v33  ;;  %v17824_v51 = vor.u32 %v20359_v44, %v17823_v2  ;;  %v14508_v1 = vor.u32 %v19512_v13, %v14505_v34  ;;  %v21838_v52 = vadd.f32 %v9623_v29, %v9610_v28  ;;  %v15401_v33 = vld [vmem:[#allocation10 + $0xad8] sm:$0xf0]  ;;  %v16551_v2 = vld [vmem:[#allocation10 + $0x1358] sm:$0xf]  ;;  %v21842_v44 = vpop.f32.mrf.mxu3  ;;  %v20295_v34 = vld [vmem:[#allocation10 + $0x1bcc] sm:$0xf0] }
 0x45b   :  { %22446 = vst [vmem:[#allocation88_spill] sm:$0xff] %v21842_v44  ;;  %v14380_v13 = vor.u32 %v19480_v23, %v14377_v62  ;;  %v15273_v37 = vld [vmem:[#allocation10 + $0x9d8] sm:$0xf0]  ;;  %v17439_v29 = vld [vmem:[#allocation10 + $0x1a50] sm:$0xf] }
 0x45c   :  { %v15276_v23 = vor.u32 %v19704_v19, %v15273_v37  ;;  %v14121_v62 = vld [vmem:[#allocation10 + $0xd8] sm:$0xf0]  ;;  %v17311_v19 = vld [vmem:[#allocation10 + $0x1950] sm:$0xf]  ;;  %v16167_v44 = vld [vmem:[#allocation10 + $0x1058] sm:$0xf] }
 0x45d   :  { %9882 = vmatpush.bf16.msrb.mxu0 %v14764_v42  ;;  %9896 = vmatpush.bf16.msrb.mxu1 %v15788_v20  ;;  %v17695_v42 = vld [vmem:[#allocation10 + $0x1c50] sm:$0xf]  ;;  %v15532_v20 = vor.u32 %v19768_v16, %v15529_v4  ;;  %v15404_v16 = vor.u32 %v19736_v54, %v15401_v33  ;;  %v19448_v4 = vld [vmem:[#allocation10 + $0x15c] sm:$0xf] }
 0x45e   :  { %9854 = vmatpush.bf16.msra.mxu2 %v16808_v39  ;;  %9756 = vmatpush.bf16.msra.mxu3 %v17824_v51  ;;  %v17696_v5 = vor.u32 %v20327_v41, %v17695_v42  ;;  %v16423_v51 = vld [vmem:[#allocation10 + $0x1258] sm:$0xf]  ;;  %v14252_v41 = vor.u32 %v19448_v4, %v14249_v36  ;;  %v15145_v54 = vld [vmem:[#allocation10 + $0x8d8] sm:$0xf0]  ;;  %v20231_v37 = vld [vmem:[#allocation10 + $0x19cc] sm:$0xf0] }
 0x45f   :  { %v20008_v42 = vld [vmem:[#allocation10 + $0x12d4] sm:$0xf0] }
 0x460   :  { %v16424_v33 = vor.u32 %v20008_v42, %v16423_v51 }
 0x461   :  { %9883 = vmatpush.bf16.msrb.mxu0 %v14636_v35  ;;  %9897 = vmatpush.bf16.msrb.mxu1 %v15660_v11  ;;  %v20040_v35 = vld [vmem:[#allocation10 + $0x13d4] sm:$0xf0]  ;;  %v17567_v11 = vld [vmem:[#allocation10 + $0x1b50] sm:$0xf] }
 0x462   :  { %9855 = vmatpush.bf16.msra.mxu2 %v16680_v38  ;;  %v16552_v39 = vor.u32 %v20040_v35, %v16551_v2  ;;  %9757 = vmatpush.bf16.msra.mxu3 %v17696_v5  ;;  %v17568_v28 = vor.u32 %v20295_v34, %v17567_v11  ;;  %v16295_v38 = vld [vmem:[#allocation10 + $0x1158] sm:$0xf]  ;;  %v15023_v2 = vld [vmem:[#allocation10 + $0x760] sm:$0xf]  ;;  %v9581_v5 = vpop.f32.mrf.mxu2  ;;  %v17440_v11 = vor.u32 %v20263_v48, %v17439_v29  ;;  %v9483_v4 = vpop.f32.mrf.mxu3  ;;  %v17183_v29 = vld [vmem:[#allocation10 + $0x1850] sm:$0xf] }
 0x463   :  { %v19657_v35 = vld [vmem:[#allocation10 + $0x7dc] sm:$0xf0]  ;;  %v19976_v34 = vld [vmem:[#allocation10 + $0x11d4] sm:$0xf0]  ;;  %v21845_v36 = vadd.f32 %v9581_v5, %v21815_v40  ;;  %v17312_v40 = vor.u32 %v20231_v37, %v17311_v19  ;;  %v17953_v37 = vld [vmem:[#allocation10 + $0x1ed0] sm:$0xf0] }
 0x464   :  { %v15024_v42 = vor.u32 %v19657_v35, %v15023_v2  ;;  %v19944_v5 = vld [vmem:[#allocation10 + $0x10d4] sm:$0xf0]  ;;  %v19593_v2 = vld [vmem:[#allocation10 + $0x5dc] sm:$0xf0] }
 0x465   :  { %9884 = vmatpush.bf16.msrb.mxu0 %v14508_v1  ;;  %9898 = vmatpush.bf16.msrb.mxu1 %v15532_v20  ;;  %v19416_v1 = vld [vmem:[#allocation10 + $0x5c] sm:$0xf] }
 0x466   :  { %v19672_v20 = vld [vmem:[#allocation10 + $0x85c] sm:$0xf]  ;;  %9856 = vmatpush.bf16.msra.mxu2 %v16552_v39  ;;  %9758 = vmatpush.bf16.msra.mxu3 %v17568_v28  ;;  %v21848_v39 = vadd.f32 %v9483_v4, %v21799_v24  ;;  %v16296_v28 = vor.u32 %v19976_v34, %v16295_v38  ;;  %v14767_v38 = vld [vmem:[#allocation10 + $0x560] sm:$0xf]  ;;  %v21851_v4 = vpop.f32.mrf.mxu0 }
 0x467   :  { %v15148_v51 = vor.u32 %v19672_v20, %v15145_v54  ;;  %v17065_v24 = vld [vmem:[#allocation10 + $0x17d8] sm:$0xf0]  ;;  %v20407_v20 = vld [vmem:[#allocation10 + $0x1f54] sm:$0xf]  ;;  %v15791_v34 = vld [vmem:[#allocation10 + $0xd60] sm:$0xf]  ;;  %v14768_v19 = vor.u32 %v19593_v2, %v14767_v38 }
 0x468   :  { %22447 = vst [vmem:[#allocation89_spill] sm:$0xff] %v21848_v39  ;;  %v18081_v54 = vld [vmem:[#allocation10 + $0x1fd0] sm:$0xf0]  ;;  %v15535_v2 = vld [vmem:[#allocation10 + $0xb60] sm:$0xf] }
 0x469   :  { %9885 = vmatpush.bf16.msrb.mxu0 %v14380_v13  ;;  %9899 = vmatpush.bf16.msrb.mxu1 %v15404_v16  ;;  %v19913_v13 = vld [vmem:[#allocation10 + $0xfdc] sm:$0xf0]  ;;  %v14124_v16 = vor.u32 %v19416_v1, %v14121_v62  ;;  %v20199_v62 = vld [vmem:[#allocation10 + $0x18cc] sm:$0xf0]  ;;  %22448 = vst [vmem:[#allocation90_spill] sm:$0xff] %v21851_v4 }
 0x46a   :  { %9857 = vmatpush.bf16.msra.mxu2 %v16424_v33  ;;  %v16048_v48 = vor.u32 %v19913_v13, %v16047_v17  ;;  %9759 = vmatpush.bf16.msra.mxu3 %v17440_v11  ;;  %v19881_v1 = vld [vmem:[#allocation10 + $0xedc] sm:$0xf0]  ;;  %v16168_v17 = vor.u32 %v19944_v5, %v16167_v44  ;;  %v17184_v35 = vor.u32 %v20199_v62, %v17183_v29  ;;  %v20375_v44 = vld [vmem:[#allocation10 + $0x1e54] sm:$0xf]  ;;  %v22356_v62 = vperm.slane %v21785_v55, 3 }
 0x46b   :  { %v17068_v11 = vor.u32 %v20152_v31, %v17065_v24  ;;  %v19849_v13 = vld [vmem:[#allocation10 + $0xddc] sm:$0xf0]  ;;  %v17956_v5 = vor.u32 %v20375_v44, %v17953_v37  ;;  %v17697_v44 = vld [vmem:[#allocation10 + $0x1cd0] sm:$0xf0]  ;;  %v19897_v39 = vld [vmem:[#allocation10 + $0xf64] sm:$0xf] }
 0x46c   :  { %v19561_v31 = vld [vmem:[#allocation10 + $0x4dc] sm:$0xf0]  ;;  %v14897_v4 = vld [vmem:[#allocation10 + $0x6e0] sm:$0xf0] }
 0x46d   :  { %9886 = vmatpush.bf16.msrb.mxu0 %v14252_v41  ;;  %9900 = vmatpush.bf16.msrb.mxu1 %v15276_v23  ;;  %v15919_v41 = vld [vmem:[#allocation10 + $0xe60] sm:$0xf]  ;;  %v14896_v23 = vor.u32 %v19625_v0, %v14895_v15  ;;  %v18084_v0 = vor.u32 %v20407_v20, %v18081_v54  ;;  %v20120_v15 = vld [vmem:[#allocation10 + $0x165c] sm:$0xf]  ;;  %v17825_v20 = vld [vmem:[#allocation10 + $0x1dd0] sm:$0xf0] }
 0x46e   :  { %9858 = vmatpush.bf16.msra.mxu2 %v16296_v28  ;;  %v15920_v33 = vor.u32 %v19881_v1, %v15919_v41  ;;  %9760 = vmatpush.bf16.msra.mxu3 %v17312_v40  ;;  %v14639_v28 = vld [vmem:[#allocation10 + $0x460] sm:$0xf]  ;;  %v20088_v41 = vld [vmem:[#allocation10 + $0x155c] sm:$0xf]  ;;  %v20153_v55 = vld [vmem:[#allocation10 + $0x1764] sm:$0xf] }
 0x46f   :  { %v15663_v29 = vld [vmem:[#allocation10 + $0xc60] sm:$0xf]  ;;  %v16809_v1 = vld [vmem:[#allocation10 + $0x15d8] sm:$0xf0]  ;;  %v14640_v24 = vor.u32 %v19561_v31, %v14639_v28 }
 0x470   :  { %v19817_v40 = vld [vmem:[#allocation10 + $0xcdc] sm:$0xf0]  ;;  %v16812_v38 = vor.u32 %v20088_v41, %v16809_v1  ;;  %v21863_v41 = vpop.f32.mrf.mxu2 }
 0x471   :  { %9887 = vmatpush.bf16.msrb.mxu0 %v14124_v16  ;;  %9901 = vmatpush.bf16.msrb.mxu1 %v15148_v51  ;;  %v16937_v16 = vld [vmem:[#allocation10 + $0x16d8] sm:$0xf0]  ;;  %v21854_v51 = vpop.f32.mrf.mxu1  ;;  %v15664_v54 = vor.u32 %v19817_v40, %v15663_v29  ;;  %v14383_v28 = vld [vmem:[#allocation10 + $0x260] sm:$0xf]  ;;  %22450 = vst [vmem:[#allocation92_spill] sm:$0xff] %v21863_v41 }
 0x472   :  { %22449 = vst [vmem:[#allocation91_spill] sm:$0xff] %v21854_v51  ;;  %9859 = vmatpush.bf16.msra.mxu2 %v16168_v17  ;;  %9761 = vmatpush.bf16.msra.mxu3 %v17184_v35  ;;  %v14511_v17 = vld [vmem:[#allocation10 + $0x360] sm:$0xf]  ;;  %v19609_v51 = vld [vmem:[#allocation10 + $0x664] sm:$0xf] }
 0x473   :  { %v19785_v35 = vld [vmem:[#allocation10 + $0xbdc] sm:$0xf0] }
 0x474   :  { %9888 = vmatmul.bf16.vlgmr.msrb.gmra.mxu0 %v21401_v53  ;;  %9902 = vmatmul.bf16.vlgmr.msrb.gmra.mxu1 %v21403_v18  ;;  %v19497_v31 = vld [vmem:[#allocation10 + $0x2dc] sm:$0xf0] }
 0x475   :  { %9936 = vmatpush.bf16.msra.mxu0 %v15024_v42  ;;  %9950 = vmatpush.bf16.msra.mxu1 %v16048_v48  ;;  %v15792_v42 = vor.u32 %v19849_v13, %v15791_v34  ;;  %v16940_v48 = vor.u32 %v20120_v15, %v16937_v16  ;;  %v20056_v13 = vld [vmem:[#allocation10 + $0x145c] sm:$0xf]  ;;  %v15407_v40 = vld [vmem:[#allocation10 + $0xa60] sm:$0xf] }
 0x476   :  { %9908 = vmatpush.bf16.msrb.mxu2 %v17068_v11  ;;  %9810 = vmatpush.bf16.msrb.mxu3 %v18084_v0  ;;  %v9665_v11 = vpop.f32.mrf.mxu0  ;;  %v16681_v0 = vld [vmem:[#allocation10 + $0x14d8] sm:$0xf0]  ;;  %v17071_v41 = vld [vmem:[#allocation10 + $0x1760] sm:$0xf] }
 0x477   :  { %9860 = vmatmul.bf16.vlgmr.msra.gmra.mxu2 %v21413_v46  ;;  %9762 = vmatmul.bf16.vlgmr.msra.gmra.mxu3 %v21429_v25  ;;  %v9666_v15 = vadd.f32 %v9665_v11, %v22356_v62  ;;  %v16684_v29 = vor.u32 %v20056_v13, %v16681_v0  ;;  %v19465_v11 = vld [vmem:[#allocation10 + $0x1dc] sm:$0xf0]  ;;  %v17441_v62 = vld [vmem:[#allocation10 + $0x1ad0] sm:$0xf0] }
 0x478   :  { %v15279_v13 = vld [vmem:[#allocation10 + $0x960] sm:$0xf] }
 0x479   :  { %9937 = vmatpush.bf16.msra.mxu0 %v14896_v23  ;;  %9951 = vmatpush.bf16.msra.mxu1 %v15920_v33  ;;  %v20343_v23 = vld [vmem:[#allocation10 + $0x1d54] sm:$0xf]  ;;  %v19529_v33 = vld [vmem:[#allocation10 + $0x3dc] sm:$0xf0]  ;;  %v9679_v37 = vpop.f32.mrf.mxu1 }
 0x47a   :  { %9909 = vmatpush.bf16.msrb.mxu2 %v16940_v48  ;;  %9811 = vmatpush.bf16.msrb.mxu3 %v17956_v5  ;;  %v17828_v34 = vor.u32 %v20343_v23, %v17825_v20  ;;  %v14512_v16 = vor.u32 %v19529_v33, %v14511_v17  ;;  %v21861_v48 = vadd.f32 %v9679_v37, %v9666_v15  ;;  %v19753_v5 = vld [vmem:[#allocation10 + $0xadc] sm:$0xf0]  ;;  %v20024_v23 = vld [vmem:[#allocation10 + $0x135c] sm:$0xf]  ;;  %v21865_v20 = vpop.f32.mrf.mxu3  ;;  %v17569_v33 = vld [vmem:[#allocation10 + $0x1bd0] sm:$0xf0] }
 0x47b   :  { %22451 = vst [vmem:[#allocation93_spill] sm:$0xff] %v21865_v20  ;;  %v14384_v17 = vor.u32 %v19497_v31, %v14383_v28  ;;  %v19721_v0 = vld [vmem:[#allocation10 + $0x9dc] sm:$0xf0]  ;;  %v20247_v37 = vld [vmem:[#allocation10 + $0x1a54] sm:$0xf] }
 0x47c   :  { %v15280_v28 = vor.u32 %v19721_v0, %v15279_v13  ;;  %v19433_v31 = vld [vmem:[#allocation10 + $0xdc] sm:$0xf0]  ;;  %v20215_v13 = vld [vmem:[#allocation10 + $0x1954] sm:$0xf]  ;;  %v19928_v20 = vld [vmem:[#allocation10 + $0x105c] sm:$0xf] }
 0x47d   :  { %9938 = vmatpush.bf16.msra.mxu0 %v14768_v19  ;;  %9952 = vmatpush.bf16.msra.mxu1 %v15792_v42  ;;  %v20311_v19 = vld [vmem:[#allocation10 + $0x1c54] sm:$0xf]  ;;  %v15536_v42 = vor.u32 %v19785_v35, %v15535_v2  ;;  %v15408_v2 = vor.u32 %v19753_v5, %v15407_v40  ;;  %v14255_v35 = vld [vmem:[#allocation10 + $0x160] sm:$0xf] }
 0x47e   :  { %9910 = vmatpush.bf16.msrb.mxu2 %v16812_v38  ;;  %9812 = vmatpush.bf16.msrb.mxu3 %v17828_v34  ;;  %v17700_v1 = vor.u32 %v20311_v19, %v17697_v44  ;;  %v19992_v34 = vld [vmem:[#allocation10 + $0x125c] sm:$0xf]  ;;  %v14256_v44 = vor.u32 %v19465_v11, %v14255_v35  ;;  %v19689_v40 = vld [vmem:[#allocation10 + $0x8dc] sm:$0xf0]  ;;  %v17313_v0 = vld [vmem:[#allocation10 + $0x19d0] sm:$0xf0] }
 0x47f   :  { %v16425_v19 = vld [vmem:[#allocation10 + $0x12d8] sm:$0xf0] }
 0x480   :  { %v16428_v5 = vor.u32 %v19992_v34, %v16425_v19 }
 0x481   :  { %9939 = vmatpush.bf16.msra.mxu0 %v14640_v24  ;;  %9953 = vmatpush.bf16.msra.mxu1 %v15664_v54  ;;  %v16553_v24 = vld [vmem:[#allocation10 + $0x13d8] sm:$0xf0]  ;;  %v20279_v54 = vld [vmem:[#allocation10 + $0x1b54] sm:$0xf] }
 0x482   :  { %9911 = vmatpush.bf16.msrb.mxu2 %v16684_v29  ;;  %v16556_v38 = vor.u32 %v20024_v23, %v16553_v24  ;;  %9813 = vmatpush.bf16.msrb.mxu3 %v17700_v1  ;;  %v17572_v15 = vor.u32 %v20279_v54, %v17569_v33  ;;  %v19960_v29 = vld [vmem:[#allocation10 + $0x115c] sm:$0xf]  ;;  %v19641_v23 = vld [vmem:[#allocation10 + $0x764] sm:$0xf]  ;;  %v9637_v1 = vpop.f32.mrf.mxu2  ;;  %v17444_v54 = vor.u32 %v20247_v37, %v17441_v62  ;;  %v9539_v35 = vpop.f32.mrf.mxu3  ;;  %v20183_v37 = vld [vmem:[#allocation10 + $0x1854] sm:$0xf] }
 0x483   :  { %v15025_v24 = vld [vmem:[#allocation10 + $0x7e0] sm:$0xf0]  ;;  %v16297_v33 = vld [vmem:[#allocation10 + $0x11d8] sm:$0xf0]  ;;  %v21868_v11 = vadd.f32 %v9637_v1, %v21838_v52  ;;  %v17316_v52 = vor.u32 %v20215_v13, %v17313_v0  ;;  %v20392_v0 = vld [vmem:[#allocation10 + $0x1ed4] sm:$0xf0] }
 0x484   :  { %v15028_v19 = vor.u32 %v19641_v23, %v15025_v24  ;;  %v16169_v1 = vld [vmem:[#allocation10 + $0x10d8] sm:$0xf0]  ;;  %v14769_v23 = vld [vmem:[#allocation10 + $0x5e0] sm:$0xf0] }
 0x485   :  { %9940 = vmatpush.bf16.msra.mxu0 %v14512_v16  ;;  %9954 = vmatpush.bf16.msra.mxu1 %v15536_v42  ;;  %v14127_v16 = vld [vmem:[#allocation10 + $0x60] sm:$0xf] }
 0x486   :  { %v15151_v42 = vld [vmem:[#allocation10 + $0x860] sm:$0xf]  ;;  %9912 = vmatpush.bf16.msrb.mxu2 %v16556_v38  ;;  %9814 = vmatpush.bf16.msrb.mxu3 %v17572_v15  ;;  %v21871_v38 = vadd.f32 %v9539_v35, %v21822_v61  ;;  %v16300_v15 = vor.u32 %v19960_v29, %v16297_v33  ;;  %v19577_v29 = vld [vmem:[#allocation10 + $0x564] sm:$0xf]  ;;  %v21874_v35 = vpop.f32.mrf.mxu0 }
 0x487   :  { %v15152_v34 = vor.u32 %v19689_v40, %v15151_v42  ;;  %v20169_v61 = vld [vmem:[#allocation10 + $0x17dc] sm:$0xf0]  ;;  %v18087_v42 = vld [vmem:[#allocation10 + $0x1f58] sm:$0xf]  ;;  %v19833_v33 = vld [vmem:[#allocation10 + $0xd64] sm:$0xf]  ;;  %v14772_v13 = vor.u32 %v19577_v29, %v14769_v23 }
 0x488   :  { %22452 = vst [vmem:[#allocation94_spill] sm:$0xff] %v21871_v38  ;;  %v20424_v40 = vld [vmem:[#allocation10 + $0x1fd4] sm:$0xf0]  ;;  %v14513_v29 = vld [vmem:[#allocation10 + $0x3e0] sm:$0xf0] }
 0x489   :  { %9941 = vmatpush.bf16.msra.mxu0 %v14384_v17  ;;  %9955 = vmatpush.bf16.msra.mxu1 %v15408_v2  ;;  %v16049_v17 = vld [vmem:[#allocation10 + $0xfe0] sm:$0xf0]  ;;  %v14128_v2 = vor.u32 %v19433_v31, %v14127_v16  ;;  %v17185_v31 = vld [vmem:[#allocation10 + $0x18d0] sm:$0xf0]  ;;  %22453 = vst [vmem:[#allocation95_spill] sm:$0xff] %v21874_v35 }
 0x48a   :  { %9913 = vmatpush.bf16.msrb.mxu2 %v16428_v5  ;;  %v16052_v62 = vor.u32 %v19897_v39, %v16049_v17  ;;  %9815 = vmatpush.bf16.msrb.mxu3 %v17444_v54  ;;  %v15921_v16 = vld [vmem:[#allocation10 + $0xee0] sm:$0xf0]  ;;  %v16172_v39 = vor.u32 %v19928_v20, %v16169_v1  ;;  %v17188_v24 = vor.u32 %v20183_v37, %v17185_v31  ;;  %v17959_v20 = vld [vmem:[#allocation10 + $0x1e58] sm:$0xf]  ;;  %v21880_v31 = vld [vmem:[#allocation11 + $0x10] sm:$0xff] }
 0x48b   :  { %v17072_v54 = vor.u32 %v20169_v61, %v17071_v41  ;;  %v15793_v17 = vld [vmem:[#allocation10 + $0xde0] sm:$0xf0]  ;;  %v17960_v1 = vor.u32 %v20392_v0, %v17959_v20  ;;  %v22357_v61 = vperm.slane %v21880_v31, 4  ;;  %v17703_v20 = vld [vmem:[#allocation10 + $0x1c58] sm:$0xf] }
 0x48c   :  { %v14641_v41 = vld [vmem:[#allocation10 + $0x4e0] sm:$0xf0]  ;;  %v20328_v0 = vld [vmem:[#allocation10 + $0x1cd4] sm:$0xf0]  ;;  %v16055_v35 = vld [vmem:[#allocation10 + $0xf68] sm:$0xf] }
 0x48d   :  { %9942 = vmatpush.bf16.msra.mxu0 %v14256_v44  ;;  %9956 = vmatpush.bf16.msra.mxu1 %v15280_v28  ;;  %v19865_v44 = vld [vmem:[#allocation10 + $0xe64] sm:$0xf]  ;;  %v14900_v28 = vor.u32 %v19609_v51, %v14897_v4  ;;  %v18088_v4 = vor.u32 %v20424_v40, %v18087_v42  ;;  %v16943_v51 = vld [vmem:[#allocation10 + $0x1660] sm:$0xf]  ;;  %v17831_v42 = vld [vmem:[#allocation10 + $0x1d58] sm:$0xf] }
 0x48e   :  { %9914 = vmatpush.bf16.msrb.mxu2 %v16300_v15  ;;  %v15924_v5 = vor.u32 %v19865_v44, %v15921_v16  ;;  %9816 = vmatpush.bf16.msrb.mxu3 %v17316_v52  ;;  %v19545_v15 = vld [vmem:[#allocation10 + $0x464] sm:$0xf]  ;;  %v16815_v44 = vld [vmem:[#allocation10 + $0x1560] sm:$0xf]  ;;  %v20360_v40 = vld [vmem:[#allocation10 + $0x1dd4] sm:$0xf0] }
 0x48f   :  { %v19801_v37 = vld [vmem:[#allocation10 + $0xc64] sm:$0xf]  ;;  %v20105_v16 = vld [vmem:[#allocation10 + $0x15dc] sm:$0xf0]  ;;  %v14903_v38 = vld [vmem:[#allocation10 + $0x668] sm:$0xf] }
 0x490   :  { %v15665_v52 = vld [vmem:[#allocation10 + $0xce0] sm:$0xf0]  ;;  %v16816_v23 = vor.u32 %v20105_v16, %v16815_v44  ;;  %v21888_v16 = vpop.f32.mrf.mxu2 }
 0x491   :  { %9943 = vmatpush.bf16.msra.mxu0 %v14128_v2  ;;  %9957 = vmatpush.bf16.msra.mxu1 %v15152_v34  ;;  %v20137_v2 = vld [vmem:[#allocation10 + $0x16dc] sm:$0xf0]  ;;  %v21877_v34 = vpop.f32.mrf.mxu1  ;;  %v15409_v44 = vld [vmem:[#allocation10 + $0xae0] sm:$0xf0]  ;;  %22455 = vst [vmem:[#allocation97_spill] sm:$0xff] %v21888_v16 }
 0x492   :  { %22454 = vst [vmem:[#allocation96_spill] sm:$0xff] %v21877_v34  ;;  %9915 = vmatpush.bf16.msrb.mxu2 %v16172_v39  ;;  %9817 = vmatpush.bf16.msrb.mxu3 %v17188_v24  ;;  %v15668_v39 = vor.u32 %v19801_v37, %v15665_v52  ;;  %v19769_v24 = vld [vmem:[#allocation10 + $0xb64] sm:$0xf]  ;;  %v20264_v34 = vld [vmem:[#allocation10 + $0x1ad4] sm:$0xf0] }
 0x493   :  { %v16175_v16 = vld [vmem:[#allocation10 + $0x1060] sm:$0xf] }
 0x494   :  { %9944 = vmatmul.bf16.vlgmr.msra.gmra.mxu0 %v21401_v53  ;;  %9958 = vmatmul.bf16.vlgmr.msra.gmra.mxu1 %v21403_v18 }
 0x495   :  { %9992 = vmatpush.bf16.msrb.mxu0 %v15028_v19  ;;  %10006 = vmatpush.bf16.msrb.mxu1 %v16052_v62  ;;  %v15796_v19 = vor.u32 %v19833_v33, %v15793_v17  ;;  %v16944_v62 = vor.u32 %v20137_v2, %v16943_v51  ;;  %v9721_v33 = vpop.f32.mrf.mxu0  ;;  %v17832_v17 = vor.u32 %v20360_v40, %v17831_v42  ;;  %v20073_v51 = vld [vmem:[#allocation10 + $0x14dc] sm:$0xf0] }
 0x496   :  { %9964 = vmatpush.bf16.msra.mxu2 %v17072_v54  ;;  %9866 = vmatpush.bf16.msra.mxu3 %v18088_v4  ;;  %v15537_v54 = vld [vmem:[#allocation10 + $0xbe0] sm:$0xf0]  ;;  %v16687_v4 = vld [vmem:[#allocation10 + $0x1460] sm:$0xf]  ;;  %v9722_v2 = vadd.f32 %v9721_v33, %v22357_v61  ;;  %v17704_v42 = vor.u32 %v20328_v0, %v17703_v20  ;;  %v17447_v61 = vld [vmem:[#allocation10 + $0x1a58] sm:$0xf] }
 0x497   :  { %9916 = vmatmul.bf16.vlgmr.msrb.gmra.mxu2 %v21413_v46  ;;  %9818 = vmatmul.bf16.vlgmr.msrb.gmra.mxu3 %v21429_v25  ;;  %v16688_v52 = vor.u32 %v20073_v51, %v16687_v4  ;;  %v16559_v40 = vld [vmem:[#allocation10 + $0x1360] sm:$0xf]  ;;  %v19449_v33 = vld [vmem:[#allocation10 + $0x164] sm:$0xf] }
 0x498   :  { %v19705_v4 = vld [vmem:[#allocation10 + $0x964] sm:$0xf]  ;;  %v20009_v20 = vld [vmem:[#allocation10 + $0x12dc] sm:$0xf0] }
 0x499   :  { %9993 = vmatpush.bf16.msrb.mxu0 %v14900_v28  ;;  %10007 = vmatpush.bf16.msrb.mxu1 %v15924_v5  ;;  %v14644_v28 = vor.u32 %v19545_v15, %v14641_v41  ;;  %v19513_v5 = vld [vmem:[#allocation10 + $0x364] sm:$0xf]  ;;  %v15540_v15 = vor.u32 %v19769_v24, %v15537_v54  ;;  %v20296_v24 = vld [vmem:[#allocation10 + $0x1bd4] sm:$0xf0] }
 0x49a   :  { %9965 = vmatpush.bf16.msra.mxu2 %v16944_v62  ;;  %9867 = vmatpush.bf16.msra.mxu3 %v17960_v1  ;;  %v19481_v41 = vld [vmem:[#allocation10 + $0x264] sm:$0xf] }
 0x49b   :  { %v14385_v62 = vld [vmem:[#allocation10 + $0x2e0] sm:$0xf0] }
 0x49c   :  { %v19737_v1 = vld [vmem:[#allocation10 + $0xa64] sm:$0xf] }
 0x49d   :  { %9994 = vmatpush.bf16.msrb.mxu0 %v14772_v13  ;;  %10008 = vmatpush.bf16.msrb.mxu1 %v15796_v19  ;;  %v14516_v13 = vor.u32 %v19513_v5, %v14513_v29  ;;  %v9735_v19 = vpop.f32.mrf.mxu1  ;;  %v21890_v5 = vpop.f32.mrf.mxu3  ;;  %v14388_v29 = vor.u32 %v19481_v41, %v14385_v62  ;;  %v15412_v54 = vor.u32 %v19737_v1, %v15409_v44  ;;  %v15281_v51 = vld [vmem:[#allocation10 + $0x9e0] sm:$0xf0] }
 0x49e   :  { %v21886_v37 = vadd.f32 %v9735_v19, %v9722_v2  ;;  %9966 = vmatpush.bf16.msra.mxu2 %v16816_v23  ;;  %9868 = vmatpush.bf16.msra.mxu3 %v17832_v17  ;;  %22456 = vst [vmem:[#allocation98_spill] sm:$0xff] %v21890_v5  ;;  %v14257_v2 = vld [vmem:[#allocation10 + $0x1e0] sm:$0xf0]  ;;  %v16431_v17 = vld [vmem:[#allocation10 + $0x1260] sm:$0xf]  ;;  %v15284_v41 = vor.u32 %v19705_v4, %v15281_v51 }
 0x49f   :  { %v14260_v0 = vor.u32 %v19449_v33, %v14257_v2  ;;  %v14129_v62 = vld [vmem:[#allocation10 + $0xe0] sm:$0xf0]  ;;  %v16432_v44 = vor.u32 %v20009_v20, %v16431_v17  ;;  %v17319_v4 = vld [vmem:[#allocation10 + $0x1958] sm:$0xf]  ;;  %v19626_v5 = vld [vmem:[#allocation10 + $0x6e4] sm:$0xf0] }
 0x4a0   :  { %v15153_v1 = vld [vmem:[#allocation10 + $0x8e0] sm:$0xf0]  ;;  %v20232_v51 = vld [vmem:[#allocation10 + $0x19d4] sm:$0xf0] }
 0x4a1   :  { %9995 = vmatpush.bf16.msrb.mxu0 %v14644_v28  ;;  %10009 = vmatpush.bf16.msrb.mxu1 %v15668_v39  ;;  %v20041_v28 = vld [vmem:[#allocation10 + $0x13dc] sm:$0xf0]  ;;  %v17575_v39 = vld [vmem:[#allocation10 + $0x1b58] sm:$0xf] }
 0x4a2   :  { %9967 = vmatpush.bf16.msra.mxu2 %v16688_v52  ;;  %v16560_v23 = vor.u32 %v20041_v28, %v16559_v40  ;;  %9869 = vmatpush.bf16.msra.mxu3 %v17704_v42  ;;  %v17576_v19 = vor.u32 %v20296_v24, %v17575_v39  ;;  %v16303_v52 = vld [vmem:[#allocation10 + $0x1160] sm:$0xf]  ;;  %v15031_v40 = vld [vmem:[#allocation10 + $0x768] sm:$0xf]  ;;  %v9693_v42 = vpop.f32.mrf.mxu2  ;;  %v17448_v39 = vor.u32 %v20264_v34, %v17447_v61  ;;  %v17191_v61 = vld [vmem:[#allocation10 + $0x1858] sm:$0xf] }
 0x4a3   :  { %v19658_v28 = vld [vmem:[#allocation10 + $0x7e4] sm:$0xf0]  ;;  %v19977_v24 = vld [vmem:[#allocation10 + $0x11dc] sm:$0xf0]  ;;  %v21893_v2 = vadd.f32 %v9693_v42, %v21861_v48  ;;  %v17320_v48 = vor.u32 %v20232_v51, %v17319_v4  ;;  %v17961_v51 = vld [vmem:[#allocation10 + $0x1ed8] sm:$0xf0] }
 0x4a4   :  { %v15032_v20 = vor.u32 %v19658_v28, %v15031_v40  ;;  %v19945_v42 = vld [vmem:[#allocation10 + $0x10dc] sm:$0xf0]  ;;  %v19594_v40 = vld [vmem:[#allocation10 + $0x5e4] sm:$0xf0] }
 0x4a5   :  { %9996 = vmatpush.bf16.msrb.mxu0 %v14516_v13  ;;  %10010 = vmatpush.bf16.msrb.mxu1 %v15540_v15  ;;  %v19417_v13 = vld [vmem:[#allocation10 + $0x64] sm:$0xf]  ;;  %v9595_v33 = vpop.f32.mrf.mxu3 }
 0x4a6   :  { %v19673_v15 = vld [vmem:[#allocation10 + $0x864] sm:$0xf]  ;;  %9968 = vmatpush.bf16.msra.mxu2 %v16560_v23  ;;  %9870 = vmatpush.bf16.msra.mxu3 %v17576_v19  ;;  %v21896_v23 = vadd.f32 %v9595_v33, %v21845_v36  ;;  %v16304_v19 = vor.u32 %v19977_v24, %v16303_v52  ;;  %v14775_v52 = vld [vmem:[#allocation10 + $0x568] sm:$0xf]  ;;  %v21899_v33 = vpop.f32.mrf.mxu0 }
 0x4a7   :  { %v15156_v17 = vor.u32 %v19673_v15, %v15153_v1  ;;  %v17073_v36 = vld [vmem:[#allocation10 + $0x17e0] sm:$0xf0]  ;;  %v20408_v15 = vld [vmem:[#allocation10 + $0x1f5c] sm:$0xf]  ;;  %v15799_v24 = vld [vmem:[#allocation10 + $0xd68] sm:$0xf]  ;;  %v14776_v4 = vor.u32 %v19594_v40, %v14775_v52 }
 0x4a8   :  { %22457 = vst [vmem:[#allocation99_spill] sm:$0xff] %v21896_v23  ;;  %v18089_v1 = vld [vmem:[#allocation10 + $0x1fd8] sm:$0xf0]  ;;  %v15543_v40 = vld [vmem:[#allocation10 + $0xb68] sm:$0xf] }
 0x4a9   :  { %9997 = vmatpush.bf16.msrb.mxu0 %v14388_v29  ;;  %10011 = vmatpush.bf16.msrb.mxu1 %v15412_v54  ;;  %v19914_v29 = vld [vmem:[#allocation10 + $0xfe4] sm:$0xf0]  ;;  %v14132_v54 = vor.u32 %v19417_v13, %v14129_v62  ;;  %v20200_v62 = vld [vmem:[#allocation10 + $0x18d4] sm:$0xf0]  ;;  %22458 = vst [vmem:[#allocation100_spill] sm:$0xff] %v21899_v33 }
 0x4aa   :  { %9969 = vmatpush.bf16.msra.mxu2 %v16432_v44  ;;  %v16056_v34 = vor.u32 %v19914_v29, %v16055_v35  ;;  %9871 = vmatpush.bf16.msra.mxu3 %v17448_v39  ;;  %v19882_v13 = vld [vmem:[#allocation10 + $0xee4] sm:$0xf0]  ;;  %v16176_v35 = vor.u32 %v19945_v42, %v16175_v16  ;;  %v17192_v28 = vor.u32 %v20200_v62, %v17191_v61  ;;  %v20376_v16 = vld [vmem:[#allocation10 + $0x1e5c] sm:$0xf]  ;;  %v22360_v62 = vperm.slane %v21880_v31, 5 }
 0x4ab   :  { %v17076_v39 = vor.u32 %v20153_v55, %v17073_v36  ;;  %v19850_v29 = vld [vmem:[#allocation10 + $0xde4] sm:$0xf0]  ;;  %v17964_v42 = vor.u32 %v20376_v16, %v17961_v51  ;;  %v17705_v16 = vld [vmem:[#allocation10 + $0x1cd8] sm:$0xf0]  ;;  %v19610_v33 = vld [vmem:[#allocation10 + $0x66c] sm:$0xf] }
 0x4ac   :  { %v19562_v55 = vld [vmem:[#allocation10 + $0x4e4] sm:$0xf0]  ;;  %v14905_v23 = vld [vmem:[#allocation10 + $0x6e8] sm:$0xf0] }
 0x4ad   :  { %9998 = vmatpush.bf16.msrb.mxu0 %v14260_v0  ;;  %10012 = vmatpush.bf16.msrb.mxu1 %v15284_v41  ;;  %v15927_v0 = vld [vmem:[#allocation10 + $0xe68] sm:$0xf]  ;;  %v14904_v41 = vor.u32 %v19626_v5, %v14903_v38  ;;  %v18092_v38 = vor.u32 %v20408_v15, %v18089_v1  ;;  %v20121_v5 = vld [vmem:[#allocation10 + $0x1664] sm:$0xf]  ;;  %v17833_v15 = vld [vmem:[#allocation10 + $0x1dd8] sm:$0xf0] }
 0x4ae   :  { %9970 = vmatpush.bf16.msra.mxu2 %v16304_v19  ;;  %v15928_v44 = vor.u32 %v19882_v13, %v15927_v0  ;;  %9872 = vmatpush.bf16.msra.mxu3 %v17320_v48  ;;  %v14647_v19 = vld [vmem:[#allocation10 + $0x468] sm:$0xf]  ;;  %v20089_v0 = vld [vmem:[#allocation10 + $0x1564] sm:$0xf] }
 0x4af   :  { %v15671_v61 = vld [vmem:[#allocation10 + $0xc68] sm:$0xf]  ;;  %v16817_v13 = vld [vmem:[#allocation10 + $0x15e0] sm:$0xf0]  ;;  %v14648_v36 = vor.u32 %v19562_v55, %v14647_v19 }
 0x4b0   :  { %v19818_v48 = vld [vmem:[#allocation10 + $0xce4] sm:$0xf0]  ;;  %v16820_v52 = vor.u32 %v20089_v0, %v16817_v13  ;;  %v21911_v0 = vpop.f32.mrf.mxu2 }
 0x4b1   :  { %9999 = vmatpush.bf16.msrb.mxu0 %v14132_v54  ;;  %10013 = vmatpush.bf16.msrb.mxu1 %v15156_v17  ;;  %v16945_v54 = vld [vmem:[#allocation10 + $0x16e0] sm:$0xf0]  ;;  %v21902_v17 = vpop.f32.mrf.mxu1  ;;  %v15672_v1 = vor.u32 %v19818_v48, %v15671_v61  ;;  %v14391_v19 = vld [vmem:[#allocation10 + $0x268] sm:$0xf]  ;;  %22460 = vst [vmem:[#allocation102_spill] sm:$0xff] %v21911_v0 }
 0x4b2   :  { %22459 = vst [vmem:[#allocation101_spill] sm:$0xff] %v21902_v17  ;;  %9971 = vmatpush.bf16.msra.mxu2 %v16176_v35  ;;  %9873 = vmatpush.bf16.msra.mxu3 %v17192_v28  ;;  %v14519_v35 = vld [vmem:[#allocation10 + $0x368] sm:$0xf]  ;;  %v19898_v0 = vld [vmem:[#allocation10 + $0xf6c] sm:$0xf] }
 0x4b3   :  { %v19786_v28 = vld [vmem:[#allocation10 + $0xbe4] sm:$0xf0]  ;;  %v19929_v17 = vld [vmem:[#allocation10 + $0x1064] sm:$0xf] }
 0x4b4   :  { %10000 = vmatmul.bf16.vlgmr.msrb.gmra.mxu0 %v21401_v53  ;;  %10014 = vmatmul.bf16.vlgmr.msrb.gmra.mxu1 %v21403_v18  ;;  %v19498_v55 = vld [vmem:[#allocation10 + $0x2e4] sm:$0xf0] }
 0x4b5   :  { %10048 = vmatpush.bf16.msra.mxu0 %v15032_v20  ;;  %10062 = vmatpush.bf16.msra.mxu1 %v16056_v34  ;;  %v15800_v20 = vor.u32 %v19850_v29, %v15799_v24  ;;  %v16948_v34 = vor.u32 %v20121_v5, %v16945_v54  ;;  %v20057_v29 = vld [vmem:[#allocation10 + $0x1464] sm:$0xf]  ;;  %v15415_v48 = vld [vmem:[#allocation10 + $0xa68] sm:$0xf] }
 0x4b6   :  { %10020 = vmatpush.bf16.msrb.mxu2 %v17076_v39  ;;  %9922 = vmatpush.bf16.msrb.mxu3 %v18092_v38  ;;  %v9777_v39 = vpop.f32.mrf.mxu0  ;;  %v16689_v38 = vld [vmem:[#allocation10 + $0x14e0] sm:$0xf0] }
 0x4b7   :  { %9972 = vmatmul.bf16.vlgmr.msra.gmra.mxu2 %v21413_v46  ;;  %9874 = vmatmul.bf16.vlgmr.msra.gmra.mxu3 %v21429_v25  ;;  %v9778_v5 = vadd.f32 %v9777_v39, %v22360_v62  ;;  %v16692_v61 = vor.u32 %v20057_v29, %v16689_v38  ;;  %v19466_v39 = vld [vmem:[#allocation10 + $0x1e4] sm:$0xf0]  ;;  %v17449_v62 = vld [vmem:[#allocation10 + $0x1ad8] sm:$0xf0] }
 0x4b8   :  { %v15287_v29 = vld [vmem:[#allocation10 + $0x968] sm:$0xf] }
 0x4b9   :  { %10049 = vmatpush.bf16.msra.mxu0 %v14904_v41  ;;  %10063 = vmatpush.bf16.msra.mxu1 %v15928_v44  ;;  %v20344_v41 = vld [vmem:[#allocation10 + $0x1d5c] sm:$0xf]  ;;  %v19530_v44 = vld [vmem:[#allocation10 + $0x3e4] sm:$0xf0]  ;;  %v9791_v51 = vpop.f32.mrf.mxu1 }
 0x4ba   :  { %10021 = vmatpush.bf16.msrb.mxu2 %v16948_v34  ;;  %9923 = vmatpush.bf16.msrb.mxu3 %v17964_v42  ;;  %v17836_v24 = vor.u32 %v20344_v41, %v17833_v15  ;;  %v14520_v54 = vor.u32 %v19530_v44, %v14519_v35  ;;  %v21909_v34 = vadd.f32 %v9791_v51, %v9778_v5  ;;  %v19754_v42 = vld [vmem:[#allocation10 + $0xae4] sm:$0xf0]  ;;  %v20025_v41 = vld [vmem:[#allocation10 + $0x1364] sm:$0xf]  ;;  %v21913_v15 = vpop.f32.mrf.mxu3  ;;  %v17577_v44 = vld [vmem:[#allocation10 + $0x1bd8] sm:$0xf0] }
 0x4bb   :  { %22461 = vst [vmem:[#allocation103_spill] sm:$0xff] %v21913_v15  ;;  %v14392_v35 = vor.u32 %v19498_v55, %v14391_v19  ;;  %v19722_v38 = vld [vmem:[#allocation10 + $0x9e4] sm:$0xf0]  ;;  %v20248_v51 = vld [vmem:[#allocation10 + $0x1a5c] sm:$0xf] }
 0x4bc   :  { %v15288_v19 = vor.u32 %v19722_v38, %v15287_v29  ;;  %v19434_v55 = vld [vmem:[#allocation10 + $0xe4] sm:$0xf0]  ;;  %v20216_v29 = vld [vmem:[#allocation10 + $0x195c] sm:$0xf] }
 0x4bd   :  { %10050 = vmatpush.bf16.msra.mxu0 %v14776_v4  ;;  %10064 = vmatpush.bf16.msra.mxu1 %v15800_v20  ;;  %v20312_v4 = vld [vmem:[#allocation10 + $0x1c5c] sm:$0xf]  ;;  %v15544_v20 = vor.u32 %v19786_v28, %v15543_v40  ;;  %v15416_v40 = vor.u32 %v19754_v42, %v15415_v48  ;;  %v14263_v28 = vld [vmem:[#allocation10 + $0x168] sm:$0xf] }
 0x4be   :  { %10022 = vmatpush.bf16.msrb.mxu2 %v16820_v52  ;;  %9924 = vmatpush.bf16.msrb.mxu3 %v17836_v24  ;;  %v17708_v13 = vor.u32 %v20312_v4, %v17705_v16  ;;  %v19993_v24 = vld [vmem:[#allocation10 + $0x1264] sm:$0xf]  ;;  %v14264_v16 = vor.u32 %v19466_v39, %v14263_v28  ;;  %v19690_v48 = vld [vmem:[#allocation10 + $0x8e4] sm:$0xf0]  ;;  %v17321_v38 = vld [vmem:[#allocation10 + $0x19d8] sm:$0xf0] }
 0x4bf   :  { %v16433_v4 = vld [vmem:[#allocation10 + $0x12e0] sm:$0xf0]  ;;  %v17079_v15 = vld [vmem:[#allocation10 + $0x1768] sm:$0xf] }
 0x4c0   :  { %v16436_v42 = vor.u32 %v19993_v24, %v16433_v4 }
 0x4c1   :  { %10051 = vmatpush.bf16.msra.mxu0 %v14648_v36  ;;  %10065 = vmatpush.bf16.msra.mxu1 %v15672_v1  ;;  %v16561_v36 = vld [vmem:[#allocation10 + $0x13e0] sm:$0xf0]  ;;  %v20280_v1 = vld [vmem:[#allocation10 + $0x1b5c] sm:$0xf] }
 0x4c2   :  { %10023 = vmatpush.bf16.msrb.mxu2 %v16692_v61  ;;  %v16564_v52 = vor.u32 %v20025_v41, %v16561_v36  ;;  %9925 = vmatpush.bf16.msrb.mxu3 %v17708_v13  ;;  %v17580_v5 = vor.u32 %v20280_v1, %v17577_v44  ;;  %v19961_v61 = vld [vmem:[#allocation10 + $0x1164] sm:$0xf]  ;;  %v19642_v41 = vld [vmem:[#allocation10 + $0x76c] sm:$0xf]  ;;  %v9749_v13 = vpop.f32.mrf.mxu2  ;;  %v17452_v1 = vor.u32 %v20248_v51, %v17449_v62  ;;  %v9651_v28 = vpop.f32.mrf.mxu3  ;;  %v20184_v51 = vld [vmem:[#allocation10 + $0x185c] sm:$0xf] }
 0x4c3   :  { %v15033_v36 = vld [vmem:[#allocation10 + $0x7e8] sm:$0xf0]  ;;  %v16305_v44 = vld [vmem:[#allocation10 + $0x11e0] sm:$0xf0]  ;;  %v21916_v39 = vadd.f32 %v9749_v13, %v21886_v37  ;;  %v17324_v37 = vor.u32 %v20216_v29, %v17321_v38  ;;  %v20393_v38 = vld [vmem:[#allocation10 + $0x1edc] sm:$0xf0] }
 0x4c4   :  { %v15036_v4 = vor.u32 %v19642_v41, %v15033_v36  ;;  %v16177_v13 = vld [vmem:[#allocation10 + $0x10e0] sm:$0xf0]  ;;  %v14777_v41 = vld [vmem:[#allocation10 + $0x5e8] sm:$0xf0] }
 0x4c5   :  { %10052 = vmatpush.bf16.msra.mxu0 %v14520_v54  ;;  %10066 = vmatpush.bf16.msra.mxu1 %v15544_v20  ;;  %v14135_v54 = vld [vmem:[#allocation10 + $0x68] sm:$0xf] }
 0x4c6   :  { %v15159_v20 = vld [vmem:[#allocation10 + $0x868] sm:$0xf]  ;;  %10024 = vmatpush.bf16.msrb.mxu2 %v16564_v52  ;;  %9926 = vmatpush.bf16.msrb.mxu3 %v17580_v5  ;;  %v21919_v52 = vadd.f32 %v9651_v28, %v21868_v11  ;;  %v16308_v5 = vor.u32 %v19961_v61, %v16305_v44  ;;  %v19578_v61 = vld [vmem:[#allocation10 + $0x56c] sm:$0xf]  ;;  %v21922_v28 = vpop.f32.mrf.mxu0 }
 0x4c7   :  { %v15160_v24 = vor.u32 %v19690_v48, %v15159_v20  ;;  %v20170_v11 = vld [vmem:[#allocation10 + $0x17e4] sm:$0xf0]  ;;  %v18095_v20 = vld [vmem:[#allocation10 + $0x1f60] sm:$0xf]  ;;  %v19834_v44 = vld [vmem:[#allocation10 + $0xd6c] sm:$0xf]  ;;  %v14780_v29 = vor.u32 %v19578_v61, %v14777_v41 }
 0x4c8   :  { %22462 = vst [vmem:[#allocation104_spill] sm:$0xff] %v21919_v52  ;;  %v20425_v48 = vld [vmem:[#allocation10 + $0x1fdc] sm:$0xf0]  ;;  %v19770_v41 = vld [vmem:[#allocation10 + $0xb6c] sm:$0xf] }
 0x4c9   :  { %10053 = vmatpush.bf16.msra.mxu0 %v14392_v35  ;;  %10067 = vmatpush.bf16.msra.mxu1 %v15416_v40  ;;  %v16057_v35 = vld [vmem:[#allocation10 + $0xfe8] sm:$0xf0]  ;;  %v14136_v40 = vor.u32 %v19434_v55, %v14135_v54  ;;  %v17193_v55 = vld [vmem:[#allocation10 + $0x18d8] sm:$0xf0]  ;;  %v16063_v52 = vld [vmem:[#allocation10 + $0xf70] sm:$0xf] }
 0x4ca   :  { %10025 = vmatpush.bf16.msrb.mxu2 %v16436_v42  ;;  %v16060_v62 = vor.u32 %v19898_v0, %v16057_v35  ;;  %9927 = vmatpush.bf16.msrb.mxu3 %v17452_v1  ;;  %v15929_v54 = vld [vmem:[#allocation10 + $0xee8] sm:$0xf0]  ;;  %v16180_v0 = vor.u32 %v19929_v17, %v16177_v13  ;;  %v17196_v36 = vor.u32 %v20184_v51, %v17193_v55  ;;  %v17967_v17 = vld [vmem:[#allocation10 + $0x1e60] sm:$0xf]  ;;  %v22361_v55 = vperm.slane %v21880_v31, 6 }
 0x4cb   :  { %v17080_v1 = vor.u32 %v20170_v11, %v17079_v15  ;;  %v15801_v35 = vld [vmem:[#allocation10 + $0xde8] sm:$0xf0]  ;;  %v17968_v13 = vor.u32 %v20393_v38, %v17967_v17  ;;  %v20329_v17 = vld [vmem:[#allocation10 + $0x1cdc] sm:$0xf0] }
 0x4cc   :  { %v14649_v15 = vld [vmem:[#allocation10 + $0x4e8] sm:$0xf0] }
 0x4cd   :  { %10054 = vmatpush.bf16.msra.mxu0 %v14264_v16  ;;  %10068 = vmatpush.bf16.msra.mxu1 %v15288_v19  ;;  %v19866_v16 = vld [vmem:[#allocation10 + $0xe6c] sm:$0xf]  ;;  %v14908_v19 = vor.u32 %v19610_v33, %v14905_v23  ;;  %v18096_v23 = vor.u32 %v20425_v48, %v18095_v20  ;;  %v16951_v33 = vld [vmem:[#allocation10 + $0x1668] sm:$0xf]  ;;  %v20361_v20 = vld [vmem:[#allocation10 + $0x1ddc] sm:$0xf0] }
 0x4ce   :  { %10026 = vmatpush.bf16.msrb.mxu2 %v16308_v5  ;;  %v15932_v42 = vor.u32 %v19866_v16, %v15929_v54  ;;  %9928 = vmatpush.bf16.msrb.mxu3 %v17324_v37  ;;  %v19546_v5 = vld [vmem:[#allocation10 + $0x46c] sm:$0xf]  ;;  %v16823_v16 = vld [vmem:[#allocation10 + $0x1568] sm:$0xf] }
 0x4cf   :  { %v19802_v51 = vld [vmem:[#allocation10 + $0xc6c] sm:$0xf]  ;;  %v20106_v54 = vld [vmem:[#allocation10 + $0x15e4] sm:$0xf0]  ;;  %v14652_v11 = vor.u32 %v19546_v5, %v14649_v15 }
 0x4d0   :  { %v15673_v37 = vld [vmem:[#allocation10 + $0xce8] sm:$0xf0]  ;;  %v16824_v61 = vor.u32 %v20106_v54, %v16823_v16  ;;  %v21934_v16 = vpop.f32.mrf.mxu2 }
 0x4d1   :  { %10055 = vmatpush.bf16.msra.mxu0 %v14136_v40  ;;  %10069 = vmatpush.bf16.msra.mxu1 %v15160_v24  ;;  %v20138_v40 = vld [vmem:[#allocation10 + $0x16e4] sm:$0xf0]  ;;  %v21925_v24 = vpop.f32.mrf.mxu1  ;;  %v15676_v48 = vor.u32 %v19802_v51, %v15673_v37  ;;  %v19482_v5 = vld [vmem:[#allocation10 + $0x26c] sm:$0xf]  ;;  %22463 = vst [vmem:[#allocation105_spill] sm:$0xff] %v21934_v16 }
 0x4d2   :  { %10027 = vmatpush.bf16.msrb.mxu2 %v16180_v0  ;;  %9929 = vmatpush.bf16.msrb.mxu3 %v17196_v36  ;;  %v19514_v0 = vld [vmem:[#allocation10 + $0x36c] sm:$0xf]  ;;  %v14911_v16 = vld [vmem:[#allocation10 + $0x670] sm:$0xf] }
 0x4d3   :  { %v15545_v36 = vld [vmem:[#allocation10 + $0xbe8] sm:$0xf0] }
 0x4d4   :  { %10056 = vmatmul.bf16.vlgmr.msra.gmra.mxu0 %v21401_v53  ;;  %10070 = vmatmul.bf16.vlgmr.msra.gmra.mxu1 %v21403_v18  ;;  %v14393_v15 = vld [vmem:[#allocation10 + $0x2e8] sm:$0xf0] }
 0x4d5   :  { %10104 = vmatpush.bf16.msrb.mxu0 %v15036_v4  ;;  %10118 = vmatpush.bf16.msrb.mxu1 %v16060_v62  ;;  %v15804_v4 = vor.u32 %v19834_v44, %v15801_v35  ;;  %v16952_v62 = vor.u32 %v20138_v40, %v16951_v33  ;;  %v16695_v35 = vld [vmem:[#allocation10 + $0x1468] sm:$0xf]  ;;  %v19738_v37 = vld [vmem:[#allocation10 + $0xa6c] sm:$0xf] }
 0x4d6   :  { %10076 = vmatpush.bf16.msra.mxu2 %v17080_v1  ;;  %9978 = vmatpush.bf16.msra.mxu3 %v18096_v23  ;;  %v9833_v1 = vpop.f32.mrf.mxu0  ;;  %v20074_v23 = vld [vmem:[#allocation10 + $0x14e4] sm:$0xf0] }
 0x4d7   :  { %10028 = vmatmul.bf16.vlgmr.msrb.gmra.mxu2 %v21413_v46  ;;  %9930 = vmatmul.bf16.vlgmr.msrb.gmra.mxu3 %v21429_v25  ;;  %v9834_v33 = vadd.f32 %v9833_v1, %v22361_v55  ;;  %v16696_v51 = vor.u32 %v20074_v23, %v16695_v35  ;;  %v14265_v1 = vld [vmem:[#allocation10 + $0x1e8] sm:$0xf0]  ;;  %v20265_v55 = vld [vmem:[#allocation10 + $0x1adc] sm:$0xf0] }
 0x4d8   :  { %v19706_v35 = vld [vmem:[#allocation10 + $0x96c] sm:$0xf] }
 0x4d9   :  { %10105 = vmatpush.bf16.msrb.mxu0 %v14908_v19  ;;  %10119 = vmatpush.bf16.msrb.mxu1 %v15932_v42  ;;  %v17839_v19 = vld [vmem:[#allocation10 + $0x1d60] sm:$0xf]  ;;  %v14521_v42 = vld [vmem:[#allocation10 + $0x3e8] sm:$0xf0]  ;;  %v9847_v38 = vpop.f32.mrf.mxu1 }
 0x4da   :  { %10077 = vmatpush.bf16.msra.mxu2 %v16952_v62  ;;  %9979 = vmatpush.bf16.msra.mxu3 %v17968_v13  ;;  %v17840_v44 = vor.u32 %v20361_v20, %v17839_v19  ;;  %v14524_v40 = vor.u32 %v19514_v0, %v14521_v42  ;;  %v21932_v62 = vadd.f32 %v9847_v38, %v9834_v33  ;;  %v15417_v13 = vld [vmem:[#allocation10 + $0xae8] sm:$0xf0]  ;;  %v16567_v19 = vld [vmem:[#allocation10 + $0x1368] sm:$0xf]  ;;  %v21936_v20 = vpop.f32.mrf.mxu3  ;;  %v20297_v42 = vld [vmem:[#allocation10 + $0x1bdc] sm:$0xf0] }
 0x4db   :  { %22464 = vst [vmem:[#allocation106_spill] sm:$0xff] %v21936_v20  ;;  %v14396_v0 = vor.u32 %v19482_v5, %v14393_v15  ;;  %v15289_v23 = vld [vmem:[#allocation10 + $0x9e8] sm:$0xf0]  ;;  %v17455_v38 = vld [vmem:[#allocation10 + $0x1a60] sm:$0xf] }
 0x4dc   :  { %v15292_v5 = vor.u32 %v19706_v35, %v15289_v23  ;;  %v14137_v15 = vld [vmem:[#allocation10 + $0xe8] sm:$0xf0]  ;;  %v17327_v35 = vld [vmem:[#allocation10 + $0x1960] sm:$0xf]  ;;  %v16183_v20 = vld [vmem:[#allocation10 + $0x1068] sm:$0xf] }
 0x4dd   :  { %10106 = vmatpush.bf16.msrb.mxu0 %v14780_v29  ;;  %10120 = vmatpush.bf16.msrb.mxu1 %v15804_v4  ;;  %v17711_v29 = vld [vmem:[#allocation10 + $0x1c60] sm:$0xf]  ;;  %v15548_v4 = vor.u32 %v19770_v41, %v15545_v36  ;;  %v15420_v41 = vor.u32 %v19738_v37, %v15417_v13  ;;  %v19450_v36 = vld [vmem:[#allocation10 + $0x16c] sm:$0xf] }
 0x4de   :  { %10078 = vmatpush.bf16.msra.mxu2 %v16824_v61  ;;  %9980 = vmatpush.bf16.msra.mxu3 %v17840_v44  ;;  %v17712_v54 = vor.u32 %v20329_v17, %v17711_v29  ;;  %v16439_v44 = vld [vmem:[#allocation10 + $0x1268] sm:$0xf]  ;;  %v14268_v17 = vor.u32 %v19450_v36, %v14265_v1  ;;  %v15161_v37 = vld [vmem:[#allocation10 + $0x8e8] sm:$0xf0]  ;;  %v20233_v23 = vld [vmem:[#allocation10 + $0x19dc] sm:$0xf0] }
 0x4df   :  { %v20010_v29 = vld [vmem:[#allocation10 + $0x12e4] sm:$0xf0] }
 0x4e0   :  { %v16440_v13 = vor.u32 %v20010_v29, %v16439_v44 }
 0x4e1   :  { %10107 = vmatpush.bf16.msrb.mxu0 %v14652_v11  ;;  %10121 = vmatpush.bf16.msrb.mxu1 %v15676_v48  ;;  %v20042_v11 = vld [vmem:[#allocation10 + $0x13e4] sm:$0xf0]  ;;  %v17583_v48 = vld [vmem:[#allocation10 + $0x1b60] sm:$0xf] }
 0x4e2   :  { %10079 = vmatpush.bf16.msra.mxu2 %v16696_v51  ;;  %v16568_v61 = vor.u32 %v20042_v11, %v16567_v19  ;;  %9981 = vmatpush.bf16.msra.mxu3 %v17712_v54  ;;  %v17584_v33 = vor.u32 %v20297_v42, %v17583_v48  ;;  %v16311_v51 = vld [vmem:[#allocation10 + $0x1168] sm:$0xf]  ;;  %v15039_v19 = vld [vmem:[#allocation10 + $0x770] sm:$0xf]  ;;  %v9805_v54 = vpop.f32.mrf.mxu2  ;;  %v17456_v48 = vor.u32 %v20265_v55, %v17455_v38  ;;  %v9707_v36 = vpop.f32.mrf.mxu3  ;;  %v17199_v38 = vld [vmem:[#allocation10 + $0x1860] sm:$0xf] }
 0x4e3   :  { %v19659_v11 = vld [vmem:[#allocation10 + $0x7ec] sm:$0xf0]  ;;  %v19978_v42 = vld [vmem:[#allocation10 + $0x11e4] sm:$0xf0]  ;;  %v21939_v1 = vadd.f32 %v9805_v54, %v21909_v34  ;;  %v17328_v34 = vor.u32 %v20233_v23, %v17327_v35  ;;  %v17969_v23 = vld [vmem:[#allocation10 + $0x1ee0] sm:$0xf0] }
 0x4e4   :  { %v15040_v29 = vor.u32 %v19659_v11, %v15039_v19  ;;  %v19946_v54 = vld [vmem:[#allocation10 + $0x10e4] sm:$0xf0]  ;;  %v19595_v19 = vld [vmem:[#allocation10 + $0x5ec] sm:$0xf0] }
 0x4e5   :  { %10108 = vmatpush.bf16.msrb.mxu0 %v14524_v40  ;;  %10122 = vmatpush.bf16.msrb.mxu1 %v15548_v4  ;;  %v19418_v40 = vld [vmem:[#allocation10 + $0x6c] sm:$0xf] }
 0x4e6   :  { %v19674_v4 = vld [vmem:[#allocation10 + $0x86c] sm:$0xf]  ;;  %10080 = vmatpush.bf16.msra.mxu2 %v16568_v61  ;;  %9982 = vmatpush.bf16.msra.mxu3 %v17584_v33  ;;  %v21942_v61 = vadd.f32 %v9707_v36, %v21893_v2  ;;  %v16312_v33 = vor.u32 %v19978_v42, %v16311_v51  ;;  %v14783_v51 = vld [vmem:[#allocation10 + $0x570] sm:$0xf]  ;;  %v21945_v36 = vpop.f32.mrf.mxu0 }
 0x4e7   :  { %v15164_v44 = vor.u32 %v19674_v4, %v15161_v37  ;;  %v17081_v2 = vld [vmem:[#allocation10 + $0x17e8] sm:$0xf0]  ;;  %v20409_v4 = vld [vmem:[#allocation10 + $0x1f64] sm:$0xf]  ;;  %v15807_v42 = vld [vmem:[#allocation10 + $0xd70] sm:$0xf]  ;;  %v14784_v35 = vor.u32 %v19595_v19, %v14783_v51 }
 0x4e8   :  { %22465 = vst [vmem:[#allocation107_spill] sm:$0xff] %v21942_v61  ;;  %v18097_v37 = vld [vmem:[#allocation10 + $0x1fe0] sm:$0xf0]  ;;  %v15551_v19 = vld [vmem:[#allocation10 + $0xb70] sm:$0xf] }
 0x4e9   :  { %10109 = vmatpush.bf16.msrb.mxu0 %v14396_v0  ;;  %10123 = vmatpush.bf16.msrb.mxu1 %v15420_v41  ;;  %v19915_v0 = vld [vmem:[#allocation10 + $0xfec] sm:$0xf0]  ;;  %v14140_v41 = vor.u32 %v19418_v40, %v14137_v15  ;;  %v20201_v15 = vld [vmem:[#allocation10 + $0x18dc] sm:$0xf0]  ;;  %22466 = vst [vmem:[#allocation108_spill] sm:$0xff] %v21945_v36 }
 0x4ea   :  { %10081 = vmatpush.bf16.msra.mxu2 %v16440_v13  ;;  %v16064_v55 = vor.u32 %v19915_v0, %v16063_v52  ;;  %9983 = vmatpush.bf16.msra.mxu3 %v17456_v48  ;;  %v19883_v40 = vld [vmem:[#allocation10 + $0xeec] sm:$0xf0]  ;;  %v16184_v52 = vor.u32 %v19946_v54, %v16183_v20  ;;  %v17200_v11 = vor.u32 %v20201_v15, %v17199_v38  ;;  %v20377_v20 = vld [vmem:[#allocation10 + $0x1e64] sm:$0xf]  ;;  %v22362_v15 = vperm.slane %v21880_v31, 7 }
 0x4eb   :  { %v17084_v48 = vor.u32 %v20154_v30, %v17081_v2  ;;  %v19851_v0 = vld [vmem:[#allocation10 + $0xdec] sm:$0xf0]  ;;  %v17972_v54 = vor.u32 %v20377_v20, %v17969_v23  ;;  %v17713_v20 = vld [vmem:[#allocation10 + $0x1ce0] sm:$0xf0]  ;;  %v19899_v61 = vld [vmem:[#allocation10 + $0xf74] sm:$0xf] }
 0x4ec   :  { %v19563_v30 = vld [vmem:[#allocation10 + $0x4ec] sm:$0xf0]  ;;  %v14913_v36 = vld [vmem:[#allocation10 + $0x6f0] sm:$0xf0] }
 0x4ed   :  { %10110 = vmatpush.bf16.msrb.mxu0 %v14268_v17  ;;  %10124 = vmatpush.bf16.msrb.mxu1 %v15292_v5  ;;  %v15935_v17 = vld [vmem:[#allocation10 + $0xe70] sm:$0xf]  ;;  %v14912_v5 = vor.u32 %v19627_v56, %v14911_v16  ;;  %v18100_v56 = vor.u32 %v20409_v4, %v18097_v37  ;;  %v20122_v16 = vld [vmem:[#allocation10 + $0x166c] sm:$0xf]  ;;  %v17841_v4 = vld [vmem:[#allocation10 + $0x1de0] sm:$0xf0] }
 0x4ee   :  { %10082 = vmatpush.bf16.msra.mxu2 %v16312_v33  ;;  %v15936_v13 = vor.u32 %v19883_v40, %v15935_v17  ;;  %9984 = vmatpush.bf16.msra.mxu3 %v17328_v34  ;;  %v14655_v33 = vld [vmem:[#allocation10 + $0x470] sm:$0xf]  ;;  %v20090_v17 = vld [vmem:[#allocation10 + $0x156c] sm:$0xf] }
 0x4ef   :  { %v15679_v38 = vld [vmem:[#allocation10 + $0xc70] sm:$0xf]  ;;  %v16825_v40 = vld [vmem:[#allocation10 + $0x15e8] sm:$0xf0]  ;;  %v14656_v2 = vor.u32 %v19563_v30, %v14655_v33 }
 0x4f0   :  { %v19819_v34 = vld [vmem:[#allocation10 + $0xcec] sm:$0xf0]  ;;  %v16828_v51 = vor.u32 %v20090_v17, %v16825_v40  ;;  %v21957_v17 = vpop.f32.mrf.mxu2 }
 0x4f1   :  { %10111 = vmatpush.bf16.msrb.mxu0 %v14140_v41  ;;  %10125 = vmatpush.bf16.msrb.mxu1 %v15164_v44  ;;  %v16953_v41 = vld [vmem:[#allocation10 + $0x16e8] sm:$0xf0]  ;;  %v21948_v44 = vpop.f32.mrf.mxu1  ;;  %v15680_v37 = vor.u32 %v19819_v34, %v15679_v38  ;;  %v14399_v33 = vld [vmem:[#allocation10 + $0x270] sm:$0xf] }
 0x4f2   :  { %22467 = vst [vmem:[#allocation109_spill] sm:$0xff] %v21948_v44  ;;  %10083 = vmatpush.bf16.msra.mxu2 %v16184_v52  ;;  %9985 = vmatpush.bf16.msra.mxu3 %v17200_v11  ;;  %v14527_v52 = vld [vmem:[#allocation10 + $0x370] sm:$0xf]  ;;  %v19611_v44 = vld [vmem:[#allocation10 + $0x674] sm:$0xf] }
 0x4f3   :  { %v19787_v11 = vld [vmem:[#allocation10 + $0xbec] sm:$0xf0] }
 0x4f4   :  { %10112 = vmatmul.bf16.vlgmr.msrb.gmra.mxu0 %v21401_v53  ;;  %10126 = vmatmul.bf16.vlgmr.msrb.gmra.mxu1 %v21403_v18  ;;  %v19499_v30 = vld [vmem:[#allocation10 + $0x2ec] sm:$0xf0] }
 0x4f5   :  { %10160 = vmatpush.bf16.msra.mxu0 %v15040_v29  ;;  %10174 = vmatpush.bf16.msra.mxu1 %v16064_v55  ;;  %v15808_v29 = vor.u32 %v19851_v0, %v15807_v42  ;;  %v16956_v55 = vor.u32 %v20122_v16, %v16953_v41  ;;  %v20058_v0 = vld [vmem:[#allocation10 + $0x146c] sm:$0xf]  ;;  %v15423_v34 = vld [vmem:[#allocation10 + $0xa70] sm:$0xf] }
 0x4f6   :  { %10132 = vmatpush.bf16.msrb.mxu2 %v17084_v48  ;;  %10034 = vmatpush.bf16.msrb.mxu3 %v18100_v56  ;;  %v9889_v48 = vpop.f32.mrf.mxu0  ;;  %v16697_v56 = vld [vmem:[#allocation10 + $0x14e8] sm:$0xf0] }
 0x4f7   :  { %10084 = vmatmul.bf16.vlgmr.msra.gmra.mxu2 %v21413_v46  ;;  %9986 = vmatmul.bf16.vlgmr.msra.gmra.mxu3 %v21429_v25  ;;  %v9890_v16 = vadd.f32 %v9889_v48, %v22362_v15  ;;  %v16700_v38 = vor.u32 %v20058_v0, %v16697_v56  ;;  %v19467_v48 = vld [vmem:[#allocation10 + $0x1ec] sm:$0xf0]  ;;  %v17457_v15 = vld [vmem:[#allocation10 + $0x1ae0] sm:$0xf0] }
 0x4f8   :  { %v15295_v0 = vld [vmem:[#allocation10 + $0x970] sm:$0xf] }
 0x4f9   :  { %10161 = vmatpush.bf16.msra.mxu0 %v14912_v5  ;;  %10175 = vmatpush.bf16.msra.mxu1 %v15936_v13  ;;  %v20345_v5 = vld [vmem:[#allocation10 + $0x1d64] sm:$0xf]  ;;  %v19531_v13 = vld [vmem:[#allocation10 + $0x3ec] sm:$0xf0]  ;;  %v9903_v23 = vpop.f32.mrf.mxu1 }
 0x4fa   :  { %10133 = vmatpush.bf16.msrb.mxu2 %v16956_v55  ;;  %10035 = vmatpush.bf16.msrb.mxu3 %v17972_v54  ;;  %v17844_v42 = vor.u32 %v20345_v5, %v17841_v4  ;;  %v14528_v41 = vor.u32 %v19531_v13, %v14527_v52  ;;  %v21955_v55 = vadd.f32 %v9903_v23, %v9890_v16  ;;  %v19755_v54 = vld [vmem:[#allocation10 + $0xaec] sm:$0xf0]  ;;  %v20026_v5 = vld [vmem:[#allocation10 + $0x136c] sm:$0xf]  ;;  %v21959_v4 = vpop.f32.mrf.mxu3  ;;  %v17585_v13 = vld [vmem:[#allocation10 + $0x1be0] sm:$0xf0] }
 0x4fb   :  { %22468 = vst [vmem:[#allocation110_spill] sm:$0xff] %v21959_v4  ;;  %v14400_v52 = vor.u32 %v19499_v30, %v14399_v33  ;;  %v19723_v56 = vld [vmem:[#allocation10 + $0x9ec] sm:$0xf0]  ;;  %v20249_v23 = vld [vmem:[#allocation10 + $0x1a64] sm:$0xf] }
 0x4fc   :  { %v15296_v33 = vor.u32 %v19723_v56, %v15295_v0  ;;  %v19435_v30 = vld [vmem:[#allocation10 + $0xec] sm:$0xf0]  ;;  %v20217_v0 = vld [vmem:[#allocation10 + $0x1964] sm:$0xf]  ;;  %v19930_v4 = vld [vmem:[#allocation10 + $0x106c] sm:$0xf] }
 0x4fd   :  { %10162 = vmatpush.bf16.msra.mxu0 %v14784_v35  ;;  %10176 = vmatpush.bf16.msra.mxu1 %v15808_v29  ;;  %v20313_v35 = vld [vmem:[#allocation10 + $0x1c64] sm:$0xf]  ;;  %v15552_v29 = vor.u32 %v19787_v11, %v15551_v19  ;;  %v15424_v19 = vor.u32 %v19755_v54, %v15423_v34  ;;  %v14271_v11 = vld [vmem:[#allocation10 + $0x170] sm:$0xf] }
 0x4fe   :  { %10134 = vmatpush.bf16.msrb.mxu2 %v16828_v51  ;;  %10036 = vmatpush.bf16.msrb.mxu3 %v17844_v42  ;;  %v17716_v40 = vor.u32 %v20313_v35, %v17713_v20  ;;  %v19994_v42 = vld [vmem:[#allocation10 + $0x126c] sm:$0xf]  ;;  %v14272_v20 = vor.u32 %v19467_v48, %v14271_v11  ;;  %v19691_v34 = vld [vmem:[#allocation10 + $0x8ec] sm:$0xf0]  ;;  %v17329_v56 = vld [vmem:[#allocation10 + $0x19e0] sm:$0xf0] }
 0x4ff   :  { %v16441_v35 = vld [vmem:[#allocation10 + $0x12e8] sm:$0xf0] }
 0x500   :  { %v16444_v54 = vor.u32 %v19994_v42, %v16441_v35 }
 0x501   :  { %10163 = vmatpush.bf16.msra.mxu0 %v14656_v2  ;;  %10177 = vmatpush.bf16.msra.mxu1 %v15680_v37  ;;  %v16569_v2 = vld [vmem:[#allocation10 + $0x13e8] sm:$0xf0]  ;;  %v20281_v37 = vld [vmem:[#allocation10 + $0x1b64] sm:$0xf] }
 0x502   :  { %10135 = vmatpush.bf16.msrb.mxu2 %v16700_v38  ;;  %v16572_v51 = vor.u32 %v20026_v5, %v16569_v2  ;;  %10037 = vmatpush.bf16.msrb.mxu3 %v17716_v40  ;;  %v17588_v16 = vor.u32 %v20281_v37, %v17585_v13  ;;  %v19962_v38 = vld [vmem:[#allocation10 + $0x116c] sm:$0xf]  ;;  %v19643_v5 = vld [vmem:[#allocation10 + $0x774] sm:$0xf]  ;;  %v9861_v40 = vpop.f32.mrf.mxu2  ;;  %v17460_v37 = vor.u32 %v20249_v23, %v17457_v15  ;;  %v9763_v11 = vpop.f32.mrf.mxu3  ;;  %v20185_v23 = vld [vmem:[#allocation10 + $0x1864] sm:$0xf] }
 0x503   :  { %v15041_v2 = vld [vmem:[#allocation10 + $0x7f0] sm:$0xf0]  ;;  %v16313_v13 = vld [vmem:[#allocation10 + $0x11e8] sm:$0xf0]  ;;  %v21962_v48 = vadd.f32 %v9861_v40, %v21932_v62  ;;  %v17332_v62 = vor.u32 %v20217_v0, %v17329_v56  ;;  %v17975_v0 = vld [vmem:[#allocation10 + $0x1e68] sm:$0xf] }
 0x504   :  { %v15044_v35 = vor.u32 %v19643_v5, %v15041_v2  ;;  %v16185_v40 = vld [vmem:[#allocation10 + $0x10e8] sm:$0xf0]  ;;  %v14785_v5 = vld [vmem:[#allocation10 + $0x5f0] sm:$0xf0]  ;;  %v20394_v56 = vld [vmem:[#allocation10 + $0x1ee4] sm:$0xf0] }
 0x505   :  { %10164 = vmatpush.bf16.msra.mxu0 %v14528_v41  ;;  %10178 = vmatpush.bf16.msra.mxu1 %v15552_v29  ;;  %v14143_v41 = vld [vmem:[#allocation10 + $0x70] sm:$0xf] }
 0x506   :  { %v15167_v29 = vld [vmem:[#allocation10 + $0x870] sm:$0xf]  ;;  %10136 = vmatpush.bf16.msrb.mxu2 %v16572_v51  ;;  %10038 = vmatpush.bf16.msrb.mxu3 %v17588_v16  ;;  %v21965_v51 = vadd.f32 %v9763_v11, %v21916_v39  ;;  %v16316_v16 = vor.u32 %v19962_v38, %v16313_v13  ;;  %v19579_v38 = vld [vmem:[#allocation10 + $0x574] sm:$0xf] }
 0x507   :  { %v15168_v42 = vor.u32 %v19691_v34, %v15167_v29  ;;  %v20171_v39 = vld [vmem:[#allocation10 + $0x17ec] sm:$0xf0]  ;;  %v18103_v29 = vld [vmem:[#allocation10 + $0x1f68] sm:$0xf]  ;;  %v19835_v13 = vld [vmem:[#allocation10 + $0xd74] sm:$0xf] }
 0x508   :  { %22469 = vst [vmem:[#allocation111_spill] sm:$0xff] %v21965_v51  ;;  %v20426_v34 = vld [vmem:[#allocation10 + $0x1fe4] sm:$0xf0]  ;;  %v19884_v51 = vld [vmem:[#allocation10 + $0xef4] sm:$0xf0] }
 0x509   :  { %10165 = vmatpush.bf16.msra.mxu0 %v14400_v52  ;;  %10179 = vmatpush.bf16.msra.mxu1 %v15424_v19  ;;  %v16065_v52 = vld [vmem:[#allocation10 + $0xff0] sm:$0xf0]  ;;  %v14144_v19 = vor.u32 %v19435_v30, %v14143_v41  ;;  %v17201_v30 = vld [vmem:[#allocation10 + $0x18e0] sm:$0xf0]  ;;  %v18104_v11 = vor.u32 %v20426_v34, %v18103_v29 }
 0x50a   :  { %10137 = vmatpush.bf16.msrb.mxu2 %v16444_v54  ;;  %v16068_v15 = vor.u32 %v19899_v61, %v16065_v52  ;;  %10039 = vmatpush.bf16.msrb.mxu3 %v17460_v37  ;;  %v15937_v41 = vld [vmem:[#allocation10 + $0xef0] sm:$0xf0]  ;;  %v16188_v61 = vor.u32 %v19930_v4, %v16185_v40  ;;  %v17204_v2 = vor.u32 %v20185_v23, %v17201_v30  ;;  %v20107_v40 = vld [vmem:[#allocation10 + $0x15ec] sm:$0xf0]  ;;  %v20362_v30 = vld [vmem:[#allocation10 + $0x1de4] sm:$0xf0] }
 0x50b   :  { %v17088_v37 = vor.u32 %v20171_v39, %v17087_v50  ;;  %v15809_v52 = vld [vmem:[#allocation10 + $0xdf0] sm:$0xf0]  ;;  %v17976_v23 = vor.u32 %v20394_v56, %v17975_v0 }
 0x50c   :  { %v15812_v4 = vor.u32 %v19835_v13, %v15809_v52  ;;  %v19803_v50 = vld [vmem:[#allocation10 + $0xc74] sm:$0xf]  ;;  %v17719_v13 = vld [vmem:[#allocation10 + $0x1c68] sm:$0xf] }
 0x50d   :  { %10166 = vmatpush.bf16.msra.mxu0 %v14272_v20  ;;  %10180 = vmatpush.bf16.msra.mxu1 %v15296_v33  ;;  %v19867_v20 = vld [vmem:[#allocation10 + $0xe74] sm:$0xf]  ;;  %v14916_v33 = vor.u32 %v19611_v44, %v14913_v36  ;;  %v20139_v36 = vld [vmem:[#allocation10 + $0x16ec] sm:$0xf0]  ;;  %v14788_v44 = vor.u32 %v19579_v38, %v14785_v5  ;;  %v20330_v52 = vld [vmem:[#allocation10 + $0x1ce4] sm:$0xf0] }
 0x50e   :  { %10138 = vmatpush.bf16.msrb.mxu2 %v16316_v16  ;;  %v15940_v54 = vor.u32 %v19867_v20, %v15937_v41  ;;  %10040 = vmatpush.bf16.msrb.mxu3 %v17332_v62  ;;  %v16831_v62 = vld [vmem:[#allocation10 + $0x1570] sm:$0xf]  ;;  %v17847_v41 = vld [vmem:[#allocation10 + $0x1d68] sm:$0xf]  ;;  %v14529_v29 = vld [vmem:[#allocation10 + $0x3f0] sm:$0xf0] }
 0x50f   :  { %v16832_v34 = vor.u32 %v20107_v40, %v16831_v62  ;;  %v17848_v38 = vor.u32 %v20362_v30, %v17847_v41  ;;  %v16703_v5 = vld [vmem:[#allocation10 + $0x1470] sm:$0xf]  ;;  %v19739_v0 = vld [vmem:[#allocation10 + $0xa74] sm:$0xf]  ;;  %v20298_v62 = vld [vmem:[#allocation10 + $0x1be4] sm:$0xf0] }
 0x510   :  { %v15425_v56 = vld [vmem:[#allocation10 + $0xaf0] sm:$0xf0] }
 0x511   :  { %10167 = vmatpush.bf16.msra.mxu0 %v14144_v19  ;;  %10181 = vmatpush.bf16.msra.mxu1 %v15168_v42  ;;  %v16959_v19 = vld [vmem:[#allocation10 + $0x1670] sm:$0xf]  ;;  %v19547_v42 = vld [vmem:[#allocation10 + $0x474] sm:$0xf]  ;;  %v15428_v40 = vor.u32 %v19739_v0, %v15425_v56  ;;  %v19660_v0 = vld [vmem:[#allocation10 + $0x7f4] sm:$0xf0] }
 0x512   :  { %10139 = vmatpush.bf16.msrb.mxu2 %v16188_v61  ;;  %10041 = vmatpush.bf16.msrb.mxu3 %v17204_v2  ;;  %v16960_v16 = vor.u32 %v20139_v36, %v16959_v19  ;;  %v19771_v61 = vld [vmem:[#allocation10 + $0xb74] sm:$0xf]  ;;  %v20075_v2 = vld [vmem:[#allocation10 + $0x14ec] sm:$0xf0] }
 0x513   :  { %v19483_v19 = vld [vmem:[#allocation10 + $0x274] sm:$0xf] }
 0x514   :  { %10168 = vmatmul.bf16.vlgmr.msra.gmra.mxu0 %v21401_v53  ;;  %10182 = vmatmul.bf16.vlgmr.msra.gmra.mxu1 %v21403_v18  ;;  %v14401_v36 = vld [vmem:[#allocation10 + $0x2f0] sm:$0xf0] }
 0x515   :  { %10216 = vmatpush.bf16.msrb.mxu0 %v15044_v35  ;;  %10230 = vmatpush.bf16.msrb.mxu1 %v16068_v15  ;;  %v14657_v35 = vld [vmem:[#allocation10 + $0x4f0] sm:$0xf0] }
 0x516   :  { %10188 = vmatpush.bf16.msra.mxu2 %v17088_v37  ;;  %v15681_v15 = vld [vmem:[#allocation10 + $0xcf0] sm:$0xf0]  ;;  %10090 = vmatpush.bf16.msra.mxu3 %v18104_v11  ;;  %v14660_v20 = vor.u32 %v19547_v42, %v14657_v35  ;;  %v17720_v42 = vor.u32 %v20330_v52, %v17719_v13  ;;  %v16575_v35 = vld [vmem:[#allocation10 + $0x1370] sm:$0xf] }
 0x517   :  { %10140 = vmatmul.bf16.vlgmr.msrb.gmra.mxu2 %v21413_v46  ;;  %10042 = vmatmul.bf16.vlgmr.msrb.gmra.mxu3 %v21429_v25  ;;  %v15684_v39 = vor.u32 %v19803_v50, %v15681_v15  ;;  %v21973_v50 = vpop.f32.mrf.mxu3  ;;  %v14404_v15 = vor.u32 %v19483_v19, %v14401_v36  ;;  %v14273_v41 = vld [vmem:[#allocation10 + $0x1f0] sm:$0xf0]  ;;  %v16319_v36 = vld [vmem:[#allocation10 + $0x1170] sm:$0xf] }
 0x518   :  { %v14145_v13 = vld [vmem:[#allocation10 + $0xf0] sm:$0xf0] }
 0x519   :  { %10217 = vmatpush.bf16.msrb.mxu0 %v14916_v33  ;;  %10231 = vmatpush.bf16.msrb.mxu1 %v15940_v54  ;;  %v19515_v33 = vld [vmem:[#allocation10 + $0x374] sm:$0xf] }
 0x51a   :  { %10189 = vmatpush.bf16.msra.mxu2 %v16960_v16  ;;  %v15553_v54 = vld [vmem:[#allocation10 + $0xbf0] sm:$0xf0]  ;;  %10091 = vmatpush.bf16.msra.mxu3 %v17976_v23  ;;  %v14532_v37 = vor.u32 %v19515_v33, %v14529_v29  ;;  %v20043_v16 = vld [vmem:[#allocation10 + $0x13ec] sm:$0xf0]  ;;  %v17591_v23 = vld [vmem:[#allocation10 + $0x1b68] sm:$0xf] }
 0x51b   :  { %v15556_v11 = vor.u32 %v19771_v61, %v15553_v54  ;;  %v16576_v30 = vor.u32 %v20043_v16, %v16575_v35  ;;  %v15297_v33 = vld [vmem:[#allocation10 + $0x9f0] sm:$0xf0]  ;;  %v17592_v29 = vor.u32 %v20298_v62, %v17591_v23  ;;  %v20011_v61 = vld [vmem:[#allocation10 + $0x12ec] sm:$0xf0]  ;;  %v16071_v16 = vld [vmem:[#allocation10 + $0xf78] sm:$0xf] }
 0x51c   :  { %v19675_v52 = vld [vmem:[#allocation10 + $0x874] sm:$0xf]  ;;  %v19979_v35 = vld [vmem:[#allocation10 + $0x11ec] sm:$0xf0] }
 0x51d   :  { %10218 = vmatpush.bf16.msrb.mxu0 %v14788_v44  ;;  %10232 = vmatpush.bf16.msrb.mxu1 %v15812_v4  ;;  %v16704_v44 = vor.u32 %v20075_v2, %v16703_v5  ;;  %v21971_v4 = vpop.f32.mrf.mxu2  ;;  %v20266_v5 = vld [vmem:[#allocation10 + $0x1ae4] sm:$0xf0]  ;;  %v19419_v2 = vld [vmem:[#allocation10 + $0x74] sm:$0xf] }
 0x51e   :  { %10190 = vmatpush.bf16.msra.mxu2 %v16832_v34  ;;  %22470 = vst [vmem:[#allocation112_spill] sm:$0xff] %v21971_v4  ;;  %10092 = vmatpush.bf16.msra.mxu3 %v17848_v38  ;;  %v16447_v34 = vld [vmem:[#allocation10 + $0x1270] sm:$0xf]  ;;  %v17463_v38 = vld [vmem:[#allocation10 + $0x1a68] sm:$0xf] }
 0x51f   :  { %v16448_v19 = vor.u32 %v20011_v61, %v16447_v34  ;;  %v9819_v23 = vpop.f32.mrf.mxu3  ;;  %v16320_v61 = vor.u32 %v19979_v35, %v16319_v36  ;;  %v15943_v4 = vld [vmem:[#allocation10 + $0xe78] sm:$0xf] }
 0x521   :  { %10219 = vmatpush.bf16.msrb.mxu0 %v14660_v20  ;;  %10233 = vmatpush.bf16.msrb.mxu1 %v15684_v39  ;;  %v19451_v20 = vld [vmem:[#allocation10 + $0x174] sm:$0xf] }
 0x522   :  { %10191 = vmatpush.bf16.msra.mxu2 %v16704_v44  ;;  %v19707_v39 = vld [vmem:[#allocation10 + $0x974] sm:$0xf]  ;;  %10093 = vmatpush.bf16.msra.mxu3 %v17720_v42  ;;  %v14276_v54 = vor.u32 %v19451_v20, %v14273_v41  ;;  %v15047_v44 = vld [vmem:[#allocation10 + $0x778] sm:$0xf]  ;;  %v17464_v42 = vor.u32 %v20266_v5, %v17463_v38  ;;  %v17335_v20 = vld [vmem:[#allocation10 + $0x1968] sm:$0xf] }
 0x523   :  { %v20234_v41 = vld [vmem:[#allocation10 + $0x19e4] sm:$0xf0]  ;;  %v15048_v34 = vor.u32 %v19660_v0, %v15047_v44  ;;  %v15944_v44 = vor.u32 %v19884_v51, %v15943_v4  ;;  %v14791_v0 = vld [vmem:[#allocation10 + $0x578] sm:$0xf]  ;;  %v20378_v4 = vld [vmem:[#allocation10 + $0x1e6c] sm:$0xf] }
 0x524   :  { %v17207_v5 = vld [vmem:[#allocation10 + $0x1868] sm:$0xf] }
 0x525   :  { %10220 = vmatpush.bf16.msrb.mxu0 %v14532_v37  ;;  %10234 = vmatpush.bf16.msrb.mxu1 %v15556_v11  ;;  %v15300_v37 = vor.u32 %v19707_v39, %v15297_v33  ;;  %v15169_v11 = vld [vmem:[#allocation10 + $0x8f0] sm:$0xf0]  ;;  %v9917_v56 = vpop.f32.mrf.mxu2  ;;  %v21982_v33 = vadd.f32 %v9819_v23, %v21939_v1  ;;  %v15815_v23 = vld [vmem:[#allocation10 + $0xd78] sm:$0xf] }
 0x526   :  { %10192 = vmatpush.bf16.msra.mxu2 %v16576_v30  ;;  %10094 = vmatpush.bf16.msra.mxu3 %v17592_v29  ;;  %v21976_v62 = vadd.f32 %v9917_v56, %v21955_v55  ;;  %v22471_v30 = vperm.slane %v21880_v31, 5  ;;  %v15172_v29 = vor.u32 %v19675_v52, %v15169_v11  ;;  %v16191_v55 = vld [vmem:[#allocation10 + $0x1070] sm:$0xf]  ;;  %v14919_v56 = vld [vmem:[#allocation10 + $0x678] sm:$0xf] }
 0x527   :  { %v17089_v1 = vld [vmem:[#allocation10 + $0x17f0] sm:$0xf0]  ;;  %v20410_v11 = vld [vmem:[#allocation10 + $0x1f6c] sm:$0xf] }
 0x528   :  { %v9780_v39 = vadd.f32 %v21922_v28, %v22471_v30  ;;  %v20202_v28 = vld [vmem:[#allocation10 + $0x18e4] sm:$0xf0]  ;;  %v20155_v30 = vld [vmem:[#allocation10 + $0x1774] sm:$0xf] }
 0x529   :  { %10221 = vmatpush.bf16.msrb.mxu0 %v14404_v15  ;;  %10235 = vmatpush.bf16.msrb.mxu1 %v15428_v40  ;;  %v19916_v15 = vld [vmem:[#allocation10 + $0xff4] sm:$0xf0]  ;;  %v14148_v40 = vor.u32 %v19419_v2, %v14145_v13  ;;  %v17336_v2 = vor.u32 %v20234_v41, %v17335_v20  ;;  %v19947_v13 = vld [vmem:[#allocation10 + $0x10ec] sm:$0xf0]  ;;  %v20123_v41 = vld [vmem:[#allocation10 + $0x1674] sm:$0xf] }
 0x52a   :  { %10193 = vmatpush.bf16.msra.mxu2 %v16448_v19  ;;  %v16072_v38 = vor.u32 %v19916_v15, %v16071_v16  ;;  %10095 = vmatpush.bf16.msra.mxu3 %v17464_v42  ;;  %v18105_v19 = vld [vmem:[#allocation10 + $0x1fe8] sm:$0xf0]  ;;  %v16192_v36 = vor.u32 %v19947_v13, %v16191_v55  ;;  %v19596_v42 = vld [vmem:[#allocation10 + $0x5f4] sm:$0xf0]  ;;  %v17208_v16 = vor.u32 %v20202_v28, %v17207_v5  ;;  %v10405_v5 = vmax.f32 %v21982_v33, 0.0  ;;  %v21989_v13 = vpop.f32.mrf.mxu0 }
 0x52b   :  { %v17092_v15 = vor.u32 %v20155_v30, %v17089_v1  ;;  %v18108_v20 = vor.u32 %v20410_v11, %v18105_v19  ;;  %v14792_v51 = vor.u32 %v19596_v42, %v14791_v0  ;;  %22472 = vst [vmem:[#allocation113_spill] sm:$0xff] %v21989_v13  ;;  %v20091_v30 = vld [vmem:[#allocation10 + $0x1574] sm:$0xf]  ;;  %v20346_v11 = vld [vmem:[#allocation10 + $0x1d6c] sm:$0xf]  ;;  %v21994_v19 = vpop.f32.mrf.mxu1 }
 0x52c   :  { %v16833_v1 = vld [vmem:[#allocation10 + $0x15f0] sm:$0xf0]  ;;  %v17849_v33 = vld [vmem:[#allocation10 + $0x1de8] sm:$0xf0]  ;;  %22473 = vst [vmem:[#allocation114_spill] sm:$0xff] %v21994_v19 }
 0x52d   :  { %10222 = vmatpush.bf16.msrb.mxu0 %v14276_v54  ;;  %10236 = vmatpush.bf16.msrb.mxu1 %v15300_v37  ;;  %v19628_v54 = vld [vmem:[#allocation10 + $0x6f4] sm:$0xf0]  ;;  %v9794_v37 = vadd.f32 %v21925_v24, %v9780_v39  ;;  %v16961_v39 = vld [vmem:[#allocation10 + $0x16f0] sm:$0xf0]  ;;  %v16836_v42 = vor.u32 %v20091_v30, %v16833_v1  ;;  %v15945_v19 = vld [vmem:[#allocation10 + $0xef8] sm:$0xf0] }
 0x52e   :  { %v14920_v52 = vor.u32 %v19628_v54, %v14919_v56  ;;  %10194 = vmatpush.bf16.msra.mxu2 %v16320_v61  ;;  %10096 = vmatpush.bf16.msra.mxu3 %v17336_v2  ;;  %v19852_v24 = vld [vmem:[#allocation10 + $0xdf4] sm:$0xf0]  ;;  %v16964_v56 = vor.u32 %v20123_v41, %v16961_v39  ;;  %v17721_v41 = vld [vmem:[#allocation10 + $0x1ce8] sm:$0xf0] }
 0x52f   :  { %v9808_v35 = vadd.f32 %v21957_v17, %v9794_v37  ;;  %v15816_v17 = vor.u32 %v19852_v24, %v15815_v23  ;;  %v14663_v61 = vld [vmem:[#allocation10 + $0x478] sm:$0xf]  ;;  %v20059_v23 = vld [vmem:[#allocation10 + $0x1474] sm:$0xf] }
 0x530   :  { %v15687_v54 = vld [vmem:[#allocation10 + $0xc78] sm:$0xf]  ;;  %v16705_v24 = vld [vmem:[#allocation10 + $0x14f0] sm:$0xf0] }
 0x531   :  { %10223 = vmatpush.bf16.msrb.mxu0 %v14148_v40  ;;  %10237 = vmatpush.bf16.msrb.mxu1 %v15172_v29  ;;  %v9821_v40 = vpop.f32.mrf.mxu3  ;;  %v19820_v2 = vld [vmem:[#allocation10 + $0xcf4] sm:$0xf0] }
 0x532   :  { %v9822_v29 = vadd.f32 %v9821_v40, %v9808_v35  ;;  %10195 = vmatpush.bf16.msra.mxu2 %v16192_v36  ;;  %10097 = vmatpush.bf16.msra.mxu3 %v17208_v16  ;;  %v15688_v36 = vor.u32 %v19820_v2, %v15687_v54  ;;  %v19532_v0 = vld [vmem:[#allocation10 + $0x3f4] sm:$0xf0]  ;;  %v20282_v54 = vld [vmem:[#allocation10 + $0x1b6c] sm:$0xf] }
 0x533   :  { %v15559_v35 = vld [vmem:[#allocation10 + $0xb78] sm:$0xf]  ;;  %v17593_v2 = vld [vmem:[#allocation10 + $0x1be8] sm:$0xf0] }
 0x534   :  { %10224 = vmatmul.bf16.vlgmr.msrb.gmra.mxu0 %v21401_v53  ;;  %10238 = vmatmul.bf16.vlgmr.msrb.gmra.mxu1 %v21403_v18  ;;  %v10437_v55 = vmax.f32 %v9822_v29, 0.0  ;;  %v19788_v16 = vld [vmem:[#allocation10 + $0xbf4] sm:$0xf0] }
 0x535   :  { %10272 = vmatpush.bf16.msra.mxu0 %v15048_v34  ;;  %10286 = vmatpush.bf16.msra.mxu1 %v16072_v38  ;;  %v17977_v34 = vld [vmem:[#allocation10 + $0x1ee8] sm:$0xf0]  ;;  %v19564_v38 = vld [vmem:[#allocation10 + $0x4f4] sm:$0xf0]  ;;  %v15560_v39 = vor.u32 %v19788_v16, %v15559_v35 }
 0x536   :  { %10244 = vmatpush.bf16.msrb.mxu2 %v17092_v15  ;;  %10146 = vmatpush.bf16.msrb.mxu3 %v18108_v20  ;;  %v17980_v28 = vor.u32 %v20378_v4, %v17977_v34  ;;  %v21991_v37 = vpack.c.bf16 %v10437_v55, %v10405_v5  ;;  %v17852_v15 = vor.u32 %v20346_v11, %v17849_v33  ;;  %v20314_v20 = vld [vmem:[#allocation10 + $0x1c6c] sm:$0xf]  ;;  %v14407_v29 = vld [vmem:[#allocation10 + $0x278] sm:$0xf]  ;;  %v20027_v5 = vld [vmem:[#allocation10 + $0x1374] sm:$0xf] }
 0x537   :  { %10196 = vmatmul.bf16.vlgmr.msra.gmra.mxu2 %v21413_v46  ;;  %10098 = vmatmul.bf16.vlgmr.msra.gmra.mxu3 %v21429_v25  ;;  %v16708_v4 = vor.u32 %v20059_v23, %v16705_v24  ;;  %v15431_v34 = vld [vmem:[#allocation10 + $0xa78] sm:$0xf]  ;;  %v16577_v55 = vld [vmem:[#allocation10 + $0x13f0] sm:$0xf0]  ;;  %v20250_v16 = vld [vmem:[#allocation10 + $0x1a6c] sm:$0xf] }
 0x538   :  { %v14279_v1 = vld [vmem:[#allocation10 + $0x178] sm:$0xf]  ;;  %v16580_v11 = vor.u32 %v20027_v5, %v16577_v55  ;;  %v16073_v5 = vld [vmem:[#allocation10 + $0xff8] sm:$0xf0] }
 0x539   :  { %10273 = vmatpush.bf16.msra.mxu0 %v14920_v52  ;;  %10287 = vmatpush.bf16.msra.mxu1 %v15944_v44  ;;  %v14664_v52 = vor.u32 %v19564_v38, %v14663_v61  ;;  %v14535_v44 = vld [vmem:[#allocation10 + $0x378] sm:$0xf]  ;;  %v21997_v61 = vpop.f32.mrf.mxu0  ;;  %v17724_v38 = vor.u32 %v20314_v20, %v17721_v41 }
 0x53a   :  { %10245 = vmatpush.bf16.msrb.mxu2 %v16964_v56  ;;  %10147 = vmatpush.bf16.msrb.mxu3 %v17980_v28  ;;  %v14536_v40 = vor.u32 %v19532_v0, %v14535_v44  ;;  %v21999_v28 = vpop.f32.mrf.mxu1  ;;  %v15303_v33 = vld [vmem:[#allocation10 + $0x978] sm:$0xf]  ;;  %v17596_v44 = vor.u32 %v20282_v54, %v17593_v2  ;;  %v19995_v0 = vld [vmem:[#allocation10 + $0x1274] sm:$0xf]  ;;  %v9875_v55 = vpop.f32.mrf.mxu3  ;;  %v20218_v54 = vld [vmem:[#allocation10 + $0x196c] sm:$0xf] }
 0x53b   :  { %v14151_v23 = vld [vmem:[#allocation10 + $0x78] sm:$0xf]  ;;  %v17337_v2 = vld [vmem:[#allocation10 + $0x19e8] sm:$0xf0] }
 0x53c   :  { %v15175_v20 = vld [vmem:[#allocation10 + $0x878] sm:$0xf] }
 0x53d   :  { %10274 = vmatpush.bf16.msra.mxu0 %v14792_v51  ;;  %10288 = vmatpush.bf16.msra.mxu1 %v15816_v17  ;;  %v19500_v51 = vld [vmem:[#allocation10 + $0x2f4] sm:$0xf0] }
 0x53e   :  { %10246 = vmatpush.bf16.msrb.mxu2 %v16836_v42  ;;  %v19756_v17 = vld [vmem:[#allocation10 + $0xaf4] sm:$0xf0]  ;;  %10148 = vmatpush.bf16.msrb.mxu3 %v17852_v15  ;;  %v14408_v56 = vor.u32 %v19500_v51, %v14407_v29  ;;  %v16449_v42 = vld [vmem:[#allocation10 + $0x12f0] sm:$0xf0]  ;;  %v17465_v15 = vld [vmem:[#allocation10 + $0x1ae8] sm:$0xf0] }
 0x53f   :  { %v15432_v30 = vor.u32 %v19756_v17, %v15431_v34  ;;  %v19692_v41 = vld [vmem:[#allocation10 + $0x8f4] sm:$0xf0]  ;;  %v19963_v29 = vld [vmem:[#allocation10 + $0x1174] sm:$0xf]  ;;  %v19644_v51 = vld [vmem:[#allocation10 + $0x77c] sm:$0xf]  ;;  %v17468_v34 = vor.u32 %v20250_v16, %v17465_v15 }
 0x540   :  { %v16321_v17 = vld [vmem:[#allocation10 + $0x11f0] sm:$0xf0]  ;;  %v14921_v16 = vld [vmem:[#allocation10 + $0x6f8] sm:$0xf0] }
 0x541   :  { %10275 = vmatpush.bf16.msra.mxu0 %v14664_v52  ;;  %10289 = vmatpush.bf16.msra.mxu1 %v15688_v36  ;;  %v19468_v52 = vld [vmem:[#allocation10 + $0x1f4] sm:$0xf0] }
 0x542   :  { %10247 = vmatpush.bf16.msrb.mxu2 %v16708_v4  ;;  %v19724_v36 = vld [vmem:[#allocation10 + $0x9f4] sm:$0xf0]  ;;  %10149 = vmatpush.bf16.msrb.mxu3 %v17724_v38  ;;  %v14280_v35 = vor.u32 %v19468_v52, %v14279_v1  ;;  %v15049_v4 = vld [vmem:[#allocation10 + $0x7f8] sm:$0xf0]  ;;  %v22004_v1 = vadd.f32 %v9875_v55, %v21962_v48  ;;  %v15176_v52 = vor.u32 %v19692_v41, %v15175_v20  ;;  %v22006_v15 = vpop.f32.mrf.mxu1  ;;  %v17209_v48 = vld [vmem:[#allocation10 + $0x18e8] sm:$0xf0] }
 0x543   :  { %v15304_v24 = vor.u32 %v19724_v36, %v15303_v33  ;;  %v19900_v38 = vld [vmem:[#allocation10 + $0xf7c] sm:$0xf]  ;;  %v16324_v33 = vor.u32 %v19963_v29, %v16321_v17  ;;  %v17095_v55 = vld [vmem:[#allocation10 + $0x1778] sm:$0xf]  ;;  %v18111_v41 = vld [vmem:[#allocation10 + $0x1f70] sm:$0xf] }
 0x544   :  { %v16076_v36 = vor.u32 %v19900_v38, %v16073_v5  ;;  %v14793_v17 = vld [vmem:[#allocation10 + $0x5f8] sm:$0xf0] }
 0x545   :  { %10276 = vmatpush.bf16.msra.mxu0 %v14536_v40  ;;  %10290 = vmatpush.bf16.msra.mxu1 %v15560_v39  ;;  %v19436_v40 = vld [vmem:[#allocation10 + $0xf4] sm:$0xf0]  ;;  %v16452_v39 = vor.u32 %v19995_v0, %v16449_v42  ;;  %v19931_v0 = vld [vmem:[#allocation10 + $0x1074] sm:$0xf]  ;;  %v19612_v42 = vld [vmem:[#allocation10 + $0x67c] sm:$0xf] }
 0x546   :  { %10248 = vmatpush.bf16.msrb.mxu2 %v16580_v11  ;;  %10150 = vmatpush.bf16.msrb.mxu3 %v17596_v44  ;;  %v15052_v11 = vor.u32 %v19644_v51, %v15049_v4  ;;  %v20186_v44 = vld [vmem:[#allocation10 + $0x186c] sm:$0xf]  ;;  %v14924_v20 = vor.u32 %v19612_v42, %v14921_v16  ;;  %v19580_v4 = vld [vmem:[#allocation10 + $0x57c] sm:$0xf] }
 0x547   :  { %v19836_v5 = vld [vmem:[#allocation10 + $0xd7c] sm:$0xf] }
 0x548   :  { %v19548_v42 = vld [vmem:[#allocation10 + $0x47c] sm:$0xf] }
 0x549   :  { %10277 = vmatpush.bf16.msra.mxu0 %v14408_v56  ;;  %10291 = vmatpush.bf16.msra.mxu1 %v15432_v30  ;;  %v14152_v56 = vor.u32 %v19436_v40, %v14151_v23  ;;  %v22001_v30 = vpop.f32.mrf.mxu0  ;;  %v16193_v23 = vld [vmem:[#allocation10 + $0x10f0] sm:$0xf0]  ;;  %v19868_v40 = vld [vmem:[#allocation10 + $0xe7c] sm:$0xf] }
 0x54a   :  { %10249 = vmatpush.bf16.msrb.mxu2 %v16452_v39  ;;  %10151 = vmatpush.bf16.msrb.mxu3 %v17468_v34  ;;  %v20427_v39 = vld [vmem:[#allocation10 + $0x1fec] sm:$0xf0]  ;;  %v16196_v29 = vor.u32 %v19931_v0, %v16193_v23  ;;  %v15948_v51 = vor.u32 %v19868_v40, %v15945_v19  ;;  %v17212_v34 = vor.u32 %v20186_v44, %v17209_v48  ;;  %v14665_v16 = vld [vmem:[#allocation10 + $0x4f8] sm:$0xf0]  ;;  %v22012_v44 = vpop.f32.mrf.mxu1 }
 0x54b   :  { %v20395_v19 = vld [vmem:[#allocation10 + $0x1eec] sm:$0xf0]  ;;  %v19804_v23 = vld [vmem:[#allocation10 + $0xc7c] sm:$0xf] }
 0x54c   :  { %v15689_v40 = vld [vmem:[#allocation10 + $0xcf8] sm:$0xf0] }
 0x54d   :  { %10278 = vmatpush.bf16.msra.mxu0 %v14280_v35  ;;  %10292 = vmatpush.bf16.msra.mxu1 %v15304_v24  ;;  %v17340_v35 = vor.u32 %v20218_v54, %v17337_v2  ;;  %v20172_v24 = vld [vmem:[#allocation10 + $0x17f4] sm:$0xf0]  ;;  %v18112_v54 = vor.u32 %v20427_v39, %v18111_v41  ;;  %v17855_v41 = vld [vmem:[#allocation10 + $0x1d70] sm:$0xf] }
 0x54e   :  { %10250 = vmatpush.bf16.msrb.mxu2 %v16324_v33  ;;  %v17096_v38 = vor.u32 %v20172_v24, %v17095_v55  ;;  %v16967_v2 = vld [vmem:[#allocation10 + $0x1678] sm:$0xf]  ;;  %v14796_v33 = vor.u32 %v19580_v4, %v14793_v17  ;;  %v20363_v39 = vld [vmem:[#allocation10 + $0x1dec] sm:$0xf0]  ;;  %v14537_v4 = vld [vmem:[#allocation10 + $0x3f8] sm:$0xf0] }
 0x54f   :  { %10152 = vmatpush.bf16.msrb.mxu3 %v17340_v35  ;;  %v16839_v55 = vld [vmem:[#allocation10 + $0x1578] sm:$0xf] }
 0x550   :  { %v20108_v24 = vld [vmem:[#allocation10 + $0x15f4] sm:$0xf0] }
 0x551   :  { %10279 = vmatpush.bf16.msra.mxu0 %v14152_v56  ;;  %10293 = vmatpush.bf16.msra.mxu1 %v15176_v52  ;;  %v15817_v56 = vld [vmem:[#allocation10 + $0xdf8] sm:$0xf0]  ;;  %v20140_v52 = vld [vmem:[#allocation10 + $0x16f4] sm:$0xf0]  ;;  %v16840_v17 = vor.u32 %v20108_v24, %v16839_v55 }
 0x552   :  { %10251 = vmatpush.bf16.msrb.mxu2 %v16196_v29  ;;  %v15820_v0 = vor.u32 %v19836_v5, %v15817_v56  ;;  %v16968_v35 = vor.u32 %v20140_v52, %v16967_v2  ;;  %v15692_v29 = vor.u32 %v19804_v23, %v15689_v40  ;;  %v17856_v5 = vor.u32 %v20363_v39, %v17855_v41  ;;  %v16711_v56 = vld [vmem:[#allocation10 + $0x1478] sm:$0xf]  ;;  %v17727_v52 = vld [vmem:[#allocation10 + $0x1c70] sm:$0xf]  ;;  %v15433_v23 = vld [vmem:[#allocation10 + $0xaf8] sm:$0xf0]  ;;  %v22018_v24 = vpop.f32.mrf.mxu1 }
 0x553   :  { %10153 = vmatpush.bf16.msrb.mxu3 %v17212_v34  ;;  %v19772_v34 = vld [vmem:[#allocation10 + $0xb7c] sm:$0xf]  ;;  %v20044_v55 = vld [vmem:[#allocation10 + $0x13f4] sm:$0xf0]  ;;  %v17599_v39 = vld [vmem:[#allocation10 + $0x1b70] sm:$0xf] }
 0x554   :  { %10280 = vmatmul.bf16.vlgmr.msra.gmra.mxu0 %v21401_v53  ;;  %10294 = vmatmul.bf16.vlgmr.msra.gmra.mxu1 %v21403_v18 }
 0x555   :  { %10328 = vmatpush.bf16.msrb.mxu0 %v15052_v11  ;;  %10342 = vmatpush.bf16.msrb.mxu1 %v16076_v36  ;;  %v22010_v11 = vpop.f32.mrf.mxu0  ;;  %v17983_v36 = vld [vmem:[#allocation10 + $0x1e70] sm:$0xf] }
 0x556   :  { %10300 = vmatpush.bf16.msra.mxu2 %v17096_v38  ;;  %v17984_v48 = vor.u32 %v20395_v19, %v17983_v36  ;;  %10154 = vmatmul.bf16.vlgmr.msrb.gmra.mxu3 %v21429_v25  ;;  %v15561_v38 = vld [vmem:[#allocation10 + $0xbf8] sm:$0xf0] }
 0x557   :  { %10202 = vmatpush.bf16.msra.mxu3 %v18112_v54  ;;  %10252 = vmatmul.bf16.vlgmr.msrb.gmra.mxu2 %v21413_v46  ;;  %v20076_v54 = vld [vmem:[#allocation10 + $0x14f4] sm:$0xf0]  ;;  %v15564_v36 = vor.u32 %v19772_v34, %v15561_v38  ;;  %v19484_v19 = vld [vmem:[#allocation10 + $0x27c] sm:$0xf] }
 0x558   :  { %v14281_v34 = vld [vmem:[#allocation10 + $0x1f8] sm:$0xf0] }
 0x559   :  { %10329 = vmatpush.bf16.msrb.mxu0 %v14924_v20  ;;  %10343 = vmatpush.bf16.msrb.mxu1 %v15948_v51  ;;  %v14668_v20 = vor.u32 %v19548_v42, %v14665_v16  ;;  %v19516_v51 = vld [vmem:[#allocation10 + $0x37c] sm:$0xf]  ;;  %v16712_v16 = vor.u32 %v20076_v54, %v16711_v56 }
 0x55a   :  { %10301 = vmatpush.bf16.msra.mxu2 %v16968_v35  ;;  %v14540_v2 = vor.u32 %v19516_v51, %v14537_v4  ;;  %v14409_v42 = vld [vmem:[#allocation10 + $0x2f8] sm:$0xf0] }
 0x55b   :  { %10203 = vmatpush.bf16.msra.mxu3 %v17984_v48  ;;  %v19740_v35 = vld [vmem:[#allocation10 + $0xa7c] sm:$0xf]  ;;  %v16583_v48 = vld [vmem:[#allocation10 + $0x1378] sm:$0xf]  ;;  %v14412_v41 = vor.u32 %v19484_v19, %v14409_v42  ;;  %v20267_v19 = vld [vmem:[#allocation10 + $0x1aec] sm:$0xf0] }
 0x55c   :  { %v15436_v51 = vor.u32 %v19740_v35, %v15433_v23  ;;  %v19452_v4 = vld [vmem:[#allocation10 + $0x17c] sm:$0xf] }
 0x55d   :  { %10330 = vmatpush.bf16.msrb.mxu0 %v14796_v33  ;;  %10344 = vmatpush.bf16.msrb.mxu1 %v15820_v0  ;;  %v20331_v33 = vld [vmem:[#allocation10 + $0x1cec] sm:$0xf0]  ;;  %v22016_v0 = vpop.f32.mrf.mxu0  ;;  %v19708_v38 = vld [vmem:[#allocation10 + $0x97c] sm:$0xf]  ;;  %v14284_v13 = vor.u32 %v19452_v4, %v14281_v34 }
 0x55e   :  { %10302 = vmatpush.bf16.msra.mxu2 %v16840_v17  ;;  %v17728_v40 = vor.u32 %v20331_v33, %v17727_v52  ;;  %v16584_v17 = vor.u32 %v20044_v55, %v16583_v48  ;;  %v15305_v56 = vld [vmem:[#allocation10 + $0x9f8] sm:$0xf0]  ;;  %v16455_v52 = vld [vmem:[#allocation10 + $0x1278] sm:$0xf]  ;;  %v17343_v34 = vld [vmem:[#allocation10 + $0x1970] sm:$0xf] }
 0x55f   :  { %10204 = vmatpush.bf16.msra.mxu3 %v17856_v5  ;;  %v22022_v5 = vpop.f32.mrf.mxu2  ;;  %v20012_v33 = vld [vmem:[#allocation10 + $0x12f4] sm:$0xf0]  ;;  %v15308_v42 = vor.u32 %v19708_v38, %v15305_v56  ;;  %v14153_v35 = vld [vmem:[#allocation10 + $0xf8] sm:$0xf0] }
 0x560   :  { %22474 = vst [vmem:[#allocation115_spill] sm:$0xff] %v22022_v5  ;;  %v19676_v48 = vld [vmem:[#allocation10 + $0x87c] sm:$0xf] }
 0x561   :  { %10331 = vmatpush.bf16.msrb.mxu0 %v14668_v20  ;;  %10345 = vmatpush.bf16.msrb.mxu1 %v15692_v29  ;;  %v22020_v20 = vpop.f32.mrf.mxu3  ;;  %v20299_v29 = vld [vmem:[#allocation10 + $0x1bec] sm:$0xf0]  ;;  %v15177_v55 = vld [vmem:[#allocation10 + $0x8f8] sm:$0xf0] }
 0x562   :  { %10303 = vmatpush.bf16.msra.mxu2 %v16712_v16  ;;  %v17600_v54 = vor.u32 %v20299_v29, %v17599_v39  ;;  %v16456_v16 = vor.u32 %v20012_v33, %v16455_v52  ;;  %v19980_v39 = vld [vmem:[#allocation10 + $0x11f4] sm:$0xf0]  ;;  %v22026_v29 = vpop.f32.mrf.mxu1  ;;  %v15180_v56 = vor.u32 %v19676_v48, %v15177_v55  ;;  %v18113_v48 = vld [vmem:[#allocation10 + $0x1ff0] sm:$0xf0] }
 0x563   :  { %10205 = vmatpush.bf16.msra.mxu3 %v17728_v40  ;;  %v16327_v40 = vld [vmem:[#allocation10 + $0x1178] sm:$0xf]  ;;  %22476 = vst [vmem:[#allocation117_spill] sm:$0xff] %v22026_v29  ;;  %v20443_v55 = vld [vmem:[#allocation13 + $0x70] sm:$0xff] }
 0x564   :  { %v16328_v52 = vor.u32 %v19980_v39, %v16327_v40  ;;  %v20444_v33 = vld [vmem:[#allocation13 + $0x78] sm:$0xff] }
 0x565   :  { %10332 = vmatpush.bf16.msrb.mxu0 %v14540_v2  ;;  %10346 = vmatpush.bf16.msrb.mxu1 %v15564_v36  ;;  %v17471_v2 = vld [vmem:[#allocation10 + $0x1a70] sm:$0xf]  ;;  %v19420_v36 = vld [vmem:[#allocation10 + $0x7c] sm:$0xf]  ;;  %v22024_v23 = vpop.f32.mrf.mxu0  ;;  %v16199_v29 = vld [vmem:[#allocation10 + $0x1078] sm:$0xf] }
 0x566   :  { %22475 = vst [vmem:[#allocation116_spill] sm:$0xff] %v22024_v23  ;;  %10304 = vmatpush.bf16.msra.mxu2 %v16584_v17  ;;  %v17472_v5 = vor.u32 %v20267_v19, %v17471_v2  ;;  %v14156_v4 = vor.u32 %v19420_v36, %v14153_v35  ;;  %v20436_v17 = vld [vmem:[#allocation13 + $0x38] sm:$0xff]  ;;  %v17215_v19 = vld [vmem:[#allocation10 + $0x1870] sm:$0xf] }
 0x567   :  { %10206 = vmatpush.bf16.msra.mxu3 %v17600_v54  ;;  %v22031_v54 = vpop.f32.mrf.mxu2  ;;  %v19948_v23 = vld [vmem:[#allocation10 + $0x10f4] sm:$0xf0]  ;;  %v20156_v36 = vld [vmem:[#allocation10 + $0x177c] sm:$0xf] }
 0x568   :  { %v17097_v35 = vld [vmem:[#allocation10 + $0x17f8] sm:$0xf0] }
 0x569   :  { %10333 = vmatpush.bf16.msrb.mxu0 %v14412_v41  ;;  %10347 = vmatpush.bf16.msrb.mxu1 %v15436_v51  ;;  %v9931_v41 = vpop.f32.mrf.mxu3  ;;  %v20235_v51 = vld [vmem:[#allocation10 + $0x19ec] sm:$0xf0]  ;;  %v17100_v40 = vor.u32 %v20156_v36, %v17097_v35  ;;  %v20433_v36 = vld [vmem:[#allocation13 + $0x20] sm:$0xff]  ;;  %v20347_v35 = vld [vmem:[#allocation10 + $0x1d74] sm:$0xf] }
 0x56a   :  { %v22029_v38 = vadd.f32 %v9931_v41, %v21976_v62  ;;  %10305 = vmatpush.bf16.msra.mxu2 %v16456_v16  ;;  %v17344_v2 = vor.u32 %v20235_v51, %v17343_v34  ;;  %v20435_v62 = vld [vmem:[#allocation13 + $0x30] sm:$0xff]  ;;  %v16200_v16 = vor.u32 %v19948_v23, %v16199_v29  ;;  %v16969_v34 = vld [vmem:[#allocation10 + $0x16f8] sm:$0xf0]  ;;  %v20434_v51 = vld [vmem:[#allocation13 + $0x28] sm:$0xff] }
 0x56b   :  { %10207 = vmatpush.bf16.msra.mxu3 %v17472_v5  ;;  %v20442_v23 = vld [vmem:[#allocation13 + $0x68] sm:$0xff]  ;;  %v22039_v29 = vld [vmem:[#allocation11 + $0x18] sm:$0xff] }
 0x56c   :  { %22477 = vst [vmem:[#allocation118_spill] sm:$0xff] %v22029_v38  ;;  %v20439_v38 = vld [vmem:[#allocation13 + $0x50] sm:$0xff] }
 0x56d   :  { %10334 = vmatpush.bf16.msrb.mxu0 %v14284_v13  ;;  %10348 = vmatpush.bf16.msrb.mxu1 %v15308_v42  ;;  %v20203_v13 = vld [vmem:[#allocation10 + $0x18ec] sm:$0xf0]  ;;  %v20411_v42 = vld [vmem:[#allocation10 + $0x1f74] sm:$0xf]  ;;  %v22034_v39 = vpop.f32.mrf.mxu0  ;;  %22478 = vst [vmem:[#allocation119_spill] sm:$0xff] %v22039_v29 }
 0x56e   :  { %10306 = vmatpush.bf16.msra.mxu2 %v16328_v52  ;;  %v17216_v5 = vor.u32 %v20203_v13, %v17215_v19  ;;  %v18116_v41 = vor.u32 %v20411_v42, %v18113_v48  ;;  %v22037_v52 = vpop.f32.mrf.mxu1  ;;  %v22363_v13 = vperm.slane %v22039_v29, 3  ;;  %v20441_v42 = vld [vmem:[#allocation13 + $0x60] sm:$0xff]  ;;  %v20431_v29 = vld [vmem:[#allocation13 + $0x10] sm:$0xff] }
 0x56f   :  { %10208 = vmatpush.bf16.msra.mxu3 %v17344_v2  ;;  %v16841_v2 = vld [vmem:[#allocation10 + $0x15f8] sm:$0xf0]  ;;  %v22041_v19 = vpop.f32.mrf.mxu2 }
 0x571   :  { %10335 = vmatpush.bf16.msrb.mxu0 %v14156_v4  ;;  %10349 = vmatpush.bf16.msrb.mxu1 %v15180_v56  ;;  %v20124_v4 = vld [vmem:[#allocation10 + $0x167c] sm:$0xf]  ;;  %v20379_v56 = vld [vmem:[#allocation10 + $0x1e74] sm:$0xf] }
 0x572   :  { %10307 = vmatpush.bf16.msra.mxu2 %v16200_v16 }
 0x573   :  { %10209 = vmatpush.bf16.msra.mxu3 %v17216_v5  ;;  %v20060_v5 = vld [vmem:[#allocation10 + $0x147c] sm:$0xf] }
 0x574   :  { %10336 = vmatmul.bf16.vlgmr.msrb.gmra.mxu0 %v21401_v53  ;;  %10350 = vmatmul.bf16.vlgmr.msrb.gmra.mxu1 %v21403_v18  ;;  %v16972_v53 = vor.u32 %v20124_v4, %v16969_v34  ;;  %v20092_v18 = vld [vmem:[#allocation10 + $0x157c] sm:$0xf]  ;;  %v20315_v34 = vld [vmem:[#allocation10 + $0x1c74] sm:$0xf] }
 0x575   :  { %12532 = vmatpush.bf16.msra.mxu0 %v20436_v17  ;;  %12546 = vmatpush.bf16.msra.mxu1 %v20444_v33  ;;  %v17985_v17 = vld [vmem:[#allocation10 + $0x1ef0] sm:$0xf0]  ;;  %v16844_v48 = vor.u32 %v20092_v18, %v16841_v2  ;;  %v10113_v16 = vpop.f32.mrf.mxu0  ;;  %v20432_v4 = vld [vmem:[#allocation13 + $0x18] sm:$0xff] }
 0x576   :  { %10356 = vmatpush.bf16.msrb.mxu2 %v17100_v40  ;;  %v17988_v33 = vor.u32 %v20379_v56, %v17985_v17  ;;  %10210 = vmatmul.bf16.vlgmr.msra.gmra.mxu3 %v21429_v25  ;;  %v16713_v40 = vld [vmem:[#allocation10 + $0x14f8] sm:$0xf0]  ;;  %v22479_v56 = vperm.slane %v21432_v27, 0 }
 0x577   :  { %10258 = vmatpush.bf16.msrb.mxu3 %v18116_v41  ;;  %10308 = vmatmul.bf16.vlgmr.msra.gmra.mxu2 %v21413_v46  ;;  %v10114_v41 = vadd.f32 %v10113_v16, %v22363_v13  ;;  %v16585_v16 = vld [vmem:[#allocation10 + $0x13f8] sm:$0xf0]  ;;  %v22056_v13 = vpop.f32.mrf.mxu2 }
 0x578   :  { %v8604_v17 = vadd.f32 %v21443_v9, %v22479_v56  ;;  %v20283_v9 = vld [vmem:[#allocation10 + $0x1b74] sm:$0xf] }
 0x579   :  { %12533 = vmatpush.bf16.msra.mxu0 %v20435_v62  ;;  %12547 = vmatpush.bf16.msra.mxu1 %v20443_v55  ;;  %v17857_v62 = vld [vmem:[#allocation10 + $0x1df0] sm:$0xf0] }
 0x57a   :  { %10357 = vmatpush.bf16.msrb.mxu2 %v16972_v53  ;;  %v17860_v55 = vor.u32 %v20347_v35, %v17857_v62  ;;  %v20440_v53 = vld [vmem:[#allocation13 + $0x58] sm:$0xff]  ;;  %v16716_v35 = vor.u32 %v20060_v5, %v16713_v40  ;;  %v17601_v56 = vld [vmem:[#allocation10 + $0x1bf0] sm:$0xf0] }
 0x57b   :  { %10259 = vmatpush.bf16.msrb.mxu3 %v17988_v33  ;;  %v22480_v33 = vperm.slane %v21432_v27, 1  ;;  %v20028_v62 = vld [vmem:[#allocation10 + $0x137c] sm:$0xf] }
 0x57c   :  { %v19996_v5 = vld [vmem:[#allocation10 + $0x127c] sm:$0xf] }
 0x57d   :  { %12534 = vmatpush.bf16.msra.mxu0 %v20434_v51  ;;  %12548 = vmatpush.bf16.msra.mxu1 %v20442_v23  ;;  %v17729_v51 = vld [vmem:[#allocation10 + $0x1cf0] sm:$0xf0]  ;;  %v10127_v23 = vpop.f32.mrf.mxu1  ;;  %v8660_v18 = vadd.f32 %v21456_v45, %v22480_v33  ;;  %v16457_v40 = vld [vmem:[#allocation10 + $0x12f8] sm:$0xf0] }
 0x57e   :  { %v22054_v2 = vadd.f32 %v10127_v23, %v10114_v41  ;;  %10358 = vmatpush.bf16.msrb.mxu2 %v16844_v48  ;;  %v16588_v41 = vor.u32 %v20028_v62, %v16585_v16  ;;  %v17473_v23 = vld [vmem:[#allocation10 + $0x1af0] sm:$0xf0]  ;;  %v19964_v33 = vld [vmem:[#allocation10 + $0x117c] sm:$0xf]  ;;  %v20437_v62 = vld [vmem:[#allocation13 + $0x40] sm:$0xff] }
 0x57f   :  { %10260 = vmatpush.bf16.msrb.mxu3 %v17860_v55  ;;  %v8674_v45 = vadd.f32 %v21459_v10, %v8660_v18  ;;  %v17604_v55 = vor.u32 %v20283_v9, %v17601_v56  ;;  %v16329_v18 = vld [vmem:[#allocation10 + $0x11f8] sm:$0xf0]  ;;  %v10384_v56 = vmax.f32 %v21512_v60, 0.0  ;;  %v20475_v60 = vld [vmem:[#allocation13 + $0x170] sm:$0xff] }
 0x580   :  { %v20468_v16 = vld [vmem:[#allocation13 + $0x138] sm:$0xff] }
 0x581   :  { %12535 = vmatpush.bf16.msra.mxu0 %v20433_v36  ;;  %12549 = vmatpush.bf16.msra.mxu1 %v20441_v42  ;;  %v17732_v36 = vor.u32 %v20315_v34, %v17729_v51  ;;  %v8618_v42 = vadd.f32 %v21446_v21, %v8604_v17  ;;  %v8688_v34 = vadd.f32 %v21489_v32, %v8674_v45  ;;  %v20251_v51 = vld [vmem:[#allocation10 + $0x1a74] sm:$0xf]  ;;  %v20438_v17 = vld [vmem:[#allocation13 + $0x48] sm:$0xff]  ;;  %v19932_v45 = vld [vmem:[#allocation10 + $0x107c] sm:$0xf] }
 0x582   :  { %10359 = vmatpush.bf16.msrb.mxu2 %v16716_v35  ;;  %v20429_v35 = vld [vmem:[#allocation13] sm:$0xff]  ;;  %v17345_v32 = vld [vmem:[#allocation10 + $0x19f0] sm:$0xf0] }
 0x583   :  { %v8632_v48 = vadd.f32 %v21471_v8, %v8618_v42  ;;  %10261 = vmatpush.bf16.msrb.mxu3 %v17732_v36  ;;  %v8702_v10 = vadd.f32 %v21537_v3, %v8688_v34  ;;  %v17476_v8 = vor.u32 %v20251_v51, %v17473_v23  ;;  %v20219_v36 = vld [vmem:[#allocation10 + $0x1974] sm:$0xf]  ;;  %v20476_v3 = vld [vmem:[#allocation13 + $0x178] sm:$0xff] }
 0x584   :  { %v17348_v42 = vor.u32 %v20219_v36, %v17345_v32  ;;  %v20467_v34 = vld [vmem:[#allocation13 + $0x130] sm:$0xff]  ;;  %v20428_v51 = vld [vmem:[#allocation10 + $0x1ff4] sm:$0xf0] }
 0x585   :  { %12536 = vmatpush.bf16.msra.mxu0 %v20432_v4  ;;  %12550 = vmatpush.bf16.msra.mxu1 %v20440_v53  ;;  %v20430_v4 = vld [vmem:[#allocation13 + $0x8] sm:$0xff]  ;;  %v8646_v21 = vadd.f32 %v21517_v7, %v8632_v48  ;;  %v16460_v53 = vor.u32 %v19996_v5, %v16457_v40  ;;  %v10417_v9 = vmax.f32 %v8702_v10, 0.0  ;;  %v22064_v7 = vpop.f32.mrf.mxu2  ;;  %v10385_v48 = vmax.f32 %v21528_v6, 0.0  ;;  %v17217_v5 = vld [vmem:[#allocation10 + $0x18f0] sm:$0xf0]  ;;  %v20452_v10 = vld [vmem:[#allocation13 + $0xb8] sm:$0xff] }
 0x586   :  { %10360 = vmatpush.bf16.msrb.mxu2 %v16588_v41  ;;  %v16201_v41 = vld [vmem:[#allocation10 + $0x10f8] sm:$0xf0]  ;;  %v20451_v36 = vld [vmem:[#allocation13 + $0xb0] sm:$0xff] }
 0x587   :  { %10262 = vmatpush.bf16.msrb.mxu3 %v17604_v55  ;;  %v20187_v55 = vld [vmem:[#allocation10 + $0x1874] sm:$0xf]  ;;  %v10449_v23 = vpack.c.bf16 %v10417_v9, %v10385_v48  ;;  %v20473_v9 = vld [vmem:[#allocation13 + $0x160] sm:$0xff]  ;;  %v20472_v48 = vld [vmem:[#allocation13 + $0x158] sm:$0xff] }
 0x589   :  { %12537 = vmatpush.bf16.msra.mxu0 %v20431_v29  ;;  %12551 = vmatpush.bf16.msra.mxu1 %v20439_v38  ;;  %v10416_v29 = vmax.f32 %v8646_v21, 0.0  ;;  %v16332_v38 = vor.u32 %v19964_v33, %v16329_v18  ;;  %v16204_v21 = vor.u32 %v19932_v45, %v16201_v41  ;;  %v20396_v33 = vld [vmem:[#allocation10 + $0x1ef4] sm:$0xf0]  ;;  %v22481_v41 = vperm.slane %v21501_v26, 4 }
 0x58a   :  { %10361 = vmatpush.bf16.msrb.mxu2 %v16460_v53  ;;  %v20466_v53 = vld [vmem:[#allocation13 + $0x128] sm:$0xff]  ;;  %v20332_v45 = vld [vmem:[#allocation10 + $0x1cf4] sm:$0xf0] }
 0x58b   :  { %10263 = vmatpush.bf16.msrb.mxu3 %v17476_v8  ;;  %v10448_v40 = vpack.c.bf16 %v10416_v29, %v10384_v56  ;;  %v17991_v8 = vld [vmem:[#allocation10 + $0x1e78] sm:$0xf]  ;;  %v20465_v29 = vld [vmem:[#allocation13 + $0x120] sm:$0xff] }
 0x58c   :  { %v17992_v32 = vor.u32 %v20396_v33, %v17991_v8  ;;  %v20464_v56 = vld [vmem:[#allocation13 + $0x118] sm:$0xff] }
 0x58d   :  { %12538 = vmatpush.bf16.msra.mxu0 %v20430_v4  ;;  %12552 = vmatpush.bf16.msra.mxu1 %v20438_v17  ;;  %v18119_v4 = vld [vmem:[#allocation10 + $0x1f78] sm:$0xf]  ;;  %v17220_v17 = vor.u32 %v20187_v55, %v17217_v5  ;;  %v22068_v18 = vpop.f32.mrf.mxu2  ;;  %v22482_v55 = vperm.slane %v21501_v26, 5 }
 0x58e   :  { %10362 = vmatpush.bf16.msrb.mxu2 %v16332_v38  ;;  %v18120_v6 = vor.u32 %v20428_v51, %v18119_v4  ;;  %v20450_v38 = vld [vmem:[#allocation13 + $0xa8] sm:$0xff]  ;;  %v20463_v51 = vld [vmem:[#allocation13 + $0x110] sm:$0xff] }
 0x58f   :  { %10264 = vmatpush.bf16.msrb.mxu3 %v17348_v42  ;;  %v17735_v42 = vld [vmem:[#allocation10 + $0x1c78] sm:$0xf]  ;;  %v8884_v5 = vadd.f32 %v21546_v63, %v22482_v55  ;;  %v22483_v63 = vperm.slane %v21432_v27, 2 }
 0x590   :  { %v17736_v4 = vor.u32 %v20332_v45, %v17735_v42  ;;  %v22484_v42 = vld [vmem:[#allocation25_spill] sm:$0xff]  ;;  %v22485_v55 = vld [vmem:[#allocation28_spill] sm:$0xff] }
 0x591   :  { %12539 = vmatpush.bf16.msra.mxu0 %v20429_v35  ;;  %12553 = vmatpush.bf16.msra.mxu1 %v20437_v62  ;;  %v20474_v35 = vld [vmem:[#allocation13 + $0x168] sm:$0xff]  ;;  %v17863_v62 = vld [vmem:[#allocation10 + $0x1d78] sm:$0xf] }
 0x592   :  { %10363 = vmatpush.bf16.msrb.mxu2 %v16204_v21  ;;  %v20300_v21 = vld [vmem:[#allocation10 + $0x1bf4] sm:$0xf0] }
 0x593   :  { %10265 = vmatpush.bf16.msrb.mxu3 %v17220_v17  ;;  %v8898_v17 = vadd.f32 %v21549_v22, %v8884_v5 }
 0x594   :  { %12540 = vmatmul.bf16.vlgmr.msra.gmra.mxu0 %v10448_v40  ;;  %12554 = vmatmul.bf16.vlgmr.msra.gmra.mxu1 %v10449_v23  ;;  %v20449_v40 = vld [vmem:[#allocation13 + $0xa0] sm:$0xff]  ;;  %v17607_v23 = vld [vmem:[#allocation10 + $0x1b78] sm:$0xf] }
 0x595   :  { %12588 = vmatpush.bf16.msrb.mxu0 %v20468_v16  ;;  %12602 = vmatpush.bf16.msrb.mxu1 %v20476_v3  ;;  %v20364_v16 = vld [vmem:[#allocation10 + $0x1df4] sm:$0xf0]  ;;  %v17608_v8 = vor.u32 %v20300_v21, %v17607_v23  ;;  %v8912_v33 = vadd.f32 %v21581_v57, %v8898_v17 }
 0x596   :  { %12560 = vmatpush.bf16.msra.mxu2 %v20452_v10  ;;  %10266 = vmatmul.bf16.vlgmr.msrb.gmra.mxu3 %v21429_v25  ;;  %v17864_v3 = vor.u32 %v20364_v16, %v17863_v62  ;;  %v20448_v10 = vld [vmem:[#allocation13 + $0x98] sm:$0xff] }
 0x597   :  { %10314 = vmatpush.bf16.msra.mxu3 %v18120_v6  ;;  %10364 = vmatmul.bf16.vlgmr.msrb.gmra.mxu2 %v21413_v46  ;;  %v8828_v46 = vadd.f32 %v21520_v14, %v22481_v41  ;;  %v20471_v14 = vld [vmem:[#allocation13 + $0x150] sm:$0xff]  ;;  %v8716_v6 = vadd.f32 %v21474_v47, %v22483_v63  ;;  %v8926_v62 = vadd.f32 %v21631_v43, %v8912_v33  ;;  %v20469_v41 = vld [vmem:[#allocation13 + $0x140] sm:$0xff]  ;;  %v20500_v43 = vld [vmem:[#allocation13 + $0x238] sm:$0xff] }
 0x598   :  { %v20447_v47 = vld [vmem:[#allocation13 + $0x90] sm:$0xff]  ;;  %v20412_v63 = vld [vmem:[#allocation10 + $0x1f7c] sm:$0xf] }
 0x599   :  { %12589 = vmatpush.bf16.msrb.mxu0 %v20467_v34  ;;  %12603 = vmatpush.bf16.msrb.mxu1 %v20475_v60  ;;  %v22078_v34 = vpop.f32.mrf.mxu2  ;;  %v8842_v60 = vadd.f32 %v21523_v58, %v8828_v46  ;;  %v20462_v58 = vld [vmem:[#allocation13 + $0x108] sm:$0xff]  ;;  %v10421_v46 = vmax.f32 %v8926_v62, 0.0  ;;  %v20507_v33 = vld [vmem:[#allocation13 + $0x270] sm:$0xff] }
 0x59a   :  { %12561 = vmatpush.bf16.msra.mxu2 %v20451_v36  ;;  %v17479_v36 = vld [vmem:[#allocation10 + $0x1a78] sm:$0xf] }
 0x59b   :  { %10315 = vmatpush.bf16.msra.mxu3 %v17992_v32  ;;  %v20268_v32 = vld [vmem:[#allocation10 + $0x1af4] sm:$0xf0] }
 0x59d   :  { %12590 = vmatpush.bf16.msrb.mxu0 %v20466_v53  ;;  %12604 = vmatpush.bf16.msrb.mxu1 %v20474_v35  ;;  %v8856_v53 = vadd.f32 %v21558_v12, %v8842_v60  ;;  %v22087_v35 = vpop.f32.mrf.mxu3  ;;  %v8730_v12 = vadd.f32 %v21477_v59, %v8716_v6  ;;  %v20508_v59 = vld [vmem:[#allocation13 + $0x278] sm:$0xff] }
 0x59e   :  { %12562 = vmatpush.bf16.msra.mxu2 %v20450_v38  ;;  %v20461_v38 = vld [vmem:[#allocation13 + $0x100] sm:$0xff]  ;;  %v17223_v60 = vld [vmem:[#allocation10 + $0x1878] sm:$0xf]  ;;  %v18121_v6 = vld [vmem:[#allocation10 + $0x1ff8] sm:$0xf0] }
 0x59f   :  { %10316 = vmatpush.bf16.msra.mxu3 %v17864_v3  ;;  %v8870_v22 = vadd.f32 %v21608_v49, %v8856_v53  ;;  %v17351_v3 = vld [vmem:[#allocation10 + $0x1978] sm:$0xf]  ;;  %v8744_v49 = vadd.f32 %v22484_v42, %v8730_v12  ;;  %v20380_v12 = vld [vmem:[#allocation10 + $0x1e7c] sm:$0xf]  ;;  %v20497_v42 = vld [vmem:[#allocation13 + $0x220] sm:$0xff] }
 0x5a1   :  { %12591 = vmatpush.bf16.msrb.mxu0 %v20465_v29  ;;  %12605 = vmatpush.bf16.msrb.mxu1 %v20473_v9  ;;  %v20470_v29 = vld [vmem:[#allocation13 + $0x148] sm:$0xff]  ;;  %v10141_v16 = vpop.f32.mrf.mxu2  ;;  %v17480_v9 = vor.u32 %v20268_v32, %v17479_v36  ;;  %v10420_v45 = vmax.f32 %v8870_v22, 0.0  ;;  %v8758_v5 = vadd.f32 %v22485_v55, %v8744_v49  ;;  %v20484_v32 = vld [vmem:[#allocation13 + $0x1b8] sm:$0xff]  ;;  %v18124_v22 = vor.u32 %v20412_v63, %v18121_v6  ;;  %v20495_v6 = vld [vmem:[#allocation13 + $0x210] sm:$0xff] }
 0x5a2   :  { %12563 = vmatpush.bf16.msra.mxu2 %v20449_v40  ;;  %v22093_v57 = vadd.f32 %v10141_v16, %v22054_v2  ;;  %v22486_v40 = vld [vmem:[#allocation33_spill] sm:$0xff]  ;;  %v17993_v16 = vld [vmem:[#allocation10 + $0x1ef8] sm:$0xf0] }
 0x5a3   :  { %10317 = vmatpush.bf16.msra.mxu3 %v17736_v4  ;;  %v10388_v4 = vmax.f32 %v22486_v40, 0.0  ;;  %v20348_v49 = vld [vmem:[#allocation10 + $0x1d7c] sm:$0xf] }
 0x5a4   :  { %v20316_v55 = vld [vmem:[#allocation10 + $0x1c7c] sm:$0xf] }
 0x5a5   :  { %12592 = vmatpush.bf16.msrb.mxu0 %v20464_v56  ;;  %12606 = vmatpush.bf16.msrb.mxu1 %v20472_v48  ;;  %v20236_v56 = vld [vmem:[#allocation10 + $0x19f4] sm:$0xf0]  ;;  %v20446_v48 = vld [vmem:[#allocation13 + $0x88] sm:$0xff]  ;;  %v22099_v21 = vpop.f32.mrf.mxu3  ;;  %v10452_v17 = vpack.c.bf16 %v10420_v45, %v10388_v4  ;;  %v17865_v45 = vld [vmem:[#allocation10 + $0x1df8] sm:$0xf0] }
 0x5a6   :  { %12564 = vmatpush.bf16.msra.mxu2 %v20448_v10  ;;  %v17352_v2 = vor.u32 %v20236_v56, %v17351_v3  ;;  %v20499_v10 = vld [vmem:[#allocation13 + $0x230] sm:$0xff]  ;;  %v17996_v56 = vor.u32 %v20380_v12, %v17993_v16  ;;  %v22489_v40 = vld [vmem:[#allocation36_spill] sm:$0xff] }
 0x5a7   :  { %10318 = vmatpush.bf16.msra.mxu3 %v17608_v8  ;;  %v20445_v8 = vld [vmem:[#allocation13 + $0x80] sm:$0xff]  ;;  %v20483_v3 = vld [vmem:[#allocation13 + $0x1b0] sm:$0xff]  ;;  %v22490_v4 = vperm.slane %v22489_v40, 0 }
 0x5a8   :  { %v22497_v12 = vld [vmem:[#allocation30_spill] sm:$0xff] }
 0x5a9   :  { %12593 = vmatpush.bf16.msrb.mxu0 %v20463_v51  ;;  %12607 = vmatpush.bf16.msrb.mxu1 %v20471_v14  ;;  %v22487_v51 = vld [vmem:[#allocation38_spill] sm:$0xff]  ;;  %v20204_v14 = vld [vmem:[#allocation10 + $0x18f4] sm:$0xf0] }
 0x5aa   :  { %12565 = vmatpush.bf16.msra.mxu2 %v20447_v47  ;;  %v10389_v23 = vmax.f32 %v22487_v51, 0.0  ;;  %v17224_v36 = vor.u32 %v20204_v14, %v17223_v60  ;;  %v20498_v47 = vld [vmem:[#allocation13 + $0x228] sm:$0xff]  ;;  %v22492_v60 = vperm.slane %v22489_v40, 1  ;;  %v22493_v14 = vld [vmem:[#allocation43_spill] sm:$0xff] }
 0x5ab   :  { %10319 = vmatpush.bf16.msra.mxu3 %v17480_v9  ;;  %v20506_v9 = vld [vmem:[#allocation13 + $0x268] sm:$0xff] }
 0x5ac   :  { %v10453_v53 = vpack.c.bf16 %v10421_v46, %v10389_v23  ;;  %v20482_v46 = vld [vmem:[#allocation13 + $0x1a8] sm:$0xff]  ;;  %v20504_v23 = vld [vmem:[#allocation13 + $0x258] sm:$0xff] }
 0x5ad   :  { %12594 = vmatpush.bf16.msrb.mxu0 %v20462_v58  ;;  %12608 = vmatpush.bf16.msrb.mxu1 %v20470_v29  ;;  %v10418_v58 = vmax.f32 %v8758_v5, 0.0  ;;  %v22488_v29 = vld [vmem:[#allocation27_spill] sm:$0xff]  ;;  %v17737_v5 = vld [vmem:[#allocation10 + $0x1cf8] sm:$0xf0] }
 0x5ae   :  { %12566 = vmatpush.bf16.msra.mxu2 %v20446_v48  ;;  %v10386_v62 = vmax.f32 %v22488_v29, 0.0  ;;  %v17868_v48 = vor.u32 %v20348_v49, %v17865_v45  ;;  %v17740_v63 = vor.u32 %v20316_v55, %v17737_v5  ;;  %v20494_v49 = vld [vmem:[#allocation13 + $0x208] sm:$0xff]  ;;  %v20252_v45 = vld [vmem:[#allocation10 + $0x1a7c] sm:$0xf] }
 0x5af   :  { %10320 = vmatpush.bf16.msra.mxu3 %v17352_v2  ;;  %v22491_v2 = vld [vmem:[#allocation39_spill] sm:$0xff]  ;;  %v22501_v55 = vld [vmem:[#allocation62_spill] sm:$0xff] }
 0x5b0   :  { %v9052_v51 = vadd.f32 %v22491_v2, %v22490_v4  ;;  %v20479_v4 = vld [vmem:[#allocation13 + $0x190] sm:$0xff] }
 0x5b1   :  { %12595 = vmatpush.bf16.msrb.mxu0 %v20461_v38  ;;  %12609 = vmatpush.bf16.msrb.mxu1 %v20469_v41  ;;  %v10450_v38 = vpack.c.bf16 %v10418_v58, %v10386_v62  ;;  %v22102_v41 = vpop.f32.mrf.mxu3  ;;  %v20480_v62 = vld [vmem:[#allocation13 + $0x198] sm:$0xff] }
 0x5b2   :  { %12567 = vmatpush.bf16.msra.mxu2 %v20445_v8  ;;  %v17609_v8 = vld [vmem:[#allocation10 + $0x1bf8] sm:$0xf0]  ;;  %v22502_v2 = vld [vmem:[#allocation31_spill] sm:$0xff] }
 0x5b3   :  { %10321 = vmatpush.bf16.msra.mxu3 %v17224_v36 }
 0x5b4   :  { %12596 = vmatmul.bf16.vlgmr.msrb.gmra.mxu0 %v10452_v17  ;;  %12610 = vmatmul.bf16.vlgmr.msrb.gmra.mxu1 %v10453_v53  ;;  %v9108_v17 = vadd.f32 %v22493_v14, %v22492_v60  ;;  %v20284_v53 = vld [vmem:[#allocation10 + $0x1b7c] sm:$0xf]  ;;  %v20493_v60 = vld [vmem:[#allocation13 + $0x200] sm:$0xff] }
 0x5b5   :  { %12644 = vmatpush.bf16.msra.mxu0 %v20500_v43  ;;  %12658 = vmatpush.bf16.msra.mxu1 %v20508_v59  ;;  %v20505_v43 = vld [vmem:[#allocation13 + $0x260] sm:$0xff]  ;;  %v20496_v59 = vld [vmem:[#allocation13 + $0x218] sm:$0xff] }
 0x5b6   :  { %12616 = vmatpush.bf16.msrb.mxu2 %v20484_v32  ;;  %10322 = vmatmul.bf16.vlgmr.msra.gmra.mxu3 %v21429_v25  ;;  %v20503_v32 = vld [vmem:[#allocation13 + $0x250] sm:$0xff]  ;;  %v20220_v14 = vld [vmem:[#allocation10 + $0x197c] sm:$0xf] }
 0x5b7   :  { %10370 = vmatpush.bf16.msrb.mxu3 %v18124_v22  ;;  %12568 = vmatmul.bf16.vlgmr.msra.gmra.mxu2 %v10450_v38  ;;  %v22495_v22 = vld [vmem:[#allocation44_spill] sm:$0xff] }
 0x5b8   :  { %v9122_v29 = vadd.f32 %v22495_v22, %v9108_v17  ;;  %v17353_v17 = vld [vmem:[#allocation10 + $0x19f8] sm:$0xf0]  ;;  %v22504_v22 = vld [vmem:[#allocation46_spill] sm:$0xff] }
 0x5b9   :  { %12645 = vmatpush.bf16.msra.mxu0 %v20499_v10  ;;  %12659 = vmatpush.bf16.msra.mxu1 %v20507_v33  ;;  %v20481_v10 = vld [vmem:[#allocation13 + $0x1a0] sm:$0xff]  ;;  %v22112_v36 = vpop.f32.mrf.mxu3 }
 0x5ba   :  { %12617 = vmatpush.bf16.msrb.mxu2 %v20483_v3  ;;  %v22494_v33 = vld [vmem:[#allocation40_spill] sm:$0xff]  ;;  %v17612_v3 = vor.u32 %v20284_v53, %v17609_v8 }
 0x5bb   :  { %10371 = vmatpush.bf16.msrb.mxu3 %v17996_v56  ;;  %v9066_v58 = vadd.f32 %v22494_v33, %v9052_v51  ;;  %v22499_v56 = vld [vmem:[#allocation50_spill] sm:$0xff]  ;;  %v20501_v53 = vld [vmem:[#allocation13 + $0x240] sm:$0xff]  ;;  %v20532_v8 = vld [vmem:[#allocation13 + $0x338] sm:$0xff] }
 0x5bd   :  { %12646 = vmatpush.bf16.msra.mxu0 %v20498_v47  ;;  %12660 = vmatpush.bf16.msra.mxu1 %v20506_v9  ;;  %v22496_v47 = vperm.slane %v21501_v26, 6  ;;  %v22498_v9 = vld [vmem:[#allocation45_spill] sm:$0xff] }
 0x5be   :  { %12618 = vmatpush.bf16.msrb.mxu2 %v20482_v46  ;;  %v9080_v38 = vadd.f32 %v22498_v9, %v9066_v58  ;;  %v22500_v46 = vld [vmem:[#allocation57_spill] sm:$0xff]  ;;  %v22506_v9 = vld [vmem:[#allocation58_spill] sm:$0xff] }
 0x5bf   :  { %10372 = vmatpush.bf16.msrb.mxu3 %v17868_v48  ;;  %v8940_v16 = vadd.f32 %v22497_v12, %v22496_v47  ;;  %v20478_v58 = vld [vmem:[#allocation13 + $0x188] sm:$0xff] }
 0x5c0   :  { %v9094_v48 = vadd.f32 %v22500_v46, %v9080_v38  ;;  %v10393_v38 = vmax.f32 %v22506_v9, 0.0  ;;  %v20539_v46 = vld [vmem:[#allocation13 + $0x370] sm:$0xff] }
 0x5c1   :  { %12647 = vmatpush.bf16.msra.mxu0 %v20497_v42  ;;  %12661 = vmatpush.bf16.msra.mxu1 %v20505_v43  ;;  %v9136_v42 = vadd.f32 %v22499_v56, %v9122_v29  ;;  %v17481_v43 = vld [vmem:[#allocation10 + $0x1af8] sm:$0xf0]  ;;  %v8954_v51 = vadd.f32 %v22502_v2, %v8940_v16  ;;  %v22126_v12 = vpop.f32.mrf.mxu3  ;;  %v17356_v16 = vor.u32 %v20220_v14, %v17353_v17  ;;  %v20515_v17 = vld [vmem:[#allocation13 + $0x2b0] sm:$0xff] }
 0x5c2   :  { %12619 = vmatpush.bf16.msrb.mxu2 %v20481_v10  ;;  %v22503_v10 = vld [vmem:[#allocation37_spill] sm:$0xff]  ;;  %v17225_v56 = vld [vmem:[#allocation10 + $0x18f8] sm:$0xf0] }
 0x5c3   :  { %10373 = vmatpush.bf16.msrb.mxu3 %v17740_v63  ;;  %v9150_v5 = vadd.f32 %v22501_v55, %v9136_v42  ;;  %v8968_v63 = vadd.f32 %v22503_v10, %v8954_v51  ;;  %v20516_v55 = vld [vmem:[#allocation13 + $0x2b8] sm:$0xff]  ;;  %v20530_v51 = vld [vmem:[#allocation13 + $0x328] sm:$0xff]  ;;  %v20459_v10 = vld [vmem:[#allocation13 + $0xf0] sm:$0xff] }
 0x5c5   :  { %12648 = vmatpush.bf16.msra.mxu0 %v20496_v59  ;;  %12662 = vmatpush.bf16.msra.mxu1 %v20504_v23  ;;  %v20502_v59 = vld [vmem:[#allocation13 + $0x248] sm:$0xff]  ;;  %v17484_v23 = vor.u32 %v20252_v45, %v17481_v43  ;;  %v10425_v33 = vmax.f32 %v9150_v5, 0.0  ;;  %v8982_v29 = vadd.f32 %v22504_v22, %v8968_v63  ;;  %v20477_v43 = vld [vmem:[#allocation13 + $0x180] sm:$0xff]  ;;  %v20460_v5 = vld [vmem:[#allocation13 + $0xf8] sm:$0xff] }
 0x5c6   :  { %12620 = vmatpush.bf16.msrb.mxu2 %v20480_v62  ;;  %v22505_v62 = vld [vmem:[#allocation52_spill] sm:$0xff]  ;;  %v22510_v22 = vld [vmem:[#allocation59_spill] sm:$0xff] }
 0x5c7   :  { %10374 = vmatpush.bf16.msrb.mxu3 %v17612_v3  ;;  %v10392_v47 = vmax.f32 %v22505_v62, 0.0  ;;  %v20188_v3 = vld [vmem:[#allocation10 + $0x187c] sm:$0xf]  ;;  %v10457_v45 = vpack.c.bf16 %v10425_v33, %v10393_v38  ;;  %v20529_v63 = vld [vmem:[#allocation13 + $0x320] sm:$0xff] }
 0x5c8   :  { %v20528_v33 = vld [vmem:[#allocation13 + $0x318] sm:$0xff]  ;;  %v20457_v38 = vld [vmem:[#allocation13 + $0xe0] sm:$0xff] }
 0x5c9   :  { %12649 = vmatpush.bf16.msra.mxu0 %v20495_v6  ;;  %12663 = vmatpush.bf16.msra.mxu1 %v20503_v32  ;;  %v10424_v6 = vmax.f32 %v9094_v48, 0.0  ;;  %v20540_v32 = vld [vmem:[#allocation13 + $0x378] sm:$0xff]  ;;  %v10422_v48 = vmax.f32 %v8982_v29, 0.0  ;;  %v22130_v14 = vpop.f32.mrf.mxu3 }
 0x5ca   :  { %12621 = vmatpush.bf16.msrb.mxu2 %v20479_v4  ;;  %v22507_v4 = vld [vmem:[#allocation42_spill] sm:$0xff]  ;;  %v20536_v62 = vld [vmem:[#allocation13 + $0x358] sm:$0xff] }
 0x5cb   :  { %10375 = vmatpush.bf16.msrb.mxu3 %v17484_v23  ;;  %v10456_v42 = vpack.c.bf16 %v10424_v6, %v10392_v47  ;;  %v10390_v2 = vmax.f32 %v22507_v4, 0.0  ;;  %v20538_v23 = vld [vmem:[#allocation13 + $0x368] sm:$0xff]  ;;  %v20537_v6 = vld [vmem:[#allocation13 + $0x360] sm:$0xff] }
 0x5cc   :  { %v22517_v4 = vld [vmem:[#allocation66_spill] sm:$0xff] }
 0x5cd   :  { %12650 = vmatpush.bf16.msra.mxu0 %v20494_v49  ;;  %12664 = vmatpush.bf16.msra.mxu1 %v20502_v59  ;;  %v20531_v49 = vld [vmem:[#allocation13 + $0x330] sm:$0xff]  ;;  %v17228_v59 = vor.u32 %v20188_v3, %v17225_v56 }
 0x5ce   :  { %12622 = vmatpush.bf16.msrb.mxu2 %v20478_v58  ;;  %v22508_v58 = vld [vmem:[#allocation55_spill] sm:$0xff] }
 0x5cf   :  { %10376 = vmatpush.bf16.msrb.mxu3 %v17356_v16  ;;  %v22511_v47 = vperm.slane %v22508_v58, 5  ;;  %v22512_v16 = vld [vmem:[#allocation64_spill] sm:$0xff]  ;;  %v20527_v56 = vld [vmem:[#allocation13 + $0x310] sm:$0xff] }
 0x5d1   :  { %12651 = vmatpush.bf16.msra.mxu0 %v20493_v60  ;;  %12665 = vmatpush.bf16.msra.mxu1 %v20501_v53  ;;  %v10454_v60 = vpack.c.bf16 %v10422_v48, %v10390_v2  ;;  %v20514_v53 = vld [vmem:[#allocation13 + $0x2a8] sm:$0xff]  ;;  %v9332_v9 = vadd.f32 %v22512_v16, %v22511_v47  ;;  %v22139_v3 = vpop.f32.mrf.mxu3  ;;  %v20512_v48 = vld [vmem:[#allocation13 + $0x298] sm:$0xff]  ;;  %v20455_v16 = vld [vmem:[#allocation13 + $0xd0] sm:$0xff] }
 0x5d2   :  { %12623 = vmatpush.bf16.msrb.mxu2 %v20477_v43  ;;  %v22514_v43 = vld [vmem:[#allocation65_spill] sm:$0xff] }
 0x5d3   :  { %10377 = vmatpush.bf16.msrb.mxu3 %v17228_v59  ;;  %v22515_v59 = vperm.slane %v22489_v40, 2 }
 0x5d4   :  { %12652 = vmatmul.bf16.vlgmr.msra.gmra.mxu0 %v10456_v42  ;;  %12666 = vmatmul.bf16.vlgmr.msra.gmra.mxu1 %v10457_v45  ;;  %v22513_v42 = vld [vmem:[#allocation60_spill] sm:$0xff]  ;;  %v20535_v45 = vld [vmem:[#allocation13 + $0x350] sm:$0xff] }
 0x5d5   :  { %12700 = vmatpush.bf16.msrb.mxu0 %v20532_v8  ;;  %12714 = vmatpush.bf16.msrb.mxu1 %v20540_v32  ;;  %v20458_v8 = vld [vmem:[#allocation13 + $0xe8] sm:$0xff]  ;;  %v22509_v32 = vperm.slane %v22508_v58, 4 }
 0x5d6   :  { %12672 = vmatpush.bf16.msra.mxu2 %v20516_v55  ;;  %10378 = vmatmul.bf16.vlgmr.msrb.gmra.mxu3 %v21429_v25  ;;  %v20513_v25 = vld [vmem:[#allocation13 + $0x2a0] sm:$0xff] }
 0x5d7   :  { %12574 = vmatpush.bf16.msra.mxu3 %v20460_v5  ;;  %12624 = vmatmul.bf16.vlgmr.msrb.gmra.mxu2 %v10454_v60  ;;  %v9276_v29 = vadd.f32 %v22510_v22, %v22509_v32  ;;  %v22516_v55 = vld [vmem:[#allocation48_spill] sm:$0xff]  ;;  %v22519_v60 = vld [vmem:[#allocation23_spill] sm:$0xff] }
 0x5d8   :  { %v9164_v5 = vadd.f32 %v22516_v55, %v22515_v59  ;;  %v22522_v32 = vld [vmem:[#allocation83_spill] sm:$0xff] }
 0x5d9   :  { %12701 = vmatpush.bf16.msrb.mxu0 %v20531_v49  ;;  %12715 = vmatpush.bf16.msrb.mxu1 %v20539_v46  ;;  %v9290_v49 = vadd.f32 %v22513_v42, %v9276_v29  ;;  %v9346_v46 = vadd.f32 %v22514_v43, %v9332_v9  ;;  %v20511_v29 = vld [vmem:[#allocation13 + $0x290] sm:$0xff]  ;;  %v22524_v9 = vld [vmem:[#allocation24_spill] sm:$0xff] }
 0x5da   :  { %12673 = vmatpush.bf16.msra.mxu2 %v20515_v17  ;;  %v22525_v42 = vld [vmem:[#allocation56_spill] sm:$0xff] }
 0x5db   :  { %12575 = vmatpush.bf16.msra.mxu3 %v20459_v10  ;;  %v9304_v2 = vadd.f32 %v22517_v4, %v9290_v49  ;;  %v22520_v10 = vld [vmem:[#allocation71_spill] sm:$0xff] }
 0x5dc   :  { %v20572_v4 = vld [vmem:[#allocation13 + $0x478] sm:$0xff] }
 0x5dd   :  { %12702 = vmatpush.bf16.msrb.mxu0 %v20530_v51  ;;  %12716 = vmatpush.bf16.msrb.mxu1 %v20538_v23  ;;  %v20456_v51 = vld [vmem:[#allocation13 + $0xd8] sm:$0xff]  ;;  %v22518_v23 = vperm.slane %v21432_v27, 3 }
 0x5de   :  { %12674 = vmatpush.bf16.msra.mxu2 %v20514_v53  ;;  %v22521_v53 = vld [vmem:[#allocation78_spill] sm:$0xff] }
 0x5df   :  { %12576 = vmatpush.bf16.msra.mxu3 %v20458_v8  ;;  %v8772_v17 = vadd.f32 %v22519_v60, %v22518_v23  ;;  %v9318_v8 = vadd.f32 %v22521_v53, %v9304_v2  ;;  %v22527_v2 = vld [vmem:[#allocation67_spill] sm:$0xff]  ;;  %v22528_v23 = vld [vmem:[#allocation73_spill] sm:$0xff] }
 0x5e0   :  { %v10396_v60 = vmax.f32 %v22528_v23, 0.0  ;;  %v22533_v23 = vld [vmem:[#allocation76_spill] sm:$0xff] }
 0x5e1   :  { %12703 = vmatpush.bf16.msrb.mxu0 %v20529_v63  ;;  %12717 = vmatpush.bf16.msrb.mxu1 %v20537_v6  ;;  %v9360_v63 = vadd.f32 %v22520_v10, %v9346_v46  ;;  %v20526_v6 = vld [vmem:[#allocation13 + $0x308] sm:$0xff]  ;;  %v8786_v27 = vadd.f32 %v22524_v9, %v8772_v17  ;;  %v10428_v49 = vmax.f32 %v9318_v8, 0.0  ;;  %v20564_v46 = vld [vmem:[#allocation13 + $0x438] sm:$0xff]  ;;  %v20563_v8 = vld [vmem:[#allocation13 + $0x430] sm:$0xff] }
 0x5e2   :  { %12675 = vmatpush.bf16.msra.mxu2 %v20513_v25  ;;  %v10155_v25 = vpop.f32.mrf.mxu3  ;;  %v20454_v17 = vld [vmem:[#allocation13 + $0xc8] sm:$0xff]  ;;  %v22529_v10 = vld [vmem:[#allocation32_spill] sm:$0xff] }
 0x5e3   :  { %12577 = vmatpush.bf16.msra.mxu3 %v20457_v38  ;;  %v9374_v22 = vadd.f32 %v22522_v32, %v9360_v63  ;;  %v20525_v38 = vld [vmem:[#allocation13 + $0x300] sm:$0xff]  ;;  %v22157_v43 = vadd.f32 %v10155_v25, %v22093_v57  ;;  %v10460_v53 = vpack.c.bf16 %v10428_v49, %v10396_v60  ;;  %v20492_v9 = vld [vmem:[#allocation13 + $0x1f8] sm:$0xff]  ;;  %v20570_v49 = vld [vmem:[#allocation13 + $0x468] sm:$0xff]  ;;  %v22534_v60 = vperm.slane %v22533_v23, 0 }
 0x5e4   :  { %v20509_v32 = vld [vmem:[#allocation13 + $0x280] sm:$0xff] }
 0x5e5   :  { %12704 = vmatpush.bf16.msrb.mxu0 %v20528_v33  ;;  %12718 = vmatpush.bf16.msrb.mxu1 %v20536_v62  ;;  %v20534_v33 = vld [vmem:[#allocation13 + $0x348] sm:$0xff]  ;;  %v10429_v55 = vmax.f32 %v9374_v22, 0.0  ;;  %v20571_v22 = vld [vmem:[#allocation13 + $0x470] sm:$0xff] }
 0x5e6   :  { %12676 = vmatpush.bf16.msra.mxu2 %v20512_v48  ;;  %v22523_v62 = vld [vmem:[#allocation49_spill] sm:$0xff]  ;;  %v22526_v48 = vld [vmem:[#allocation26_spill] sm:$0xff] }
 0x5e7   :  { %v9178_v47 = vadd.f32 %v22523_v62, %v9164_v5  ;;  %12578 = vmatpush.bf16.msra.mxu3 %v20456_v51  ;;  %v8800_v59 = vadd.f32 %v22526_v48, %v8786_v27  ;;  %v20510_v5 = vld [vmem:[#allocation13 + $0x288] sm:$0xff]  ;;  %v20453_v62 = vld [vmem:[#allocation13 + $0xc0] sm:$0xff]  ;;  %v22531_v27 = vld [vmem:[#allocation63_spill] sm:$0xff] }
 0x5e8   :  { %v10394_v25 = vmax.f32 %v22531_v27, 0.0  ;;  %v22540_v27 = vperm.slane %v22508_v58, 6 }
 0x5e9   :  { %12705 = vmatpush.bf16.msrb.mxu0 %v20527_v56  ;;  %12719 = vmatpush.bf16.msrb.mxu1 %v20535_v45  ;;  %v9192_v56 = vadd.f32 %v22525_v42, %v9178_v47  ;;  %v20533_v45 = vld [vmem:[#allocation13 + $0x340] sm:$0xff]  ;;  %v8814_v63 = vadd.f32 %v22529_v10, %v8800_v59  ;;  %v20548_v47 = vld [vmem:[#allocation13 + $0x3b8] sm:$0xff]  ;;  %v20491_v59 = vld [vmem:[#allocation13 + $0x1f0] sm:$0xff] }
 0x5ea   :  { %12677 = vmatpush.bf16.msra.mxu2 %v20511_v29  ;;  %v22532_v42 = vld [vmem:[#allocation29_spill] sm:$0xff] }
 0x5eb   :  { %v9206_v51 = vadd.f32 %v22527_v2, %v9192_v56  ;;  %12579 = vmatpush.bf16.msra.mxu3 %v20455_v16  ;;  %v10419_v16 = vmax.f32 %v8814_v63, 0.0  ;;  %v10387_v56 = vmax.f32 %v22532_v42, 0.0  ;;  %v20490_v2 = vld [vmem:[#allocation13 + $0x1e8] sm:$0xff]  ;;  %v20568_v63 = vld [vmem:[#allocation13 + $0x458] sm:$0xff] }
 0x5ec   :  { %v22542_v42 = vld [vmem:[#allocation87_spill] sm:$0xff] }
 0x5ed   :  { %12706 = vmatpush.bf16.msrb.mxu0 %v20526_v6  ;;  %12720 = vmatpush.bf16.msrb.mxu1 %v20534_v33  ;;  %v22530_v6 = vld [vmem:[#allocation79_spill] sm:$0xff]  ;;  %v10426_v29 = vmax.f32 %v9206_v51, 0.0  ;;  %v10451_v48 = vpack.c.bf16 %v10419_v16, %v10387_v56 }
 0x5ee   :  { %v10397_v57 = vmax.f32 %v22530_v6, 0.0  ;;  %12678 = vmatpush.bf16.msra.mxu2 %v20510_v5  ;;  %v20569_v5 = vld [vmem:[#allocation13 + $0x460] sm:$0xff]  ;;  %v20560_v51 = vld [vmem:[#allocation13 + $0x418] sm:$0xff]  ;;  %v22536_v6 = vperm.slane %v22533_v23, 1 }
 0x5ef   :  { %12580 = vmatpush.bf16.msra.mxu3 %v20454_v17  ;;  %v22535_v17 = vld [vmem:[#allocation80_spill] sm:$0xff] }
 0x5f0   :  { %v10461_v33 = vpack.c.bf16 %v10429_v55, %v10397_v57  ;;  %v20561_v55 = vld [vmem:[#allocation13 + $0x420] sm:$0xff]  ;;  %v9500_v10 = vadd.f32 %v22535_v17, %v22534_v60  ;;  %v22547_v60 = vld [vmem:[#allocation103_spill] sm:$0xff] }
 0x5f1   :  { %12707 = vmatpush.bf16.msrb.mxu0 %v20525_v38  ;;  %12721 = vmatpush.bf16.msrb.mxu1 %v20533_v45  ;;  %v20562_v38 = vld [vmem:[#allocation13 + $0x428] sm:$0xff]  ;;  %v10458_v45 = vpack.c.bf16 %v10426_v29, %v10394_v25 }
 0x5f2   :  { %12679 = vmatpush.bf16.msra.mxu2 %v20509_v32  ;;  %v22537_v57 = vld [vmem:[#allocation85_spill] sm:$0xff]  ;;  %v20559_v32 = vld [vmem:[#allocation13 + $0x410] sm:$0xff] }
 0x5f3   :  { %12581 = vmatpush.bf16.msra.mxu3 %v20453_v62  ;;  %v20567_v62 = vld [vmem:[#allocation13 + $0x450] sm:$0xff]  ;;  %v22541_v25 = vld [vmem:[#allocation69_spill] sm:$0xff] }
 0x5f4   :  { %12708 = vmatmul.bf16.vlgmr.msrb.gmra.mxu0 %v10460_v53  ;;  %12722 = vmatmul.bf16.vlgmr.msrb.gmra.mxu1 %v10461_v33  ;;  %v9556_v53 = vadd.f32 %v22537_v57, %v22536_v6  ;;  %v20489_v33 = vld [vmem:[#allocation13 + $0x1e0] sm:$0xff]  ;;  %v20487_v57 = vld [vmem:[#allocation13 + $0x1d0] sm:$0xff] }
 0x5f5   :  { %12756 = vmatpush.bf16.msra.mxu0 %v20564_v46  ;;  %12770 = vmatpush.bf16.msra.mxu1 %v20572_v4  ;;  %v20547_v46 = vld [vmem:[#allocation13 + $0x3b0] sm:$0xff]  ;;  %v20546_v4 = vld [vmem:[#allocation13 + $0x3a8] sm:$0xff] }
 0x5f6   :  { %12728 = vmatpush.bf16.msrb.mxu2 %v20548_v47  ;;  %12582 = vmatmul.bf16.vlgmr.msra.gmra.mxu3 %v10451_v48  ;;  %v22539_v47 = vld [vmem:[#allocation86_spill] sm:$0xff] }
 0x5f7   :  { %12630 = vmatpush.bf16.msrb.mxu3 %v20492_v9  ;;  %12680 = vmatmul.bf16.vlgmr.msra.gmra.mxu2 %v10458_v45  ;;  %v9570_v16 = vadd.f32 %v22539_v47, %v9556_v53  ;;  %v20544_v9 = vld [vmem:[#allocation13 + $0x398] sm:$0xff]  ;;  %v22543_v45 = vperm.slane %v21501_v26, 7 }
 0x5f8   :  { %v22549_v53 = vld [vmem:[#allocation35_spill] sm:$0xff] }
 0x5f9   :  { %12757 = vmatpush.bf16.msra.mxu0 %v20563_v8  ;;  %12771 = vmatpush.bf16.msra.mxu1 %v20571_v22  ;;  %v20545_v8 = vld [vmem:[#allocation13 + $0x3a0] sm:$0xff]  ;;  %v20596_v47 = vld [vmem:[#allocation13 + $0x538] sm:$0xff] }
 0x5fa   :  { %12729 = vmatpush.bf16.msrb.mxu2 %v20547_v46  ;;  %v22538_v22 = vld [vmem:[#allocation81_spill] sm:$0xff]  ;;  %v22544_v46 = vld [vmem:[#allocation34_spill] sm:$0xff] }
 0x5fb   :  { %12631 = vmatpush.bf16.msrb.mxu3 %v20491_v59  ;;  %v9514_v29 = vadd.f32 %v22538_v22, %v9500_v10  ;;  %v8996_v48 = vadd.f32 %v22544_v46, %v22543_v45  ;;  %v22545_v59 = vld [vmem:[#allocation92_spill] sm:$0xff]  ;;  %v20543_v10 = vld [vmem:[#allocation13 + $0x390] sm:$0xff]  ;;  %v20486_v45 = vld [vmem:[#allocation13 + $0x1c8] sm:$0xff] }
 0x5fc   :  { %v22554_v46 = vld [vmem:[#allocation51_spill] sm:$0xff] }
 0x5fd   :  { %12758 = vmatpush.bf16.msra.mxu0 %v20562_v38  ;;  %12772 = vmatpush.bf16.msra.mxu1 %v20570_v49  ;;  %v9388_v38 = vadd.f32 %v22541_v25, %v22540_v27  ;;  %v9528_v56 = vadd.f32 %v22542_v42, %v9514_v29  ;;  %v20488_v49 = vld [vmem:[#allocation13 + $0x1d8] sm:$0xff]  ;;  %v9010_v26 = vadd.f32 %v22549_v53, %v8996_v48  ;;  %v20565_v29 = vld [vmem:[#allocation13 + $0x440] sm:$0xff] }
 0x5fe   :  { %12730 = vmatpush.bf16.msrb.mxu2 %v20546_v4  ;;  %v22546_v4 = vld [vmem:[#allocation98_spill] sm:$0xff]  ;;  %v20604_v25 = vld [vmem:[#allocation13 + $0x578] sm:$0xff] }
 0x5ff   :  { %12632 = vmatpush.bf16.msrb.mxu3 %v20490_v2  ;;  %v9542_v2 = vadd.f32 %v22546_v4, %v9528_v56  ;;  %v22552_v42 = vld [vmem:[#allocation88_spill] sm:$0xff]  ;;  %v22553_v56 = vld [vmem:[#allocation94_spill] sm:$0xff] }
 0x600   :  { %v20595_v4 = vld [vmem:[#allocation13 + $0x530] sm:$0xff]  ;;  %v22556_v53 = vld [vmem:[#allocation84_spill] sm:$0xff] }
 0x601   :  { %12759 = vmatpush.bf16.msra.mxu0 %v20561_v55  ;;  %12773 = vmatpush.bf16.msra.mxu1 %v20569_v5  ;;  %v9584_v55 = vadd.f32 %v22545_v59, %v9570_v16  ;;  %v20558_v5 = vld [vmem:[#allocation13 + $0x408] sm:$0xff]  ;;  %v22555_v59 = vld [vmem:[#allocation99_spill] sm:$0xff] }
 0x602   :  { %12731 = vmatpush.bf16.msrb.mxu2 %v20545_v8  ;;  %v20557_v8 = vld [vmem:[#allocation13 + $0x400] sm:$0xff] }
 0x603   :  { %12633 = vmatpush.bf16.msrb.mxu3 %v20489_v33  ;;  %v9598_v17 = vadd.f32 %v22547_v60, %v9584_v55  ;;  %v22550_v33 = vld [vmem:[#allocation77_spill] sm:$0xff]  ;;  %v10401_v55 = vmax.f32 %v22555_v59, 0.0  ;;  %v20603_v60 = vld [vmem:[#allocation13 + $0x570] sm:$0xff] }
 0x604   :  { %v20521_v59 = vld [vmem:[#allocation13 + $0x2e0] sm:$0xff] }
 0x605   :  { %12760 = vmatpush.bf16.msra.mxu0 %v20560_v51  ;;  %12774 = vmatpush.bf16.msra.mxu1 %v20568_v63  ;;  %v20566_v51 = vld [vmem:[#allocation13 + $0x448] sm:$0xff]  ;;  %v10433_v27 = vmax.f32 %v9598_v17, 0.0 }
 0x606   :  { %12732 = vmatpush.bf16.msrb.mxu2 %v20544_v9  ;;  %v22548_v63 = vld [vmem:[#allocation70_spill] sm:$0xff] }
 0x607   :  { %v9402_v6 = vadd.f32 %v22548_v63, %v9388_v38  ;;  %12634 = vmatpush.bf16.msrb.mxu3 %v20488_v49  ;;  %v20542_v9 = vld [vmem:[#allocation13 + $0x388] sm:$0xff]  ;;  %v10400_v49 = vmax.f32 %v22553_v56, 0.0  ;;  %v20580_v63 = vld [vmem:[#allocation13 + $0x4b8] sm:$0xff]  ;;  %v22558_v56 = vperm.slane %v21880_v31, 4 }
 0x609   :  { %12761 = vmatpush.bf16.msra.mxu0 %v20559_v32  ;;  %12775 = vmatpush.bf16.msra.mxu1 %v20567_v62  ;;  %v9416_v22 = vadd.f32 %v22550_v33, %v9402_v6  ;;  %v10432_v32 = vmax.f32 %v9542_v2, 0.0  ;;  %v22551_v62 = vld [vmem:[#allocation41_spill] sm:$0xff]  ;;  %v10465_v2 = vpack.c.bf16 %v10433_v27, %v10401_v55  ;;  %v22557_v33 = vld [vmem:[#allocation47_spill] sm:$0xff] }
 0x60a   :  { %v9024_v16 = vadd.f32 %v22551_v62, %v9010_v26  ;;  %12733 = vmatpush.bf16.msrb.mxu2 %v20543_v10  ;;  %v20485_v10 = vld [vmem:[#allocation13 + $0x1c0] sm:$0xff]  ;;  %v10398_v26 = vmax.f32 %v22556_v53, 0.0  ;;  %v20591_v55 = vld [vmem:[#allocation13 + $0x510] sm:$0xff]  ;;  %v22564_v53 = vperm.slane %v22489_v40, 3 }
 0x60b   :  { %v9430_v38 = vadd.f32 %v22552_v42, %v9416_v22  ;;  %12635 = vmatpush.bf16.msrb.mxu3 %v20487_v57  ;;  %v20524_v57 = vld [vmem:[#allocation13 + $0x2f8] sm:$0xff]  ;;  %v10391_v22 = vmax.f32 %v22557_v33, 0.0  ;;  %v20593_v27 = vld [vmem:[#allocation13 + $0x520] sm:$0xff]  ;;  %v20522_v42 = vld [vmem:[#allocation13 + $0x2e8] sm:$0xff] }
 0x60c   :  { %v9038_v48 = vadd.f32 %v22554_v46, %v9024_v16  ;;  %v20523_v16 = vld [vmem:[#allocation13 + $0x2f0] sm:$0xff]  ;;  %v20600_v46 = vld [vmem:[#allocation13 + $0x558] sm:$0xff]  ;;  %v20590_v33 = vld [vmem:[#allocation13 + $0x508] sm:$0xff] }
 0x60d   :  { %12762 = vmatpush.bf16.msra.mxu0 %v20558_v5  ;;  %12776 = vmatpush.bf16.msra.mxu1 %v20566_v51  ;;  %v10464_v5 = vpack.c.bf16 %v10432_v32, %v10400_v49  ;;  %v20541_v51 = vld [vmem:[#allocation13 + $0x380] sm:$0xff]  ;;  %v10430_v17 = vmax.f32 %v9430_v38, 0.0  ;;  %v20602_v32 = vld [vmem:[#allocation13 + $0x568] sm:$0xff]  ;;  %v20592_v38 = vld [vmem:[#allocation13 + $0x518] sm:$0xff] }
 0x60e   :  { %12734 = vmatpush.bf16.msrb.mxu2 %v20542_v9  ;;  %v10423_v6 = vmax.f32 %v9038_v48, 0.0  ;;  %v20601_v9 = vld [vmem:[#allocation13 + $0x560] sm:$0xff] }
 0x60f   :  { %12636 = vmatpush.bf16.msrb.mxu3 %v20486_v45  ;;  %v22559_v49 = vld [vmem:[#allocation100_spill] sm:$0xff] }
 0x610   :  { %v10455_v62 = vpack.c.bf16 %v10423_v6, %v10391_v22  ;;  %v9724_v45 = vadd.f32 %v22559_v49, %v22558_v56  ;;  %v20577_v48 = vld [vmem:[#allocation13 + $0x4a0] sm:$0xff]  ;;  %v20628_v49 = vld [vmem:[#allocation13 + $0x638] sm:$0xff] }
 0x611   :  { %12763 = vmatpush.bf16.msra.mxu0 %v20557_v8  ;;  %12777 = vmatpush.bf16.msra.mxu1 %v20565_v29  ;;  %v20594_v8 = vld [vmem:[#allocation13 + $0x528] sm:$0xff]  ;;  %v10462_v29 = vpack.c.bf16 %v10430_v17, %v10398_v26  ;;  %v20597_v56 = vld [vmem:[#allocation13 + $0x540] sm:$0xff] }
 0x612   :  { %12735 = vmatpush.bf16.msrb.mxu2 %v20541_v51  ;;  %v20576_v51 = vld [vmem:[#allocation13 + $0x498] sm:$0xff]  ;;  %v22562_v17 = vld [vmem:[#allocation90_spill] sm:$0xff]  ;;  %v22565_v26 = vld [vmem:[#allocation53_spill] sm:$0xff] }
 0x613   :  { %12637 = vmatpush.bf16.msrb.mxu3 %v20485_v10 }
 0x614   :  { %12764 = vmatmul.bf16.vlgmr.msra.gmra.mxu0 %v10464_v5  ;;  %12778 = vmatmul.bf16.vlgmr.msra.gmra.mxu1 %v10465_v2  ;;  %v22560_v5 = vld [vmem:[#allocation101_spill] sm:$0xff]  ;;  %v20599_v2 = vld [vmem:[#allocation13 + $0x550] sm:$0xff] }
 0x615   :  { %12812 = vmatpush.bf16.msrb.mxu0 %v20596_v47  ;;  %12826 = vmatpush.bf16.msrb.mxu1 %v20604_v25  ;;  %v20579_v47 = vld [vmem:[#allocation13 + $0x4b0] sm:$0xff]  ;;  %v20578_v25 = vld [vmem:[#allocation13 + $0x4a8] sm:$0xff] }
 0x616   :  { %12784 = vmatpush.bf16.msra.mxu2 %v20580_v63  ;;  %12638 = vmatmul.bf16.vlgmr.msrb.gmra.mxu3 %v10455_v62  ;;  %v22563_v63 = vld [vmem:[#allocation105_spill] sm:$0xff] }
 0x617   :  { %12686 = vmatpush.bf16.msra.mxu3 %v20524_v57  ;;  %12736 = vmatmul.bf16.vlgmr.msrb.gmra.mxu2 %v10462_v29  ;;  %v20520_v57 = vld [vmem:[#allocation13 + $0x2d8] sm:$0xff]  ;;  %v20575_v29 = vld [vmem:[#allocation13 + $0x490] sm:$0xff] }
 0x619   :  { %12813 = vmatpush.bf16.msrb.mxu0 %v20595_v4  ;;  %12827 = vmatpush.bf16.msrb.mxu1 %v20603_v60  ;;  %v9738_v4 = vadd.f32 %v22560_v5, %v9724_v45  ;;  %v22561_v60 = vperm.slane %v22533_v23, 2  ;;  %v22569_v45 = vld [vmem:[#allocation61_spill] sm:$0xff]  ;;  %v22571_v5 = vld [vmem:[#allocation111_spill] sm:$0xff] }
 0x61a   :  { %12785 = vmatpush.bf16.msra.mxu2 %v20579_v47  ;;  %v22566_v47 = vld [vmem:[#allocation91_spill] sm:$0xff] }
 0x61b   :  { %12687 = vmatpush.bf16.msra.mxu3 %v20523_v16  ;;  %v9612_v10 = vadd.f32 %v22562_v17, %v22561_v60  ;;  %v9752_v6 = vadd.f32 %v22563_v63, %v9738_v4  ;;  %v20519_v16 = vld [vmem:[#allocation13 + $0x2d0] sm:$0xff]  ;;  %v10404_v4 = vmax.f32 %v22571_v5, 0.0  ;;  %v20573_v63 = vld [vmem:[#allocation13 + $0x480] sm:$0xff]  ;;  %v22228_v5 = vpop.f32.mrf.mxu3 }
 0x61d   :  { %12814 = vmatpush.bf16.msrb.mxu0 %v20594_v8  ;;  %12828 = vmatpush.bf16.msrb.mxu1 %v20602_v32  ;;  %v9220_v8 = vadd.f32 %v22565_v26, %v22564_v53  ;;  %v9766_v22 = vadd.f32 %v21973_v50, %v9752_v6  ;;  %v20598_v32 = vld [vmem:[#allocation13 + $0x548] sm:$0xff]  ;;  %v9626_v62 = vadd.f32 %v22566_v47, %v9612_v10  ;;  %v20627_v10 = vld [vmem:[#allocation13 + $0x630] sm:$0xff]  ;;  %v20517_v53 = vld [vmem:[#allocation13 + $0x2c0] sm:$0xff] }
 0x61e   :  { %12786 = vmatpush.bf16.msra.mxu2 %v20578_v25  ;;  %v20589_v25 = vld [vmem:[#allocation13 + $0x500] sm:$0xff]  ;;  %v20635_v6 = vld [vmem:[#allocation13 + $0x670] sm:$0xff]  ;;  %v20612_v26 = vld [vmem:[#allocation13 + $0x5b8] sm:$0xff] }
 0x61f   :  { %12688 = vmatpush.bf16.msra.mxu3 %v20522_v42  ;;  %v22568_v42 = vld [vmem:[#allocation97_spill] sm:$0xff] }
 0x620   :  { %v9640_v40 = vadd.f32 %v22568_v42, %v9626_v62  ;;  %v20626_v47 = vld [vmem:[#allocation13 + $0x628] sm:$0xff]  ;;  %v22574_v62 = vld [vmem:[#allocation68_spill] sm:$0xff] }
 0x621   :  { %12815 = vmatpush.bf16.msrb.mxu0 %v20593_v27  ;;  %12829 = vmatpush.bf16.msrb.mxu1 %v20601_v9  ;;  %v22567_v27 = vld [vmem:[#allocation54_spill] sm:$0xff] }
 0x622   :  { %12787 = vmatpush.bf16.msra.mxu2 %v20577_v48  ;;  %v9234_v9 = vadd.f32 %v22567_v27, %v9220_v8  ;;  %v20636_v48 = vld [vmem:[#allocation13 + $0x678] sm:$0xff]  ;;  %v20634_v27 = vld [vmem:[#allocation13 + $0x668] sm:$0xff] }
 0x623   :  { %12689 = vmatpush.bf16.msra.mxu3 %v20521_v59  ;;  %v22570_v59 = vld [vmem:[#allocation106_spill] sm:$0xff] }
 0x624   :  { %v9248_v50 = vadd.f32 %v22569_v45, %v9234_v9  ;;  %v20610_v45 = vld [vmem:[#allocation13 + $0x5a8] sm:$0xff] }
 0x625   :  { %12816 = vmatpush.bf16.msrb.mxu0 %v20592_v38  ;;  %12830 = vmatpush.bf16.msrb.mxu1 %v20600_v46  ;;  %v10436_v38 = vmax.f32 %v9766_v22, 0.0  ;;  %v20574_v46 = vld [vmem:[#allocation13 + $0x488] sm:$0xff]  ;;  %v22573_v22 = vld [vmem:[#allocation104_spill] sm:$0xff] }
 0x626   :  { %12788 = vmatpush.bf16.msra.mxu2 %v20576_v51  ;;  %v22572_v51 = vld [vmem:[#allocation72_spill] sm:$0xff] }
 0x627   :  { %12690 = vmatpush.bf16.msra.mxu3 %v20520_v57  ;;  %v9262_v60 = vadd.f32 %v22572_v51, %v9248_v50  ;;  %v10468_v17 = vpack.c.bf16 %v10436_v38, %v10404_v4  ;;  %v20633_v38 = vld [vmem:[#allocation13 + $0x660] sm:$0xff]  ;;  %v22222_v50 = vld [vmem:[#allocation11 + $0x18] sm:$0xff] }
 0x628   :  { %v20624_v4 = vld [vmem:[#allocation13 + $0x618] sm:$0xff] }
 0x629   :  { %12817 = vmatpush.bf16.msrb.mxu0 %v20591_v55  ;;  %12831 = vmatpush.bf16.msrb.mxu1 %v20599_v2  ;;  %v9654_v55 = vadd.f32 %v22570_v59, %v9640_v40  ;;  %v20518_v2 = vld [vmem:[#allocation13 + $0x2c8] sm:$0xff]  ;;  %v10427_v8 = vmax.f32 %v9262_v60, 0.0  ;;  %v20555_v40 = vld [vmem:[#allocation13 + $0x3f0] sm:$0xff]  ;;  %v3433_v59 = vperm.slane %v22222_v50, 1  ;;  %v20632_v51 = vld [vmem:[#allocation13 + $0x658] sm:$0xff] }
 0x62a   :  { %12789 = vmatpush.bf16.msra.mxu2 %v20575_v29  ;;  %v22215_v29 = vpop.f32.mrf.mxu0 }
 0x62b   :  { %12691 = vmatpush.bf16.msra.mxu3 %v20519_v16  ;;  %v10434_v57 = vmax.f32 %v9654_v55, 0.0  ;;  %v10395_v16 = vmax.f32 %v22574_v62, 0.0  ;;  %v10004_v60 = vadd.f32 %v22016_v0, %v3433_v59  ;;  %v20608_v0 = vld [vmem:[#allocation13 + $0x598] sm:$0xff]  ;;  %v22577_v62 = vperm.slane %v22508_v58, 7 }
 0x62d   :  { %12818 = vmatpush.bf16.msrb.mxu0 %v20590_v33  ;;  %12832 = vmatpush.bf16.msrb.mxu1 %v20598_v32  ;;  %v20556_v33 = vld [vmem:[#allocation13 + $0x3f8] sm:$0xff]  ;;  %v10402_v32 = vmax.f32 %v22573_v22, 0.0  ;;  %v10459_v42 = vpack.c.bf16 %v10427_v8, %v10395_v16  ;;  %v22578_v16 = vld [vmem:[#allocation74_spill] sm:$0xff] }
 0x62e   :  { %12790 = vmatpush.bf16.msra.mxu2 %v20574_v46  ;;  %v3432_v46 = vperm.slane %v22222_v50, 0  ;;  %v22576_v22 = vld [vmem:[#allocation108_spill] sm:$0xff] }
 0x62f   :  { %12692 = vmatpush.bf16.msra.mxu3 %v20518_v2  ;;  %v10466_v9 = vpack.c.bf16 %v10434_v57, %v10402_v32  ;;  %v20623_v57 = vld [vmem:[#allocation13 + $0x610] sm:$0xff] }
 0x630   :  { %v9948_v2 = vadd.f32 %v22001_v30, %v3432_v46  ;;  %v10018_v30 = vadd.f32 %v22018_v24, %v10004_v60  ;;  %v9444_v24 = vadd.f32 %v22578_v16, %v22577_v62  ;;  %v20629_v60 = vld [vmem:[#allocation13 + $0x640] sm:$0xff]  ;;  %v20667_v16 = vld [vmem:[#allocation13 + $0x770] sm:$0xff] }
 0x631   :  { %12819 = vmatpush.bf16.msrb.mxu0 %v20589_v25  ;;  %12833 = vmatpush.bf16.msrb.mxu1 %v20597_v56  ;;  %v20611_v25 = vld [vmem:[#allocation13 + $0x5b0] sm:$0xff]  ;;  %v22218_v56 = vpop.f32.mrf.mxu1 }
 0x632   :  { %12791 = vmatpush.bf16.msra.mxu2 %v20573_v63  ;;  %v22226_v55 = vpop.f32.mrf.mxu0  ;;  %v20553_v63 = vld [vmem:[#allocation13 + $0x3e0] sm:$0xff] }
 0x633   :  { %12693 = vmatpush.bf16.msra.mxu3 %v20517_v53  ;;  %v9962_v53 = vadd.f32 %v22006_v15, %v9948_v2  ;;  %v20552_v15 = vld [vmem:[#allocation13 + $0x3d8] sm:$0xff] }
 0x634   :  { %12820 = vmatmul.bf16.vlgmr.msrb.gmra.mxu0 %v10468_v17  ;;  %12834 = vmatmul.bf16.vlgmr.msrb.gmra.mxu1 %v21991_v37  ;;  %v20625_v37 = vld [vmem:[#allocation13 + $0x620] sm:$0xff] }
 0x635   :  { %12868 = vmatpush.bf16.msra.mxu0 %v20628_v49  ;;  %12882 = vmatpush.bf16.msra.mxu1 %v20636_v48  ;;  %v22220_v49 = vpop.f32.mrf.mxu2  ;;  %v20554_v48 = vld [vmem:[#allocation13 + $0x3e8] sm:$0xff]  ;;  %v20609_v17 = vld [vmem:[#allocation13 + $0x5a0] sm:$0xff] }
 0x636   :  { %12840 = vmatpush.bf16.msrb.mxu2 %v20612_v26  ;;  %12694 = vmatmul.bf16.vlgmr.msra.gmra.mxu3 %v10459_v42  ;;  %v20631_v26 = vld [vmem:[#allocation13 + $0x650] sm:$0xff]  ;;  %v20622_v42 = vld [vmem:[#allocation13 + $0x608] sm:$0xff]  ;;  %v22581_v2 = vld [vmem:[#allocation112_spill] sm:$0xff] }
 0x637   :  { %12742 = vmatpush.bf16.msrb.mxu3 %v20556_v33  ;;  %12792 = vmatmul.bf16.vlgmr.msra.gmra.mxu2 %v10466_v9  ;;  %v10032_v9 = vadd.f32 %v22064_v7, %v10018_v30 }
 0x639   :  { %12869 = vmatpush.bf16.msra.mxu0 %v20627_v10  ;;  %12883 = vmatpush.bf16.msra.mxu1 %v20635_v6  ;;  %v9946_v10 = vadd.f32 %v21997_v61, %v3432_v46  ;;  %v10002_v6 = vadd.f32 %v22010_v11, %v3433_v59  ;;  %v22236_v8 = vpop.f32.mrf.mxu1  ;;  %v22575_v61 = vperm.slane %v21880_v31, 6  ;;  %v10046_v58 = vadd.f32 %v22126_v12, %v10032_v9  ;;  %v22580_v59 = vld [vmem:[#allocation75_spill] sm:$0xff] }
 0x63a   :  { %12841 = vmatpush.bf16.msrb.mxu2 %v20611_v25  ;;  %v22250_v25 = vpop.f32.mrf.mxu3  ;;  %v20660_v12 = vld [vmem:[#allocation13 + $0x738] sm:$0xff] }
 0x63b   :  { %12743 = vmatpush.bf16.msrb.mxu3 %v20555_v40  ;;  %v9836_v32 = vadd.f32 %v22576_v22, %v22575_v61  ;;  %v9960_v11 = vadd.f32 %v21999_v28, %v9946_v10  ;;  %v20644_v9 = vld [vmem:[#allocation13 + $0x6b8] sm:$0xff] }
 0x63d   :  { %12870 = vmatpush.bf16.msra.mxu0 %v20626_v47  ;;  %12884 = vmatpush.bf16.msra.mxu1 %v20634_v27  ;;  %v22238_v33 = vpop.f32.mrf.mxu2  ;;  %v9976_v47 = vadd.f32 %v22041_v19, %v9962_v53  ;;  %v10016_v27 = vadd.f32 %v22012_v44, %v10002_v6  ;;  %v9974_v40 = vadd.f32 %v22031_v54, %v9960_v11  ;;  %v20630_v19 = vld [vmem:[#allocation13 + $0x648] sm:$0xff]  ;;  %v20607_v44 = vld [vmem:[#allocation13 + $0x590] sm:$0xff] }
 0x63e   :  { %12842 = vmatpush.bf16.msrb.mxu2 %v20610_v45  ;;  %v22579_v45 = vld [vmem:[#allocation109_spill] sm:$0xff]  ;;  %v9458_v54 = vadd.f32 %v22580_v59, %v9444_v24  ;;  %v20659_v11 = vld [vmem:[#allocation13 + $0x730] sm:$0xff] }
 0x63f   :  { %12744 = vmatpush.bf16.msrb.mxu3 %v20554_v48  ;;  %v9990_v28 = vadd.f32 %v22102_v41, %v9976_v47  ;;  %v9850_v7 = vadd.f32 %v22579_v45, %v9836_v32  ;;  %v9988_v46 = vadd.f32 %v22099_v21, %v9974_v40  ;;  %v20551_v48 = vld [vmem:[#allocation13 + $0x3d0] sm:$0xff]  ;;  %v20606_v6 = vld [vmem:[#allocation13 + $0x588] sm:$0xff]  ;;  %v20668_v21 = vld [vmem:[#allocation13 + $0x778] sm:$0xff] }
 0x640   :  { %v20588_v40 = vld [vmem:[#allocation13 + $0x4f8] sm:$0xff] }
 0x641   :  { %12871 = vmatpush.bf16.msra.mxu0 %v20625_v37  ;;  %12885 = vmatpush.bf16.msra.mxu1 %v20633_v38  ;;  %v10030_v37 = vadd.f32 %v22056_v13, %v10016_v27  ;;  %v22255_v38 = vpop.f32.mrf.mxu0  ;;  %v9864_v13 = vadd.f32 %v22581_v2, %v9850_v7  ;;  %v10408_v53 = vmax.f32 %v9988_v46, 0.0  ;;  %v20549_v27 = vld [vmem:[#allocation13 + $0x3c0] sm:$0xff]  ;;  %v20643_v7 = vld [vmem:[#allocation13 + $0x6b0] sm:$0xff]  ;;  %v20642_v2 = vld [vmem:[#allocation13 + $0x6a8] sm:$0xff] }
 0x642   :  { %12843 = vmatpush.bf16.msrb.mxu2 %v20609_v17  ;;  %v22582_v17 = vld [vmem:[#allocation82_spill] sm:$0xff]  ;;  %v22270_v62 = vpop.f32.mrf.mxu3 }
 0x643   :  { %12745 = vmatpush.bf16.msrb.mxu3 %v20553_v63  ;;  %v10044_v41 = vadd.f32 %v22112_v36, %v10030_v37  ;;  %v9472_v10 = vadd.f32 %v22582_v17, %v9458_v54  ;;  %v10441_v63 = vmax.f32 %v10046_v58, 0.0  ;;  %v22583_v36 = vld [vmem:[#allocation93_spill] sm:$0xff]  ;;  %v20587_v54 = vld [vmem:[#allocation13 + $0x4f0] sm:$0xff]  ;;  %v20656_v17 = vld [vmem:[#allocation13 + $0x718] sm:$0xff] }
 0x644   :  { %v22584_v37 = vld [vmem:[#allocation89_spill] sm:$0xff] }
 0x645   :  { %12872 = vmatpush.bf16.msra.mxu0 %v20624_v4  ;;  %12886 = vmatpush.bf16.msra.mxu1 %v20632_v51  ;;  %v20621_v4 = vld [vmem:[#allocation13 + $0x600] sm:$0xff]  ;;  %v10440_v51 = vmax.f32 %v9990_v28, 0.0  ;;  %v9486_v30 = vadd.f32 %v22583_v36, %v9472_v10  ;;  %v10409_v61 = vmax.f32 %v10044_v41, 0.0  ;;  %v22268_v22 = vpop.f32.mrf.mxu2  ;;  %v10406_v28 = vmax.f32 %v22004_v1, 0.0  ;;  %v20655_v36 = vld [vmem:[#allocation13 + $0x710] sm:$0xff] }
 0x646   :  { %12844 = vmatpush.bf16.msrb.mxu2 %v20608_v0  ;;  %v22266_v0 = vpop.f32.mrf.mxu1  ;;  %v10399_v58 = vmax.f32 %v22584_v37, 0.0  ;;  %v20657_v41 = vld [vmem:[#allocation13 + $0x720] sm:$0xff] }
 0x647   :  { %12746 = vmatpush.bf16.msrb.mxu3 %v20552_v15  ;;  %v10472_v32 = vpack.c.bf16 %v10440_v51, %v10408_v53  ;;  %v10473_v47 = vpack.c.bf16 %v10441_v63, %v10409_v61  ;;  %v20664_v63 = vld [vmem:[#allocation13 + $0x758] sm:$0xff]  ;;  %v20585_v53 = vld [vmem:[#allocation13 + $0x4e0] sm:$0xff] }
 0x648   :  { %v22587_v37 = vld [vmem:[#allocation116_spill] sm:$0xff] }
 0x649   :  { %12873 = vmatpush.bf16.msra.mxu0 %v20623_v57  ;;  %12887 = vmatpush.bf16.msra.mxu1 %v20631_v26  ;;  %v9878_v57 = vadd.f32 %v22020_v20, %v9864_v13  ;;  %v20550_v26 = vld [vmem:[#allocation13 + $0x3c8] sm:$0xff]  ;;  %v10225_v15 = vpop.f32.mrf.mxu0  ;;  %v20605_v20 = vld [vmem:[#allocation13 + $0x580] sm:$0xff]  ;;  %v3436_v13 = vperm.slane %v22222_v50, 4 }
 0x64a   :  { %12845 = vmatpush.bf16.msrb.mxu2 %v20607_v44  ;;  %v20666_v44 = vld [vmem:[#allocation13 + $0x768] sm:$0xff]  ;;  %v10267_v1 = vpop.f32.mrf.mxu3 }
 0x64b   :  { %12747 = vmatpush.bf16.msrb.mxu3 %v20551_v48  ;;  %v10438_v24 = vmax.f32 %v9878_v57, 0.0  ;;  %v10172_v10 = vadd.f32 %v22255_v38, %v3436_v13  ;;  %v10170_v57 = vadd.f32 %v22226_v55, %v3436_v13  ;;  %v20663_v38 = vld [vmem:[#allocation13 + $0x750] sm:$0xff] }
 0x64d   :  { %12874 = vmatpush.bf16.msra.mxu0 %v20622_v42  ;;  %12888 = vmatpush.bf16.msra.mxu1 %v20630_v19  ;;  %v10431_v42 = vmax.f32 %v9486_v30, 0.0  ;;  %v20658_v19 = vld [vmem:[#allocation13 + $0x728] sm:$0xff]  ;;  %v10470_v45 = vpack.c.bf16 %v10438_v24, %v10406_v28  ;;  %v10253_v59 = vpop.f32.mrf.mxu2  ;;  %v3434_v30 = vperm.slane %v22222_v50, 2  ;;  %v10186_v61 = vadd.f32 %v22266_v0, %v10172_v10 }
 0x64e   :  { %12846 = vmatpush.bf16.msrb.mxu2 %v20606_v6  ;;  %v10239_v48 = vpop.f32.mrf.mxu1  ;;  %v10184_v55 = vadd.f32 %v22236_v8, %v10170_v57  ;;  %v20662_v8 = vld [vmem:[#allocation13 + $0x748] sm:$0xff] }
 0x64f   :  { %12748 = vmatpush.bf16.msrb.mxu3 %v20550_v26  ;;  %v10463_v46 = vpack.c.bf16 %v10431_v42, %v10399_v58  ;;  %v10200_v24 = vadd.f32 %v22268_v22, %v10186_v61  ;;  %v22586_v42 = vld [vmem:[#allocation95_spill] sm:$0xff]  ;;  %v10058_v58 = vadd.f32 %v22587_v37, %v3434_v30  ;;  %v3438_v37 = vperm.slane %v22222_v50, 6 }
 0x650   :  { %v20676_v61 = vld [vmem:[#allocation13 + $0x7b8] sm:$0xff] }
 0x651   :  { %12875 = vmatpush.bf16.msra.mxu0 %v20621_v4  ;;  %12889 = vmatpush.bf16.msra.mxu1 %v20629_v60  ;;  %v20665_v4 = vld [vmem:[#allocation13 + $0x760] sm:$0xff]  ;;  %v10227_v51 = vpop.f32.mrf.mxu0  ;;  %v20586_v60 = vld [vmem:[#allocation13 + $0x4e8] sm:$0xff] }
 0x652   :  { %12847 = vmatpush.bf16.msrb.mxu2 %v20605_v20  ;;  %v20640_v20 = vld [vmem:[#allocation13 + $0x698] sm:$0xff] }
 0x653   :  { %12749 = vmatpush.bf16.msrb.mxu3 %v20549_v27  ;;  %v20584_v27 = vld [vmem:[#allocation13 + $0x4d8] sm:$0xff] }
 0x654   :  { %12876 = vmatmul.bf16.vlgmr.msra.gmra.mxu0 %v10472_v32  ;;  %12890 = vmatmul.bf16.vlgmr.msra.gmra.mxu1 %v10473_v47 }
 0x655   :  { %12924 = vmatpush.bf16.msrb.mxu0 %v20660_v12  ;;  %12938 = vmatpush.bf16.msrb.mxu1 %v20668_v21  ;;  %v3437_v12 = vperm.slane %v22222_v50, 5  ;;  %v20641_v21 = vld [vmem:[#allocation13 + $0x6a0] sm:$0xff] }
 0x656   :  { %12896 = vmatpush.bf16.msra.mxu2 %v20644_v9  ;;  %12750 = vmatmul.bf16.vlgmr.msrb.gmra.mxu3 %v10463_v46  ;;  %v10241_v32 = vpop.f32.mrf.mxu1  ;;  %v22585_v9 = vperm.slane %v22533_v23, 3 }
 0x657   :  { %12798 = vmatpush.bf16.msra.mxu3 %v20588_v40  ;;  %12848 = vmatmul.bf16.vlgmr.msrb.gmra.mxu2 %v10470_v45  ;;  %v10228_v6 = vadd.f32 %v10227_v51, %v3437_v12  ;;  %v10226_v26 = vadd.f32 %v10225_v15, %v3437_v12  ;;  %v10269_v15 = vpop.f32.mrf.mxu3 }
 0x658   :  { %v9668_v0 = vadd.f32 %v22586_v42, %v22585_v9 }
 0x659   :  { %12925 = vmatpush.bf16.msrb.mxu0 %v20659_v11  ;;  %12939 = vmatpush.bf16.msrb.mxu1 %v20667_v16  ;;  %v10255_v11 = vpop.f32.mrf.mxu2  ;;  %v10242_v47 = vadd.f32 %v10241_v32, %v10228_v6  ;;  %v10060_v16 = vadd.f32 %v22034_v39, %v3434_v30  ;;  %v10240_v40 = vadd.f32 %v10239_v48, %v10226_v26  ;;  %v20583_v48 = vld [vmem:[#allocation13 + $0x4d0] sm:$0xff]  ;;  %v20620_v32 = vld [vmem:[#allocation13 + $0x5f8] sm:$0xff] }
 0x65a   :  { %12897 = vmatpush.bf16.msra.mxu2 %v20643_v7  ;;  %v10214_v39 = vadd.f32 %v22270_v62, %v10200_v24  ;;  %v20639_v7 = vld [vmem:[#allocation13 + $0x690] sm:$0xff] }
 0x65b   :  { %12799 = vmatpush.bf16.msra.mxu3 %v20587_v54  ;;  %v10256_v28 = vadd.f32 %v10255_v11, %v10242_v47  ;;  %v10254_v22 = vadd.f32 %v10253_v59, %v10240_v40  ;;  %v10074_v23 = vadd.f32 %v22037_v52, %v10060_v16  ;;  %v22588_v54 = vld [vmem:[#allocation96_spill] sm:$0xff]  ;;  %v20638_v52 = vld [vmem:[#allocation13 + $0x688] sm:$0xff]  ;;  %v10281_v16 = vpop.f32.mrf.mxu0  ;;  %v20619_v24 = vld [vmem:[#allocation13 + $0x5f0] sm:$0xff] }
 0x65c   :  { %v10444_v51 = vmax.f32 %v10214_v39, 0.0  ;;  %v20661_v59 = vld [vmem:[#allocation13 + $0x740] sm:$0xff]  ;;  %v22591_v6 = vld [vmem:[#allocation110_spill] sm:$0xff]  ;;  %v20616_v39 = vld [vmem:[#allocation13 + $0x5d8] sm:$0xff] }
 0x65d   :  { %12926 = vmatpush.bf16.msrb.mxu0 %v20658_v19  ;;  %12940 = vmatpush.bf16.msrb.mxu1 %v20666_v44  ;;  %v20654_v19 = vld [vmem:[#allocation13 + $0x708] sm:$0xff]  ;;  %v10198_v44 = vadd.f32 %v22238_v33, %v10184_v55  ;;  %v10270_v45 = vadd.f32 %v10269_v15, %v10256_v28  ;;  %v10088_v62 = vadd.f32 %v22078_v34, %v10074_v23  ;;  %v20673_v40 = vld [vmem:[#allocation13 + $0x7a0] sm:$0xff] }
 0x65e   :  { %12898 = vmatpush.bf16.msra.mxu2 %v20642_v2  ;;  %v20653_v2 = vld [vmem:[#allocation13 + $0x700] sm:$0xff]  ;;  %v20674_v15 = vld [vmem:[#allocation13 + $0x7a8] sm:$0xff]  ;;  %v10295_v9 = vpop.f32.mrf.mxu1 }
 0x65f   :  { %12800 = vmatpush.bf16.msra.mxu3 %v20586_v60  ;;  %v10212_v46 = vadd.f32 %v22250_v25, %v10198_v44  ;;  %v22589_v33 = vld [vmem:[#allocation117_spill] sm:$0xff]  ;;  %v22590_v60 = vld [vmem:[#allocation102_spill] sm:$0xff]  ;;  %v10102_v10 = vadd.f32 %v22139_v3, %v10088_v62 }
 0x660   :  { %v10072_v13 = vadd.f32 %v22589_v33, %v10058_v58  ;;  %v20617_v28 = vld [vmem:[#allocation13 + $0x5e0] sm:$0xff]  ;;  %v20672_v58 = vld [vmem:[#allocation13 + $0x798] sm:$0xff] }
 0x661   :  { %12927 = vmatpush.bf16.msrb.mxu0 %v20657_v41  ;;  %12941 = vmatpush.bf16.msrb.mxu1 %v20665_v4  ;;  %v9682_v41 = vadd.f32 %v22588_v54, %v9668_v0  ;;  %v10268_v4 = vadd.f32 %v10267_v1, %v10254_v22  ;;  %v20582_v1 = vld [vmem:[#allocation13 + $0x4c8] sm:$0xff]  ;;  %v10442_v30 = vmax.f32 %v10102_v10, 0.0  ;;  %v10309_v42 = vpop.f32.mrf.mxu2  ;;  %v10323_v0 = vpop.f32.mrf.mxu3  ;;  %v20669_v10 = vld [vmem:[#allocation13 + $0x780] sm:$0xff] }
 0x662   :  { %12899 = vmatpush.bf16.msra.mxu2 %v20641_v21  ;;  %v10086_v25 = vadd.f32 %v22068_v18, %v10072_v13  ;;  %v20581_v18 = vld [vmem:[#allocation13 + $0x4c0] sm:$0xff] }
 0x663   :  { %12801 = vmatpush.bf16.msra.mxu3 %v20585_v53  ;;  %v9696_v12 = vadd.f32 %v22590_v60, %v9682_v41  ;;  %v10413_v57 = vmax.f32 %v10268_v4, 0.0  ;;  %v22594_v22 = vld [vmem:[#allocation113_spill] sm:$0xff]  ;;  %v20615_v41 = vld [vmem:[#allocation13 + $0x5d0] sm:$0xff] }
 0x664   :  { %v10100_v34 = vadd.f32 %v22130_v14, %v10086_v25  ;;  %v20675_v14 = vld [vmem:[#allocation13 + $0x7b0] sm:$0xff]  ;;  %v20670_v60 = vld [vmem:[#allocation13 + $0x788] sm:$0xff] }
 0x665   :  { %12928 = vmatpush.bf16.msrb.mxu0 %v20656_v17  ;;  %12942 = vmatpush.bf16.msrb.mxu1 %v20664_v63  ;;  %v10445_v17 = vmax.f32 %v10270_v45, 0.0  ;;  %v10412_v63 = vmax.f32 %v10212_v46, 0.0  ;;  %v9710_v21 = vadd.f32 %v22591_v6, %v9696_v12  ;;  %v22595_v4 = vld [vmem:[#allocation114_spill] sm:$0xff] }
 0x666   :  { %12900 = vmatpush.bf16.msra.mxu2 %v20640_v20  ;;  %v10410_v11 = vmax.f32 %v10100_v34, 0.0  ;;  %v10297_v23 = vpop.f32.mrf.mxu1  ;;  %v22597_v34 = vld [vmem:[#allocation118_spill] sm:$0xff] }
 0x667   :  { %12802 = vmatpush.bf16.msra.mxu3 %v20584_v27  ;;  %v10476_v53 = vpack.c.bf16 %v10444_v51, %v10412_v63  ;;  %v10477_v26 = vpack.c.bf16 %v10445_v17, %v10413_v57  ;;  %v10435_v3 = vmax.f32 %v9710_v21, 0.0  ;;  %v20618_v27 = vld [vmem:[#allocation13 + $0x5e8] sm:$0xff]  ;;  %v22596_v51 = vld [vmem:[#allocation115_spill] sm:$0xff] }
 0x668   :  { %v10474_v20 = vpack.c.bf16 %v10442_v30, %v10410_v11  ;;  %v20614_v17 = vld [vmem:[#allocation13 + $0x5c8] sm:$0xff]  ;;  %v20652_v21 = vld [vmem:[#allocation13 + $0x6f8] sm:$0xff]  ;;  %v20651_v30 = vld [vmem:[#allocation13 + $0x6f0] sm:$0xff] }
 0x669   :  { %12929 = vmatpush.bf16.msrb.mxu0 %v20655_v36  ;;  %12943 = vmatpush.bf16.msrb.mxu1 %v20663_v38  ;;  %v20637_v36 = vld [vmem:[#allocation13 + $0x680] sm:$0xff]  ;;  %v22592_v38 = vld [vmem:[#allocation107_spill] sm:$0xff]  ;;  %v10311_v46 = vpop.f32.mrf.mxu2  ;;  %v10325_v33 = vpop.f32.mrf.mxu3 }
 0x66a   :  { %12901 = vmatpush.bf16.msra.mxu2 %v20639_v7  ;;  %v10403_v47 = vmax.f32 %v22592_v38, 0.0  ;;  %v10282_v7 = vadd.f32 %v10281_v16, %v3438_v37  ;;  %v20647_v38 = vld [vmem:[#allocation13 + $0x6d0] sm:$0xff]  ;;  %v20646_v16 = vld [vmem:[#allocation13 + $0x6c8] sm:$0xff] }
 0x66b   :  { %12803 = vmatpush.bf16.msra.mxu3 %v20583_v48  ;;  %v20671_v48 = vld [vmem:[#allocation13 + $0x790] sm:$0xff] }
 0x66c   :  { %v10467_v55 = vpack.c.bf16 %v10435_v3, %v10403_v47  ;;  %v10296_v13 = vadd.f32 %v10295_v9, %v10282_v7  ;;  %v22598_v3 = vld [vmem:[#allocation119_spill] sm:$0xff] }
 0x66d   :  { %12930 = vmatpush.bf16.msrb.mxu0 %v20654_v19  ;;  %12944 = vmatpush.bf16.msrb.mxu1 %v20662_v8  ;;  %v10283_v19 = vpop.f32.mrf.mxu0  ;;  %v22593_v8 = vperm.slane %v21880_v31, 7 }
 0x66e   :  { %12902 = vmatpush.bf16.msra.mxu2 %v20638_v52  ;;  %v10284_v44 = vadd.f32 %v10283_v19, %v3438_v37  ;;  %v10310_v31 = vadd.f32 %v10309_v42, %v10296_v13  ;;  %v3439_v19 = vperm.slane %v22222_v50, 7  ;;  %v20680_v37 = vld [vmem:[#allocation13 + $0x7d8] sm:$0xff]  ;;  %v20677_v50 = vld [vmem:[#allocation13 + $0x7c0] sm:$0xff] }
 0x66f   :  { %12804 = vmatpush.bf16.msra.mxu3 %v20582_v1  ;;  %v9892_v45 = vadd.f32 %v22594_v22, %v22593_v8  ;;  %v20613_v1 = vld [vmem:[#allocation13 + $0x5c0] sm:$0xff]  ;;  %v20679_v8 = vld [vmem:[#allocation13 + $0x7d0] sm:$0xff] }
 0x670   :  { %v10298_v54 = vadd.f32 %v10297_v23, %v10284_v44  ;;  %v10324_v25 = vadd.f32 %v10323_v0, %v10310_v31  ;;  %v10351_v0 = vpop.f32.mrf.mxu1 }
 0x671   :  { %12931 = vmatpush.bf16.msrb.mxu0 %v20653_v2  ;;  %12945 = vmatpush.bf16.msrb.mxu1 %v20661_v59  ;;  %v9906_v2 = vadd.f32 %v22595_v4, %v9892_v45 }
 0x672   :  { %12903 = vmatpush.bf16.msra.mxu2 %v20637_v36  ;;  %v10312_v62 = vadd.f32 %v10311_v46, %v10298_v54  ;;  %v10414_v57 = vmax.f32 %v10324_v25, 0.0  ;;  %v20678_v46 = vld [vmem:[#allocation13 + $0x7c8] sm:$0xff] }
 0x673   :  { %12805 = vmatpush.bf16.msra.mxu3 %v20581_v18  ;;  %v9920_v59 = vadd.f32 %v22596_v51, %v9906_v2  ;;  %v20649_v18 = vld [vmem:[#allocation13 + $0x6e0] sm:$0xff] }
 0x674   :  { %12932 = vmatmul.bf16.vlgmr.msrb.gmra.mxu0 %v10476_v53  ;;  %12946 = vmatmul.bf16.vlgmr.msrb.gmra.mxu1 %v10477_v26  ;;  %v10326_v12 = vadd.f32 %v10325_v33, %v10312_v62  ;;  %v10407_v53 = vmax.f32 %v22597_v34, 0.0 }
 0x675   :  { %12904 = vmatmul.bf16.vlgmr.msra.gmra.mxu2 %v10474_v20  ;;  %v9934_v52 = vadd.f32 %v22087_v35, %v9920_v59  ;;  %v20650_v35 = vld [vmem:[#allocation13 + $0x6e8] sm:$0xff]  ;;  %v10337_v42 = vpop.f32.mrf.mxu0 }
 0x676   :  { %12952 = vmatpush.bf16.msrb.mxu2 %v20676_v61  ;;  %12806 = vmatmul.bf16.vlgmr.msra.gmra.mxu3 %v10467_v55  ;;  %v10446_v63 = vmax.f32 %v10326_v12, 0.0  ;;  %v20648_v61 = vld [vmem:[#allocation13 + $0x6d8] sm:$0xff]  ;;  %v20645_v55 = vld [vmem:[#allocation13 + $0x6c0] sm:$0xff] }
 0x677   :  { %12854 = vmatpush.bf16.msrb.mxu3 %v20620_v32  ;;  %v10439_v6 = vmax.f32 %v9934_v52, 0.0  ;;  %v22599_v32 = vperm.slane %v22598_v3, 3 }
 0x678   :  { %v10478_v26 = vpack.c.bf16 %v10446_v63, %v10414_v57  ;;  %v10353_v44 = vpop.f32.mrf.mxu1 }
 0x679   :  { %v10471_v36 = vpack.c.bf16 %v10439_v6, %v10407_v53  ;;  %v10116_v11 = vadd.f32 %v22215_v29, %v22599_v32  ;;  %v20683_v29 = vld [vmem:[#allocation13 + $0x7f0] sm:$0xff] }
 0x67a   :  { %12953 = vmatpush.bf16.msrb.mxu2 %v20675_v14 }
 0x67b   :  { %12855 = vmatpush.bf16.msrb.mxu3 %v20619_v24  ;;  %v10130_v47 = vadd.f32 %v22218_v56, %v10116_v11  ;;  %v20682_v56 = vld [vmem:[#allocation13 + $0x7e8] sm:$0xff] }
 0x67d   :  { %v10144_v20 = vadd.f32 %v22220_v49, %v10130_v47  ;;  %v10365_v49 = vpop.f32.mrf.mxu2 }
 0x67e   :  { %12954 = vmatpush.bf16.msrb.mxu2 %v20674_v15  ;;  %v20684_v15 = vld [vmem:[#allocation13 + $0x7f8] sm:$0xff] }
 0x67f   :  { %12856 = vmatpush.bf16.msrb.mxu3 %v20618_v27  ;;  %v10158_v14 = vadd.f32 %v22228_v5, %v10144_v20  ;;  %v10411_v27 = vmax.f32 %v22157_v43, 0.0  ;;  %v10339_v5 = vpop.f32.mrf.mxu0  ;;  %v10338_v43 = vadd.f32 %v10337_v42, %v3439_v19 }
 0x680   :  { %v12555_v13 = vpop.f32.mrf.mxu1 }
 0x681   :  { %v10443_v24 = vmax.f32 %v10158_v14, 0.0  ;;  %v10352_v7 = vadd.f32 %v10351_v0, %v10338_v43 }
 0x682   :  { %12955 = vmatpush.bf16.msrb.mxu2 %v20673_v40  ;;  %v10379_v40 = vpop.f32.mrf.mxu3 }
 0x683   :  { %12857 = vmatpush.bf16.msrb.mxu3 %v20617_v28  ;;  %v10475_v9 = vpack.c.bf16 %v10443_v24, %v10411_v27  ;;  %v20681_v28 = vld [vmem:[#allocation13 + $0x7e0] sm:$0xff] }
 0x686   :  { %12956 = vmatpush.bf16.msrb.mxu2 %v20672_v58  ;;  %v10340_v58 = vadd.f32 %v10339_v5, %v3439_v19 }
 0x687   :  { %12858 = vmatpush.bf16.msrb.mxu3 %v20616_v39  ;;  %v10367_v39 = vpop.f32.mrf.mxu2  ;;  %v12541_v4 = vpop.f32.mrf.mxu0 }
 0x688   :  { %v10354_v22 = vadd.f32 %v10353_v44, %v10340_v58  ;;  %v12557_v31 = vpop.f32.mrf.mxu1 }
 0x68a   :  { %12957 = vmatpush.bf16.msrb.mxu2 %v20671_v48  ;;  %v10381_v45 = vpop.f32.mrf.mxu3  ;;  %v10368_v23 = vadd.f32 %v10367_v39, %v10354_v22  ;;  %v10366_v48 = vadd.f32 %v10365_v49, %v10352_v7 }
 0x68b   :  { %12859 = vmatpush.bf16.msrb.mxu3 %v20615_v41 }
 0x68c   :  { %v10382_v54 = vadd.f32 %v10381_v45, %v10368_v23  ;;  %v10380_v41 = vadd.f32 %v10379_v40, %v10366_v48 }
 0x68e   :  { %12958 = vmatpush.bf16.msrb.mxu2 %v20670_v60  ;;  %v10447_v2 = vmax.f32 %v10382_v54, 0.0  ;;  %v10415_v33 = vmax.f32 %v10380_v41, 0.0 }
 0x68f   :  { %12860 = vmatpush.bf16.msrb.mxu3 %v20614_v17  ;;  %v12569_v51 = vpop.f32.mrf.mxu2  ;;  %v12543_v59 = vpop.f32.mrf.mxu0 }
 0x690   :  { %v10479_v62 = vpack.c.bf16 %v10447_v2, %v10415_v33  ;;  %v12611_v52 = vpop.f32.mrf.mxu1 }
 0x692   :  { %12959 = vmatpush.bf16.msrb.mxu2 %v20669_v10  ;;  %v12583_v60 = vpop.f32.mrf.mxu3 }
 0x693   :  { %12861 = vmatpush.bf16.msrb.mxu3 %v20613_v1  ;;  %v20708_v1 = vld [vmem:[#allocation14] ss:$0 sm:$0xff] }
 0x694   :  { %v12542_v57 = vadd.f32 %v20708_v1, %v12541_v4 }
 0x695   :  { %12960 = vmatmul.bf16.vlgmr.msrb.gmra.mxu2 %v10478_v26 }
 0x696   :  { %12862 = vmatmul.bf16.vlgmr.msrb.gmra.mxu3 %v10471_v36  ;;  %v12556_v26 = vadd.f32 %v12555_v13, %v12542_v57 }
 0x697   :  { %12910 = vmatpush.bf16.msra.mxu3 %v20652_v21  ;;  %v12597_v12 = vpop.f32.mrf.mxu0  ;;  %v12571_v17 = vpop.f32.mrf.mxu2 }
 0x698   :  { %v12613_v21 = vpop.f32.mrf.mxu1  ;;  %v12570_v36 = vadd.f32 %v12569_v51, %v12556_v26 }
 0x69a   :  { %v12585_v25 = vpop.f32.mrf.mxu3 }
 0x69b   :  { %12911 = vmatpush.bf16.msra.mxu3 %v20651_v30 }
 0x69f   :  { %12912 = vmatpush.bf16.msra.mxu3 %v20650_v35  ;;  %v12625_v10 = vpop.f32.mrf.mxu2  ;;  %v12599_v63 = vpop.f32.mrf.mxu0 }
 0x6a0   :  { %v12667_v30 = vpop.f32.mrf.mxu1 }
 0x6a2   :  { %v12639_v6 = vpop.f32.mrf.mxu3 }
 0x6a3   :  { %12913 = vmatpush.bf16.msra.mxu3 %v20649_v18  ;;  %v12544_v18 = vadd.f32 %v20708_v1, %v12543_v59 }
 0x6a5   :  { %v12558_v32 = vadd.f32 %v12557_v31, %v12544_v18 }
 0x6a7   :  { %12914 = vmatpush.bf16.msra.mxu3 %v20648_v61  ;;  %v12653_v34 = vpop.f32.mrf.mxu0  ;;  %v12627_v53 = vpop.f32.mrf.mxu2  ;;  %v12584_v61 = vadd.f32 %v12583_v60, %v12570_v36  ;;  %v12572_v47 = vadd.f32 %v12571_v17, %v12558_v32 }
 0x6a9   :  { %v12598_v11 = vadd.f32 %v12597_v12, %v12584_v61 }
 0x6aa   :  { %v12641_v35 = vpop.f32.mrf.mxu3 }
 0x6ab   :  { %12915 = vmatpush.bf16.msra.mxu3 %v20647_v38  ;;  %v12612_v14 = vadd.f32 %v12611_v52, %v12598_v11 }
 0x6af   :  { %12916 = vmatpush.bf16.msra.mxu3 %v20646_v16  ;;  %v12681_v3 = vpop.f32.mrf.mxu2  ;;  %v12655_v38 = vpop.f32.mrf.mxu0  ;;  %v12586_v16 = vadd.f32 %v12585_v25, %v12572_v47 }
 0x6b1   :  { %v12600_v24 = vadd.f32 %v12599_v63, %v12586_v16 }
 0x6b3   :  { %12917 = vmatpush.bf16.msra.mxu3 %v20645_v55  ;;  %v12669_v55 = vpop.f32.mrf.mxu1 }
 0x6b6   :  { %12918 = vmatmul.bf16.vlgmr.msra.gmra.mxu3 %v10475_v9 }
 0x6b7   :  { %12966 = vmatpush.bf16.msrb.mxu3 %v20684_v15  ;;  %v12626_v15 = vadd.f32 %v12625_v10, %v12612_v14  ;;  %v12709_v27 = vpop.f32.mrf.mxu0  ;;  %v12683_v9 = vpop.f32.mrf.mxu2 }
 0x6b9   :  { %v12695_v20 = vpop.f32.mrf.mxu3  ;;  %v12640_v42 = vadd.f32 %v12639_v6, %v12626_v15 }
 0x6bb   :  { %12967 = vmatpush.bf16.msrb.mxu3 %v20683_v29  ;;  %v12614_v29 = vadd.f32 %v12613_v21, %v12600_v24  ;;  %v12654_v49 = vadd.f32 %v12653_v34, %v12640_v42 }
 0x6bd   :  { %v12628_v40 = vadd.f32 %v12627_v53, %v12614_v29  ;;  %v12668_v19 = vadd.f32 %v12667_v30, %v12654_v49 }
 0x6bf   :  { %12968 = vmatpush.bf16.msrb.mxu3 %v20682_v56  ;;  %v12723_v56 = vpop.f32.mrf.mxu1  ;;  %v12642_v5 = vadd.f32 %v12641_v35, %v12628_v40  ;;  %v12682_v44 = vadd.f32 %v12681_v3, %v12668_v19 }
 0x6c1   :  { %v12697_v0 = vpop.f32.mrf.mxu3  ;;  %v12656_v43 = vadd.f32 %v12655_v38, %v12642_v5 }
 0x6c3   :  { %12969 = vmatpush.bf16.msrb.mxu3 %v20681_v28  ;;  %v12737_v28 = vpop.f32.mrf.mxu2  ;;  %v12670_v22 = vadd.f32 %v12669_v55, %v12656_v43 }
 0x6c7   :  { %12970 = vmatpush.bf16.msrb.mxu3 %v20680_v37  ;;  %v12711_v37 = vpop.f32.mrf.mxu0  ;;  %v12725_v39 = vpop.f32.mrf.mxu1 }
 0x6cb   :  { %12971 = vmatpush.bf16.msrb.mxu3 %v20679_v8  ;;  %v12696_v8 = vadd.f32 %v12695_v20, %v12682_v44  ;;  %v12739_v7 = vpop.f32.mrf.mxu2 }
 0x6cd   :  { %v12710_v23 = vadd.f32 %v12709_v27, %v12696_v8 }
 0x6cf   :  { %12972 = vmatpush.bf16.msrb.mxu3 %v20678_v46  ;;  %v12765_v45 = vpop.f32.mrf.mxu0  ;;  %v12684_v46 = vadd.f32 %v12683_v9, %v12670_v22  ;;  %v12779_v48 = vpop.f32.mrf.mxu1  ;;  %v12724_v4 = vadd.f32 %v12723_v56, %v12710_v23 }
 0x6d1   :  { %v12698_v41 = vadd.f32 %v12697_v0, %v12684_v46  ;;  %v12738_v33 = vadd.f32 %v12737_v28, %v12724_v4 }
 0x6d3   :  { %12973 = vmatpush.bf16.msrb.mxu3 %v20677_v50  ;;  %v12793_v50 = vpop.f32.mrf.mxu2  ;;  %v12712_v2 = vadd.f32 %v12711_v37, %v12698_v41 }
 0x6d5   :  { %v12726_v59 = vadd.f32 %v12725_v39, %v12712_v2 }
 0x6d6   :  { %12974 = vmatmul.bf16.vlgmr.msrb.gmra.mxu3 %v10479_v62 }
 0x6d7   :  { %v12767_v13 = vpop.f32.mrf.mxu0  ;;  %v12781_v60 = vpop.f32.mrf.mxu1  ;;  %v12740_v12 = vadd.f32 %v12739_v7, %v12726_v59 }
 0x6d9   :  { %v12751_v58 = vpop.f32.mrf.mxu3 }
 0x6da   :  { %v12752_v62 = vadd.f32 %v12751_v58, %v12738_v33 }
 0x6db   :  { %v12795_v52 = vpop.f32.mrf.mxu2 }
 0x6dc   :  { %v12766_v31 = vadd.f32 %v12765_v45, %v12752_v62 }
 0x6de   :  { %v12780_v10 = vadd.f32 %v12779_v48, %v12766_v31 }
 0x6df   :  { %v12821_v17 = vpop.f32.mrf.mxu0  ;;  %v12835_v63 = vpop.f32.mrf.mxu1 }
 0x6e0   :  { %v12794_v21 = vadd.f32 %v12793_v50, %v12780_v10 }
 0x6e1   :  { %v12753_v54 = vpop.f32.mrf.mxu3 }
 0x6e2   :  { %v12754_v25 = vadd.f32 %v12753_v54, %v12740_v12 }
 0x6e3   :  { %v12849_v34 = vpop.f32.mrf.mxu2 }
 0x6e4   :  { %v12768_v6 = vadd.f32 %v12767_v13, %v12754_v25 }
 0x6e6   :  { %v12782_v53 = vadd.f32 %v12781_v60, %v12768_v6 }
 0x6e7   :  { %v12823_v26 = vpop.f32.mrf.mxu0  ;;  %v12837_v18 = vpop.f32.mrf.mxu1 }
 0x6e8   :  { %v12796_v35 = vadd.f32 %v12795_v52, %v12782_v53 }
 0x6eb   :  { %v12851_v11 = vpop.f32.mrf.mxu2 }
 0x6ef   :  { %v12877_v32 = vpop.f32.mrf.mxu0  ;;  %v12891_v16 = vpop.f32.mrf.mxu1 }
 0x6f7   :  { %v12879_v9 = vpop.f32.mrf.mxu0  ;;  %v12893_v0 = vpop.f32.mrf.mxu1 }
 0x6f8   :  { %v12905_v15 = vpop.f32.mrf.mxu2 }
 0x6f9   :  { %v12807_v51 = vpop.f32.mrf.mxu3 }
 0x6fa   :  { %v12808_v57 = vadd.f32 %v12807_v51, %v12794_v21 }
 0x6fc   :  { %v12822_v36 = vadd.f32 %v12821_v17, %v12808_v57 }
 0x6fe   :  { %v12836_v3 = vadd.f32 %v12835_v63, %v12822_v36 }
 0x6ff   :  { %v12933_v5 = vpop.f32.mrf.mxu0  ;;  %v12947_v43 = vpop.f32.mrf.mxu1 }
 0x700   :  { %v12850_v47 = vadd.f32 %v12849_v34, %v12836_v3  ;;  %v12907_v19 = vpop.f32.mrf.mxu2 }
 0x701   :  { %v12809_v1 = vpop.f32.mrf.mxu3 }
 0x702   :  { %v12810_v61 = vadd.f32 %v12809_v1, %v12796_v35 }
 0x704   :  { %v12824_v38 = vadd.f32 %v12823_v26, %v12810_v61 }
 0x706   :  { %v12838_v55 = vadd.f32 %v12837_v18, %v12824_v38 }
 0x707   :  { %v12935_v7 = vpop.f32.mrf.mxu0  ;;  %v12949_v41 = vpop.f32.mrf.mxu1 }
 0x708   :  { %v12852_v27 = vadd.f32 %v12851_v11, %v12838_v55 }
 0x718   :  { %v12961_v45 = vpop.f32.mrf.mxu2 }
 0x719   :  { %v12863_v30 = vpop.f32.mrf.mxu3 }
 0x71a   :  { %v12864_v20 = vadd.f32 %v12863_v30, %v12850_v47 }
 0x71c   :  { %v12878_v24 = vadd.f32 %v12877_v32, %v12864_v20 }
 0x71e   :  { %v12892_v29 = vadd.f32 %v12891_v16, %v12878_v24 }
 0x720   :  { %v12906_v40 = vadd.f32 %v12905_v15, %v12892_v29  ;;  %v12963_v50 = vpop.f32.mrf.mxu2 }
 0x721   :  { %v12865_v14 = vpop.f32.mrf.mxu3 }
 0x722   :  { %v12866_v42 = vadd.f32 %v12865_v14, %v12852_v27 }
 0x724   :  { %v12880_v49 = vadd.f32 %v12879_v9, %v12866_v42 }
 0x726   :  { %v12894_v37 = vadd.f32 %v12893_v0, %v12880_v49 }
 0x728   :  { %v12908_v39 = vadd.f32 %v12907_v19, %v12894_v37 }
 0x739   :  { %v12919_v56 = vpop.f32.mrf.mxu3 }
 0x73a   :  { %v12920_v28 = vadd.f32 %v12919_v56, %v12906_v40 }
 0x73c   :  { %v12934_v58 = vadd.f32 %v12933_v5, %v12920_v28 }
 0x73e   :  { %v12948_v22 = vadd.f32 %v12947_v43, %v12934_v58 }
 0x740   :  { %v12962_v46 = vadd.f32 %v12961_v45, %v12948_v22 }
 0x741   :  { %v12921_v44 = vpop.f32.mrf.mxu3 }
 0x742   :  { %v12922_v8 = vadd.f32 %v12921_v44, %v12908_v39 }
 0x744   :  { %v12936_v23 = vadd.f32 %v12935_v7, %v12922_v8 }
 0x746   :  { %v12950_v4 = vadd.f32 %v12949_v41, %v12936_v23 }
 0x748   :  { %v12964_v2 = vadd.f32 %v12963_v50, %v12950_v4 }
 0x759   :  { %v12975_v48 = vpop.f32.mrf.mxu3 }
 0x75a   :  { %v12976_v54 = vadd.f32 %v12975_v48, %v12962_v46 }
 0x75c   :  { %12980 = vst [vmem:[#allocation16] sm:$0xff] %v12976_v54 }
 0x761   :  { %v12977_v33 = vpop.f32.mrf.mxu3 }
 0x762   :  { %v12978_v13 = vadd.f32 %v12977_v33, %v12964_v2 }
 0x764   :  { %12981 = vst [vmem:[#allocation16 + $0x8] sm:$0xff] %v12978_v13 }
 0x765   :  { %12994 = dma.vmem_to_hbm [thread:$0]  %s12987_s30, 256, %s12989_s29, [#allocation4], %s20951_s17, %s20951_s17, %s20960_s10  }
 0x766   :  { %20940 = dma.done.wait [#allocation4], 256  }
 0x767   :  { %20941 = vsyncadd [#allocation4], 4294967040 }
 0x768   :  { %12999 = vsyncpa [#allocation3], 1 }
 0x769   :  { %13000 = vsyncpa [#allocation6], 1 }
 0x76a   :  { %13001 = vsyncpa [#allocation9], 1 }
 0x76b   :  { %13002 = vsyncpa [#allocation12], 1 }
 0x76c   :  { %13003 = vsyncpa [#allocation15], 1 }
 0x76d   :  { %13004 = vsyncpa [#allocation4], 1 }

</bundles_post_ra>
